<compile_context>
chip_gen: v5e
topology: v5e:2x2
jax: 0.10.0
libtpu: 0.0.40
codegen_flags: <defaults>
</compile_context>

<pallas_src>
import functools
import math

import numpy as np
import jax
import jax.numpy as jnp
from jax.experimental import pallas as pl
from jax.experimental.pallas import tpu as pltpu

# ----------------------------- configuration -------------------------------
IMG_SIZE = 32
PATCH = 8
IN_CHANS = 3
EMBED_DIM = 32
DEPTH = 2
NUM_HEADS = 4
DEC_EMBED_DIM = 32
DEC_DEPTH = 2
DEC_NUM_HEADS = 4
MLP_RATIO = 4.0
GRID_SIZE = IMG_SIZE // PATCH          # 4
NUM_PATCHES = GRID_SIZE * GRID_SIZE    # 16
LN_EPS = 1e-5
NEG_INF = -1e30


# ------------------------- in-kernel math helpers ---------------------------
def _layernorm(x, g, b, eps):
    mean = jnp.mean(x, axis=-1, keepdims=True)
    xc = x - mean
    var = jnp.mean(xc * xc, axis=-1, keepdims=True)
    return xc * jax.lax.rsqrt(var + eps) * g + b


def _erf(z):
    # Abramowitz & Stegun 7.1.26 (max abs err ~1.5e-7, i.e. f32 precision).
    # TODO(synk): lax.erf has no Mosaic lowering; this polynomial keeps torch's
    #             exact (erf) GELU semantics to within f32 rounding.
    a1, a2, a3, a4, a5 = (0.254829592, -0.284496736, 1.421413741,
                          -1.453152027, 1.061405429)
    az = jnp.abs(z)
    t = 1.0 / (1.0 + 0.3275911 * az)
    poly = ((((a5 * t + a4) * t + a3) * t + a2) * t + a1) * t
    e = 1.0 - poly * jnp.exp(-az * az)
    return jnp.where(z >= 0, e, -e)


def _gelu(x):
    return 0.5 * x * (1.0 + _erf(x * 0.7071067811865476))


def _transformer_blocks(x, blk, qkv_s, attn_s, attn_bias, *,
                        depth, num_heads, dim, eps, scale):
    """Runs `depth` pre-LN transformer blocks entirely VMEM/vreg-resident.

    x         : (M, dim) f32 value, M = batch * seq.
    blk       : tuple of 12 refs, each stacked along a leading `depth` axis.
    qkv_s     : VMEM scratch (M, 3*dim) f32.
    attn_s    : VMEM scratch (M, dim) f32.
    attn_bias : (M, M) additive bias; 0 inside a sample, -1e30 across samples
                (block-diagonal attention == per-sample attention).
    """
    (n1g, n1b, qkvw, qkvb, projw, projb,
     n2g, n2b, fc1w, fc1b, fc2w, fc2b) = blk
    hd = dim // num_heads
    for d in range(depth):                      # static unroll (depth is tiny)
        # ---------------- attention ----------------
        y = _layernorm(x, n1g[d], n1b[d], eps)
        qkv_s[...] = (jnp.dot(y, qkvw[d], preferred_element_type=jnp.float32)
                      + qkvb[d])
        for h in range(num_heads):              # static unroll over heads
            q = qkv_s[:, h * hd:(h + 1) * hd]
            k = qkv_s[:, dim + h * hd:dim + (h + 1) * hd]
            v = qkv_s[:, 2 * dim + h * hd:2 * dim + (h + 1) * hd]
            s = jax.lax.dot_general(q, k, (((1,), (1,)), ((), ())),
                                    preferred_element_type=jnp.float32) * scale
            s = s + attn_bias
            s = s - jnp.max(s, axis=-1, keepdims=True)
            p = jnp.exp(s)
            p = p * pl.reciprocal(jnp.sum(p, axis=-1, keepdims=True),
                                  approx=True)
            attn_s[:, h * hd:(h + 1) * hd] = jnp.dot(
                p, v, preferred_element_type=jnp.float32)
        x = x + (jnp.dot(attn_s[...], projw[d],
                         preferred_element_type=jnp.float32) + projb[d])
        # ---------------- MLP ----------------
        y = _layernorm(x, n2g[d], n2b[d], eps)
        hmid = _gelu(jnp.dot(y, fc1w[d], preferred_element_type=jnp.float32)
                     + fc1b[d])                 # hidden = 128 (lane dense)
        x = x + (jnp.dot(hmid, fc2w[d], preferred_element_type=jnp.float32)
                 + fc2b[d])
    return x


# ----------------------------- fused stage kernels ---------------------------
def _encoder_stage_kernel(xp_ref, pos_ref, bias_ref, pew_ref, peb_ref,
                          n1g, n1b, qkvw, qkvb, projw, projb,
                          n2g, n2b, fc1w, fc1b, fc2w, fc2b,
                          ng, nb, hw, hb,
                          o_ref, qkv_s, attn_s,
                          *, depth, num_heads, dim, eps, scale):
    # PatchEmbed (stride-p conv == per-patch linear) + positional embedding.
    x = (jnp.dot(xp_ref[...], pew_ref[...], preferred_element_type=jnp.float32)
         + peb_ref[...] + pos_ref[...])
    x = _transformer_blocks(
        x,
        (n1g, n1b, qkvw, qkvb, projw, projb, n2g, n2b, fc1w, fc1b, fc2w, fc2b),
        qkv_s, attn_s, bias_ref[...],
        depth=depth, num_heads=num_heads, dim=dim, eps=eps, scale=scale)
    # fused: final encoder norm + decoder_embed projection.
    y = _layernorm(x, ng[...], nb[...], eps)
    o_ref[...] = (jnp.dot(y, hw[...], preferred_element_type=jnp.float32)
                  + hb[...]).astype(o_ref.dtype)


def _decoder_stage_kernel(x_ref, bias_ref,
                          n1g, n1b, qkvw, qkvb, projw, projb,
                          n2g, n2b, fc1w, fc1b, fc2w, fc2b,
                          ng, nb, hw, hb,
                          o_ref, qkv_s, attn_s,
                          *, depth, num_heads, dim, eps, scale):
    x = x_ref[...].astype(jnp.float32)
    x = _transformer_blocks(
        x,
        (n1g, n1b, qkvw, qkvb, projw, projb, n2g, n2b, fc1w, fc1b, fc2w, fc2b),
        qkv_s, attn_s, bias_ref[...],
        depth=depth, num_heads=num_heads, dim=dim, eps=eps, scale=scale)
    # fused: decoder norm + decoder_pred head (192-wide lane-dense output).
    y = _layernorm(x, ng[...], nb[...], eps)
    o_ref[...] = (jnp.dot(y, hw[...], preferred_element_type=jnp.float32)
                  + hb[...]).astype(o_ref.dtype)


def _stage_call(kernel, inputs, M, dim, out_dim):
    return pl.pallas_call(
        kernel,
        out_shape=jax.ShapeDtypeStruct((M, out_dim), jnp.float32),
        scratch_shapes=[pltpu.VMEM((M, 3 * dim), jnp.float32),   # fused QKV
                        pltpu.VMEM((M, dim), jnp.float32)],      # attn output
    )(*inputs)


def encoder_stage(xp, pos, attn_bias, pe_w, pe_b, blk,
                  norm_g, norm_b, head_w, head_b, *, num_heads, eps=LN_EPS):
    M = xp.shape[0]
    dim = pe_w.shape[1]
    depth = blk['qkv_w'].shape[0]
    out_dim = head_w.shape[1]
    scale = (dim // num_heads) ** -0.5
    kernel = functools.partial(_encoder_stage_kernel, depth=depth,
                               num_heads=num_heads, dim=dim, eps=eps,
                               scale=scale)
    inputs = (xp, pos, attn_bias, pe_w, pe_b,
              blk['n1_g'], blk['n1_b'], blk['qkv_w'], blk['qkv_b'],
              blk['proj_w'], blk['proj_b'], blk['n2_g'], blk['n2_b'],
              blk['fc1_w'], blk['fc1_b'], blk['fc2_w'], blk['fc2_b'],
              norm_g, norm_b, head_w, head_b)
    return _stage_call(kernel, inputs, M, dim, out_dim)


def decoder_stage(x, attn_bias, blk, norm_g, norm_b, head_w, head_b,
                  *, num_heads, eps=LN_EPS):
    M, dim = x.shape
    depth = blk['qkv_w'].shape[0]
    out_dim = head_w.shape[1]
    scale = (dim // num_heads) ** -0.5
    kernel = functools.partial(_decoder_stage_kernel, depth=depth,
                               num_heads=num_heads, dim=dim, eps=eps,
                               scale=scale)
    inputs = (x, attn_bias,
              blk['n1_g'], blk['n1_b'], blk['qkv_w'], blk['qkv_b'],
              blk['proj_w'], blk['proj_b'], blk['n2_g'], blk['n2_b'],
              blk['fc1_w'], blk['fc1_b'], blk['fc2_w'], blk['fc2_b'],
              norm_g, norm_b, head_w, head_b)
    return _stage_call(kernel, inputs, M, dim, out_dim)


# ----------------------------- masked-MSE loss -------------------------------
def _masked_mse_kernel(pred_ref, tgt_ref, mask_ref, num_ref, den_ref):
    d = pred_ref[...] - tgt_ref[...]
    per_tok = jnp.mean(d * d, axis=-1, keepdims=True)   # (M, 1)
    m = mask_ref[...]                                    # (M, 1)
    num_ref[0, 0] = jnp.sum(per_tok * m)                 # scalars -> SMEM
    den_ref[0, 0] = jnp.sum(m)


def masked_mse_loss(pred2d, target2d, mask2d):
    num, den = pl.pallas_call(
        _masked_mse_kernel,
        out_shape=(jax.ShapeDtypeStruct((1, 1), jnp.float32),
                   jax.ShapeDtypeStruct((1, 1), jnp.float32)),
        out_specs=(pl.BlockSpec(memory_space=pltpu.MemorySpace.SMEM),
                   pl.BlockSpec(memory_space=pltpu.MemorySpace.SMEM)),
    )(pred2d, target2d, mask2d)
    return num[0, 0] / den[0, 0]


# ----------------------------- model glue (XLA) ------------------------------
def patchify_conv_order(imgs, p):
    """Matches Conv2d(k=p, stride=p) im2col: per-patch flatten order (C, p, p)."""
    N, C, H, W = imgs.shape
    h, w = H // p, W // p
    x = imgs.reshape(N, C, h, p, w, p)
    x = x.transpose(0, 2, 4, 1, 3, 5)      # N, h, w, C, p, p
    return x.reshape(N, h * w, C * p * p)


def patchify_target_order(imgs, p):
    """Matches MaskedAutoencoderViT.patchify: einsum 'nchpwq->nhwpqc'."""
    N, C, H, W = imgs.shape
    h, w = H // p, W // p
    x = imgs.reshape(N, C, h, p, w, p)
    x = x.transpose(0, 2, 4, 3, 5, 1)      # n, h, w, p, q, c
    return x.reshape(N, h * w, p * p * C)


def adaptive_random_masking_ids(mask_img, mask_ratio, key, L):
    # TODO(synk): torch uses torch.rand + (unstable) argsort; jax.random +
    #             stable argsort reproduces the same masking semantics.
    N = mask_img.shape[0]
    s = int(math.sqrt(L))
    H, W = mask_img.shape[2], mask_img.shape[3]
    fh, fw = H // s, W // s
    m = mask_img.reshape(N, 1, s, fh, s, fw).mean(axis=(3, 5))  # interpolate(area)
    m = jnp.where(m > 0, 1.0, m)
    m = m.reshape(N, L)
    len_keep = int(L * (1 - mask_ratio))
    noise = jax.random.uniform(key, (N, L), dtype=jnp.float32)
    noise = jnp.clip(noise + m, 0.0, 1.0)
    ids_shuffle = jnp.argsort(noise, axis=1)
    ids_restore = jnp.argsort(ids_shuffle, axis=1)
    ids_keep = ids_shuffle[:, :len_keep]
    mask_out = jnp.ones((N, L), jnp.float32).at[:, :len_keep].set(0.0)
    mask_out = jnp.take_along_axis(mask_out, ids_restore, axis=1)
    return ids_keep, ids_restore, mask_out


def block_diag_bias(batch, seq):
    """(batch*seq, batch*seq) additive attention bias: 0 within a sample,
    -1e30 across samples (trace-time numpy constant)."""
    m = np.full((batch * seq, batch * seq), NEG_INF, np.float32)
    for b in range(batch):
        m[b * seq:(b + 1) * seq, b * seq:(b + 1) * seq] = 0.0
    return jnp.asarray(m)


@functools.partial(jax.jit, static_argnames=("mask_ratio",))
def mae_forward(params, imgs, mask_img, key, mask_ratio=0.75):
    N = imgs.shape[0]
    L = NUM_PATCHES
    D = EMBED_DIM
    DD = DEC_EMBED_DIM
    len_keep = int(L * (1 - mask_ratio))

    # ----- random masking ids (value-independent, so computed up front) -----
    ids_keep, ids_restore, mask = adaptive_random_masking_ids(
        mask_img, mask_ratio, key, L)

    # ----- encoder stage (1 fused pallas_call) -------------------------------
    # gather-then-embed == embed-then-gather for a per-row linear + pos add,
    # so the patch embedding folds into the fused encoder kernel.
    patches = patchify_conv_order(imgs, PATCH)                        # (N,L,Cp^2)
    xp = jnp.take_along_axis(patches, ids_keep[:, :, None], axis=1)   # (N,keep,.)
    pos = jnp.broadcast_to(params['pos_embed'], (N, L, D))
    pos_keep = jnp.take_along_axis(pos, ids_keep[:, :, None], axis=1)
    latent = encoder_stage(
        xp.reshape(N * len_keep, -1), pos_keep.reshape(N * len_keep, D),
        block_diag_bias(N, len_keep),
        params['pe_w'], params['pe_b'], params['enc_blocks'],
        params['norm_g'], params['norm_b'], params['de_w'], params['de_b'],
        num_heads=NUM_HEADS)                                          # (N*keep,DD)

    # ----- token un-shuffle + mask tokens + decoder pos (glue gathers) -------
    x = latent.reshape(N, len_keep, DD)
    # reference keeps a legacy "+1" (CLS) mask token; it is never selected by
    # ids_restore, so the result is identical -- kept for fidelity.
    mask_tokens = jnp.broadcast_to(params['mask_token'],
                                   (N, L + 1 - len_keep, DD))
    x_ = jnp.concatenate([x, mask_tokens], axis=1)
    x_ = jnp.take_along_axis(x_, ids_restore[:, :, None], axis=1)
    x_ = x_ + params['dec_pos_embed']

    # ----- decoder stage (1 fused pallas_call) --------------------------------
    pred = decoder_stage(
        x_.reshape(N * L, DD), block_diag_bias(N, L),
        params['dec_blocks'], params['dnorm_g'], params['dnorm_b'],
        params['pred_w'], params['pred_b'],
        num_heads=DEC_NUM_HEADS)                                      # (N*L,p^2*C)

    # ----- loss (norm_pix_loss=False) -----------------------------------------
    target = patchify_target_order(imgs, PATCH).reshape(N * L, -1)
    loss = masked_mse_loss(pred, target, mask.reshape(N * L, 1))
    return loss, pred.reshape(N, L, -1), mask


# ----------------------------- parameter init -------------------------------
def get_2d_sincos_pos_embed(embed_dim, grid_size):
    def get_1d(ed, pos):
        omega = np.arange(ed // 2, dtype=np.float64)
        omega /= ed / 2.0
        omega = 1.0 / 10000 ** omega
        pos = pos.reshape(-1)
        out = np.einsum('m,d->md', pos, omega)
        return np.concatenate([np.sin(out), np.cos(out)], axis=1)

    grid_h = np.arange(grid_size, dtype=np.float32)
    grid_w = np.arange(grid_size, dtype=np.float32)
    grid = np.meshgrid(grid_w, grid_h)
    grid = np.stack(grid, axis=0).reshape([2, 1, grid_size, grid_size])
    emb_h = get_1d(embed_dim // 2, grid[0])
    emb_w = get_1d(embed_dim // 2, grid[1])
    return np.concatenate([emb_h, emb_w], axis=1).astype(np.float32)


def xavier_uniform(key, shape, fan_in, fan_out):
    bound = math.sqrt(6.0 / (fan_in + fan_out))
    return jax.random.uniform(key, shape, jnp.float32, -bound, bound)


def make_block_params(key, dim, mlp_ratio):
    hidden = int(dim * mlp_ratio)
    ks = jax.random.split(key, 4)
    return dict(
        n1_g=jnp.ones((1, dim), jnp.float32), n1_b=jnp.zeros((1, dim), jnp.float32),
        qkv_w=xavier_uniform(ks[0], (dim, 3 * dim), dim, 3 * dim),
        qkv_b=jnp.zeros((1, 3 * dim), jnp.float32),
        proj_w=xavier_uniform(ks[1], (dim, dim), dim, dim),
        proj_b=jnp.zeros((1, dim), jnp.float32),
        n2_g=jnp.ones((1, dim), jnp.float32), n2_b=jnp.zeros((1, dim), jnp.float32),
        fc1_w=xavier_uniform(ks[2], (dim, hidden), dim, hidden),
        fc1_b=jnp.zeros((1, hidden), jnp.float32),
        fc2_w=xavier_uniform(ks[3], (hidden, dim), hidden, dim),
        fc2_b=jnp.zeros((1, dim), jnp.float32),
    )


def stack_blocks(blocks):
    """Stack per-block params along a leading depth axis for the fused kernels."""
    return {k: jnp.stack([b[k] for b in blocks]) for k in blocks[0]}


def init_params(key):
    keys = jax.random.split(key, 8 + DEPTH + DEC_DEPTH)
    patch_dim = IN_CHANS * PATCH * PATCH
    pred_dim = PATCH * PATCH * IN_CHANS
    enc_blocks = [make_block_params(keys[1 + i], EMBED_DIM, MLP_RATIO)
                  for i in range(DEPTH)]
    dec_blocks = [make_block_params(keys[3 + DEPTH + i], DEC_EMBED_DIM, MLP_RATIO)
                  for i in range(DEC_DEPTH)]
    return dict(
        pe_w=xavier_uniform(keys[0], (patch_dim, EMBED_DIM), patch_dim, EMBED_DIM),
        pe_b=jnp.zeros((1, EMBED_DIM), jnp.float32),
        pos_embed=jnp.asarray(get_2d_sincos_pos_embed(EMBED_DIM, GRID_SIZE))[None],
        enc_blocks=stack_blocks(enc_blocks),
        norm_g=jnp.ones((1, EMBED_DIM), jnp.float32),
        norm_b=jnp.zeros((1, EMBED_DIM), jnp.float32),
        de_w=xavier_uniform(keys[1 + DEPTH], (EMBED_DIM, DEC_EMBED_DIM),
                            EMBED_DIM, DEC_EMBED_DIM),
        de_b=jnp.zeros((1, DEC_EMBED_DIM), jnp.float32),
        mask_token=0.02 * jax.random.normal(keys[2 + DEPTH],
                                            (1, 1, DEC_EMBED_DIM), jnp.float32),
        dec_pos_embed=jnp.asarray(get_2d_sincos_pos_embed(DEC_EMBED_DIM,
                                                          GRID_SIZE))[None],
        dec_blocks=stack_blocks(dec_blocks),
        dnorm_g=jnp.ones((1, DEC_EMBED_DIM), jnp.float32),
        dnorm_b=jnp.zeros((1, DEC_EMBED_DIM), jnp.float32),
        pred_w=xavier_uniform(keys[3 + DEPTH + DEC_DEPTH],
                              (DEC_EMBED_DIM, pred_dim), DEC_EMBED_DIM, pred_dim),
        pred_b=jnp.zeros((1, pred_dim), jnp.float32),
    )


# ----------------------------- main -----------------------------------------
if __name__ == "__main__":
    key = jax.random.PRNGKey(0)
    k_param, k_img, k_mask, k_noise = jax.random.split(key, 4)
    params = init_params(k_param)

    imgs = jax.random.normal(k_img, (2, IN_CHANS, IMG_SIZE, IMG_SIZE), jnp.float32)
    mask_img = (jax.random.uniform(k_mask, (2, 1, IMG_SIZE, IMG_SIZE)) > 0.5
                ).astype(jnp.float32)

    loss, pred, mask = mae_forward(params, imgs, mask_img, k_noise,
                                   mask_ratio=0.75)
    jax.block_until_ready((loss, pred, mask))

    assert pred.shape == (2, NUM_PATCHES, PATCH * PATCH * IN_CHANS)
    assert mask.shape == (2, NUM_PATCHES)
    assert jnp.isfinite(loss)
    print("KERNEL_OK")
</pallas_src>

<mosaic_0001>
module attributes {stable_mosaic.version = 11 : i64} {
  func.func @_encoder_stage_kernel(%arg0: memref<8x192xf32, #tpu.memory_space<vmem>>, %arg1: memref<8x32xf32, #tpu.memory_space<vmem>>, %arg2: memref<8x8xf32, #tpu.memory_space<vmem>>, %arg3: memref<192x32xf32, #tpu.memory_space<vmem>>, %arg4: memref<1x32xf32, #tpu.memory_space<vmem>>, %arg5: memref<2x1x32xf32, #tpu.memory_space<vmem>>, %arg6: memref<2x1x32xf32, #tpu.memory_space<vmem>>, %arg7: memref<2x32x96xf32, #tpu.memory_space<vmem>>, %arg8: memref<2x1x96xf32, #tpu.memory_space<vmem>>, %arg9: memref<2x32x32xf32, #tpu.memory_space<vmem>>, %arg10: memref<2x1x32xf32, #tpu.memory_space<vmem>>, %arg11: memref<2x1x32xf32, #tpu.memory_space<vmem>>, %arg12: memref<2x1x32xf32, #tpu.memory_space<vmem>>, %arg13: memref<2x32x128xf32, #tpu.memory_space<vmem>>, %arg14: memref<2x1x128xf32, #tpu.memory_space<vmem>>, %arg15: memref<2x128x32xf32, #tpu.memory_space<vmem>>, %arg16: memref<2x1x32xf32, #tpu.memory_space<vmem>>, %arg17: memref<1x32xf32, #tpu.memory_space<vmem>>, %arg18: memref<1x32xf32, #tpu.memory_space<vmem>>, %arg19: memref<32x32xf32, #tpu.memory_space<vmem>>, %arg20: memref<1x32xf32, #tpu.memory_space<vmem>>, %arg21: memref<8x32xf32, #tpu.memory_space<vmem>>, %arg22: memref<8x96xf32, #tpu.memory_space<vmem>>, %arg23: memref<8x32xf32, #tpu.memory_space<vmem>>) attributes {dimension_semantics = [], scalar_prefetch = 0 : i64, scratch_operands = 2 : i64, tpu.core_type = #tpu.core_type<tc>} {
    %c0 = arith.constant 0 : index
    %c0_0 = arith.constant 0 : index
    %0 = vector.load %arg0[%c0, %c0_0] : memref<8x192xf32, #tpu.memory_space<vmem>>, vector<8x192xf32>
    %c0_1 = arith.constant 0 : index
    %c0_2 = arith.constant 0 : index
    %1 = vector.load %arg3[%c0_1, %c0_2] : memref<192x32xf32, #tpu.memory_space<vmem>>, vector<192x32xf32>
    %cst = arith.constant dense<0.000000e+00> : vector<8x32xf32>
    %2 = tpu.matmul %0, %1, %cst {dimension_numbers = #tpu.dot_dimension_numbers<[1], [0], [0], [1], [0, 0, 1, 1], [], []>} : vector<8x192xf32>, vector<192x32xf32>, vector<8x32xf32> -> vector<8x32xf32>
    %c0_3 = arith.constant 0 : index
    %c0_4 = arith.constant 0 : index
    %3 = vector.load %arg4[%c0_3, %c0_4] : memref<1x32xf32, #tpu.memory_space<vmem>>, vector<1x32xf32>
    %4 = vector.broadcast %3 : vector<1x32xf32> to vector<8x32xf32>
    %5 = arith.addf %2, %4 : vector<8x32xf32>
    %c0_5 = arith.constant 0 : index
    %c0_6 = arith.constant 0 : index
    %6 = vector.load %arg1[%c0_5, %c0_6] : memref<8x32xf32, #tpu.memory_space<vmem>>, vector<8x32xf32>
    %7 = arith.addf %5, %6 : vector<8x32xf32>
    %c0_7 = arith.constant 0 : index
    %c0_8 = arith.constant 0 : index
    %8 = vector.load %arg2[%c0_7, %c0_8] : memref<8x8xf32, #tpu.memory_space<vmem>>, vector<8x8xf32>
    %c0_9 = arith.constant 0 : index
    %c0_10 = arith.constant 0 : index
    %c0_11 = arith.constant 0 : index
    %9 = vector.load %arg5[%c0_9, %c0_10, %c0_11] : memref<2x1x32xf32, #tpu.memory_space<vmem>>, vector<1x1x32xf32>
    %10 = vector.shape_cast %9 : vector<1x1x32xf32> to vector<1x32xf32>
    %c0_12 = arith.constant 0 : index
    %c0_13 = arith.constant 0 : index
    %c0_14 = arith.constant 0 : index
    %11 = vector.load %arg6[%c0_12, %c0_13, %c0_14] : memref<2x1x32xf32, #tpu.memory_space<vmem>>, vector<1x1x32xf32>
    %12 = vector.shape_cast %11 : vector<1x1x32xf32> to vector<1x32xf32>
    %cst_15 = arith.constant dense<0.000000e+00> : vector<8xf32>
    %13 = vector.multi_reduction <add>, %7, %cst_15 [1] : vector<8x32xf32> to vector<8xf32>
    %14 = vector.shape_cast %13 : vector<8xf32> to vector<8x1xf32>
    %cst_16 = arith.constant 3.200000e+01 : f32
    %15 = vector.broadcast %cst_16 : f32 to vector<8x1xf32>
    %16 = arith.divf %14, %15 : vector<8x1xf32>
    %17 = vector.broadcast %16 : vector<8x1xf32> to vector<8x32xf32>
    %18 = arith.subf %7, %17 : vector<8x32xf32>
    %19 = arith.mulf %18, %18 : vector<8x32xf32>
    %cst_17 = arith.constant dense<0.000000e+00> : vector<8xf32>
    %20 = vector.multi_reduction <add>, %19, %cst_17 [1] : vector<8x32xf32> to vector<8xf32>
    %21 = vector.shape_cast %20 : vector<8xf32> to vector<8x1xf32>
    %cst_18 = arith.constant 3.200000e+01 : f32
    %22 = vector.broadcast %cst_18 : f32 to vector<8x1xf32>
    %23 = arith.divf %21, %22 : vector<8x1xf32>
    %cst_19 = arith.constant 9.99999974E-6 : f32
    %24 = vector.broadcast %cst_19 : f32 to vector<8x1xf32>
    %25 = arith.addf %23, %24 : vector<8x1xf32>
    %26 = math.rsqrt %25 : vector<8x1xf32>
    %27 = vector.broadcast %26 : vector<8x1xf32> to vector<8x32xf32>
    %28 = arith.mulf %18, %27 : vector<8x32xf32>
    %29 = vector.broadcast %10 : vector<1x32xf32> to vector<8x32xf32>
    %30 = arith.mulf %28, %29 : vector<8x32xf32>
    %31 = vector.broadcast %12 : vector<1x32xf32> to vector<8x32xf32>
    %32 = arith.addf %30, %31 : vector<8x32xf32>
    %c0_20 = arith.constant 0 : index
    %c0_21 = arith.constant 0 : index
    %c0_22 = arith.constant 0 : index
    %33 = vector.load %arg7[%c0_20, %c0_21, %c0_22] : memref<2x32x96xf32, #tpu.memory_space<vmem>>, vector<1x32x96xf32>
    %34 = vector.shape_cast %33 : vector<1x32x96xf32> to vector<32x96xf32>
    %cst_23 = arith.constant dense<0.000000e+00> : vector<8x96xf32>
    %35 = tpu.matmul %32, %34, %cst_23 {dimension_numbers = #tpu.dot_dimension_numbers<[1], [0], [0], [1], [0, 0, 1, 1], [], []>} : vector<8x32xf32>, vector<32x96xf32>, vector<8x96xf32> -> vector<8x96xf32>
    %c0_24 = arith.constant 0 : index
    %c0_25 = arith.constant 0 : index
    %c0_26 = arith.constant 0 : index
    %36 = vector.load %arg8[%c0_24, %c0_25, %c0_26] : memref<2x1x96xf32, #tpu.memory_space<vmem>>, vector<1x1x96xf32>
    %37 = vector.shape_cast %36 : vector<1x1x96xf32> to vector<1x96xf32>
    %38 = vector.broadcast %37 : vector<1x96xf32> to vector<8x96xf32>
    %39 = arith.addf %35, %38 : vector<8x96xf32>
    %c0_27 = arith.constant 0 : index
    %c0_28 = arith.constant 0 : index
    %40 = vector.load %arg22[%c0_27, %c0_28] : memref<8x96xf32, #tpu.memory_space<vmem>>, vector<8x96xf32>
    tpu.vector_store %arg22[%c0_27, %c0_28], %39 {strides = array<i32>} : memref<8x96xf32, #tpu.memory_space<vmem>>, vector<8x96xf32>,
    %c0_29 = arith.constant 0 : index
    %c0_30 = arith.constant 0 : index
    %41 = vector.load %arg22[%c0_29, %c0_30] : memref<8x96xf32, #tpu.memory_space<vmem>>, vector<8x8xf32>
    %c0_31 = arith.constant 0 : index
    %c32 = arith.constant 32 : index
    %42 = vector.load %arg22[%c0_31, %c32] : memref<8x96xf32, #tpu.memory_space<vmem>>, vector<8x8xf32>
    %c0_32 = arith.constant 0 : index
    %c64 = arith.constant 64 : index
    %43 = vector.load %arg22[%c0_32, %c64] : memref<8x96xf32, #tpu.memory_space<vmem>>, vector<8x8xf32>
    %cst_33 = arith.constant dense<0.000000e+00> : vector<8x8xf32>
    %44 = tpu.matmul %41, %42, %cst_33 {dimension_numbers = #tpu.dot_dimension_numbers<[1], [1], [0], [0], [0, 0, 1, 0], [], []>} : vector<8x8xf32>, vector<8x8xf32>, vector<8x8xf32> -> vector<8x8xf32>
    %cst_34 = arith.constant 0.353553385 : f32
    %45 = vector.broadcast %cst_34 : f32 to vector<8x8xf32>
    %46 = arith.mulf %44, %45 : vector<8x8xf32>
    %47 = arith.addf %46, %8 : vector<8x8xf32>
    %cst_35 = arith.constant dense<0xFF800000> : vector<8xf32>
    %48 = vector.multi_reduction <maximumf>, %47, %cst_35 [1] : vector<8x8xf32> to vector<8xf32>
    %49 = vector.shape_cast %48 : vector<8xf32> to vector<8x1xf32>
    %50 = vector.broadcast %49 : vector<8x1xf32> to vector<8x8xf32>
    %51 = arith.subf %47, %50 : vector<8x8xf32>
    %52 = math.exp %51 : vector<8x8xf32>
    %cst_36 = arith.constant dense<0.000000e+00> : vector<8xf32>
    %53 = vector.multi_reduction <add>, %52, %cst_36 [1] : vector<8x8xf32> to vector<8xf32>
    %54 = vector.shape_cast %53 : vector<8xf32> to vector<8x1xf32>
    %55 = tpu.reciprocal %54 {approx = true} : vector<8x1xf32> -> vector<8x1xf32>
    %56 = vector.broadcast %55 : vector<8x1xf32> to vector<8x8xf32>
    %57 = arith.mulf %52, %56 : vector<8x8xf32>
    %cst_37 = arith.constant dense<0.000000e+00> : vector<8x8xf32>
    %58 = tpu.matmul %57, %43, %cst_37 {dimension_numbers = #tpu.dot_dimension_numbers<[1], [0], [0], [1], [0, 0, 1, 1], [], []>} : vector<8x8xf32>, vector<8x8xf32>, vector<8x8xf32> -> vector<8x8xf32>
    %c0_38 = arith.constant 0 : index
    %c0_39 = arith.constant 0 : index
    %59 = vector.load %arg23[%c0_38, %c0_39] : memref<8x32xf32, #tpu.memory_space<vmem>>, vector<8x8xf32>
    tpu.vector_store %arg23[%c0_38, %c0_39], %58 {strides = array<i32>} : memref<8x32xf32, #tpu.memory_space<vmem>>, vector<8x8xf32>,
    %c0_40 = arith.constant 0 : index
    %c8 = arith.constant 8 : index
    %60 = vector.load %arg22[%c0_40, %c8] : memref<8x96xf32, #tpu.memory_space<vmem>>, vector<8x8xf32>
    %c0_41 = arith.constant 0 : index
    %c40 = arith.constant 40 : index
    %61 = vector.load %arg22[%c0_41, %c40] : memref<8x96xf32, #tpu.memory_space<vmem>>, vector<8x8xf32>
    %c0_42 = arith.constant 0 : index
    %c72 = arith.constant 72 : index
    %62 = vector.load %arg22[%c0_42, %c72] : memref<8x96xf32, #tpu.memory_space<vmem>>, vector<8x8xf32>
    %cst_43 = arith.constant dense<0.000000e+00> : vector<8x8xf32>
    %63 = tpu.matmul %60, %61, %cst_43 {dimension_numbers = #tpu.dot_dimension_numbers<[1], [1], [0], [0], [0, 0, 1, 0], [], []>} : vector<8x8xf32>, vector<8x8xf32>, vector<8x8xf32> -> vector<8x8xf32>
    %cst_44 = arith.constant 0.353553385 : f32
    %64 = vector.broadcast %cst_44 : f32 to vector<8x8xf32>
    %65 = arith.mulf %63, %64 : vector<8x8xf32>
    %66 = arith.addf %65, %8 : vector<8x8xf32>
    %cst_45 = arith.constant dense<0xFF800000> : vector<8xf32>
    %67 = vector.multi_reduction <maximumf>, %66, %cst_45 [1] : vector<8x8xf32> to vector<8xf32>
    %68 = vector.shape_cast %67 : vector<8xf32> to vector<8x1xf32>
    %69 = vector.broadcast %68 : vector<8x1xf32> to vector<8x8xf32>
    %70 = arith.subf %66, %69 : vector<8x8xf32>
    %71 = math.exp %70 : vector<8x8xf32>
    %cst_46 = arith.constant dense<0.000000e+00> : vector<8xf32>
    %72 = vector.multi_reduction <add>, %71, %cst_46 [1] : vector<8x8xf32> to vector<8xf32>
    %73 = vector.shape_cast %72 : vector<8xf32> to vector<8x1xf32>
    %74 = tpu.reciprocal %73 {approx = true} : vector<8x1xf32> -> vector<8x1xf32>
    %75 = vector.broadcast %74 : vector<8x1xf32> to vector<8x8xf32>
    %76 = arith.mulf %71, %75 : vector<8x8xf32>
    %cst_47 = arith.constant dense<0.000000e+00> : vector<8x8xf32>
    %77 = tpu.matmul %76, %62, %cst_47 {dimension_numbers = #tpu.dot_dimension_numbers<[1], [0], [0], [1], [0, 0, 1, 1], [], []>} : vector<8x8xf32>, vector<8x8xf32>, vector<8x8xf32> -> vector<8x8xf32>
    %c0_48 = arith.constant 0 : index
    %c8_49 = arith.constant 8 : index
    %78 = vector.load %arg23[%c0_48, %c8_49] : memref<8x32xf32, #tpu.memory_space<vmem>>, vector<8x8xf32>
    tpu.vector_store %arg23[%c0_48, %c8_49], %77 {strides = array<i32>} : memref<8x32xf32, #tpu.memory_space<vmem>>, vector<8x8xf32>,
    %c0_50 = arith.constant 0 : index
    %c16 = arith.constant 16 : index
    %79 = vector.load %arg22[%c0_50, %c16] : memref<8x96xf32, #tpu.memory_space<vmem>>, vector<8x8xf32>
    %c0_51 = arith.constant 0 : index
    %c48 = arith.constant 48 : index
    %80 = vector.load %arg22[%c0_51, %c48] : memref<8x96xf32, #tpu.memory_space<vmem>>, vector<8x8xf32>
    %c0_52 = arith.constant 0 : index
    %c80 = arith.constant 80 : index
    %81 = vector.load %arg22[%c0_52, %c80] : memref<8x96xf32, #tpu.memory_space<vmem>>, vector<8x8xf32>
    %cst_53 = arith.constant dense<0.000000e+00> : vector<8x8xf32>
    %82 = tpu.matmul %79, %80, %cst_53 {dimension_numbers = #tpu.dot_dimension_numbers<[1], [1], [0], [0], [0, 0, 1, 0], [], []>} : vector<8x8xf32>, vector<8x8xf32>, vector<8x8xf32> -> vector<8x8xf32>
    %cst_54 = arith.constant 0.353553385 : f32
    %83 = vector.broadcast %cst_54 : f32 to vector<8x8xf32>
    %84 = arith.mulf %82, %83 : vector<8x8xf32>
    %85 = arith.addf %84, %8 : vector<8x8xf32>
    %cst_55 = arith.constant dense<0xFF800000> : vector<8xf32>
    %86 = vector.multi_reduction <maximumf>, %85, %cst_55 [1] : vector<8x8xf32> to vector<8xf32>
    %87 = vector.shape_cast %86 : vector<8xf32> to vector<8x1xf32>
    %88 = vector.broadcast %87 : vector<8x1xf32> to vector<8x8xf32>
    %89 = arith.subf %85, %88 : vector<8x8xf32>
    %90 = math.exp %89 : vector<8x8xf32>
    %cst_56 = arith.constant dense<0.000000e+00> : vector<8xf32>
    %91 = vector.multi_reduction <add>, %90, %cst_56 [1] : vector<8x8xf32> to vector<8xf32>
    %92 = vector.shape_cast %91 : vector<8xf32> to vector<8x1xf32>
    %93 = tpu.reciprocal %92 {approx = true} : vector<8x1xf32> -> vector<8x1xf32>
    %94 = vector.broadcast %93 : vector<8x1xf32> to vector<8x8xf32>
    %95 = arith.mulf %90, %94 : vector<8x8xf32>
    %cst_57 = arith.constant dense<0.000000e+00> : vector<8x8xf32>
    %96 = tpu.matmul %95, %81, %cst_57 {dimension_numbers = #tpu.dot_dimension_numbers<[1], [0], [0], [1], [0, 0, 1, 1], [], []>} : vector<8x8xf32>, vector<8x8xf32>, vector<8x8xf32> -> vector<8x8xf32>
    %c0_58 = arith.constant 0 : index
    %c16_59 = arith.constant 16 : index
    %97 = vector.load %arg23[%c0_58, %c16_59] : memref<8x32xf32, #tpu.memory_space<vmem>>, vector<8x8xf32>
    tpu.vector_store %arg23[%c0_58, %c16_59], %96 {strides = array<i32>} : memref<8x32xf32, #tpu.memory_space<vmem>>, vector<8x8xf32>,
    %c0_60 = arith.constant 0 : index
    %c24 = arith.constant 24 : index
    %98 = vector.load %arg22[%c0_60, %c24] : memref<8x96xf32, #tpu.memory_space<vmem>>, vector<8x8xf32>
    %c0_61 = arith.constant 0 : index
    %c56 = arith.constant 56 : index
    %99 = vector.load %arg22[%c0_61, %c56] : memref<8x96xf32, #tpu.memory_space<vmem>>, vector<8x8xf32>
    %c0_62 = arith.constant 0 : index
    %c88 = arith.constant 88 : index
    %100 = vector.load %arg22[%c0_62, %c88] : memref<8x96xf32, #tpu.memory_space<vmem>>, vector<8x8xf32>
    %cst_63 = arith.constant dense<0.000000e+00> : vector<8x8xf32>
    %101 = tpu.matmul %98, %99, %cst_63 {dimension_numbers = #tpu.dot_dimension_numbers<[1], [1], [0], [0], [0, 0, 1, 0], [], []>} : vector<8x8xf32>, vector<8x8xf32>, vector<8x8xf32> -> vector<8x8xf32>
    %cst_64 = arith.constant 0.353553385 : f32
    %102 = vector.broadcast %cst_64 : f32 to vector<8x8xf32>
    %103 = arith.mulf %101, %102 : vector<8x8xf32>
    %104 = arith.addf %103, %8 : vector<8x8xf32>
    %cst_65 = arith.constant dense<0xFF800000> : vector<8xf32>
    %105 = vector.multi_reduction <maximumf>, %104, %cst_65 [1] : vector<8x8xf32> to vector<8xf32>
    %106 = vector.shape_cast %105 : vector<8xf32> to vector<8x1xf32>
    %107 = vector.broadcast %106 : vector<8x1xf32> to vector<8x8xf32>
    %108 = arith.subf %104, %107 : vector<8x8xf32>
    %109 = math.exp %108 : vector<8x8xf32>
    %cst_66 = arith.constant dense<0.000000e+00> : vector<8xf32>
    %110 = vector.multi_reduction <add>, %109, %cst_66 [1] : vector<8x8xf32> to vector<8xf32>
    %111 = vector.shape_cast %110 : vector<8xf32> to vector<8x1xf32>
    %112 = tpu.reciprocal %111 {approx = true} : vector<8x1xf32> -> vector<8x1xf32>
    %113 = vector.broadcast %112 : vector<8x1xf32> to vector<8x8xf32>
    %114 = arith.mulf %109, %113 : vector<8x8xf32>
    %cst_67 = arith.constant dense<0.000000e+00> : vector<8x8xf32>
    %115 = tpu.matmul %114, %100, %cst_67 {dimension_numbers = #tpu.dot_dimension_numbers<[1], [0], [0], [1], [0, 0, 1, 1], [], []>} : vector<8x8xf32>, vector<8x8xf32>, vector<8x8xf32> -> vector<8x8xf32>
    %c0_68 = arith.constant 0 : index
    %c24_69 = arith.constant 24 : index
    %116 = vector.load %arg23[%c0_68, %c24_69] : memref<8x32xf32, #tpu.memory_space<vmem>>, vector<8x8xf32>
    tpu.vector_store %arg23[%c0_68, %c24_69], %115 {strides = array<i32>} : memref<8x32xf32, #tpu.memory_space<vmem>>, vector<8x8xf32>,
    %c0_70 = arith.constant 0 : index
    %c0_71 = arith.constant 0 : index
    %117 = vector.load %arg23[%c0_70, %c0_71] : memref<8x32xf32, #tpu.memory_space<vmem>>, vector<8x32xf32>
    %c0_72 = arith.constant 0 : index
    %c0_73 = arith.constant 0 : index
    %c0_74 = arith.constant 0 : index
    %118 = vector.load %arg9[%c0_72, %c0_73, %c0_74] : memref<2x32x32xf32, #tpu.memory_space<vmem>>, vector<1x32x32xf32>
    %119 = vector.shape_cast %118 : vector<1x32x32xf32> to vector<32x32xf32>
    %cst_75 = arith.constant dense<0.000000e+00> : vector<8x32xf32>
    %120 = tpu.matmul %117, %119, %cst_75 {dimension_numbers = #tpu.dot_dimension_numbers<[1], [0], [0], [1], [0, 0, 1, 1], [], []>} : vector<8x32xf32>, vector<32x32xf32>, vector<8x32xf32> -> vector<8x32xf32>
    %c0_76 = arith.constant 0 : index
    %c0_77 = arith.constant 0 : index
    %c0_78 = arith.constant 0 : index
    %121 = vector.load %arg10[%c0_76, %c0_77, %c0_78] : memref<2x1x32xf32, #tpu.memory_space<vmem>>, vector<1x1x32xf32>
    %122 = vector.shape_cast %121 : vector<1x1x32xf32> to vector<1x32xf32>
    %123 = vector.broadcast %122 : vector<1x32xf32> to vector<8x32xf32>
    %124 = arith.addf %120, %123 : vector<8x32xf32>
    %125 = arith.addf %7, %124 : vector<8x32xf32>
    %c0_79 = arith.constant 0 : index
    %c0_80 = arith.constant 0 : index
    %c0_81 = arith.constant 0 : index
    %126 = vector.load %arg11[%c0_79, %c0_80, %c0_81] : memref<2x1x32xf32, #tpu.memory_space<vmem>>, vector<1x1x32xf32>
    %127 = vector.shape_cast %126 : vector<1x1x32xf32> to vector<1x32xf32>
    %c0_82 = arith.constant 0 : index
    %c0_83 = arith.constant 0 : index
    %c0_84 = arith.constant 0 : index
    %128 = vector.load %arg12[%c0_82, %c0_83, %c0_84] : memref<2x1x32xf32, #tpu.memory_space<vmem>>, vector<1x1x32xf32>
    %129 = vector.shape_cast %128 : vector<1x1x32xf32> to vector<1x32xf32>
    %cst_85 = arith.constant dense<0.000000e+00> : vector<8xf32>
    %130 = vector.multi_reduction <add>, %125, %cst_85 [1] : vector<8x32xf32> to vector<8xf32>
    %131 = vector.shape_cast %130 : vector<8xf32> to vector<8x1xf32>
    %cst_86 = arith.constant 3.200000e+01 : f32
    %132 = vector.broadcast %cst_86 : f32 to vector<8x1xf32>
    %133 = arith.divf %131, %132 : vector<8x1xf32>
    %134 = vector.broadcast %133 : vector<8x1xf32> to vector<8x32xf32>
    %135 = arith.subf %125, %134 : vector<8x32xf32>
    %136 = arith.mulf %135, %135 : vector<8x32xf32>
    %cst_87 = arith.constant dense<0.000000e+00> : vector<8xf32>
    %137 = vector.multi_reduction <add>, %136, %cst_87 [1] : vector<8x32xf32> to vector<8xf32>
    %138 = vector.shape_cast %137 : vector<8xf32> to vector<8x1xf32>
    %cst_88 = arith.constant 3.200000e+01 : f32
    %139 = vector.broadcast %cst_88 : f32 to vector<8x1xf32>
    %140 = arith.divf %138, %139 : vector<8x1xf32>
    %cst_89 = arith.constant 9.99999974E-6 : f32
    %141 = vector.broadcast %cst_89 : f32 to vector<8x1xf32>
    %142 = arith.addf %140, %141 : vector<8x1xf32>
    %143 = math.rsqrt %142 : vector<8x1xf32>
    %144 = vector.broadcast %143 : vector<8x1xf32> to vector<8x32xf32>
    %145 = arith.mulf %135, %144 : vector<8x32xf32>
    %146 = vector.broadcast %127 : vector<1x32xf32> to vector<8x32xf32>
    %147 = arith.mulf %145, %146 : vector<8x32xf32>
    %148 = vector.broadcast %129 : vector<1x32xf32> to vector<8x32xf32>
    %149 = arith.addf %147, %148 : vector<8x32xf32>
    %c0_90 = arith.constant 0 : index
    %c0_91 = arith.constant 0 : index
    %c0_92 = arith.constant 0 : index
    %150 = vector.load %arg13[%c0_90, %c0_91, %c0_92] : memref<2x32x128xf32, #tpu.memory_space<vmem>>, vector<1x32x128xf32>
    %151 = vector.shape_cast %150 : vector<1x32x128xf32> to vector<32x128xf32>
    %cst_93 = arith.constant dense<0.000000e+00> : vector<8x128xf32>
    %152 = tpu.matmul %149, %151, %cst_93 {dimension_numbers = #tpu.dot_dimension_numbers<[1], [0], [0], [1], [0, 0, 1, 1], [], []>} : vector<8x32xf32>, vector<32x128xf32>, vector<8x128xf32> -> vector<8x128xf32>
    %c0_94 = arith.constant 0 : index
    %c0_95 = arith.constant 0 : index
    %c0_96 = arith.constant 0 : index
    %153 = vector.load %arg14[%c0_94, %c0_95, %c0_96] : memref<2x1x128xf32, #tpu.memory_space<vmem>>, vector<1x1x128xf32>
    %154 = vector.shape_cast %153 : vector<1x1x128xf32> to vector<1x128xf32>
    %155 = vector.broadcast %154 : vector<1x128xf32> to vector<8x128xf32>
    %156 = arith.addf %152, %155 : vector<8x128xf32>
    %cst_97 = arith.constant 5.000000e-01 : f32
    %157 = vector.broadcast %cst_97 : f32 to vector<8x128xf32>
    %158 = arith.mulf %157, %156 : vector<8x128xf32>
    %cst_98 = arith.constant 0.707106769 : f32
    %159 = vector.broadcast %cst_98 : f32 to vector<8x128xf32>
    %160 = arith.mulf %156, %159 : vector<8x128xf32>
    %161 = math.absf %160 : vector<8x128xf32>
    %cst_99 = arith.constant 0.327591091 : f32
    %162 = vector.broadcast %cst_99 : f32 to vector<8x128xf32>
    %163 = arith.mulf %162, %161 : vector<8x128xf32>
    %cst_100 = arith.constant 1.000000e+00 : f32
    %164 = vector.broadcast %cst_100 : f32 to vector<8x128xf32>
    %165 = arith.addf %164, %163 : vector<8x128xf32>
    %cst_101 = arith.constant 1.000000e+00 : f32
    %166 = vector.broadcast %cst_101 : f32 to vector<8x128xf32>
    %167 = arith.divf %166, %165 : vector<8x128xf32>
    %cst_102 = arith.constant 1.06140542 : f32
    %168 = vector.broadcast %cst_102 : f32 to vector<8x128xf32>
    %169 = arith.mulf %168, %167 : vector<8x128xf32>
    %cst_103 = arith.constant -1.45315206 : f32
    %170 = vector.broadcast %cst_103 : f32 to vector<8x128xf32>
    %171 = arith.addf %169, %170 : vector<8x128xf32>
    %172 = arith.mulf %171, %167 : vector<8x128xf32>
    %cst_104 = arith.constant 1.42141378 : f32
    %173 = vector.broadcast %cst_104 : f32 to vector<8x128xf32>
    %174 = arith.addf %172, %173 : vector<8x128xf32>
    %175 = arith.mulf %174, %167 : vector<8x128xf32>
    %cst_105 = arith.constant -0.284496725 : f32
    %176 = vector.broadcast %cst_105 : f32 to vector<8x128xf32>
    %177 = arith.addf %175, %176 : vector<8x128xf32>
    %178 = arith.mulf %177, %167 : vector<8x128xf32>
    %cst_106 = arith.constant 0.254829586 : f32
    %179 = vector.broadcast %cst_106 : f32 to vector<8x128xf32>
    %180 = arith.addf %178, %179 : vector<8x128xf32>
    %181 = arith.mulf %180, %167 : vector<8x128xf32>
    %cst_107 = arith.constant 0.000000e+00 : f32
    %182 = vector.broadcast %cst_107 : f32 to vector<8x128xf32>
    %183 = arith.subf %182, %161 : vector<8x128xf32>
    %184 = arith.mulf %183, %161 : vector<8x128xf32>
    %185 = math.exp %184 : vector<8x128xf32>
    %186 = arith.mulf %181, %185 : vector<8x128xf32>
    %cst_108 = arith.constant 1.000000e+00 : f32
    %187 = vector.broadcast %cst_108 : f32 to vector<8x128xf32>
    %188 = arith.subf %187, %186 : vector<8x128xf32>
    %cst_109 = arith.constant 0.000000e+00 : f32
    %189 = vector.broadcast %cst_109 : f32 to vector<8x128xf32>
    %190 = arith.cmpf oge, %160, %189 : vector<8x128xf32>
    %cst_110 = arith.constant 0.000000e+00 : f32
    %191 = vector.broadcast %cst_110 : f32 to vector<8x128xf32>
    %192 = arith.subf %191, %188 : vector<8x128xf32>
    %193 = arith.select %190, %188, %192 : vector<8x128xi1>, vector<8x128xf32>
    %cst_111 = arith.constant 1.000000e+00 : f32
    %194 = vector.broadcast %cst_111 : f32 to vector<8x128xf32>
    %195 = arith.addf %194, %193 : vector<8x128xf32>
    %196 = arith.mulf %158, %195 : vector<8x128xf32>
    %c0_112 = arith.constant 0 : index
    %c0_113 = arith.constant 0 : index
    %c0_114 = arith.constant 0 : index
    %197 = vector.load %arg15[%c0_112, %c0_113, %c0_114] : memref<2x128x32xf32, #tpu.memory_space<vmem>>, vector<1x128x32xf32>
    %198 = vector.shape_cast %197 : vector<1x128x32xf32> to vector<128x32xf32>
    %cst_115 = arith.constant dense<0.000000e+00> : vector<8x32xf32>
    %199 = tpu.matmul %196, %198, %cst_115 {dimension_numbers = #tpu.dot_dimension_numbers<[1], [0], [0], [1], [0, 0, 1, 1], [], []>} : vector<8x128xf32>, vector<128x32xf32>, vector<8x32xf32> -> vector<8x32xf32>
    %c0_116 = arith.constant 0 : index
    %c0_117 = arith.constant 0 : index
    %c0_118 = arith.constant 0 : index
    %200 = vector.load %arg16[%c0_116, %c0_117, %c0_118] : memref<2x1x32xf32, #tpu.memory_space<vmem>>, vector<1x1x32xf32>
    %201 = vector.shape_cast %200 : vector<1x1x32xf32> to vector<1x32xf32>
    %202 = vector.broadcast %201 : vector<1x32xf32> to vector<8x32xf32>
    %203 = arith.addf %199, %202 : vector<8x32xf32>
    %204 = arith.addf %125, %203 : vector<8x32xf32>
    %c1 = arith.constant 1 : index
    %c0_119 = arith.constant 0 : index
    %c0_120 = arith.constant 0 : index
    %205 = vector.load %arg5[%c1, %c0_119, %c0_120] : memref<2x1x32xf32, #tpu.memory_space<vmem>>, vector<1x1x32xf32>
    %206 = vector.shape_cast %205 : vector<1x1x32xf32> to vector<1x32xf32>
    %c1_121 = arith.constant 1 : index
    %c0_122 = arith.constant 0 : index
    %c0_123 = arith.constant 0 : index
    %207 = vector.load %arg6[%c1_121, %c0_122, %c0_123] : memref<2x1x32xf32, #tpu.memory_space<vmem>>, vector<1x1x32xf32>
    %208 = vector.shape_cast %207 : vector<1x1x32xf32> to vector<1x32xf32>
    %cst_124 = arith.constant dense<0.000000e+00> : vector<8xf32>
    %209 = vector.multi_reduction <add>, %204, %cst_124 [1] : vector<8x32xf32> to vector<8xf32>
    %210 = vector.shape_cast %209 : vector<8xf32> to vector<8x1xf32>
    %cst_125 = arith.constant 3.200000e+01 : f32
    %211 = vector.broadcast %cst_125 : f32 to vector<8x1xf32>
    %212 = arith.divf %210, %211 : vector<8x1xf32>
    %213 = vector.broadcast %212 : vector<8x1xf32> to vector<8x32xf32>
    %214 = arith.subf %204, %213 : vector<8x32xf32>
    %215 = arith.mulf %214, %214 : vector<8x32xf32>
    %cst_126 = arith.constant dense<0.000000e+00> : vector<8xf32>
    %216 = vector.multi_reduction <add>, %215, %cst_126 [1] : vector<8x32xf32> to vector<8xf32>
    %217 = vector.shape_cast %216 : vector<8xf32> to vector<8x1xf32>
    %cst_127 = arith.constant 3.200000e+01 : f32
    %218 = vector.broadcast %cst_127 : f32 to vector<8x1xf32>
    %219 = arith.divf %217, %218 : vector<8x1xf32>
    %cst_128 = arith.constant 9.99999974E-6 : f32
    %220 = vector.broadcast %cst_128 : f32 to vector<8x1xf32>
    %221 = arith.addf %219, %220 : vector<8x1xf32>
    %222 = math.rsqrt %221 : vector<8x1xf32>
    %223 = vector.broadcast %222 : vector<8x1xf32> to vector<8x32xf32>
    %224 = arith.mulf %214, %223 : vector<8x32xf32>
    %225 = vector.broadcast %206 : vector<1x32xf32> to vector<8x32xf32>
    %226 = arith.mulf %224, %225 : vector<8x32xf32>
    %227 = vector.broadcast %208 : vector<1x32xf32> to vector<8x32xf32>
    %228 = arith.addf %226, %227 : vector<8x32xf32>
    %c1_129 = arith.constant 1 : index
    %c0_130 = arith.constant 0 : index
    %c0_131 = arith.constant 0 : index
    %229 = vector.load %arg7[%c1_129, %c0_130, %c0_131] : memref<2x32x96xf32, #tpu.memory_space<vmem>>, vector<1x32x96xf32>
    %230 = vector.shape_cast %229 : vector<1x32x96xf32> to vector<32x96xf32>
    %cst_132 = arith.constant dense<0.000000e+00> : vector<8x96xf32>
    %231 = tpu.matmul %228, %230, %cst_132 {dimension_numbers = #tpu.dot_dimension_numbers<[1], [0], [0], [1], [0, 0, 1, 1], [], []>} : vector<8x32xf32>, vector<32x96xf32>, vector<8x96xf32> -> vector<8x96xf32>
    %c1_133 = arith.constant 1 : index
    %c0_134 = arith.constant 0 : index
    %c0_135 = arith.constant 0 : index
    %232 = vector.load %arg8[%c1_133, %c0_134, %c0_135] : memref<2x1x96xf32, #tpu.memory_space<vmem>>, vector<1x1x96xf32>
    %233 = vector.shape_cast %232 : vector<1x1x96xf32> to vector<1x96xf32>
    %234 = vector.broadcast %233 : vector<1x96xf32> to vector<8x96xf32>
    %235 = arith.addf %231, %234 : vector<8x96xf32>
    %c0_136 = arith.constant 0 : index
    %c0_137 = arith.constant 0 : index
    %236 = vector.load %arg22[%c0_136, %c0_137] : memref<8x96xf32, #tpu.memory_space<vmem>>, vector<8x96xf32>
    tpu.vector_store %arg22[%c0_136, %c0_137], %235 {strides = array<i32>} : memref<8x96xf32, #tpu.memory_space<vmem>>, vector<8x96xf32>,
    %c0_138 = arith.constant 0 : index
    %c0_139 = arith.constant 0 : index
    %237 = vector.load %arg22[%c0_138, %c0_139] : memref<8x96xf32, #tpu.memory_space<vmem>>, vector<8x8xf32>
    %c0_140 = arith.constant 0 : index
    %c32_141 = arith.constant 32 : index
    %238 = vector.load %arg22[%c0_140, %c32_141] : memref<8x96xf32, #tpu.memory_space<vmem>>, vector<8x8xf32>
    %c0_142 = arith.constant 0 : index
    %c64_143 = arith.constant 64 : index
    %239 = vector.load %arg22[%c0_142, %c64_143] : memref<8x96xf32, #tpu.memory_space<vmem>>, vector<8x8xf32>
    %cst_144 = arith.constant dense<0.000000e+00> : vector<8x8xf32>
    %240 = tpu.matmul %237, %238, %cst_144 {dimension_numbers = #tpu.dot_dimension_numbers<[1], [1], [0], [0], [0, 0, 1, 0], [], []>} : vector<8x8xf32>, vector<8x8xf32>, vector<8x8xf32> -> vector<8x8xf32>
    %cst_145 = arith.constant 0.353553385 : f32
    %241 = vector.broadcast %cst_145 : f32 to vector<8x8xf32>
    %242 = arith.mulf %240, %241 : vector<8x8xf32>
    %243 = arith.addf %242, %8 : vector<8x8xf32>
    %cst_146 = arith.constant dense<0xFF800000> : vector<8xf32>
    %244 = vector.multi_reduction <maximumf>, %243, %cst_146 [1] : vector<8x8xf32> to vector<8xf32>
    %245 = vector.shape_cast %244 : vector<8xf32> to vector<8x1xf32>
    %246 = vector.broadcast %245 : vector<8x1xf32> to vector<8x8xf32>
    %247 = arith.subf %243, %246 : vector<8x8xf32>
    %248 = math.exp %247 : vector<8x8xf32>
    %cst_147 = arith.constant dense<0.000000e+00> : vector<8xf32>
    %249 = vector.multi_reduction <add>, %248, %cst_147 [1] : vector<8x8xf32> to vector<8xf32>
    %250 = vector.shape_cast %249 : vector<8xf32> to vector<8x1xf32>
    %251 = tpu.reciprocal %250 {approx = true} : vector<8x1xf32> -> vector<8x1xf32>
    %252 = vector.broadcast %251 : vector<8x1xf32> to vector<8x8xf32>
    %253 = arith.mulf %248, %252 : vector<8x8xf32>
    %cst_148 = arith.constant dense<0.000000e+00> : vector<8x8xf32>
    %254 = tpu.matmul %253, %239, %cst_148 {dimension_numbers = #tpu.dot_dimension_numbers<[1], [0], [0], [1], [0, 0, 1, 1], [], []>} : vector<8x8xf32>, vector<8x8xf32>, vector<8x8xf32> -> vector<8x8xf32>
    %c0_149 = arith.constant 0 : index
    %c0_150 = arith.constant 0 : index
    %255 = vector.load %arg23[%c0_149, %c0_150] : memref<8x32xf32, #tpu.memory_space<vmem>>, vector<8x8xf32>
    tpu.vector_store %arg23[%c0_149, %c0_150], %254 {strides = array<i32>} : memref<8x32xf32, #tpu.memory_space<vmem>>, vector<8x8xf32>,
    %c0_151 = arith.constant 0 : index
    %c8_152 = arith.constant 8 : index
    %256 = vector.load %arg22[%c0_151, %c8_152] : memref<8x96xf32, #tpu.memory_space<vmem>>, vector<8x8xf32>
    %c0_153 = arith.constant 0 : index
    %c40_154 = arith.constant 40 : index
    %257 = vector.load %arg22[%c0_153, %c40_154] : memref<8x96xf32, #tpu.memory_space<vmem>>, vector<8x8xf32>
    %c0_155 = arith.constant 0 : index
    %c72_156 = arith.constant 72 : index
    %258 = vector.load %arg22[%c0_155, %c72_156] : memref<8x96xf32, #tpu.memory_space<vmem>>, vector<8x8xf32>
    %cst_157 = arith.constant dense<0.000000e+00> : vector<8x8xf32>
    %259 = tpu.matmul %256, %257, %cst_157 {dimension_numbers = #tpu.dot_dimension_numbers<[1], [1], [0], [0], [0, 0, 1, 0], [], []>} : vector<8x8xf32>, vector<8x8xf32>, vector<8x8xf32> -> vector<8x8xf32>
    %cst_158 = arith.constant 0.353553385 : f32
    %260 = vector.broadcast %cst_158 : f32 to vector<8x8xf32>
    %261 = arith.mulf %259, %260 : vector<8x8xf32>
    %262 = arith.addf %261, %8 : vector<8x8xf32>
    %cst_159 = arith.constant dense<0xFF800000> : vector<8xf32>
    %263 = vector.multi_reduction <maximumf>, %262, %cst_159 [1] : vector<8x8xf32> to vector<8xf32>
    %264 = vector.shape_cast %263 : vector<8xf32> to vector<8x1xf32>
    %265 = vector.broadcast %264 : vector<8x1xf32> to vector<8x8xf32>
    %266 = arith.subf %262, %265 : vector<8x8xf32>
    %267 = math.exp %266 : vector<8x8xf32>
    %cst_160 = arith.constant dense<0.000000e+00> : vector<8xf32>
    %268 = vector.multi_reduction <add>, %267, %cst_160 [1] : vector<8x8xf32> to vector<8xf32>
    %269 = vector.shape_cast %268 : vector<8xf32> to vector<8x1xf32>
    %270 = tpu.reciprocal %269 {approx = true} : vector<8x1xf32> -> vector<8x1xf32>
    %271 = vector.broadcast %270 : vector<8x1xf32> to vector<8x8xf32>
    %272 = arith.mulf %267, %271 : vector<8x8xf32>
    %cst_161 = arith.constant dense<0.000000e+00> : vector<8x8xf32>
    %273 = tpu.matmul %272, %258, %cst_161 {dimension_numbers = #tpu.dot_dimension_numbers<[1], [0], [0], [1], [0, 0, 1, 1], [], []>} : vector<8x8xf32>, vector<8x8xf32>, vector<8x8xf32> -> vector<8x8xf32>
    %c0_162 = arith.constant 0 : index
    %c8_163 = arith.constant 8 : index
    %274 = vector.load %arg23[%c0_162, %c8_163] : memref<8x32xf32, #tpu.memory_space<vmem>>, vector<8x8xf32>
    tpu.vector_store %arg23[%c0_162, %c8_163], %273 {strides = array<i32>} : memref<8x32xf32, #tpu.memory_space<vmem>>, vector<8x8xf32>,
    %c0_164 = arith.constant 0 : index
    %c16_165 = arith.constant 16 : index
    %275 = vector.load %arg22[%c0_164, %c16_165] : memref<8x96xf32, #tpu.memory_space<vmem>>, vector<8x8xf32>
    %c0_166 = arith.constant 0 : index
    %c48_167 = arith.constant 48 : index
    %276 = vector.load %arg22[%c0_166, %c48_167] : memref<8x96xf32, #tpu.memory_space<vmem>>, vector<8x8xf32>
    %c0_168 = arith.constant 0 : index
    %c80_169 = arith.constant 80 : index
    %277 = vector.load %arg22[%c0_168, %c80_169] : memref<8x96xf32, #tpu.memory_space<vmem>>, vector<8x8xf32>
    %cst_170 = arith.constant dense<0.000000e+00> : vector<8x8xf32>
    %278 = tpu.matmul %275, %276, %cst_170 {dimension_numbers = #tpu.dot_dimension_numbers<[1], [1], [0], [0], [0, 0, 1, 0], [], []>} : vector<8x8xf32>, vector<8x8xf32>, vector<8x8xf32> -> vector<8x8xf32>
    %cst_171 = arith.constant 0.353553385 : f32
    %279 = vector.broadcast %cst_171 : f32 to vector<8x8xf32>
    %280 = arith.mulf %278, %279 : vector<8x8xf32>
    %281 = arith.addf %280, %8 : vector<8x8xf32>
    %cst_172 = arith.constant dense<0xFF800000> : vector<8xf32>
    %282 = vector.multi_reduction <maximumf>, %281, %cst_172 [1] : vector<8x8xf32> to vector<8xf32>
    %283 = vector.shape_cast %282 : vector<8xf32> to vector<8x1xf32>
    %284 = vector.broadcast %283 : vector<8x1xf32> to vector<8x8xf32>
    %285 = arith.subf %281, %284 : vector<8x8xf32>
    %286 = math.exp %285 : vector<8x8xf32>
    %cst_173 = arith.constant dense<0.000000e+00> : vector<8xf32>
    %287 = vector.multi_reduction <add>, %286, %cst_173 [1] : vector<8x8xf32> to vector<8xf32>
    %288 = vector.shape_cast %287 : vector<8xf32> to vector<8x1xf32>
    %289 = tpu.reciprocal %288 {approx = true} : vector<8x1xf32> -> vector<8x1xf32>
    %290 = vector.broadcast %289 : vector<8x1xf32> to vector<8x8xf32>
    %291 = arith.mulf %286, %290 : vector<8x8xf32>
    %cst_174 = arith.constant dense<0.000000e+00> : vector<8x8xf32>
    %292 = tpu.matmul %291, %277, %cst_174 {dimension_numbers = #tpu.dot_dimension_numbers<[1], [0], [0], [1], [0, 0, 1, 1], [], []>} : vector<8x8xf32>, vector<8x8xf32>, vector<8x8xf32> -> vector<8x8xf32>
    %c0_175 = arith.constant 0 : index
    %c16_176 = arith.constant 16 : index
    %293 = vector.load %arg23[%c0_175, %c16_176] : memref<8x32xf32, #tpu.memory_space<vmem>>, vector<8x8xf32>
    tpu.vector_store %arg23[%c0_175, %c16_176], %292 {strides = array<i32>} : memref<8x32xf32, #tpu.memory_space<vmem>>, vector<8x8xf32>,
    %c0_177 = arith.constant 0 : index
    %c24_178 = arith.constant 24 : index
    %294 = vector.load %arg22[%c0_177, %c24_178] : memref<8x96xf32, #tpu.memory_space<vmem>>, vector<8x8xf32>
    %c0_179 = arith.constant 0 : index
    %c56_180 = arith.constant 56 : index
    %295 = vector.load %arg22[%c0_179, %c56_180] : memref<8x96xf32, #tpu.memory_space<vmem>>, vector<8x8xf32>
    %c0_181 = arith.constant 0 : index
    %c88_182 = arith.constant 88 : index
    %296 = vector.load %arg22[%c0_181, %c88_182] : memref<8x96xf32, #tpu.memory_space<vmem>>, vector<8x8xf32>
    %cst_183 = arith.constant dense<0.000000e+00> : vector<8x8xf32>
    %297 = tpu.matmul %294, %295, %cst_183 {dimension_numbers = #tpu.dot_dimension_numbers<[1], [1], [0], [0], [0, 0, 1, 0], [], []>} : vector<8x8xf32>, vector<8x8xf32>, vector<8x8xf32> -> vector<8x8xf32>
    %cst_184 = arith.constant 0.353553385 : f32
    %298 = vector.broadcast %cst_184 : f32 to vector<8x8xf32>
    %299 = arith.mulf %297, %298 : vector<8x8xf32>
    %300 = arith.addf %299, %8 : vector<8x8xf32>
    %cst_185 = arith.constant dense<0xFF800000> : vector<8xf32>
    %301 = vector.multi_reduction <maximumf>, %300, %cst_185 [1] : vector<8x8xf32> to vector<8xf32>
    %302 = vector.shape_cast %301 : vector<8xf32> to vector<8x1xf32>
    %303 = vector.broadcast %302 : vector<8x1xf32> to vector<8x8xf32>
    %304 = arith.subf %300, %303 : vector<8x8xf32>
    %305 = math.exp %304 : vector<8x8xf32>
    %cst_186 = arith.constant dense<0.000000e+00> : vector<8xf32>
    %306 = vector.multi_reduction <add>, %305, %cst_186 [1] : vector<8x8xf32> to vector<8xf32>
    %307 = vector.shape_cast %306 : vector<8xf32> to vector<8x1xf32>
    %308 = tpu.reciprocal %307 {approx = true} : vector<8x1xf32> -> vector<8x1xf32>
    %309 = vector.broadcast %308 : vector<8x1xf32> to vector<8x8xf32>
    %310 = arith.mulf %305, %309 : vector<8x8xf32>
    %cst_187 = arith.constant dense<0.000000e+00> : vector<8x8xf32>
    %311 = tpu.matmul %310, %296, %cst_187 {dimension_numbers = #tpu.dot_dimension_numbers<[1], [0], [0], [1], [0, 0, 1, 1], [], []>} : vector<8x8xf32>, vector<8x8xf32>, vector<8x8xf32> -> vector<8x8xf32>
    %c0_188 = arith.constant 0 : index
    %c24_189 = arith.constant 24 : index
    %312 = vector.load %arg23[%c0_188, %c24_189] : memref<8x32xf32, #tpu.memory_space<vmem>>, vector<8x8xf32>
    tpu.vector_store %arg23[%c0_188, %c24_189], %311 {strides = array<i32>} : memref<8x32xf32, #tpu.memory_space<vmem>>, vector<8x8xf32>,
    %c0_190 = arith.constant 0 : index
    %c0_191 = arith.constant 0 : index
    %313 = vector.load %arg23[%c0_190, %c0_191] : memref<8x32xf32, #tpu.memory_space<vmem>>, vector<8x32xf32>
    %c1_192 = arith.constant 1 : index
    %c0_193 = arith.constant 0 : index
    %c0_194 = arith.constant 0 : index
    %314 = vector.load %arg9[%c1_192, %c0_193, %c0_194] : memref<2x32x32xf32, #tpu.memory_space<vmem>>, vector<1x32x32xf32>
    %315 = vector.shape_cast %314 : vector<1x32x32xf32> to vector<32x32xf32>
    %cst_195 = arith.constant dense<0.000000e+00> : vector<8x32xf32>
    %316 = tpu.matmul %313, %315, %cst_195 {dimension_numbers = #tpu.dot_dimension_numbers<[1], [0], [0], [1], [0, 0, 1, 1], [], []>} : vector<8x32xf32>, vector<32x32xf32>, vector<8x32xf32> -> vector<8x32xf32>
    %c1_196 = arith.constant 1 : index
    %c0_197 = arith.constant 0 : index
    %c0_198 = arith.constant 0 : index
    %317 = vector.load %arg10[%c1_196, %c0_197, %c0_198] : memref<2x1x32xf32, #tpu.memory_space<vmem>>, vector<1x1x32xf32>
    %318 = vector.shape_cast %317 : vector<1x1x32xf32> to vector<1x32xf32>
    %319 = vector.broadcast %318 : vector<1x32xf32> to vector<8x32xf32>
    %320 = arith.addf %316, %319 : vector<8x32xf32>
    %321 = arith.addf %204, %320 : vector<8x32xf32>
    %c1_199 = arith.constant 1 : index
    %c0_200 = arith.constant 0 : index
    %c0_201 = arith.constant 0 : index
    %322 = vector.load %arg11[%c1_199, %c0_200, %c0_201] : memref<2x1x32xf32, #tpu.memory_space<vmem>>, vector<1x1x32xf32>
    %323 = vector.shape_cast %322 : vector<1x1x32xf32> to vector<1x32xf32>
    %c1_202 = arith.constant 1 : index
    %c0_203 = arith.constant 0 : index
    %c0_204 = arith.constant 0 : index
    %324 = vector.load %arg12[%c1_202, %c0_203, %c0_204] : memref<2x1x32xf32, #tpu.memory_space<vmem>>, vector<1x1x32xf32>
    %325 = vector.shape_cast %324 : vector<1x1x32xf32> to vector<1x32xf32>
    %cst_205 = arith.constant dense<0.000000e+00> : vector<8xf32>
    %326 = vector.multi_reduction <add>, %321, %cst_205 [1] : vector<8x32xf32> to vector<8xf32>
    %327 = vector.shape_cast %326 : vector<8xf32> to vector<8x1xf32>
    %cst_206 = arith.constant 3.200000e+01 : f32
    %328 = vector.broadcast %cst_206 : f32 to vector<8x1xf32>
    %329 = arith.divf %327, %328 : vector<8x1xf32>
    %330 = vector.broadcast %329 : vector<8x1xf32> to vector<8x32xf32>
    %331 = arith.subf %321, %330 : vector<8x32xf32>
    %332 = arith.mulf %331, %331 : vector<8x32xf32>
    %cst_207 = arith.constant dense<0.000000e+00> : vector<8xf32>
    %333 = vector.multi_reduction <add>, %332, %cst_207 [1] : vector<8x32xf32> to vector<8xf32>
    %334 = vector.shape_cast %333 : vector<8xf32> to vector<8x1xf32>
    %cst_208 = arith.constant 3.200000e+01 : f32
    %335 = vector.broadcast %cst_208 : f32 to vector<8x1xf32>
    %336 = arith.divf %334, %335 : vector<8x1xf32>
    %cst_209 = arith.constant 9.99999974E-6 : f32
    %337 = vector.broadcast %cst_209 : f32 to vector<8x1xf32>
    %338 = arith.addf %336, %337 : vector<8x1xf32>
    %339 = math.rsqrt %338 : vector<8x1xf32>
    %340 = vector.broadcast %339 : vector<8x1xf32> to vector<8x32xf32>
    %341 = arith.mulf %331, %340 : vector<8x32xf32>
    %342 = vector.broadcast %323 : vector<1x32xf32> to vector<8x32xf32>
    %343 = arith.mulf %341, %342 : vector<8x32xf32>
    %344 = vector.broadcast %325 : vector<1x32xf32> to vector<8x32xf32>
    %345 = arith.addf %343, %344 : vector<8x32xf32>
    %c1_210 = arith.constant 1 : index
    %c0_211 = arith.constant 0 : index
    %c0_212 = arith.constant 0 : index
    %346 = vector.load %arg13[%c1_210, %c0_211, %c0_212] : memref<2x32x128xf32, #tpu.memory_space<vmem>>, vector<1x32x128xf32>
    %347 = vector.shape_cast %346 : vector<1x32x128xf32> to vector<32x128xf32>
    %cst_213 = arith.constant dense<0.000000e+00> : vector<8x128xf32>
    %348 = tpu.matmul %345, %347, %cst_213 {dimension_numbers = #tpu.dot_dimension_numbers<[1], [0], [0], [1], [0, 0, 1, 1], [], []>} : vector<8x32xf32>, vector<32x128xf32>, vector<8x128xf32> -> vector<8x128xf32>
    %c1_214 = arith.constant 1 : index
    %c0_215 = arith.constant 0 : index
    %c0_216 = arith.constant 0 : index
    %349 = vector.load %arg14[%c1_214, %c0_215, %c0_216] : memref<2x1x128xf32, #tpu.memory_space<vmem>>, vector<1x1x128xf32>
    %350 = vector.shape_cast %349 : vector<1x1x128xf32> to vector<1x128xf32>
    %351 = vector.broadcast %350 : vector<1x128xf32> to vector<8x128xf32>
    %352 = arith.addf %348, %351 : vector<8x128xf32>
    %cst_217 = arith.constant 5.000000e-01 : f32
    %353 = vector.broadcast %cst_217 : f32 to vector<8x128xf32>
    %354 = arith.mulf %353, %352 : vector<8x128xf32>
    %cst_218 = arith.constant 0.707106769 : f32
    %355 = vector.broadcast %cst_218 : f32 to vector<8x128xf32>
    %356 = arith.mulf %352, %355 : vector<8x128xf32>
    %357 = math.absf %356 : vector<8x128xf32>
    %cst_219 = arith.constant 0.327591091 : f32
    %358 = vector.broadcast %cst_219 : f32 to vector<8x128xf32>
    %359 = arith.mulf %358, %357 : vector<8x128xf32>
    %cst_220 = arith.constant 1.000000e+00 : f32
    %360 = vector.broadcast %cst_220 : f32 to vector<8x128xf32>
    %361 = arith.addf %360, %359 : vector<8x128xf32>
    %cst_221 = arith.constant 1.000000e+00 : f32
    %362 = vector.broadcast %cst_221 : f32 to vector<8x128xf32>
    %363 = arith.divf %362, %361 : vector<8x128xf32>
    %cst_222 = arith.constant 1.06140542 : f32
    %364 = vector.broadcast %cst_222 : f32 to vector<8x128xf32>
    %365 = arith.mulf %364, %363 : vector<8x128xf32>
    %cst_223 = arith.constant -1.45315206 : f32
    %366 = vector.broadcast %cst_223 : f32 to vector<8x128xf32>
    %367 = arith.addf %365, %366 : vector<8x128xf32>
    %368 = arith.mulf %367, %363 : vector<8x128xf32>
    %cst_224 = arith.constant 1.42141378 : f32
    %369 = vector.broadcast %cst_224 : f32 to vector<8x128xf32>
    %370 = arith.addf %368, %369 : vector<8x128xf32>
    %371 = arith.mulf %370, %363 : vector<8x128xf32>
    %cst_225 = arith.constant -0.284496725 : f32
    %372 = vector.broadcast %cst_225 : f32 to vector<8x128xf32>
    %373 = arith.addf %371, %372 : vector<8x128xf32>
    %374 = arith.mulf %373, %363 : vector<8x128xf32>
    %cst_226 = arith.constant 0.254829586 : f32
    %375 = vector.broadcast %cst_226 : f32 to vector<8x128xf32>
    %376 = arith.addf %374, %375 : vector<8x128xf32>
    %377 = arith.mulf %376, %363 : vector<8x128xf32>
    %cst_227 = arith.constant 0.000000e+00 : f32
    %378 = vector.broadcast %cst_227 : f32 to vector<8x128xf32>
    %379 = arith.subf %378, %357 : vector<8x128xf32>
    %380 = arith.mulf %379, %357 : vector<8x128xf32>
    %381 = math.exp %380 : vector<8x128xf32>
    %382 = arith.mulf %377, %381 : vector<8x128xf32>
    %cst_228 = arith.constant 1.000000e+00 : f32
    %383 = vector.broadcast %cst_228 : f32 to vector<8x128xf32>
    %384 = arith.subf %383, %382 : vector<8x128xf32>
    %cst_229 = arith.constant 0.000000e+00 : f32
    %385 = vector.broadcast %cst_229 : f32 to vector<8x128xf32>
    %386 = arith.cmpf oge, %356, %385 : vector<8x128xf32>
    %cst_230 = arith.constant 0.000000e+00 : f32
    %387 = vector.broadcast %cst_230 : f32 to vector<8x128xf32>
    %388 = arith.subf %387, %384 : vector<8x128xf32>
    %389 = arith.select %386, %384, %388 : vector<8x128xi1>, vector<8x128xf32>
    %cst_231 = arith.constant 1.000000e+00 : f32
    %390 = vector.broadcast %cst_231 : f32 to vector<8x128xf32>
    %391 = arith.addf %390, %389 : vector<8x128xf32>
    %392 = arith.mulf %354, %391 : vector<8x128xf32>
    %c1_232 = arith.constant 1 : index
    %c0_233 = arith.constant 0 : index
    %c0_234 = arith.constant 0 : index
    %393 = vector.load %arg15[%c1_232, %c0_233, %c0_234] : memref<2x128x32xf32, #tpu.memory_space<vmem>>, vector<1x128x32xf32>
    %394 = vector.shape_cast %393 : vector<1x128x32xf32> to vector<128x32xf32>
    %cst_235 = arith.constant dense<0.000000e+00> : vector<8x32xf32>
    %395 = tpu.matmul %392, %394, %cst_235 {dimension_numbers = #tpu.dot_dimension_numbers<[1], [0], [0], [1], [0, 0, 1, 1], [], []>} : vector<8x128xf32>, vector<128x32xf32>, vector<8x32xf32> -> vector<8x32xf32>
    %c1_236 = arith.constant 1 : index
    %c0_237 = arith.constant 0 : index
    %c0_238 = arith.constant 0 : index
    %396 = vector.load %arg16[%c1_236, %c0_237, %c0_238] : memref<2x1x32xf32, #tpu.memory_space<vmem>>, vector<1x1x32xf32>
    %397 = vector.shape_cast %396 : vector<1x1x32xf32> to vector<1x32xf32>
    %398 = vector.broadcast %397 : vector<1x32xf32> to vector<8x32xf32>
    %399 = arith.addf %395, %398 : vector<8x32xf32>
    %400 = arith.addf %321, %399 : vector<8x32xf32>
    %c0_239 = arith.constant 0 : index
    %c0_240 = arith.constant 0 : index
    %401 = vector.load %arg17[%c0_239, %c0_240] : memref<1x32xf32, #tpu.memory_space<vmem>>, vector<1x32xf32>
    %c0_241 = arith.constant 0 : index
    %c0_242 = arith.constant 0 : index
    %402 = vector.load %arg18[%c0_241, %c0_242] : memref<1x32xf32, #tpu.memory_space<vmem>>, vector<1x32xf32>
    %cst_243 = arith.constant dense<0.000000e+00> : vector<8xf32>
    %403 = vector.multi_reduction <add>, %400, %cst_243 [1] : vector<8x32xf32> to vector<8xf32>
    %404 = vector.shape_cast %403 : vector<8xf32> to vector<8x1xf32>
    %cst_244 = arith.constant 3.200000e+01 : f32
    %405 = vector.broadcast %cst_244 : f32 to vector<8x1xf32>
    %406 = arith.divf %404, %405 : vector<8x1xf32>
    %407 = vector.broadcast %406 : vector<8x1xf32> to vector<8x32xf32>
    %408 = arith.subf %400, %407 : vector<8x32xf32>
    %409 = arith.mulf %408, %408 : vector<8x32xf32>
    %cst_245 = arith.constant dense<0.000000e+00> : vector<8xf32>
    %410 = vector.multi_reduction <add>, %409, %cst_245 [1] : vector<8x32xf32> to vector<8xf32>
    %411 = vector.shape_cast %410 : vector<8xf32> to vector<8x1xf32>
    %cst_246 = arith.constant 3.200000e+01 : f32
    %412 = vector.broadcast %cst_246 : f32 to vector<8x1xf32>
    %413 = arith.divf %411, %412 : vector<8x1xf32>
    %cst_247 = arith.constant 9.99999974E-6 : f32
    %414 = vector.broadcast %cst_247 : f32 to vector<8x1xf32>
    %415 = arith.addf %413, %414 : vector<8x1xf32>
    %416 = math.rsqrt %415 : vector<8x1xf32>
    %417 = vector.broadcast %416 : vector<8x1xf32> to vector<8x32xf32>
    %418 = arith.mulf %408, %417 : vector<8x32xf32>
    %419 = vector.broadcast %401 : vector<1x32xf32> to vector<8x32xf32>
    %420 = arith.mulf %418, %419 : vector<8x32xf32>
    %421 = vector.broadcast %402 : vector<1x32xf32> to vector<8x32xf32>
    %422 = arith.addf %420, %421 : vector<8x32xf32>
    %c0_248 = arith.constant 0 : index
    %c0_249 = arith.constant 0 : index
    %423 = vector.load %arg19[%c0_248, %c0_249] : memref<32x32xf32, #tpu.memory_space<vmem>>, vector<32x32xf32>
    %cst_250 = arith.constant dense<0.000000e+00> : vector<8x32xf32>
    %424 = tpu.matmul %422, %423, %cst_250 {dimension_numbers = #tpu.dot_dimension_numbers<[1], [0], [0], [1], [0, 0, 1, 1], [], []>} : vector<8x32xf32>, vector<32x32xf32>, vector<8x32xf32> -> vector<8x32xf32>
    %c0_251 = arith.constant 0 : index
    %c0_252 = arith.constant 0 : index
    %425 = vector.load %arg20[%c0_251, %c0_252] : memref<1x32xf32, #tpu.memory_space<vmem>>, vector<1x32xf32>
    %426 = vector.broadcast %425 : vector<1x32xf32> to vector<8x32xf32>
    %427 = arith.addf %424, %426 : vector<8x32xf32>
    %c0_253 = arith.constant 0 : index
    %c0_254 = arith.constant 0 : index
    %428 = vector.load %arg21[%c0_253, %c0_254] : memref<8x32xf32, #tpu.memory_space<vmem>>, vector<8x32xf32>
    tpu.vector_store %arg21[%c0_253, %c0_254], %427 {strides = array<i32>} : memref<8x32xf32, #tpu.memory_space<vmem>>, vector<8x32xf32>,
    return
  }
}

module attributes {stable_mosaic.version = 11 : i64} {
  func.func @_decoder_stage_kernel(%arg0: memref<32x32xf32, #tpu.memory_space<vmem>>, %arg1: memref<32x32xf32, #tpu.memory_space<vmem>>, %arg2: memref<2x1x32xf32, #tpu.memory_space<vmem>>, %arg3: memref<2x1x32xf32, #tpu.memory_space<vmem>>, %arg4: memref<2x32x96xf32, #tpu.memory_space<vmem>>, %arg5: memref<2x1x96xf32, #tpu.memory_space<vmem>>, %arg6: memref<2x32x32xf32, #tpu.memory_space<vmem>>, %arg7: memref<2x1x32xf32, #tpu.memory_space<vmem>>, %arg8: memref<2x1x32xf32, #tpu.memory_space<vmem>>, %arg9: memref<2x1x32xf32, #tpu.memory_space<vmem>>, %arg10: memref<2x32x128xf32, #tpu.memory_space<vmem>>, %arg11: memref<2x1x128xf32, #tpu.memory_space<vmem>>, %arg12: memref<2x128x32xf32, #tpu.memory_space<vmem>>, %arg13: memref<2x1x32xf32, #tpu.memory_space<vmem>>, %arg14: memref<1x32xf32, #tpu.memory_space<vmem>>, %arg15: memref<1x32xf32, #tpu.memory_space<vmem>>, %arg16: memref<32x192xf32, #tpu.memory_space<vmem>>, %arg17: memref<1x192xf32, #tpu.memory_space<vmem>>, %arg18: memref<32x192xf32, #tpu.memory_space<vmem>>, %arg19: memref<32x96xf32, #tpu.memory_space<vmem>>, %arg20: memref<32x32xf32, #tpu.memory_space<vmem>>) attributes {dimension_semantics = [], scalar_prefetch = 0 : i64, scratch_operands = 2 : i64, tpu.core_type = #tpu.core_type<tc>} {
    %c0 = arith.constant 0 : index
    %c0_0 = arith.constant 0 : index
    %0 = vector.load %arg0[%c0, %c0_0] : memref<32x32xf32, #tpu.memory_space<vmem>>, vector<32x32xf32>
    %c0_1 = arith.constant 0 : index
    %c0_2 = arith.constant 0 : index
    %1 = vector.load %arg1[%c0_1, %c0_2] : memref<32x32xf32, #tpu.memory_space<vmem>>, vector<32x32xf32>
    %c0_3 = arith.constant 0 : index
    %c0_4 = arith.constant 0 : index
    %c0_5 = arith.constant 0 : index
    %2 = vector.load %arg2[%c0_3, %c0_4, %c0_5] : memref<2x1x32xf32, #tpu.memory_space<vmem>>, vector<1x1x32xf32>
    %3 = vector.shape_cast %2 : vector<1x1x32xf32> to vector<1x32xf32>
    %c0_6 = arith.constant 0 : index
    %c0_7 = arith.constant 0 : index
    %c0_8 = arith.constant 0 : index
    %4 = vector.load %arg3[%c0_6, %c0_7, %c0_8] : memref<2x1x32xf32, #tpu.memory_space<vmem>>, vector<1x1x32xf32>
    %5 = vector.shape_cast %4 : vector<1x1x32xf32> to vector<1x32xf32>
    %cst = arith.constant dense<0.000000e+00> : vector<32xf32>
    %6 = vector.multi_reduction <add>, %0, %cst [1] : vector<32x32xf32> to vector<32xf32>
    %7 = vector.shape_cast %6 : vector<32xf32> to vector<32x1xf32>
    %cst_9 = arith.constant 3.200000e+01 : f32
    %8 = vector.broadcast %cst_9 : f32 to vector<32x1xf32>
    %9 = arith.divf %7, %8 : vector<32x1xf32>
    %10 = vector.broadcast %9 : vector<32x1xf32> to vector<32x32xf32>
    %11 = arith.subf %0, %10 : vector<32x32xf32>
    %12 = arith.mulf %11, %11 : vector<32x32xf32>
    %cst_10 = arith.constant dense<0.000000e+00> : vector<32xf32>
    %13 = vector.multi_reduction <add>, %12, %cst_10 [1] : vector<32x32xf32> to vector<32xf32>
    %14 = vector.shape_cast %13 : vector<32xf32> to vector<32x1xf32>
    %cst_11 = arith.constant 3.200000e+01 : f32
    %15 = vector.broadcast %cst_11 : f32 to vector<32x1xf32>
    %16 = arith.divf %14, %15 : vector<32x1xf32>
    %cst_12 = arith.constant 9.99999974E-6 : f32
    %17 = vector.broadcast %cst_12 : f32 to vector<32x1xf32>
    %18 = arith.addf %16, %17 : vector<32x1xf32>
    %19 = math.rsqrt %18 : vector<32x1xf32>
    %20 = vector.broadcast %19 : vector<32x1xf32> to vector<32x32xf32>
    %21 = arith.mulf %11, %20 : vector<32x32xf32>
    %22 = vector.broadcast %3 : vector<1x32xf32> to vector<32x32xf32>
    %23 = arith.mulf %21, %22 : vector<32x32xf32>
    %24 = vector.broadcast %5 : vector<1x32xf32> to vector<32x32xf32>
    %25 = arith.addf %23, %24 : vector<32x32xf32>
    %c0_13 = arith.constant 0 : index
    %c0_14 = arith.constant 0 : index
    %c0_15 = arith.constant 0 : index
    %26 = vector.load %arg4[%c0_13, %c0_14, %c0_15] : memref<2x32x96xf32, #tpu.memory_space<vmem>>, vector<1x32x96xf32>
    %27 = vector.shape_cast %26 : vector<1x32x96xf32> to vector<32x96xf32>
    %cst_16 = arith.constant dense<0.000000e+00> : vector<32x96xf32>
    %28 = tpu.matmul %25, %27, %cst_16 {dimension_numbers = #tpu.dot_dimension_numbers<[1], [0], [0], [1], [0, 0, 1, 1], [], []>} : vector<32x32xf32>, vector<32x96xf32>, vector<32x96xf32> -> vector<32x96xf32>
    %c0_17 = arith.constant 0 : index
    %c0_18 = arith.constant 0 : index
    %c0_19 = arith.constant 0 : index
    %29 = vector.load %arg5[%c0_17, %c0_18, %c0_19] : memref<2x1x96xf32, #tpu.memory_space<vmem>>, vector<1x1x96xf32>
    %30 = vector.shape_cast %29 : vector<1x1x96xf32> to vector<1x96xf32>
    %31 = vector.broadcast %30 : vector<1x96xf32> to vector<32x96xf32>
    %32 = arith.addf %28, %31 : vector<32x96xf32>
    %c0_20 = arith.constant 0 : index
    %c0_21 = arith.constant 0 : index
    %33 = vector.load %arg19[%c0_20, %c0_21] : memref<32x96xf32, #tpu.memory_space<vmem>>, vector<32x96xf32>
    tpu.vector_store %arg19[%c0_20, %c0_21], %32 {strides = array<i32>} : memref<32x96xf32, #tpu.memory_space<vmem>>, vector<32x96xf32>,
    %c0_22 = arith.constant 0 : index
    %c0_23 = arith.constant 0 : index
    %34 = vector.load %arg19[%c0_22, %c0_23] : memref<32x96xf32, #tpu.memory_space<vmem>>, vector<32x8xf32>
    %c0_24 = arith.constant 0 : index
    %c32 = arith.constant 32 : index
    %35 = vector.load %arg19[%c0_24, %c32] : memref<32x96xf32, #tpu.memory_space<vmem>>, vector<32x8xf32>
    %c0_25 = arith.constant 0 : index
    %c64 = arith.constant 64 : index
    %36 = vector.load %arg19[%c0_25, %c64] : memref<32x96xf32, #tpu.memory_space<vmem>>, vector<32x8xf32>
    %cst_26 = arith.constant dense<0.000000e+00> : vector<32x32xf32>
    %37 = tpu.matmul %34, %35, %cst_26 {dimension_numbers = #tpu.dot_dimension_numbers<[1], [1], [0], [0], [0, 0, 1, 0], [], []>} : vector<32x8xf32>, vector<32x8xf32>, vector<32x32xf32> -> vector<32x32xf32>
    %cst_27 = arith.constant 0.353553385 : f32
    %38 = vector.broadcast %cst_27 : f32 to vector<32x32xf32>
    %39 = arith.mulf %37, %38 : vector<32x32xf32>
    %40 = arith.addf %39, %1 : vector<32x32xf32>
    %cst_28 = arith.constant dense<0xFF800000> : vector<32xf32>
    %41 = vector.multi_reduction <maximumf>, %40, %cst_28 [1] : vector<32x32xf32> to vector<32xf32>
    %42 = vector.shape_cast %41 : vector<32xf32> to vector<32x1xf32>
    %43 = vector.broadcast %42 : vector<32x1xf32> to vector<32x32xf32>
    %44 = arith.subf %40, %43 : vector<32x32xf32>
    %45 = math.exp %44 : vector<32x32xf32>
    %cst_29 = arith.constant dense<0.000000e+00> : vector<32xf32>
    %46 = vector.multi_reduction <add>, %45, %cst_29 [1] : vector<32x32xf32> to vector<32xf32>
    %47 = vector.shape_cast %46 : vector<32xf32> to vector<32x1xf32>
    %48 = tpu.reciprocal %47 {approx = true} : vector<32x1xf32> -> vector<32x1xf32>
    %49 = vector.broadcast %48 : vector<32x1xf32> to vector<32x32xf32>
    %50 = arith.mulf %45, %49 : vector<32x32xf32>
    %cst_30 = arith.constant dense<0.000000e+00> : vector<32x8xf32>
    %51 = tpu.matmul %50, %36, %cst_30 {dimension_numbers = #tpu.dot_dimension_numbers<[1], [0], [0], [1], [0, 0, 1, 1], [], []>} : vector<32x32xf32>, vector<32x8xf32>, vector<32x8xf32> -> vector<32x8xf32>
    %c0_31 = arith.constant 0 : index
    %c0_32 = arith.constant 0 : index
    %52 = vector.load %arg20[%c0_31, %c0_32] : memref<32x32xf32, #tpu.memory_space<vmem>>, vector<32x8xf32>
    tpu.vector_store %arg20[%c0_31, %c0_32], %51 {strides = array<i32>} : memref<32x32xf32, #tpu.memory_space<vmem>>, vector<32x8xf32>,
    %c0_33 = arith.constant 0 : index
    %c8 = arith.constant 8 : index
    %53 = vector.load %arg19[%c0_33, %c8] : memref<32x96xf32, #tpu.memory_space<vmem>>, vector<32x8xf32>
    %c0_34 = arith.constant 0 : index
    %c40 = arith.constant 40 : index
    %54 = vector.load %arg19[%c0_34, %c40] : memref<32x96xf32, #tpu.memory_space<vmem>>, vector<32x8xf32>
    %c0_35 = arith.constant 0 : index
    %c72 = arith.constant 72 : index
    %55 = vector.load %arg19[%c0_35, %c72] : memref<32x96xf32, #tpu.memory_space<vmem>>, vector<32x8xf32>
    %cst_36 = arith.constant dense<0.000000e+00> : vector<32x32xf32>
    %56 = tpu.matmul %53, %54, %cst_36 {dimension_numbers = #tpu.dot_dimension_numbers<[1], [1], [0], [0], [0, 0, 1, 0], [], []>} : vector<32x8xf32>, vector<32x8xf32>, vector<32x32xf32> -> vector<32x32xf32>
    %cst_37 = arith.constant 0.353553385 : f32
    %57 = vector.broadcast %cst_37 : f32 to vector<32x32xf32>
    %58 = arith.mulf %56, %57 : vector<32x32xf32>
    %59 = arith.addf %58, %1 : vector<32x32xf32>
    %cst_38 = arith.constant dense<0xFF800000> : vector<32xf32>
    %60 = vector.multi_reduction <maximumf>, %59, %cst_38 [1] : vector<32x32xf32> to vector<32xf32>
    %61 = vector.shape_cast %60 : vector<32xf32> to vector<32x1xf32>
    %62 = vector.broadcast %61 : vector<32x1xf32> to vector<32x32xf32>
    %63 = arith.subf %59, %62 : vector<32x32xf32>
    %64 = math.exp %63 : vector<32x32xf32>
    %cst_39 = arith.constant dense<0.000000e+00> : vector<32xf32>
    %65 = vector.multi_reduction <add>, %64, %cst_39 [1] : vector<32x32xf32> to vector<32xf32>
    %66 = vector.shape_cast %65 : vector<32xf32> to vector<32x1xf32>
    %67 = tpu.reciprocal %66 {approx = true} : vector<32x1xf32> -> vector<32x1xf32>
    %68 = vector.broadcast %67 : vector<32x1xf32> to vector<32x32xf32>
    %69 = arith.mulf %64, %68 : vector<32x32xf32>
    %cst_40 = arith.constant dense<0.000000e+00> : vector<32x8xf32>
    %70 = tpu.matmul %69, %55, %cst_40 {dimension_numbers = #tpu.dot_dimension_numbers<[1], [0], [0], [1], [0, 0, 1, 1], [], []>} : vector<32x32xf32>, vector<32x8xf32>, vector<32x8xf32> -> vector<32x8xf32>
    %c0_41 = arith.constant 0 : index
    %c8_42 = arith.constant 8 : index
    %71 = vector.load %arg20[%c0_41, %c8_42] : memref<32x32xf32, #tpu.memory_space<vmem>>, vector<32x8xf32>
    tpu.vector_store %arg20[%c0_41, %c8_42], %70 {strides = array<i32>} : memref<32x32xf32, #tpu.memory_space<vmem>>, vector<32x8xf32>,
    %c0_43 = arith.constant 0 : index
    %c16 = arith.constant 16 : index
    %72 = vector.load %arg19[%c0_43, %c16] : memref<32x96xf32, #tpu.memory_space<vmem>>, vector<32x8xf32>
    %c0_44 = arith.constant 0 : index
    %c48 = arith.constant 48 : index
    %73 = vector.load %arg19[%c0_44, %c48] : memref<32x96xf32, #tpu.memory_space<vmem>>, vector<32x8xf32>
    %c0_45 = arith.constant 0 : index
    %c80 = arith.constant 80 : index
    %74 = vector.load %arg19[%c0_45, %c80] : memref<32x96xf32, #tpu.memory_space<vmem>>, vector<32x8xf32>
    %cst_46 = arith.constant dense<0.000000e+00> : vector<32x32xf32>
    %75 = tpu.matmul %72, %73, %cst_46 {dimension_numbers = #tpu.dot_dimension_numbers<[1], [1], [0], [0], [0, 0, 1, 0], [], []>} : vector<32x8xf32>, vector<32x8xf32>, vector<32x32xf32> -> vector<32x32xf32>
    %cst_47 = arith.constant 0.353553385 : f32
    %76 = vector.broadcast %cst_47 : f32 to vector<32x32xf32>
    %77 = arith.mulf %75, %76 : vector<32x32xf32>
    %78 = arith.addf %77, %1 : vector<32x32xf32>
    %cst_48 = arith.constant dense<0xFF800000> : vector<32xf32>
    %79 = vector.multi_reduction <maximumf>, %78, %cst_48 [1] : vector<32x32xf32> to vector<32xf32>
    %80 = vector.shape_cast %79 : vector<32xf32> to vector<32x1xf32>
    %81 = vector.broadcast %80 : vector<32x1xf32> to vector<32x32xf32>
    %82 = arith.subf %78, %81 : vector<32x32xf32>
    %83 = math.exp %82 : vector<32x32xf32>
    %cst_49 = arith.constant dense<0.000000e+00> : vector<32xf32>
    %84 = vector.multi_reduction <add>, %83, %cst_49 [1] : vector<32x32xf32> to vector<32xf32>
    %85 = vector.shape_cast %84 : vector<32xf32> to vector<32x1xf32>
    %86 = tpu.reciprocal %85 {approx = true} : vector<32x1xf32> -> vector<32x1xf32>
    %87 = vector.broadcast %86 : vector<32x1xf32> to vector<32x32xf32>
    %88 = arith.mulf %83, %87 : vector<32x32xf32>
    %cst_50 = arith.constant dense<0.000000e+00> : vector<32x8xf32>
    %89 = tpu.matmul %88, %74, %cst_50 {dimension_numbers = #tpu.dot_dimension_numbers<[1], [0], [0], [1], [0, 0, 1, 1], [], []>} : vector<32x32xf32>, vector<32x8xf32>, vector<32x8xf32> -> vector<32x8xf32>
    %c0_51 = arith.constant 0 : index
    %c16_52 = arith.constant 16 : index
    %90 = vector.load %arg20[%c0_51, %c16_52] : memref<32x32xf32, #tpu.memory_space<vmem>>, vector<32x8xf32>
    tpu.vector_store %arg20[%c0_51, %c16_52], %89 {strides = array<i32>} : memref<32x32xf32, #tpu.memory_space<vmem>>, vector<32x8xf32>,
    %c0_53 = arith.constant 0 : index
    %c24 = arith.constant 24 : index
    %91 = vector.load %arg19[%c0_53, %c24] : memref<32x96xf32, #tpu.memory_space<vmem>>, vector<32x8xf32>
    %c0_54 = arith.constant 0 : index
    %c56 = arith.constant 56 : index
    %92 = vector.load %arg19[%c0_54, %c56] : memref<32x96xf32, #tpu.memory_space<vmem>>, vector<32x8xf32>
    %c0_55 = arith.constant 0 : index
    %c88 = arith.constant 88 : index
    %93 = vector.load %arg19[%c0_55, %c88] : memref<32x96xf32, #tpu.memory_space<vmem>>, vector<32x8xf32>
    %cst_56 = arith.constant dense<0.000000e+00> : vector<32x32xf32>
    %94 = tpu.matmul %91, %92, %cst_56 {dimension_numbers = #tpu.dot_dimension_numbers<[1], [1], [0], [0], [0, 0, 1, 0], [], []>} : vector<32x8xf32>, vector<32x8xf32>, vector<32x32xf32> -> vector<32x32xf32>
    %cst_57 = arith.constant 0.353553385 : f32
    %95 = vector.broadcast %cst_57 : f32 to vector<32x32xf32>
    %96 = arith.mulf %94, %95 : vector<32x32xf32>
    %97 = arith.addf %96, %1 : vector<32x32xf32>
    %cst_58 = arith.constant dense<0xFF800000> : vector<32xf32>
    %98 = vector.multi_reduction <maximumf>, %97, %cst_58 [1] : vector<32x32xf32> to vector<32xf32>
    %99 = vector.shape_cast %98 : vector<32xf32> to vector<32x1xf32>
    %100 = vector.broadcast %99 : vector<32x1xf32> to vector<32x32xf32>
    %101 = arith.subf %97, %100 : vector<32x32xf32>
    %102 = math.exp %101 : vector<32x32xf32>
    %cst_59 = arith.constant dense<0.000000e+00> : vector<32xf32>
    %103 = vector.multi_reduction <add>, %102, %cst_59 [1] : vector<32x32xf32> to vector<32xf32>
    %104 = vector.shape_cast %103 : vector<32xf32> to vector<32x1xf32>
    %105 = tpu.reciprocal %104 {approx = true} : vector<32x1xf32> -> vector<32x1xf32>
    %106 = vector.broadcast %105 : vector<32x1xf32> to vector<32x32xf32>
    %107 = arith.mulf %102, %106 : vector<32x32xf32>
    %cst_60 = arith.constant dense<0.000000e+00> : vector<32x8xf32>
    %108 = tpu.matmul %107, %93, %cst_60 {dimension_numbers = #tpu.dot_dimension_numbers<[1], [0], [0], [1], [0, 0, 1, 1], [], []>} : vector<32x32xf32>, vector<32x8xf32>, vector<32x8xf32> -> vector<32x8xf32>
    %c0_61 = arith.constant 0 : index
    %c24_62 = arith.constant 24 : index
    %109 = vector.load %arg20[%c0_61, %c24_62] : memref<32x32xf32, #tpu.memory_space<vmem>>, vector<32x8xf32>
    tpu.vector_store %arg20[%c0_61, %c24_62], %108 {strides = array<i32>} : memref<32x32xf32, #tpu.memory_space<vmem>>, vector<32x8xf32>,
    %c0_63 = arith.constant 0 : index
    %c0_64 = arith.constant 0 : index
    %110 = vector.load %arg20[%c0_63, %c0_64] : memref<32x32xf32, #tpu.memory_space<vmem>>, vector<32x32xf32>
    %c0_65 = arith.constant 0 : index
    %c0_66 = arith.constant 0 : index
    %c0_67 = arith.constant 0 : index
    %111 = vector.load %arg6[%c0_65, %c0_66, %c0_67] : memref<2x32x32xf32, #tpu.memory_space<vmem>>, vector<1x32x32xf32>
    %112 = vector.shape_cast %111 : vector<1x32x32xf32> to vector<32x32xf32>
    %cst_68 = arith.constant dense<0.000000e+00> : vector<32x32xf32>
    %113 = tpu.matmul %110, %112, %cst_68 {dimension_numbers = #tpu.dot_dimension_numbers<[1], [0], [0], [1], [0, 0, 1, 1], [], []>} : vector<32x32xf32>, vector<32x32xf32>, vector<32x32xf32> -> vector<32x32xf32>
    %c0_69 = arith.constant 0 : index
    %c0_70 = arith.constant 0 : index
    %c0_71 = arith.constant 0 : index
    %114 = vector.load %arg7[%c0_69, %c0_70, %c0_71] : memref<2x1x32xf32, #tpu.memory_space<vmem>>, vector<1x1x32xf32>
    %115 = vector.shape_cast %114 : vector<1x1x32xf32> to vector<1x32xf32>
    %116 = vector.broadcast %115 : vector<1x32xf32> to vector<32x32xf32>
    %117 = arith.addf %113, %116 : vector<32x32xf32>
    %118 = arith.addf %0, %117 : vector<32x32xf32>
    %c0_72 = arith.constant 0 : index
    %c0_73 = arith.constant 0 : index
    %c0_74 = arith.constant 0 : index
    %119 = vector.load %arg8[%c0_72, %c0_73, %c0_74] : memref<2x1x32xf32, #tpu.memory_space<vmem>>, vector<1x1x32xf32>
    %120 = vector.shape_cast %119 : vector<1x1x32xf32> to vector<1x32xf32>
    %c0_75 = arith.constant 0 : index
    %c0_76 = arith.constant 0 : index
    %c0_77 = arith.constant 0 : index
    %121 = vector.load %arg9[%c0_75, %c0_76, %c0_77] : memref<2x1x32xf32, #tpu.memory_space<vmem>>, vector<1x1x32xf32>
    %122 = vector.shape_cast %121 : vector<1x1x32xf32> to vector<1x32xf32>
    %cst_78 = arith.constant dense<0.000000e+00> : vector<32xf32>
    %123 = vector.multi_reduction <add>, %118, %cst_78 [1] : vector<32x32xf32> to vector<32xf32>
    %124 = vector.shape_cast %123 : vector<32xf32> to vector<32x1xf32>
    %cst_79 = arith.constant 3.200000e+01 : f32
    %125 = vector.broadcast %cst_79 : f32 to vector<32x1xf32>
    %126 = arith.divf %124, %125 : vector<32x1xf32>
    %127 = vector.broadcast %126 : vector<32x1xf32> to vector<32x32xf32>
    %128 = arith.subf %118, %127 : vector<32x32xf32>
    %129 = arith.mulf %128, %128 : vector<32x32xf32>
    %cst_80 = arith.constant dense<0.000000e+00> : vector<32xf32>
    %130 = vector.multi_reduction <add>, %129, %cst_80 [1] : vector<32x32xf32> to vector<32xf32>
    %131 = vector.shape_cast %130 : vector<32xf32> to vector<32x1xf32>
    %cst_81 = arith.constant 3.200000e+01 : f32
    %132 = vector.broadcast %cst_81 : f32 to vector<32x1xf32>
    %133 = arith.divf %131, %132 : vector<32x1xf32>
    %cst_82 = arith.constant 9.99999974E-6 : f32
    %134 = vector.broadcast %cst_82 : f32 to vector<32x1xf32>
    %135 = arith.addf %133, %134 : vector<32x1xf32>
    %136 = math.rsqrt %135 : vector<32x1xf32>
    %137 = vector.broadcast %136 : vector<32x1xf32> to vector<32x32xf32>
    %138 = arith.mulf %128, %137 : vector<32x32xf32>
    %139 = vector.broadcast %120 : vector<1x32xf32> to vector<32x32xf32>
    %140 = arith.mulf %138, %139 : vector<32x32xf32>
    %141 = vector.broadcast %122 : vector<1x32xf32> to vector<32x32xf32>
    %142 = arith.addf %140, %141 : vector<32x32xf32>
    %c0_83 = arith.constant 0 : index
    %c0_84 = arith.constant 0 : index
    %c0_85 = arith.constant 0 : index
    %143 = vector.load %arg10[%c0_83, %c0_84, %c0_85] : memref<2x32x128xf32, #tpu.memory_space<vmem>>, vector<1x32x128xf32>
    %144 = vector.shape_cast %143 : vector<1x32x128xf32> to vector<32x128xf32>
    %cst_86 = arith.constant dense<0.000000e+00> : vector<32x128xf32>
    %145 = tpu.matmul %142, %144, %cst_86 {dimension_numbers = #tpu.dot_dimension_numbers<[1], [0], [0], [1], [0, 0, 1, 1], [], []>} : vector<32x32xf32>, vector<32x128xf32>, vector<32x128xf32> -> vector<32x128xf32>
    %c0_87 = arith.constant 0 : index
    %c0_88 = arith.constant 0 : index
    %c0_89 = arith.constant 0 : index
    %146 = vector.load %arg11[%c0_87, %c0_88, %c0_89] : memref<2x1x128xf32, #tpu.memory_space<vmem>>, vector<1x1x128xf32>
    %147 = vector.shape_cast %146 : vector<1x1x128xf32> to vector<1x128xf32>
    %148 = vector.broadcast %147 : vector<1x128xf32> to vector<32x128xf32>
    %149 = arith.addf %145, %148 : vector<32x128xf32>
    %cst_90 = arith.constant 5.000000e-01 : f32
    %150 = vector.broadcast %cst_90 : f32 to vector<32x128xf32>
    %151 = arith.mulf %150, %149 : vector<32x128xf32>
    %cst_91 = arith.constant 0.707106769 : f32
    %152 = vector.broadcast %cst_91 : f32 to vector<32x128xf32>
    %153 = arith.mulf %149, %152 : vector<32x128xf32>
    %154 = math.absf %153 : vector<32x128xf32>
    %cst_92 = arith.constant 0.327591091 : f32
    %155 = vector.broadcast %cst_92 : f32 to vector<32x128xf32>
    %156 = arith.mulf %155, %154 : vector<32x128xf32>
    %cst_93 = arith.constant 1.000000e+00 : f32
    %157 = vector.broadcast %cst_93 : f32 to vector<32x128xf32>
    %158 = arith.addf %157, %156 : vector<32x128xf32>
    %cst_94 = arith.constant 1.000000e+00 : f32
    %159 = vector.broadcast %cst_94 : f32 to vector<32x128xf32>
    %160 = arith.divf %159, %158 : vector<32x128xf32>
    %cst_95 = arith.constant 1.06140542 : f32
    %161 = vector.broadcast %cst_95 : f32 to vector<32x128xf32>
    %162 = arith.mulf %161, %160 : vector<32x128xf32>
    %cst_96 = arith.constant -1.45315206 : f32
    %163 = vector.broadcast %cst_96 : f32 to vector<32x128xf32>
    %164 = arith.addf %162, %163 : vector<32x128xf32>
    %165 = arith.mulf %164, %160 : vector<32x128xf32>
    %cst_97 = arith.constant 1.42141378 : f32
    %166 = vector.broadcast %cst_97 : f32 to vector<32x128xf32>
    %167 = arith.addf %165, %166 : vector<32x128xf32>
    %168 = arith.mulf %167, %160 : vector<32x128xf32>
    %cst_98 = arith.constant -0.284496725 : f32
    %169 = vector.broadcast %cst_98 : f32 to vector<32x128xf32>
    %170 = arith.addf %168, %169 : vector<32x128xf32>
    %171 = arith.mulf %170, %160 : vector<32x128xf32>
    %cst_99 = arith.constant 0.254829586 : f32
    %172 = vector.broadcast %cst_99 : f32 to vector<32x128xf32>
    %173 = arith.addf %171, %172 : vector<32x128xf32>
    %174 = arith.mulf %173, %160 : vector<32x128xf32>
    %cst_100 = arith.constant 0.000000e+00 : f32
    %175 = vector.broadcast %cst_100 : f32 to vector<32x128xf32>
    %176 = arith.subf %175, %154 : vector<32x128xf32>
    %177 = arith.mulf %176, %154 : vector<32x128xf32>
    %178 = math.exp %177 : vector<32x128xf32>
    %179 = arith.mulf %174, %178 : vector<32x128xf32>
    %cst_101 = arith.constant 1.000000e+00 : f32
    %180 = vector.broadcast %cst_101 : f32 to vector<32x128xf32>
    %181 = arith.subf %180, %179 : vector<32x128xf32>
    %cst_102 = arith.constant 0.000000e+00 : f32
    %182 = vector.broadcast %cst_102 : f32 to vector<32x128xf32>
    %183 = arith.cmpf oge, %153, %182 : vector<32x128xf32>
    %cst_103 = arith.constant 0.000000e+00 : f32
    %184 = vector.broadcast %cst_103 : f32 to vector<32x128xf32>
    %185 = arith.subf %184, %181 : vector<32x128xf32>
    %186 = arith.select %183, %181, %185 : vector<32x128xi1>, vector<32x128xf32>
    %cst_104 = arith.constant 1.000000e+00 : f32
    %187 = vector.broadcast %cst_104 : f32 to vector<32x128xf32>
    %188 = arith.addf %187, %186 : vector<32x128xf32>
    %189 = arith.mulf %151, %188 : vector<32x128xf32>
    %c0_105 = arith.constant 0 : index
    %c0_106 = arith.constant 0 : index
    %c0_107 = arith.constant 0 : index
    %190 = vector.load %arg12[%c0_105, %c0_106, %c0_107] : memref<2x128x32xf32, #tpu.memory_space<vmem>>, vector<1x128x32xf32>
    %191 = vector.shape_cast %190 : vector<1x128x32xf32> to vector<128x32xf32>
    %cst_108 = arith.constant dense<0.000000e+00> : vector<32x32xf32>
    %192 = tpu.matmul %189, %191, %cst_108 {dimension_numbers = #tpu.dot_dimension_numbers<[1], [0], [0], [1], [0, 0, 1, 1], [], []>} : vector<32x128xf32>, vector<128x32xf32>, vector<32x32xf32> -> vector<32x32xf32>
    %c0_109 = arith.constant 0 : index
    %c0_110 = arith.constant 0 : index
    %c0_111 = arith.constant 0 : index
    %193 = vector.load %arg13[%c0_109, %c0_110, %c0_111] : memref<2x1x32xf32, #tpu.memory_space<vmem>>, vector<1x1x32xf32>
    %194 = vector.shape_cast %193 : vector<1x1x32xf32> to vector<1x32xf32>
    %195 = vector.broadcast %194 : vector<1x32xf32> to vector<32x32xf32>
    %196 = arith.addf %192, %195 : vector<32x32xf32>
    %197 = arith.addf %118, %196 : vector<32x32xf32>
    %c1 = arith.constant 1 : index
    %c0_112 = arith.constant 0 : index
    %c0_113 = arith.constant 0 : index
    %198 = vector.load %arg2[%c1, %c0_112, %c0_113] : memref<2x1x32xf32, #tpu.memory_space<vmem>>, vector<1x1x32xf32>
    %199 = vector.shape_cast %198 : vector<1x1x32xf32> to vector<1x32xf32>
    %c1_114 = arith.constant 1 : index
    %c0_115 = arith.constant 0 : index
    %c0_116 = arith.constant 0 : index
    %200 = vector.load %arg3[%c1_114, %c0_115, %c0_116] : memref<2x1x32xf32, #tpu.memory_space<vmem>>, vector<1x1x32xf32>
    %201 = vector.shape_cast %200 : vector<1x1x32xf32> to vector<1x32xf32>
    %cst_117 = arith.constant dense<0.000000e+00> : vector<32xf32>
    %202 = vector.multi_reduction <add>, %197, %cst_117 [1] : vector<32x32xf32> to vector<32xf32>
    %203 = vector.shape_cast %202 : vector<32xf32> to vector<32x1xf32>
    %cst_118 = arith.constant 3.200000e+01 : f32
    %204 = vector.broadcast %cst_118 : f32 to vector<32x1xf32>
    %205 = arith.divf %203, %204 : vector<32x1xf32>
    %206 = vector.broadcast %205 : vector<32x1xf32> to vector<32x32xf32>
    %207 = arith.subf %197, %206 : vector<32x32xf32>
    %208 = arith.mulf %207, %207 : vector<32x32xf32>
    %cst_119 = arith.constant dense<0.000000e+00> : vector<32xf32>
    %209 = vector.multi_reduction <add>, %208, %cst_119 [1] : vector<32x32xf32> to vector<32xf32>
    %210 = vector.shape_cast %209 : vector<32xf32> to vector<32x1xf32>
    %cst_120 = arith.constant 3.200000e+01 : f32
    %211 = vector.broadcast %cst_120 : f32 to vector<32x1xf32>
    %212 = arith.divf %210, %211 : vector<32x1xf32>
    %cst_121 = arith.constant 9.99999974E-6 : f32
    %213 = vector.broadcast %cst_121 : f32 to vector<32x1xf32>
    %214 = arith.addf %212, %213 : vector<32x1xf32>
    %215 = math.rsqrt %214 : vector<32x1xf32>
    %216 = vector.broadcast %215 : vector<32x1xf32> to vector<32x32xf32>
    %217 = arith.mulf %207, %216 : vector<32x32xf32>
    %218 = vector.broadcast %199 : vector<1x32xf32> to vector<32x32xf32>
    %219 = arith.mulf %217, %218 : vector<32x32xf32>
    %220 = vector.broadcast %201 : vector<1x32xf32> to vector<32x32xf32>
    %221 = arith.addf %219, %220 : vector<32x32xf32>
    %c1_122 = arith.constant 1 : index
    %c0_123 = arith.constant 0 : index
    %c0_124 = arith.constant 0 : index
    %222 = vector.load %arg4[%c1_122, %c0_123, %c0_124] : memref<2x32x96xf32, #tpu.memory_space<vmem>>, vector<1x32x96xf32>
    %223 = vector.shape_cast %222 : vector<1x32x96xf32> to vector<32x96xf32>
    %cst_125 = arith.constant dense<0.000000e+00> : vector<32x96xf32>
    %224 = tpu.matmul %221, %223, %cst_125 {dimension_numbers = #tpu.dot_dimension_numbers<[1], [0], [0], [1], [0, 0, 1, 1], [], []>} : vector<32x32xf32>, vector<32x96xf32>, vector<32x96xf32> -> vector<32x96xf32>
    %c1_126 = arith.constant 1 : index
    %c0_127 = arith.constant 0 : index
    %c0_128 = arith.constant 0 : index
    %225 = vector.load %arg5[%c1_126, %c0_127, %c0_128] : memref<2x1x96xf32, #tpu.memory_space<vmem>>, vector<1x1x96xf32>
    %226 = vector.shape_cast %225 : vector<1x1x96xf32> to vector<1x96xf32>
    %227 = vector.broadcast %226 : vector<1x96xf32> to vector<32x96xf32>
    %228 = arith.addf %224, %227 : vector<32x96xf32>
    %c0_129 = arith.constant 0 : index
    %c0_130 = arith.constant 0 : index
    %229 = vector.load %arg19[%c0_129, %c0_130] : memref<32x96xf32, #tpu.memory_space<vmem>>, vector<32x96xf32>
    tpu.vector_store %arg19[%c0_129, %c0_130], %228 {strides = array<i32>} : memref<32x96xf32, #tpu.memory_space<vmem>>, vector<32x96xf32>,
    %c0_131 = arith.constant 0 : index
    %c0_132 = arith.constant 0 : index
    %230 = vector.load %arg19[%c0_131, %c0_132] : memref<32x96xf32, #tpu.memory_space<vmem>>, vector<32x8xf32>
    %c0_133 = arith.constant 0 : index
    %c32_134 = arith.constant 32 : index
    %231 = vector.load %arg19[%c0_133, %c32_134] : memref<32x96xf32, #tpu.memory_space<vmem>>, vector<32x8xf32>
    %c0_135 = arith.constant 0 : index
    %c64_136 = arith.constant 64 : index
    %232 = vector.load %arg19[%c0_135, %c64_136] : memref<32x96xf32, #tpu.memory_space<vmem>>, vector<32x8xf32>
    %cst_137 = arith.constant dense<0.000000e+00> : vector<32x32xf32>
    %233 = tpu.matmul %230, %231, %cst_137 {dimension_numbers = #tpu.dot_dimension_numbers<[1], [1], [0], [0], [0, 0, 1, 0], [], []>} : vector<32x8xf32>, vector<32x8xf32>, vector<32x32xf32> -> vector<32x32xf32>
    %cst_138 = arith.constant 0.353553385 : f32
    %234 = vector.broadcast %cst_138 : f32 to vector<32x32xf32>
    %235 = arith.mulf %233, %234 : vector<32x32xf32>
    %236 = arith.addf %235, %1 : vector<32x32xf32>
    %cst_139 = arith.constant dense<0xFF800000> : vector<32xf32>
    %237 = vector.multi_reduction <maximumf>, %236, %cst_139 [1] : vector<32x32xf32> to vector<32xf32>
    %238 = vector.shape_cast %237 : vector<32xf32> to vector<32x1xf32>
    %239 = vector.broadcast %238 : vector<32x1xf32> to vector<32x32xf32>
    %240 = arith.subf %236, %239 : vector<32x32xf32>
    %241 = math.exp %240 : vector<32x32xf32>
    %cst_140 = arith.constant dense<0.000000e+00> : vector<32xf32>
    %242 = vector.multi_reduction <add>, %241, %cst_140 [1] : vector<32x32xf32> to vector<32xf32>
    %243 = vector.shape_cast %242 : vector<32xf32> to vector<32x1xf32>
    %244 = tpu.reciprocal %243 {approx = true} : vector<32x1xf32> -> vector<32x1xf32>
    %245 = vector.broadcast %244 : vector<32x1xf32> to vector<32x32xf32>
    %246 = arith.mulf %241, %245 : vector<32x32xf32>
    %cst_141 = arith.constant dense<0.000000e+00> : vector<32x8xf32>
    %247 = tpu.matmul %246, %232, %cst_141 {dimension_numbers = #tpu.dot_dimension_numbers<[1], [0], [0], [1], [0, 0, 1, 1], [], []>} : vector<32x32xf32>, vector<32x8xf32>, vector<32x8xf32> -> vector<32x8xf32>
    %c0_142 = arith.constant 0 : index
    %c0_143 = arith.constant 0 : index
    %248 = vector.load %arg20[%c0_142, %c0_143] : memref<32x32xf32, #tpu.memory_space<vmem>>, vector<32x8xf32>
    tpu.vector_store %arg20[%c0_142, %c0_143], %247 {strides = array<i32>} : memref<32x32xf32, #tpu.memory_space<vmem>>, vector<32x8xf32>,
    %c0_144 = arith.constant 0 : index
    %c8_145 = arith.constant 8 : index
    %249 = vector.load %arg19[%c0_144, %c8_145] : memref<32x96xf32, #tpu.memory_space<vmem>>, vector<32x8xf32>
    %c0_146 = arith.constant 0 : index
    %c40_147 = arith.constant 40 : index
    %250 = vector.load %arg19[%c0_146, %c40_147] : memref<32x96xf32, #tpu.memory_space<vmem>>, vector<32x8xf32>
    %c0_148 = arith.constant 0 : index
    %c72_149 = arith.constant 72 : index
    %251 = vector.load %arg19[%c0_148, %c72_149] : memref<32x96xf32, #tpu.memory_space<vmem>>, vector<32x8xf32>
    %cst_150 = arith.constant dense<0.000000e+00> : vector<32x32xf32>
    %252 = tpu.matmul %249, %250, %cst_150 {dimension_numbers = #tpu.dot_dimension_numbers<[1], [1], [0], [0], [0, 0, 1, 0], [], []>} : vector<32x8xf32>, vector<32x8xf32>, vector<32x32xf32> -> vector<32x32xf32>
    %cst_151 = arith.constant 0.353553385 : f32
    %253 = vector.broadcast %cst_151 : f32 to vector<32x32xf32>
    %254 = arith.mulf %252, %253 : vector<32x32xf32>
    %255 = arith.addf %254, %1 : vector<32x32xf32>
    %cst_152 = arith.constant dense<0xFF800000> : vector<32xf32>
    %256 = vector.multi_reduction <maximumf>, %255, %cst_152 [1] : vector<32x32xf32> to vector<32xf32>
    %257 = vector.shape_cast %256 : vector<32xf32> to vector<32x1xf32>
    %258 = vector.broadcast %257 : vector<32x1xf32> to vector<32x32xf32>
    %259 = arith.subf %255, %258 : vector<32x32xf32>
    %260 = math.exp %259 : vector<32x32xf32>
    %cst_153 = arith.constant dense<0.000000e+00> : vector<32xf32>
    %261 = vector.multi_reduction <add>, %260, %cst_153 [1] : vector<32x32xf32> to vector<32xf32>
    %262 = vector.shape_cast %261 : vector<32xf32> to vector<32x1xf32>
    %263 = tpu.reciprocal %262 {approx = true} : vector<32x1xf32> -> vector<32x1xf32>
    %264 = vector.broadcast %263 : vector<32x1xf32> to vector<32x32xf32>
    %265 = arith.mulf %260, %264 : vector<32x32xf32>
    %cst_154 = arith.constant dense<0.000000e+00> : vector<32x8xf32>
    %266 = tpu.matmul %265, %251, %cst_154 {dimension_numbers = #tpu.dot_dimension_numbers<[1], [0], [0], [1], [0, 0, 1, 1], [], []>} : vector<32x32xf32>, vector<32x8xf32>, vector<32x8xf32> -> vector<32x8xf32>
    %c0_155 = arith.constant 0 : index
    %c8_156 = arith.constant 8 : index
    %267 = vector.load %arg20[%c0_155, %c8_156] : memref<32x32xf32, #tpu.memory_space<vmem>>, vector<32x8xf32>
    tpu.vector_store %arg20[%c0_155, %c8_156], %266 {strides = array<i32>} : memref<32x32xf32, #tpu.memory_space<vmem>>, vector<32x8xf32>,
    %c0_157 = arith.constant 0 : index
    %c16_158 = arith.constant 16 : index
    %268 = vector.load %arg19[%c0_157, %c16_158] : memref<32x96xf32, #tpu.memory_space<vmem>>, vector<32x8xf32>
    %c0_159 = arith.constant 0 : index
    %c48_160 = arith.constant 48 : index
    %269 = vector.load %arg19[%c0_159, %c48_160] : memref<32x96xf32, #tpu.memory_space<vmem>>, vector<32x8xf32>
    %c0_161 = arith.constant 0 : index
    %c80_162 = arith.constant 80 : index
    %270 = vector.load %arg19[%c0_161, %c80_162] : memref<32x96xf32, #tpu.memory_space<vmem>>, vector<32x8xf32>
    %cst_163 = arith.constant dense<0.000000e+00> : vector<32x32xf32>
    %271 = tpu.matmul %268, %269, %cst_163 {dimension_numbers = #tpu.dot_dimension_numbers<[1], [1], [0], [0], [0, 0, 1, 0], [], []>} : vector<32x8xf32>, vector<32x8xf32>, vector<32x32xf32> -> vector<32x32xf32>
    %cst_164 = arith.constant 0.353553385 : f32
    %272 = vector.broadcast %cst_164 : f32 to vector<32x32xf32>
    %273 = arith.mulf %271, %272 : vector<32x32xf32>
    %274 = arith.addf %273, %1 : vector<32x32xf32>
    %cst_165 = arith.constant dense<0xFF800000> : vector<32xf32>
    %275 = vector.multi_reduction <maximumf>, %274, %cst_165 [1] : vector<32x32xf32> to vector<32xf32>
    %276 = vector.shape_cast %275 : vector<32xf32> to vector<32x1xf32>
    %277 = vector.broadcast %276 : vector<32x1xf32> to vector<32x32xf32>
    %278 = arith.subf %274, %277 : vector<32x32xf32>
    %279 = math.exp %278 : vector<32x32xf32>
    %cst_166 = arith.constant dense<0.000000e+00> : vector<32xf32>
    %280 = vector.multi_reduction <add>, %279, %cst_166 [1] : vector<32x32xf32> to vector<32xf32>
    %281 = vector.shape_cast %280 : vector<32xf32> to vector<32x1xf32>
    %282 = tpu.reciprocal %281 {approx = true} : vector<32x1xf32> -> vector<32x1xf32>
    %283 = vector.broadcast %282 : vector<32x1xf32> to vector<32x32xf32>
    %284 = arith.mulf %279, %283 : vector<32x32xf32>
    %cst_167 = arith.constant dense<0.000000e+00> : vector<32x8xf32>
    %285 = tpu.matmul %284, %270, %cst_167 {dimension_numbers = #tpu.dot_dimension_numbers<[1], [0], [0], [1], [0, 0, 1, 1], [], []>} : vector<32x32xf32>, vector<32x8xf32>, vector<32x8xf32> -> vector<32x8xf32>
    %c0_168 = arith.constant 0 : index
    %c16_169 = arith.constant 16 : index
    %286 = vector.load %arg20[%c0_168, %c16_169] : memref<32x32xf32, #tpu.memory_space<vmem>>, vector<32x8xf32>
    tpu.vector_store %arg20[%c0_168, %c16_169], %285 {strides = array<i32>} : memref<32x32xf32, #tpu.memory_space<vmem>>, vector<32x8xf32>,
    %c0_170 = arith.constant 0 : index
    %c24_171 = arith.constant 24 : index
    %287 = vector.load %arg19[%c0_170, %c24_171] : memref<32x96xf32, #tpu.memory_space<vmem>>, vector<32x8xf32>
    %c0_172 = arith.constant 0 : index
    %c56_173 = arith.constant 56 : index
    %288 = vector.load %arg19[%c0_172, %c56_173] : memref<32x96xf32, #tpu.memory_space<vmem>>, vector<32x8xf32>
    %c0_174 = arith.constant 0 : index
    %c88_175 = arith.constant 88 : index
    %289 = vector.load %arg19[%c0_174, %c88_175] : memref<32x96xf32, #tpu.memory_space<vmem>>, vector<32x8xf32>
    %cst_176 = arith.constant dense<0.000000e+00> : vector<32x32xf32>
    %290 = tpu.matmul %287, %288, %cst_176 {dimension_numbers = #tpu.dot_dimension_numbers<[1], [1], [0], [0], [0, 0, 1, 0], [], []>} : vector<32x8xf32>, vector<32x8xf32>, vector<32x32xf32> -> vector<32x32xf32>
    %cst_177 = arith.constant 0.353553385 : f32
    %291 = vector.broadcast %cst_177 : f32 to vector<32x32xf32>
    %292 = arith.mulf %290, %291 : vector<32x32xf32>
    %293 = arith.addf %292, %1 : vector<32x32xf32>
    %cst_178 = arith.constant dense<0xFF800000> : vector<32xf32>
    %294 = vector.multi_reduction <maximumf>, %293, %cst_178 [1] : vector<32x32xf32> to vector<32xf32>
    %295 = vector.shape_cast %294 : vector<32xf32> to vector<32x1xf32>
    %296 = vector.broadcast %295 : vector<32x1xf32> to vector<32x32xf32>
    %297 = arith.subf %293, %296 : vector<32x32xf32>
    %298 = math.exp %297 : vector<32x32xf32>
    %cst_179 = arith.constant dense<0.000000e+00> : vector<32xf32>
    %299 = vector.multi_reduction <add>, %298, %cst_179 [1] : vector<32x32xf32> to vector<32xf32>
    %300 = vector.shape_cast %299 : vector<32xf32> to vector<32x1xf32>
    %301 = tpu.reciprocal %300 {approx = true} : vector<32x1xf32> -> vector<32x1xf32>
    %302 = vector.broadcast %301 : vector<32x1xf32> to vector<32x32xf32>
    %303 = arith.mulf %298, %302 : vector<32x32xf32>
    %cst_180 = arith.constant dense<0.000000e+00> : vector<32x8xf32>
    %304 = tpu.matmul %303, %289, %cst_180 {dimension_numbers = #tpu.dot_dimension_numbers<[1], [0], [0], [1], [0, 0, 1, 1], [], []>} : vector<32x32xf32>, vector<32x8xf32>, vector<32x8xf32> -> vector<32x8xf32>
    %c0_181 = arith.constant 0 : index
    %c24_182 = arith.constant 24 : index
    %305 = vector.load %arg20[%c0_181, %c24_182] : memref<32x32xf32, #tpu.memory_space<vmem>>, vector<32x8xf32>
    tpu.vector_store %arg20[%c0_181, %c24_182], %304 {strides = array<i32>} : memref<32x32xf32, #tpu.memory_space<vmem>>, vector<32x8xf32>,
    %c0_183 = arith.constant 0 : index
    %c0_184 = arith.constant 0 : index
    %306 = vector.load %arg20[%c0_183, %c0_184] : memref<32x32xf32, #tpu.memory_space<vmem>>, vector<32x32xf32>
    %c1_185 = arith.constant 1 : index
    %c0_186 = arith.constant 0 : index
    %c0_187 = arith.constant 0 : index
    %307 = vector.load %arg6[%c1_185, %c0_186, %c0_187] : memref<2x32x32xf32, #tpu.memory_space<vmem>>, vector<1x32x32xf32>
    %308 = vector.shape_cast %307 : vector<1x32x32xf32> to vector<32x32xf32>
    %cst_188 = arith.constant dense<0.000000e+00> : vector<32x32xf32>
    %309 = tpu.matmul %306, %308, %cst_188 {dimension_numbers = #tpu.dot_dimension_numbers<[1], [0], [0], [1], [0, 0, 1, 1], [], []>} : vector<32x32xf32>, vector<32x32xf32>, vector<32x32xf32> -> vector<32x32xf32>
    %c1_189 = arith.constant 1 : index
    %c0_190 = arith.constant 0 : index
    %c0_191 = arith.constant 0 : index
    %310 = vector.load %arg7[%c1_189, %c0_190, %c0_191] : memref<2x1x32xf32, #tpu.memory_space<vmem>>, vector<1x1x32xf32>
    %311 = vector.shape_cast %310 : vector<1x1x32xf32> to vector<1x32xf32>
    %312 = vector.broadcast %311 : vector<1x32xf32> to vector<32x32xf32>
    %313 = arith.addf %309, %312 : vector<32x32xf32>
    %314 = arith.addf %197, %313 : vector<32x32xf32>
    %c1_192 = arith.constant 1 : index
    %c0_193 = arith.constant 0 : index
    %c0_194 = arith.constant 0 : index
    %315 = vector.load %arg8[%c1_192, %c0_193, %c0_194] : memref<2x1x32xf32, #tpu.memory_space<vmem>>, vector<1x1x32xf32>
    %316 = vector.shape_cast %315 : vector<1x1x32xf32> to vector<1x32xf32>
    %c1_195 = arith.constant 1 : index
    %c0_196 = arith.constant 0 : index
    %c0_197 = arith.constant 0 : index
    %317 = vector.load %arg9[%c1_195, %c0_196, %c0_197] : memref<2x1x32xf32, #tpu.memory_space<vmem>>, vector<1x1x32xf32>
    %318 = vector.shape_cast %317 : vector<1x1x32xf32> to vector<1x32xf32>
    %cst_198 = arith.constant dense<0.000000e+00> : vector<32xf32>
    %319 = vector.multi_reduction <add>, %314, %cst_198 [1] : vector<32x32xf32> to vector<32xf32>
    %320 = vector.shape_cast %319 : vector<32xf32> to vector<32x1xf32>
    %cst_199 = arith.constant 3.200000e+01 : f32
    %321 = vector.broadcast %cst_199 : f32 to vector<32x1xf32>
    %322 = arith.divf %320, %321 : vector<32x1xf32>
    %323 = vector.broadcast %322 : vector<32x1xf32> to vector<32x32xf32>
    %324 = arith.subf %314, %323 : vector<32x32xf32>
    %325 = arith.mulf %324, %324 : vector<32x32xf32>
    %cst_200 = arith.constant dense<0.000000e+00> : vector<32xf32>
    %326 = vector.multi_reduction <add>, %325, %cst_200 [1] : vector<32x32xf32> to vector<32xf32>
    %327 = vector.shape_cast %326 : vector<32xf32> to vector<32x1xf32>
    %cst_201 = arith.constant 3.200000e+01 : f32
    %328 = vector.broadcast %cst_201 : f32 to vector<32x1xf32>
    %329 = arith.divf %327, %328 : vector<32x1xf32>
    %cst_202 = arith.constant 9.99999974E-6 : f32
    %330 = vector.broadcast %cst_202 : f32 to vector<32x1xf32>
    %331 = arith.addf %329, %330 : vector<32x1xf32>
    %332 = math.rsqrt %331 : vector<32x1xf32>
    %333 = vector.broadcast %332 : vector<32x1xf32> to vector<32x32xf32>
    %334 = arith.mulf %324, %333 : vector<32x32xf32>
    %335 = vector.broadcast %316 : vector<1x32xf32> to vector<32x32xf32>
    %336 = arith.mulf %334, %335 : vector<32x32xf32>
    %337 = vector.broadcast %318 : vector<1x32xf32> to vector<32x32xf32>
    %338 = arith.addf %336, %337 : vector<32x32xf32>
    %c1_203 = arith.constant 1 : index
    %c0_204 = arith.constant 0 : index
    %c0_205 = arith.constant 0 : index
    %339 = vector.load %arg10[%c1_203, %c0_204, %c0_205] : memref<2x32x128xf32, #tpu.memory_space<vmem>>, vector<1x32x128xf32>
    %340 = vector.shape_cast %339 : vector<1x32x128xf32> to vector<32x128xf32>
    %cst_206 = arith.constant dense<0.000000e+00> : vector<32x128xf32>
    %341 = tpu.matmul %338, %340, %cst_206 {dimension_numbers = #tpu.dot_dimension_numbers<[1], [0], [0], [1], [0, 0, 1, 1], [], []>} : vector<32x32xf32>, vector<32x128xf32>, vector<32x128xf32> -> vector<32x128xf32>
    %c1_207 = arith.constant 1 : index
    %c0_208 = arith.constant 0 : index
    %c0_209 = arith.constant 0 : index
    %342 = vector.load %arg11[%c1_207, %c0_208, %c0_209] : memref<2x1x128xf32, #tpu.memory_space<vmem>>, vector<1x1x128xf32>
    %343 = vector.shape_cast %342 : vector<1x1x128xf32> to vector<1x128xf32>
    %344 = vector.broadcast %343 : vector<1x128xf32> to vector<32x128xf32>
    %345 = arith.addf %341, %344 : vector<32x128xf32>
    %cst_210 = arith.constant 5.000000e-01 : f32
    %346 = vector.broadcast %cst_210 : f32 to vector<32x128xf32>
    %347 = arith.mulf %346, %345 : vector<32x128xf32>
    %cst_211 = arith.constant 0.707106769 : f32
    %348 = vector.broadcast %cst_211 : f32 to vector<32x128xf32>
    %349 = arith.mulf %345, %348 : vector<32x128xf32>
    %350 = math.absf %349 : vector<32x128xf32>
    %cst_212 = arith.constant 0.327591091 : f32
    %351 = vector.broadcast %cst_212 : f32 to vector<32x128xf32>
    %352 = arith.mulf %351, %350 : vector<32x128xf32>
    %cst_213 = arith.constant 1.000000e+00 : f32
    %353 = vector.broadcast %cst_213 : f32 to vector<32x128xf32>
    %354 = arith.addf %353, %352 : vector<32x128xf32>
    %cst_214 = arith.constant 1.000000e+00 : f32
    %355 = vector.broadcast %cst_214 : f32 to vector<32x128xf32>
    %356 = arith.divf %355, %354 : vector<32x128xf32>
    %cst_215 = arith.constant 1.06140542 : f32
    %357 = vector.broadcast %cst_215 : f32 to vector<32x128xf32>
    %358 = arith.mulf %357, %356 : vector<32x128xf32>
    %cst_216 = arith.constant -1.45315206 : f32
    %359 = vector.broadcast %cst_216 : f32 to vector<32x128xf32>
    %360 = arith.addf %358, %359 : vector<32x128xf32>
    %361 = arith.mulf %360, %356 : vector<32x128xf32>
    %cst_217 = arith.constant 1.42141378 : f32
    %362 = vector.broadcast %cst_217 : f32 to vector<32x128xf32>
    %363 = arith.addf %361, %362 : vector<32x128xf32>
    %364 = arith.mulf %363, %356 : vector<32x128xf32>
    %cst_218 = arith.constant -0.284496725 : f32
    %365 = vector.broadcast %cst_218 : f32 to vector<32x128xf32>
    %366 = arith.addf %364, %365 : vector<32x128xf32>
    %367 = arith.mulf %366, %356 : vector<32x128xf32>
    %cst_219 = arith.constant 0.254829586 : f32
    %368 = vector.broadcast %cst_219 : f32 to vector<32x128xf32>
    %369 = arith.addf %367, %368 : vector<32x128xf32>
    %370 = arith.mulf %369, %356 : vector<32x128xf32>
    %cst_220 = arith.constant 0.000000e+00 : f32
    %371 = vector.broadcast %cst_220 : f32 to vector<32x128xf32>
    %372 = arith.subf %371, %350 : vector<32x128xf32>
    %373 = arith.mulf %372, %350 : vector<32x128xf32>
    %374 = math.exp %373 : vector<32x128xf32>
    %375 = arith.mulf %370, %374 : vector<32x128xf32>
    %cst_221 = arith.constant 1.000000e+00 : f32
    %376 = vector.broadcast %cst_221 : f32 to vector<32x128xf32>
    %377 = arith.subf %376, %375 : vector<32x128xf32>
    %cst_222 = arith.constant 0.000000e+00 : f32
    %378 = vector.broadcast %cst_222 : f32 to vector<32x128xf32>
    %379 = arith.cmpf oge, %349, %378 : vector<32x128xf32>
    %cst_223 = arith.constant 0.000000e+00 : f32
    %380 = vector.broadcast %cst_223 : f32 to vector<32x128xf32>
    %381 = arith.subf %380, %377 : vector<32x128xf32>
    %382 = arith.select %379, %377, %381 : vector<32x128xi1>, vector<32x128xf32>
    %cst_224 = arith.constant 1.000000e+00 : f32
    %383 = vector.broadcast %cst_224 : f32 to vector<32x128xf32>
    %384 = arith.addf %383, %382 : vector<32x128xf32>
    %385 = arith.mulf %347, %384 : vector<32x128xf32>
    %c1_225 = arith.constant 1 : index
    %c0_226 = arith.constant 0 : index
    %c0_227 = arith.constant 0 : index
    %386 = vector.load %arg12[%c1_225, %c0_226, %c0_227] : memref<2x128x32xf32, #tpu.memory_space<vmem>>, vector<1x128x32xf32>
    %387 = vector.shape_cast %386 : vector<1x128x32xf32> to vector<128x32xf32>
    %cst_228 = arith.constant dense<0.000000e+00> : vector<32x32xf32>
    %388 = tpu.matmul %385, %387, %cst_228 {dimension_numbers = #tpu.dot_dimension_numbers<[1], [0], [0], [1], [0, 0, 1, 1], [], []>} : vector<32x128xf32>, vector<128x32xf32>, vector<32x32xf32> -> vector<32x32xf32>
    %c1_229 = arith.constant 1 : index
    %c0_230 = arith.constant 0 : index
    %c0_231 = arith.constant 0 : index
    %389 = vector.load %arg13[%c1_229, %c0_230, %c0_231] : memref<2x1x32xf32, #tpu.memory_space<vmem>>, vector<1x1x32xf32>
    %390 = vector.shape_cast %389 : vector<1x1x32xf32> to vector<1x32xf32>
    %391 = vector.broadcast %390 : vector<1x32xf32> to vector<32x32xf32>
    %392 = arith.addf %388, %391 : vector<32x32xf32>
    %393 = arith.addf %314, %392 : vector<32x32xf32>
    %c0_232 = arith.constant 0 : index
    %c0_233 = arith.constant 0 : index
    %394 = vector.load %arg14[%c0_232, %c0_233] : memref<1x32xf32, #tpu.memory_space<vmem>>, vector<1x32xf32>
    %c0_234 = arith.constant 0 : index
    %c0_235 = arith.constant 0 : index
    %395 = vector.load %arg15[%c0_234, %c0_235] : memref<1x32xf32, #tpu.memory_space<vmem>>, vector<1x32xf32>
    %cst_236 = arith.constant dense<0.000000e+00> : vector<32xf32>
    %396 = vector.multi_reduction <add>, %393, %cst_236 [1] : vector<32x32xf32> to vector<32xf32>
    %397 = vector.shape_cast %396 : vector<32xf32> to vector<32x1xf32>
    %cst_237 = arith.constant 3.200000e+01 : f32
    %398 = vector.broadcast %cst_237 : f32 to vector<32x1xf32>
    %399 = arith.divf %397, %398 : vector<32x1xf32>
    %400 = vector.broadcast %399 : vector<32x1xf32> to vector<32x32xf32>
    %401 = arith.subf %393, %400 : vector<32x32xf32>
    %402 = arith.mulf %401, %401 : vector<32x32xf32>
    %cst_238 = arith.constant dense<0.000000e+00> : vector<32xf32>
    %403 = vector.multi_reduction <add>, %402, %cst_238 [1] : vector<32x32xf32> to vector<32xf32>
    %404 = vector.shape_cast %403 : vector<32xf32> to vector<32x1xf32>
    %cst_239 = arith.constant 3.200000e+01 : f32
    %405 = vector.broadcast %cst_239 : f32 to vector<32x1xf32>
    %406 = arith.divf %404, %405 : vector<32x1xf32>
    %cst_240 = arith.constant 9.99999974E-6 : f32
    %407 = vector.broadcast %cst_240 : f32 to vector<32x1xf32>
    %408 = arith.addf %406, %407 : vector<32x1xf32>
    %409 = math.rsqrt %408 : vector<32x1xf32>
    %410 = vector.broadcast %409 : vector<32x1xf32> to vector<32x32xf32>
    %411 = arith.mulf %401, %410 : vector<32x32xf32>
    %412 = vector.broadcast %394 : vector<1x32xf32> to vector<32x32xf32>
    %413 = arith.mulf %411, %412 : vector<32x32xf32>
    %414 = vector.broadcast %395 : vector<1x32xf32> to vector<32x32xf32>
    %415 = arith.addf %413, %414 : vector<32x32xf32>
    %c0_241 = arith.constant 0 : index
    %c0_242 = arith.constant 0 : index
    %416 = vector.load %arg16[%c0_241, %c0_242] : memref<32x192xf32, #tpu.memory_space<vmem>>, vector<32x192xf32>
    %cst_243 = arith.constant dense<0.000000e+00> : vector<32x192xf32>
    %417 = tpu.matmul %415, %416, %cst_243 {dimension_numbers = #tpu.dot_dimension_numbers<[1], [0], [0], [1], [0, 0, 1, 1], [], []>} : vector<32x32xf32>, vector<32x192xf32>, vector<32x192xf32> -> vector<32x192xf32>
    %c0_244 = arith.constant 0 : index
    %c0_245 = arith.constant 0 : index
    %418 = vector.load %arg17[%c0_244, %c0_245] : memref<1x192xf32, #tpu.memory_space<vmem>>, vector<1x192xf32>
    %419 = vector.broadcast %418 : vector<1x192xf32> to vector<32x192xf32>
    %420 = arith.addf %417, %419 : vector<32x192xf32>
    %c0_246 = arith.constant 0 : index
    %c0_247 = arith.constant 0 : index
    %421 = vector.load %arg18[%c0_246, %c0_247] : memref<32x192xf32, #tpu.memory_space<vmem>>, vector<32x192xf32>
    tpu.vector_store %arg18[%c0_246, %c0_247], %420 {strides = array<i32>} : memref<32x192xf32, #tpu.memory_space<vmem>>, vector<32x192xf32>,
    return
  }
}

module attributes {stable_mosaic.version = 11 : i64} {
  func.func @_masked_mse_kernel(%arg0: memref<32x192xf32, #tpu.memory_space<vmem>>, %arg1: memref<32x192xf32, #tpu.memory_space<vmem>>, %arg2: memref<32x1xf32, #tpu.memory_space<vmem>>, %arg3: memref<1x1xf32, #tpu.memory_space<smem>>, %arg4: memref<1x1xf32, #tpu.memory_space<smem>>) attributes {dimension_semantics = [], scalar_prefetch = 0 : i64, scratch_operands = 0 : i64, tpu.core_type = #tpu.core_type<tc>} {
    %c0 = arith.constant 0 : index
    %c0_0 = arith.constant 0 : index
    %0 = vector.load %arg0[%c0, %c0_0] : memref<32x192xf32, #tpu.memory_space<vmem>>, vector<32x192xf32>
    %c0_1 = arith.constant 0 : index
    %c0_2 = arith.constant 0 : index
    %1 = vector.load %arg1[%c0_1, %c0_2] : memref<32x192xf32, #tpu.memory_space<vmem>>, vector<32x192xf32>
    %2 = arith.subf %0, %1 : vector<32x192xf32>
    %3 = arith.mulf %2, %2 : vector<32x192xf32>
    %cst = arith.constant dense<0.000000e+00> : vector<32xf32>
    %4 = vector.multi_reduction <add>, %3, %cst [1] : vector<32x192xf32> to vector<32xf32>
    %5 = vector.shape_cast %4 : vector<32xf32> to vector<32x1xf32>
    %cst_3 = arith.constant 1.920000e+02 : f32
    %6 = vector.broadcast %cst_3 : f32 to vector<32x1xf32>
    %7 = arith.divf %5, %6 : vector<32x1xf32>
    %c0_4 = arith.constant 0 : index
    %c0_5 = arith.constant 0 : index
    %8 = vector.load %arg2[%c0_4, %c0_5] : memref<32x1xf32, #tpu.memory_space<vmem>>, vector<32x1xf32>
    %9 = arith.mulf %7, %8 : vector<32x1xf32>
    %10 = vector.shape_cast %9 : vector<32x1xf32> to vector<1x32x1xf32>
    %cst_6 = arith.constant dense<0.000000e+00> : vector<1xf32>
    %11 = vector.multi_reduction <add>, %10, %cst_6 [1, 2] : vector<1x32x1xf32> to vector<1xf32>
    %12 = vector.shape_cast %11 : vector<1xf32> to vector<1x1x1xf32>
    %13 = vector.extract %12[0, 0, 0] : f32 from vector<1x1x1xf32>
    %c0_7 = arith.constant 0 : index
    %c0_8 = arith.constant 0 : index
    %14 = memref.load %arg3[%c0_7, %c0_8] : memref<1x1xf32, #tpu.memory_space<smem>>
    memref.store %13, %arg3[%c0_7, %c0_8] : memref<1x1xf32, #tpu.memory_space<smem>>
    %15 = vector.shape_cast %8 : vector<32x1xf32> to vector<1x32x1xf32>
    %cst_9 = arith.constant dense<0.000000e+00> : vector<1xf32>
    %16 = vector.multi_reduction <add>, %15, %cst_9 [1, 2] : vector<1x32x1xf32> to vector<1xf32>
    %17 = vector.shape_cast %16 : vector<1xf32> to vector<1x1x1xf32>
    %18 = vector.extract %17[0, 0, 0] : f32 from vector<1x1x1xf32>
    %c0_10 = arith.constant 0 : index
    %c0_11 = arith.constant 0 : index
    %19 = memref.load %arg4[%c0_10, %c0_11] : memref<1x1xf32, #tpu.memory_space<smem>>
    memref.store %18, %arg4[%c0_10, %c0_11] : memref<1x1xf32, #tpu.memory_space<smem>>
    return
  }
}

</mosaic_0001>

<bundles_post_ra>
// kernel: mae_forward.3
= control target key start
LH: loop header
LB: loop body
LE: loop exit
PB: predicated region body
PF: predicated region fallthrough
CT: control target
= control target key end

     0   :  { %vm98_vm0 = vcmask 523264   ;;  %vm147_vm1 = vcmask 261120   ;;  %v1455_v34 = vmov 32.0   ;;  %vm216_vm6 = vcmask 785408   ;;  %s1457_s28 = smov 64   ;;  %s1458_s29 = smov 96   ;;  %s2077_s3 = inlined_call_operand.vmem [shape: f32[192,32], index: 3, kind: input, shape index: {}]   ;;  %s2078_s4 = inlined_call_operand.vmem [shape: f32[1,32], index: 4, kind: input, shape index: {}]   ;;  %s2079_s0 = inlined_call_operand.vmem [shape: f32[8,192], index: 0, kind: input, shape index: {}]   ;;  %s2080_s1 = inlined_call_operand.vmem [shape: f32[8,32], index: 1, kind: input, shape index: {}]   ;;  %s2081_s5 = inlined_call_operand.vmem [shape: f32[2,1,32], index: 5, kind: input, shape index: {}]   ;;  %s2082_s6 = inlined_call_operand.vmem [shape: f32[2,1,32], index: 6, kind: input, shape index: {}]   ;;  %s2083_s8 = inlined_call_operand.vmem [shape: f32[2,1,96], index: 8, kind: input, shape index: {}]   ;;  %s2084_s7 = inlined_call_operand.vmem [shape: f32[2,32,96], index: 7, kind: input, shape index: {}]   ;;  %s2085_s2 = inlined_call_operand.vmem [shape: f32[8,8], index: 2, kind: input, shape index: {}]   ;;  %s2086_s10 = inlined_call_operand.vmem [shape: f32[2,1,32], index: 10, kind: input, shape index: {}]   ;;  %s2087_s9 = inlined_call_operand.vmem [shape: f32[2,32,32], index: 9, kind: input, shape index: {}]   ;;  %s2088_s11 = inlined_call_operand.vmem [shape: f32[2,1,32], index: 11, kind: input, shape index: {}]   ;;  %s2089_s12 = inlined_call_operand.vmem [shape: f32[2,1,32], index: 12, kind: input, shape index: {}]   ;;  %s2090_s14 = inlined_call_operand.vmem [shape: f32[2,1,128], index: 14, kind: input, shape index: {}]   ;;  %s2091_s13 = inlined_call_operand.vmem [shape: f32[2,32,128], index: 13, kind: input, shape index: {}]   ;;  %s2092_s16 = inlined_call_operand.vmem [shape: f32[2,1,32], index: 16, kind: input, shape index: {}]   ;;  %s2093_s15 = inlined_call_operand.vmem [shape: f32[2,128,32], index: 15, kind: input, shape index: {}]   ;;  %s2094_s17 = inlined_call_operand.vmem [shape: f32[1,32], index: 17, kind: input, shape index: {}]   ;;  %s2095_s18 = inlined_call_operand.vmem [shape: f32[1,32], index: 18, kind: input, shape index: {}]   ;;  %s2096_s20 = inlined_call_operand.vmem [shape: f32[1,32], index: 20, kind: input, shape index: {}]   ;;  %s2097_s19 = inlined_call_operand.vmem [shape: f32[32,32], index: 19, kind: input, shape index: {}]   ;;  %s2098_s21 = inlined_call_operand.vmem [shape: f32[8,32], index: 21, kind: output, shape index: {}]  }
   0x1   :  { %2113 = sst [smem:[#allocation4_spill]] %s2077_s3  ;;  %1403 = vrcp.f32 %v1455_v34  ;;  %v188_v46 = vld [vmem:[%s2084_s7 + $0x18] sm:$0xff]  ;;  %v187_v47 = vld [vmem:[%s2084_s7 + $0x10] sm:$0xff]  ;;  %v186_v48 = vld [vmem:[%s2084_s7 + $0x8] sm:$0xff]  ;;  %vm222_vm7 = vcmask 64512   ;;  %s2112_s30 = smov 56  }
   0x2   :  { %2114 = sst [smem:[#allocation5_spill]] %s2078_s4  ;;  %208 = vmatpush.msra.mxu2 %v188_v46  ;;  %v185_v49 = vld [vmem:[%s2084_s7] sm:$0xff]  ;;  %s2110_s23 = smov 104   ;;  %vm360_vm8 = vcmask 130112   ;;  %vm435_vm9 = vcmask 195712   ;;  %vm510_vm10 = vcmask 261312  }
   0x3   :  { %2115 = sst [smem:[#allocation6_spill]] %s2079_s0  ;;  %s2107_s4 = smov 72  }
   0x4   :  { %2116 = sst [smem:[#allocation7_spill]] %s2080_s1  ;;  %209 = vmatpush.msra.mxu2 %v187_v47  ;;  %s2105_s25 = smov 48  }
   0x5   :  { %2117 = sst [smem:[#allocation8_spill]] %s2081_s5  ;;  %s2109_s3 = smov 16  }
   0x6   :  { %2118 = sst [smem:[#allocation9_spill]] %s2082_s6  ;;  %210 = vmatpush.msra.mxu2 %v186_v48  ;;  %s2108_s6 = smov 80  }
   0x7   :  { %s2119_s26 = sld [smem:[#allocation4_spill]]  ;;  %v1404_v35 = vpop.eup %1403  ;;  %s2111_s5 = smov 24  }
   0x8   :  { %s2120_s22 = sld [smem:[#allocation6_spill]]  ;;  %v152_v36 = vmul.f32 32.0, %v1404_v35  ;;  %vm156_vm2 = vweird.f32 %v1404_v35  ;;  %211 = vmatpush.msra.mxu2 %v185_v49 }
   0x9   :  { %s2121_s0 = sld [smem:[#allocation5_spill]] }
   0xa   :  { %s2122_s1 = sld [smem:[#allocation7_spill]]  ;;  %v153_v37 = vsub.f32 1.0, %v152_v36 }
   0xb   :  { %s2123_s24 = sld [smem:[#allocation8_spill]] }
   0xc   :  { %v154_v38 = vmul.f32 %v1404_v35, %v153_v37  ;;  %s2124_s27 = sld [smem:[#allocation9_spill]] }
   0xd   :  { %v85_v0 = vld [vmem:[%s2119_s26 + $0x78] sm:$0xff]  ;;  %v84_v1 = vld [vmem:[%s2119_s26 + $0x70] sm:$0xff]  ;;  %v83_v2 = vld [vmem:[%s2119_s26 + $0x68] sm:$0xff] }
   0xe   :  { %102 = vmatpush.msra.mxu0 %v85_v0  ;;  %v93_v3 = vld [vmem:[%s2119_s26 + $0xb8] sm:$0xff]  ;;  %v82_v4 = vld [vmem:[%s2119_s26 + $0x60] sm:$0xff]  ;;  %v92_v5 = vld [vmem:[%s2119_s26 + $0xb0] sm:$0xff]  ;;  %v155_v39 = vadd.f32 %v1404_v35, %v154_v38 }
   0xf   :  { %130 = vmatpush.msra.mxu1 %v93_v3  ;;  %v91_v6 = vld [vmem:[%s2119_s26 + $0xa8] sm:$0xff]  ;;  %v81_v7 = vld [vmem:[%s2119_s26 + $0x58] sm:$0xff]  ;;  %v90_v8 = vld [vmem:[%s2119_s26 + $0xa0] sm:$0xff] }
  0x10   :  { %103 = vmatpush.msra.mxu0 %v84_v1  ;;  %v80_v9 = vld [vmem:[%s2119_s26 + $0x50] sm:$0xff]  ;;  %v89_v10 = vld [vmem:[%s2119_s26 + $0x98] sm:$0xff]  ;;  %v79_v11 = vld [vmem:[%s2119_s26 + $0x48] sm:$0xff]  ;;  %v1668_v40 = vsel %vm156_vm2, %v1404_v35, %v155_v39 }
  0x11   :  { %131 = vmatpush.msra.mxu1 %v92_v5  ;;  %v88_v12 = vld [vmem:[%s2119_s26 + $0x90] sm:$0xff]  ;;  %v78_v13 = vld [vmem:[%s2119_s26 + $0x40] sm:$0xff]  ;;  %v87_v14 = vld [vmem:[%s2119_s26 + $0x88] sm:$0xff] }
  0x12   :  { %104 = vmatpush.msra.mxu0 %v83_v2  ;;  %v77_v15 = vld [vmem:[%s2119_s26 + $0x38] sm:$0xff]  ;;  %v86_v16 = vld [vmem:[%s2119_s26 + $0x80] sm:$0xff]  ;;  %v76_v17 = vld [vmem:[%s2119_s26 + $0x30] sm:$0xff] }
  0x13   :  { %132 = vmatpush.msra.mxu1 %v91_v6  ;;  %v69_v18 = vld [vmem:[%s2120_s22 + $0x8] sm:$0xff]  ;;  %v74_v20 = vld [vmem:[%s2119_s26 + $0x20] sm:$0xff]  ;;  %v73_v21 = vld [vmem:[%s2119_s26 + $0x18] sm:$0xff] }
  0x14   :  { %105 = vmatpush.msra.mxu0 %v82_v4  ;;  %v75_v19 = vld [vmem:[%s2119_s26 + $0x28] sm:$0xff]  ;;  %v72_v22 = vld [vmem:[%s2119_s26 + $0x10] sm:$0xff]  ;;  %v70_v24 = vld [vmem:[%s2119_s26] sm:$0xff] }
  0x15   :  { %133 = vmatpush.msra.mxu1 %v90_v8  ;;  %v71_v23 = vld [vmem:[%s2119_s26 + $0x8] sm:$0xff]  ;;  %v68_v25 = vld [vmem:[%s2120_s22] sm:$0xff]  ;;  %s1456_s22 = smov 88   ;;  %s2103_s26 = smov 40  }
  0x16   :  { %106 = vmatpush.msra.mxu0 %v81_v7  ;;  %v1383_v26 = vld [vmem:[%s2121_s0] ss:$0 sm:$0xff]  ;;  %s2106_s0 = smov 112  }
  0x17   :  { %134 = vmatpush.msra.mxu1 %v89_v10  ;;  %v142_v30 = vld [vmem:[%s2122_s1] sm:$0xff]  ;;  %s2104_s1 = smov 8  }
  0x18   :  { %107 = vmatpush.msra.mxu0 %v80_v9  ;;  %v1384_v59 = vld [vmem:[%s2123_s24] ss:$0 sm:$0xff] }
  0x19   :  { %135 = vmatpush.msra.mxu1 %v88_v12  ;;  %v1385_v62 = vld [vmem:[%s2124_s27] ss:$0 sm:$0xff] }
  0x1a   :  { %108 = vmatpush.msra.mxu0 %v79_v11  ;;  %v1388_v1 = vld [vmem:[%s2083_s8] ss:$0 sm:$0xff] }
  0x1b   :  { %136 = vmatpush.msra.mxu1 %v87_v14  ;;  %v1712_v9 = vld [vmem:[%s2085_s2] sm:$0xff]  ;;  %s1462_s2 = smov 120  }
  0x1c   :  { %109 = vmatpush.msra.mxu0 %v78_v13 }
  0x1d   :  { %137 = vmatpush.msra.mxu1 %v86_v16 }
  0x1e   :  { %110 = vmatpush.msra.mxu0 %v77_v15  ;;  %1300 = vmatmul.msk.f32.vlgmr.msra.gmra.mxu1 %vm98_vm0, %v69_v18 }
  0x20   :  { %111 = vmatpush.msra.mxu0 %v76_v17 }
  0x22   :  { %112 = vmatpush.msra.mxu0 %v75_v19 }
  0x24   :  { %113 = vmatpush.msra.mxu0 %v74_v20 }
  0x26   :  { %114 = vmatpush.msra.mxu0 %v73_v21 }
  0x28   :  { %115 = vmatpush.msra.mxu0 %v72_v22 }
  0x2a   :  { %116 = vmatpush.msra.mxu0 %v71_v23 }
  0x2c   :  { %117 = vmatpush.msra.mxu0 %v70_v24 }
  0x2d   :  { %118 = vmatmul.f32.vlgmr.msra.gmra.mxu0 %v68_v25 }
  0x9b   :  { %v139_v28 = vpop.f32.mrf.mxu1 }
  0xaa   :  { %v119_v27 = vpop.f32.mrf.mxu0 }
  0xab   :  { %v120_v29 = vadd.f32 %v1383_v26, %v119_v27 }
  0xad   :  { %v140_v31 = vadd.f32 %v139_v28, %v120_v29 }
  0xaf   :  { %v1664_v32 = vadd.f32 %v142_v30, %v140_v31 }
  0xb1   :  { %v148_v33 = vsel %vm147_vm1, %v1664_v32, 0.0 }
  0xb2   :  { %149 = vadd.xlane.f32.xlu0 %v148_v33 }
 0x125   :  { %v150_v41 = vpop.xlane.xlu0 %149 }
 0x126   :  { %v158_v42 = vmul.f32 %v1668_v40, %v150_v41 }
 0x128   :  { %v159_v43 = vsub.f32 %v1664_v32, %v158_v42 }
 0x12a   :  { %v160_v44 = vmul.f32 %v159_v43, %v159_v43 }
 0x12c   :  { %v161_v45 = vsel %vm147_vm1, %v160_v44, 0.0 }
 0x12d   :  { %162 = vadd.xlane.f32.xlu0 %v161_v45 }
 0x1a0   :  { %v163_v50 = vpop.xlane.xlu0 %162 }
 0x1a1   :  { %v164_v51 = vmul.f32 %v163_v50, %v1668_v40 }
 0x1a3   :  { %v165_v52 = vadd.f32 1e-05, %v164_v51 }
 0x1a5   :  { %1405 = vrsqrt.f32 %v165_v52  ;;  %vm172_vm4 = vweird.f32 %v165_v52 }
 0x1ab   :  { %v1406_v53 = vpop.eup %1405 }
 0x1ac   :  { %v167_v54 = vmul.f32 %v1406_v53, %v165_v52  ;;  %vm173_vm3 = vweird.f32 %v1406_v53 }
 0x1ad   :  { %vm174_vm5 = vmor %vm172_vm4, %vm173_vm3 }
 0x1ae   :  { %v168_v55 = vmul.f32 %v1406_v53, %v167_v54 }
 0x1b0   :  { %v169_v56 = vmul.f32 0.5, %v168_v55 }
 0x1b2   :  { %v170_v57 = vsub.f32 1.5, %v169_v56 }
 0x1b4   :  { %v171_v58 = vmul.f32 %v1406_v53, %v170_v57 }
 0x1b6   :  { %v175_v60 = vsel %vm174_vm5, %v1406_v53, %v171_v58 }
 0x1b7   :  { %v176_v61 = vmul.f32 %v175_v60, %v159_v43 }
 0x1b9   :  { %v180_v63 = vmul.f32 %v1384_v59, %v176_v61 }
 0x1bb   :  { %v184_v0 = vadd.f32 %v1385_v62, %v180_v63 }
 0x1bd   :  { %1301 = vmatmul.msk.f32.vlgmr.msra.gmra.mxu2 %vm147_vm1, %v184_v0 }
 0x240   :  { %v213_v2 = vpop.f32.mrf.mxu2 }
 0x241   :  { %v214_v3 = vadd.f32 %v1388_v1, %v213_v2 }
 0x243   :  { %217 = vst.msk [vmem:[#allocation2] sm:$0xff] %vm216_vm6, %v214_v3 }
 0x24a   :  { %v1697_v4 = vld [vmem:[#allocation2] sm:$0xff] }
 0x24b   :  { %291 = vrot.lane.b32.xlu0 %v1697_v4, %s1456_s22  ;;  %260 = vrot.lane.b32.xlu2 %v1697_v4, %s1457_s28 }
 0x24c   :  { %220 = vrot.lane.b32.xlu1 %v1697_v4, %s1458_s29 }
 0x2a5   :  { %v261_v5 = vpop.permute.xlu2 %260 }
 0x2a6   :  { %281 = vmatpush.msrb.mxu2 %v261_v5 }
 0x2bd   :  { %v292_v6 = vpop.permute.xlu0 %291 }
 0x2be   :  { %v221_v7 = vpop.permute.xlu1 %220  ;;  %1305 = vmatpush.xpose.msk.msra.mxu2 %vm222_vm7, %v292_v6 }
 0x2bf   :  { %1302 = vmatpush.xpose.msk.msrb.mxu1 %vm222_vm7, %v221_v7 }
 0x2c2   :  { %1303 = vmatmul.msk.f32.vlgmr.msrb.gmra.mxu1 %vm222_vm7, %v1697_v4 }
 0x33f   :  { %v244_v8 = vpop.f32.mrf.mxu1 }
 0x340   :  { %v247_v10 = vmul.f32 0.35355338, %v244_v8  ;;  %v516_v8 = vld [vmem:[%s2087_s9 + $0x18] sm:$0xff] }
 0x342   :  { %v248_v11 = vadd.f32 %v247_v10, %v1712_v9  ;;  %v515_v10 = vld [vmem:[%s2087_s9 + $0x10] sm:$0xff] }
 0x344   :  { %v249_v12 = vsel %vm222_vm7, %v248_v11, -inf }
 0x345   :  { %250 = vmax.xlane.f32.xlu1 %v249_v12  ;;  %v513_v12 = vld [vmem:[%s2087_s9] sm:$0xff] }
 0x35e   :  { %330 = vrot.lane.b32.xlu1 %v1697_v4, %s2112_s30 }
 0x366   :  { %366 = vrot.lane.b32.xlu1 %v1697_v4, %s2108_s6 }
 0x36e   :  { %439 = vrot.lane.b32.xlu1 %v1697_v4, %s2110_s23 }
 0x3b8   :  { %v251_v13 = vpop.xlane.xlu1 %250 }
 0x3b9   :  { %v252_v14 = vsub.f32 %v248_v11, %v251_v13  ;;  %v514_v11 = vld [vmem:[%s2087_s9 + $0x8] sm:$0xff] }
 0x3bb   :  { %v253_v15 = vmul.f32 1.442695, %v252_v14 }
 0x3bd   :  { %1407 = vpow2.f32 %v253_v15 }
 0x3c3   :  { %v1408_v16 = vpop.eup %1407 }
 0x3c4   :  { %v255_v17 = vsel %vm222_vm7, %v1408_v16, 0.0 }
 0x3c5   :  { %256 = vadd.xlane.f32.xlu2 %v255_v17 }
 0x3d0   :  { %v331_v18 = vpop.permute.xlu1 %330 }
 0x3d1   :  { %351 = vmatpush.msra.mxu3 %v331_v18 }
 0x3d8   :  { %v367_v19 = vpop.permute.xlu1 %366 }
 0x3d9   :  { %1308 = vmatpush.xpose.msk.msra.mxu1 %vm222_vm7, %v367_v19 }
 0x3dd   :  { %289 = vrot.lane.b32.xlu2 %v1697_v4, %s1462_s2 }
 0x3e0   :  { %v440_v41 = vpop.permute.xlu1 %439 }
 0x438   :  { %v257_v20 = vpop.xlane.xlu2 %256 }
 0x439   :  { %1409 = vrcp.f32 %v257_v20 }
 0x43f   :  { %v1410_v21 = vpop.eup %1409 }
 0x440   :  { %v259_v22 = vmul.f32 %v1410_v21, %v1408_v16  ;;  %v290_v23 = vpop.permute.xlu2 %289  ;;  %v1389_v16 = vld [vmem:[%s2086_s10] ss:$0 sm:$0xff] }
 0x442   :  { %1304 = vmatmul.msk.f32.vlgmr.msrb.gmra.mxu2 %vm222_vm7, %v259_v22 }
 0x44a   :  { %1306 = vmatmul.msk.f32.vlgmr.msra.gmra.mxu2 %vm222_vm7, %v290_v23 }
 0x4c5   :  { %v283_v24 = vpop.f32.mrf.mxu2 }
 0x4c6   :  { %286 = vst.msk [vmem:[#allocation3] sm:$0xff] %vm222_vm7, %v283_v24 }
 0x4cd   :  { %v314_v25 = vpop.f32.mrf.mxu2 }
 0x4ce   :  { %v317_v26 = vmul.f32 0.35355338, %v314_v25 }
 0x4d0   :  { %v318_v27 = vadd.f32 %v317_v26, %v1712_v9  ;;  %v580_v26 = vld [vmem:[%s2091_s13 + $0x18] sm:$0xff] }
 0x4d2   :  { %v319_v28 = vsel %vm222_vm7, %v318_v27, -inf }
 0x4d3   :  { %320 = vmax.xlane.f32.xlu0 %v319_v28  ;;  %v577_v28 = vld [vmem:[%s2091_s13] sm:$0xff] }
 0x4e7   :  { %441 = vrot.lane.b32.xlu0 %v1697_v4, %s2107_s4 }
 0x546   :  { %v321_v29 = vpop.xlane.xlu0 %320 }
 0x547   :  { %v322_v30 = vsub.f32 %v318_v27, %v321_v29  ;;  %v578_v27 = vld [vmem:[%s2091_s13 + $0x8] sm:$0xff] }
 0x549   :  { %v323_v31 = vmul.f32 1.442695, %v322_v30 }
 0x54b   :  { %1411 = vpow2.f32 %v323_v31 }
 0x551   :  { %v1412_v33 = vpop.eup %1411 }
 0x552   :  { %v325_v34 = vsel %vm222_vm7, %v1412_v33, 0.0 }
 0x553   :  { %326 = vadd.xlane.f32.xlu2 %v325_v34 }
 0x559   :  { %v442_v35 = vpop.permute.xlu0 %441 }
 0x55a   :  { %1311 = vmatpush.xpose.msk.msrb.mxu3 %vm222_vm7, %v442_v35 }
 0x56b   :  { %364 = vrot.lane.b32.xlu2 %v1697_v4, %s2106_s0 }
 0x5c6   :  { %v327_v36 = vpop.xlane.xlu2 %326 }
 0x5c7   :  { %1413 = vrcp.f32 %v327_v36 }
 0x5cd   :  { %v1414_v37 = vpop.eup %1413 }
 0x5ce   :  { %v365_v38 = vpop.permute.xlu2 %364  ;;  %v329_v39 = vmul.f32 %v1414_v37, %v1412_v33 }
 0x5cf   :  { %1309 = vmatmul.msk.f32.vlgmr.msra.gmra.mxu1 %vm222_vm7, %v365_v38 }
 0x5d0   :  { %1307 = vmatmul.msk.f32.vlgmr.msra.gmra.mxu3 %vm222_vm7, %v329_v39  ;;  %v1390_v39 = vld [vmem:[%s2088_s11] ss:$0 sm:$0xff] }
 0x5d1   :  { %600 = vmatpush.msra.mxu3 %v580_v26 }
 0x5d8   :  { %1312 = vmatmul.msk.f32.vlgmr.msrb.gmra.mxu3 %vm222_vm7, %v440_v41 }
 0x64c   :  { %v389_v42 = vpop.f32.mrf.mxu1 }
 0x64d   :  { %v392_v43 = vmul.f32 0.35355338, %v389_v42 }
 0x64f   :  { %v393_v44 = vadd.f32 %v392_v43, %v1712_v9  ;;  %v1391_v43 = vld [vmem:[%s2089_s12] ss:$0 sm:$0xff] }
 0x651   :  { %v394_v45 = vsel %vm222_vm7, %v393_v44, -inf }
 0x652   :  { %395 = vmax.xlane.f32.xlu1 %v394_v45 }
 0x653   :  { %v353_v46 = vpop.f32.mrf.mxu3 }
 0x65b   :  { %v464_v47 = vpop.f32.mrf.mxu3 }
 0x65c   :  { %v467_v48 = vmul.f32 0.35355338, %v464_v47  ;;  %v662_v47 = vld [vmem:[%s2093_s15 + $0x70] sm:$0xff] }
 0x65e   :  { %v468_v49 = vadd.f32 %v467_v48, %v1712_v9  ;;  %v661_v48 = vld [vmem:[%s2093_s15 + $0x68] sm:$0xff] }
 0x660   :  { %v469_v50 = vsel %vm222_vm7, %v468_v49, -inf }
 0x661   :  { %470 = vmax.xlane.f32.xlu0 %v469_v50  ;;  %v659_v50 = vld [vmem:[%s2093_s15 + $0x58] sm:$0xff] }
 0x675   :  { %405 = vrot.lane.b32.xlu0 %v1697_v4, %s2105_s25 }
 0x6c5   :  { %v396_v51 = vpop.xlane.xlu1 %395 }
 0x6c6   :  { %v397_v52 = vsub.f32 %v393_v44, %v396_v51  ;;  %v1392_v51 = vld [vmem:[%s2090_s14] ss:$0 sm:$0xff] }
 0x6c8   :  { %v398_v53 = vmul.f32 1.442695, %v397_v52  ;;  %v658_v52 = vld [vmem:[%s2093_s15 + $0x50] sm:$0xff] }
 0x6ca   :  { %1415 = vpow2.f32 %v398_v53 }
 0x6d0   :  { %v1416_v54 = vpop.eup %1415 }
 0x6d1   :  { %v400_v55 = vsel %vm222_vm7, %v1416_v54, 0.0 }
 0x6d2   :  { %401 = vadd.xlane.f32.xlu2 %v400_v55 }
 0x6d4   :  { %v471_v56 = vpop.xlane.xlu0 %470 }
 0x6d5   :  { %v472_v57 = vsub.f32 %v468_v49, %v471_v56  ;;  %v660_v49 = vld [vmem:[%s2093_s15 + $0x60] sm:$0xff] }
 0x6d6   :  { %v656_v56 = vld [vmem:[%s2093_s15 + $0x40] sm:$0xff] }
 0x6d7   :  { %v473_v58 = vmul.f32 1.442695, %v472_v57 }
 0x6d9   :  { %1417 = vpow2.f32 %v473_v58  ;;  %v655_v58 = vld [vmem:[%s2093_s15 + $0x38] sm:$0xff] }
 0x6df   :  { %v1418_v59 = vpop.eup %1417 }
 0x6e0   :  { %v475_v60 = vsel %vm222_vm7, %v1418_v59, 0.0 }
 0x6e1   :  { %476 = vadd.xlane.f32.xlu1 %v475_v60  ;;  %v654_v60 = vld [vmem:[%s2093_s15 + $0x30] sm:$0xff] }
 0x6e7   :  { %v406_v61 = vpop.permute.xlu0 %405 }
 0x6e8   :  { %426 = vmatpush.msrb.mxu2 %v406_v61 }
 0x6ea   :  { %357 = vrot.lane.b32.xlu2 %v353_v46, %s2104_s1  ;;  %536 = vmatpush.msra.mxu2 %v516_v8  ;;  %v663_v46 = vld [vmem:[%s2093_s15 + $0x78] sm:$0xff]  ;;  %s2132_s1 = smov 40  }
 0x6eb   :  { %668 = vmatpush.msrb.mxu0 %v663_v46 }
 0x6ec   :  { %537 = vmatpush.msra.mxu2 %v515_v10 }
 0x6ed   :  { %669 = vmatpush.msrb.mxu0 %v662_v47 }
 0x6ee   :  { %538 = vmatpush.msra.mxu2 %v514_v11 }
 0x6ef   :  { %670 = vmatpush.msrb.mxu0 %v661_v48  ;;  %v1321_v48 = vld [vmem:[%s2084_s7 + $0x38] sm:$0xff] }
 0x6f0   :  { %539 = vmatpush.msra.mxu2 %v513_v12 }
 0x6f1   :  { %671 = vmatpush.msrb.mxu0 %v660_v49  ;;  %v1319_v49 = vld [vmem:[%s2084_s7 + $0x28] sm:$0xff] }
 0x6f3   :  { %672 = vmatpush.msrb.mxu0 %v659_v50  ;;  %v1318_v50 = vld [vmem:[%s2084_s7 + $0x20] sm:$0xff] }
 0x6f5   :  { %673 = vmatpush.msrb.mxu0 %v658_v52 }
 0x6fa   :  { %480 = vrot.lane.b32.xlu1 %v1697_v4, %s2103_s26  ;;  %s2133_s26 = smov 16  }
 0x745   :  { %v402_v62 = vpop.xlane.xlu2 %401 }
 0x746   :  { %1419 = vrcp.f32 %v402_v62  ;;  %v653_v62 = vld [vmem:[%s2093_s15 + $0x28] sm:$0xff] }
 0x74c   :  { %v1420_v63 = vpop.eup %1419 }
 0x74d   :  { %v404_v0 = vmul.f32 %v1420_v63, %v1416_v54  ;;  %v358_v1 = vpop.permute.xlu2 %357  ;;  %v657_v54 = vld [vmem:[%s2093_s15 + $0x48] sm:$0xff] }
 0x74e   :  { %361 = vst.msk [vmem:[#allocation3] sm:$0xff] %vm360_vm8, %v358_v1  ;;  %674 = vmatpush.msrb.mxu0 %v657_v54  ;;  %v651_v1 = vld [vmem:[%s2093_s15 + $0x18] sm:$0xff] }
 0x74f   :  { %1310 = vmatmul.msk.f32.vlgmr.msrb.gmra.mxu2 %vm222_vm7, %v404_v0  ;;  %v652_v0 = vld [vmem:[%s2093_s15 + $0x20] sm:$0xff] }
 0x750   :  { %675 = vmatpush.msrb.mxu0 %v656_v56 }
 0x752   :  { %676 = vmatpush.msrb.mxu0 %v655_v58 }
 0x754   :  { %v477_v2 = vpop.xlane.xlu1 %476  ;;  %677 = vmatpush.msrb.mxu0 %v654_v60  ;;  %v1386_v60 = vld [vmem:[%s2123_s24 + $0x1] ss:$0 sm:$0xff]  ;;  %s2126_s24 = smov 104  }
 0x755   :  { %1421 = vrcp.f32 %v477_v2  ;;  %v650_v2 = vld [vmem:[%s2093_s15 + $0x10] sm:$0xff] }
 0x756   :  { %678 = vmatpush.msrb.mxu0 %v653_v62  ;;  %v1387_v62 = vld [vmem:[%s2124_s27 + $0x1] ss:$0 sm:$0xff]  ;;  %s2127_s27 = smov 80  }
 0x758   :  { %679 = vmatpush.msrb.mxu0 %v652_v0 }
 0x75a   :  { %680 = vmatpush.msrb.mxu0 %v651_v1 }
 0x75b   :  { %v1422_v3 = vpop.eup %1421 }
 0x75c   :  { %v479_v5 = vmul.f32 %v1422_v3, %v1418_v59  ;;  %v649_v3 = vld [vmem:[%s2093_s15 + $0x8] sm:$0xff]  ;;  %681 = vmatpush.msrb.mxu0 %v650_v2  ;;  %v1394_v2 = vld [vmem:[%s2083_s8 + $0x1] ss:$0 sm:$0xff]  ;;  %s2125_s8 = smov 56  }
 0x75e   :  { %682 = vmatpush.msrb.mxu0 %v649_v3 }
 0x76c   :  { %v481_v6 = vpop.permute.xlu1 %480 }
 0x76d   :  { %501 = vmatpush.msrb.mxu1 %v481_v6 }
 0x76e   :  { %1313 = vmatmul.msk.f32.vlgmr.msrb.gmra.mxu1 %vm222_vm7, %v479_v5 }
 0x76f   :  { %748 = vmatpush.msra.mxu1 %v1321_v48 }
 0x7d2   :  { %v428_v7 = vpop.f32.mrf.mxu2 }
 0x7d3   :  { %432 = vrot.lane.b32.xlu0 %v428_v7, %s2109_s3  ;;  %v648_v7 = vld [vmem:[%s2093_s15] sm:$0xff]  ;;  %s2134_s3 = smov 24  }
 0x7d4   :  { %683 = vmatpush.msrb.mxu0 %v648_v7 }
 0x7eb   :  { %v503_v4 = vpop.f32.mrf.mxu1 }
 0x7ec   :  { %507 = vrot.lane.b32.xlu1 %v503_v4, %s2111_s5 }
 0x845   :  { %v433_v13 = vpop.permute.xlu0 %432 }
 0x846   :  { %436 = vst.msk [vmem:[#allocation3] sm:$0xff] %vm435_vm9, %v433_v13 }
 0x85e   :  { %v508_v14 = vpop.permute.xlu1 %507 }
 0x85f   :  { %511 = vst.msk [vmem:[#allocation3] sm:$0xff] %vm510_vm10, %v508_v14 }
 0x866   :  { %v512_v15 = vld [vmem:[#allocation3] sm:$0xff] }
 0x867   :  { %1314 = vmatmul.msk.f32.vlgmr.msra.gmra.mxu2 %vm147_vm1, %v512_v15 }
 0x8ea   :  { %v541_v17 = vpop.f32.mrf.mxu2 }
 0x8eb   :  { %v542_v18 = vadd.f32 %v1389_v16, %v541_v17 }
 0x8ed   :  { %v1775_v19 = vadd.f32 %v542_v18, %v1664_v32  ;;  %v579_v32 = vld [vmem:[%s2091_s13 + $0x10] sm:$0xff] }
 0x8ee   :  { %601 = vmatpush.msra.mxu3 %v579_v32 }
 0x8ef   :  { %v547_v20 = vsel %vm147_vm1, %v1775_v19, 0.0 }
 0x8f0   :  { %548 = vadd.xlane.f32.xlu0 %v547_v20  ;;  %602 = vmatpush.msra.mxu3 %v578_v27 }
 0x8f2   :  { %603 = vmatpush.msra.mxu3 %v577_v28 }
 0x963   :  { %v549_v21 = vpop.xlane.xlu0 %548 }
 0x964   :  { %v550_v22 = vmul.f32 %v549_v21, %v1668_v40 }
 0x966   :  { %v551_v23 = vsub.f32 %v1775_v19, %v550_v22 }
 0x968   :  { %v552_v24 = vmul.f32 %v551_v23, %v551_v23 }
 0x96a   :  { %v553_v25 = vsel %vm147_vm1, %v552_v24, 0.0 }
 0x96b   :  { %554 = vadd.xlane.f32.xlu2 %v553_v25 }
 0x9de   :  { %v555_v29 = vpop.xlane.xlu2 %554 }
 0x9df   :  { %v556_v30 = vmul.f32 %v555_v29, %v1668_v40 }
 0x9e1   :  { %v557_v31 = vadd.f32 1e-05, %v556_v30 }
 0x9e3   :  { %1423 = vrsqrt.f32 %v557_v31  ;;  %vm564_vm12 = vweird.f32 %v557_v31 }
 0x9e9   :  { %v1424_v33 = vpop.eup %1423 }
 0x9ea   :  { %v559_v34 = vmul.f32 %v1424_v33, %v557_v31  ;;  %vm565_vm11 = vweird.f32 %v1424_v33 }
 0x9eb   :  { %vm566_vm13 = vmor %vm564_vm12, %vm565_vm11 }
 0x9ec   :  { %v560_v35 = vmul.f32 %v1424_v33, %v559_v34 }
 0x9ee   :  { %v561_v36 = vmul.f32 0.5, %v560_v35 }
 0x9f0   :  { %v562_v37 = vsub.f32 1.5, %v561_v36 }
 0x9f2   :  { %v563_v38 = vmul.f32 %v1424_v33, %v562_v37  ;;  %v1393_v37 = vld [vmem:[%s2092_s16] ss:$0 sm:$0xff] }
 0x9f4   :  { %v567_v41 = vsel %vm566_vm13, %v1424_v33, %v563_v38 }
 0x9f5   :  { %v568_v42 = vmul.f32 %v567_v41, %v551_v23 }
 0x9f7   :  { %v572_v44 = vmul.f32 %v1390_v39, %v568_v42 }
 0x9f9   :  { %v576_v45 = vadd.f32 %v1391_v43, %v572_v44 }
 0x9fb   :  { %1315 = vmatmul.msk.f32.vlgmr.msra.gmra.mxu3 %vm147_vm1, %v576_v45 }
 0xa7e   :  { %v605_v53 = vpop.f32.mrf.mxu3 }
 0xa7f   :  { %v606_v55 = vadd.f32 %v1392_v51, %v605_v53 }
 0xa81   :  { %v609_v57 = vmul.f32 0.70710677, %v606_v55  ;;  %v608_v34 = vmul.f32 0.5, %v606_v55 }
 0xa83   :  { %v610_v59 = vand.u32 2147483647, %v609_v57  ;;  %vm643_vm3 = vcmp.ge.f32.partialorder %v609_v57, 0.0 }
 0xa85   :  { %v611_v61 = vmul.f32 0.3275911, %v610_v59  ;;  %v637_v15 = vsub.f32 0.0, %v610_v59 }
 0xa87   :  { %v612_v63 = vadd.f32 1.0, %v611_v61  ;;  %v638_v20 = vmul.f32 %v637_v15, %v610_v59 }
 0xa89   :  { %1425 = vrcp.f32 %v612_v63  ;;  %v624_v8 = vand.u32 2147483648, %v612_v63  ;;  %v622_v11 = vand.u32 2147483647, %v612_v63  ;;  %vm618_vm15 = vweird.f32 %v612_v63 }
 0xa8a   :  { %v639_v23 = vmul.f32 1.442695, %v638_v20 }
 0xa8b   :  { %v625_v13 = vor.u32 1.1754944e-38, %v624_v8  ;;  %vm623_vm2 = vcmp.eq.f32.partialorder %v622_v11, 8.507059e+37 }
 0xa8c   :  { %1427 = vpow2.f32 %v639_v23 }
 0xa8f   :  { %v1426_v5 = vpop.eup %1425 }
 0xa90   :  { %v614_v6 = vmul.f32 %v1426_v5, %v612_v63  ;;  %vm619_vm14 = vweird.f32 %v1426_v5 }
 0xa91   :  { %vm620_vm0 = vmor %vm618_vm15, %vm619_vm14 }
 0xa92   :  { %v615_v4 = vsub.f32 1.0, %v614_v6  ;;  %v1428_v28 = vpop.eup %1427 }
 0xa94   :  { %v616_v10 = vmul.f32 %v1426_v5, %v615_v4 }
 0xa96   :  { %v617_v12 = vadd.f32 %v1426_v5, %v616_v10 }
 0xa98   :  { %v621_v14 = vsel %vm620_vm0, %v1426_v5, %v617_v12 }
 0xa99   :  { %v626_v16 = vsel %vm623_vm2, %v625_v13, %v621_v14 }
 0xa9a   :  { %v628_v17 = vmul.f32 1.0614054, %v626_v16 }
 0xa9c   :  { %v629_v18 = vadd.f32 -1.4531521, %v628_v17 }
 0xa9e   :  { %v630_v21 = vmul.f32 %v629_v18, %v626_v16 }
 0xaa0   :  { %v631_v22 = vadd.f32 1.4214138, %v630_v21 }
 0xaa2   :  { %v632_v24 = vmul.f32 %v631_v22, %v626_v16 }
 0xaa4   :  { %v633_v25 = vadd.f32 -0.28449672, %v632_v24 }
 0xaa6   :  { %v634_v26 = vmul.f32 %v633_v25, %v626_v16 }
 0xaa8   :  { %v635_v32 = vadd.f32 0.2548296, %v634_v26 }
 0xaaa   :  { %v636_v27 = vmul.f32 %v635_v32, %v626_v16 }
 0xaac   :  { %v641_v29 = vmul.f32 %v1428_v28, %v636_v27 }
 0xaae   :  { %v642_v30 = vsub.f32 1.0, %v641_v29 }
 0xab0   :  { %v644_v31 = vsub.f32 0.0, %v642_v30 }
 0xab2   :  { %v645_v33 = vsel %vm643_vm3, %v642_v30, %v644_v31 }
 0xab3   :  { %v646_v35 = vadd.f32 1.0, %v645_v33 }
 0xab5   :  { %v647_v36 = vmul.f32 %v646_v35, %v608_v34 }
 0xab7   :  { %684 = vmatmul.f32.vlgmr.msrb.gmra.mxu0 %v647_v36 }
 0xb34   :  { %v685_v38 = vpop.f32.mrf.mxu0 }
 0xb35   :  { %v686_v39 = vadd.f32 %v1393_v37, %v685_v38 }
 0xb37   :  { %v1857_v41 = vadd.f32 %v686_v39, %v1775_v19  ;;  %v1320_v19 = vld [vmem:[%s2084_s7 + $0x30] sm:$0xff] }
 0xb38   :  { %749 = vmatpush.msra.mxu1 %v1320_v19 }
 0xb39   :  { %v693_v42 = vsel %vm147_vm1, %v1857_v41, 0.0 }
 0xb3a   :  { %694 = vadd.xlane.f32.xlu1 %v693_v42  ;;  %750 = vmatpush.msra.mxu1 %v1319_v49 }
 0xb3c   :  { %751 = vmatpush.msra.mxu1 %v1318_v50 }
 0xbad   :  { %v695_v43 = vpop.xlane.xlu1 %694 }
 0xbae   :  { %v696_v44 = vmul.f32 %v695_v43, %v1668_v40 }
 0xbb0   :  { %v697_v45 = vsub.f32 %v1857_v41, %v696_v44 }
 0xbb2   :  { %v698_v46 = vmul.f32 %v697_v45, %v697_v45 }
 0xbb4   :  { %v699_v47 = vsel %vm147_vm1, %v698_v46, 0.0 }
 0xbb5   :  { %700 = vadd.xlane.f32.xlu0 %v699_v47 }
 0xc28   :  { %v701_v51 = vpop.xlane.xlu0 %700 }
 0xc29   :  { %v702_v52 = vmul.f32 %v701_v51, %v1668_v40 }
 0xc2b   :  { %v703_v53 = vadd.f32 1e-05, %v702_v52 }
 0xc2d   :  { %1429 = vrsqrt.f32 %v703_v53  ;;  %vm710_vm5 = vweird.f32 %v703_v53 }
 0xc33   :  { %v1430_v54 = vpop.eup %1429 }
 0xc34   :  { %v705_v55 = vmul.f32 %v1430_v54, %v703_v53  ;;  %vm711_vm4 = vweird.f32 %v1430_v54 }
 0xc35   :  { %vm712_vm11 = vmor %vm710_vm5, %vm711_vm4 }
 0xc36   :  { %v706_v56 = vmul.f32 %v1430_v54, %v705_v55 }
 0xc38   :  { %v707_v57 = vmul.f32 0.5, %v706_v56 }
 0xc3a   :  { %v708_v58 = vsub.f32 1.5, %v707_v57 }
 0xc3c   :  { %v709_v59 = vmul.f32 %v1430_v54, %v708_v58 }
 0xc3e   :  { %v713_v61 = vsel %vm712_vm11, %v1430_v54, %v709_v59 }
 0xc3f   :  { %v714_v63 = vmul.f32 %v713_v61, %v697_v45 }
 0xc41   :  { %v718_v0 = vmul.f32 %v1386_v60, %v714_v63 }
 0xc43   :  { %v722_v1 = vadd.f32 %v1387_v62, %v718_v0 }
 0xc45   :  { %1323 = vmatmul.msk.f32.vlgmr.msra.gmra.mxu1 %vm147_vm1, %v722_v1 }
 0xcc2   :  { %v753_v3 = vpop.f32.mrf.mxu1 }
 0xcc3   :  { %v754_v5 = vadd.f32 %v1394_v2, %v753_v3 }
 0xcc5   :  { %756 = vst.msk [vmem:[#allocation2] sm:$0xff] %vm216_vm6, %v754_v5 }
 0xccc   :  { %v1888_v6 = vld [vmem:[#allocation2] sm:$0xff] }
 0xccd   :  { %827 = vrot.lane.b32.xlu0 %v1888_v6, %s1462_s2  ;;  %829 = vrot.lane.b32.xlu1 %v1888_v6, %s1456_s22  ;;  %s2128_s22 = smov 72   ;;  %s2131_s2 = smov 8  }
 0xcce   :  { %759 = vrot.lane.b32.xlu2 %v1888_v6, %s1458_s29  ;;  %s2130_s29 = smov 48  }
 0xcd5   :  { %798 = vrot.lane.b32.xlu1 %v1888_v6, %s1457_s28  ;;  %s2129_s28 = smov 112  }
 0xd28   :  { %v760_v7 = vpop.permute.xlu2 %759 }
 0xd29   :  { %1324 = vmatpush.xpose.msk.msrb.mxu2 %vm222_vm7, %v760_v7 }
 0xd2c   :  { %1325 = vmatmul.msk.f32.vlgmr.msrb.gmra.mxu2 %vm222_vm7, %v1888_v6 }
 0xd3f   :  { %v830_v4 = vpop.permute.xlu1 %829  ;;  %v828_v8 = vpop.permute.xlu0 %827 }
 0xd40   :  { %1327 = vmatpush.xpose.msk.msrb.mxu1 %vm222_vm7, %v830_v4 }
 0xd43   :  { %1328 = vmatmul.msk.f32.vlgmr.msrb.gmra.mxu1 %vm222_vm7, %v828_v8  ;;  %v1339_v8 = vld [vmem:[%s2087_s9 + $0x38] sm:$0xff] }
 0xd47   :  { %v799_v10 = vpop.permute.xlu1 %798 }
 0xd48   :  { %819 = vmatpush.msrb.mxu3 %v799_v10  ;;  %v1338_v10 = vld [vmem:[%s2087_s9 + $0x30] sm:$0xff] }
 0xdaf   :  { %v782_v11 = vpop.f32.mrf.mxu2 }
 0xdb0   :  { %v785_v12 = vmul.f32 0.35355338, %v782_v11  ;;  %v1337_v11 = vld [vmem:[%s2087_s9 + $0x28] sm:$0xff] }
 0xdb2   :  { %v786_v13 = vadd.f32 %v785_v12, %v1712_v9  ;;  %v1336_v12 = vld [vmem:[%s2087_s9 + $0x20] sm:$0xff] }
 0xdb4   :  { %v787_v14 = vsel %vm222_vm7, %v786_v13, -inf }
 0xdb5   :  { %788 = vmax.xlane.f32.xlu0 %v787_v14 }
 0xdc0   :  { %v852_v15 = vpop.f32.mrf.mxu1 }
 0xdc1   :  { %v855_v16 = vmul.f32 0.35355338, %v852_v15 }
 0xdc3   :  { %v856_v17 = vadd.f32 %v855_v16, %v1712_v9  ;;  %v1395_v16 = vld [vmem:[%s2086_s10 + $0x1] ss:$0 sm:$0xff] }
 0xdc5   :  { %v857_v18 = vsel %vm222_vm7, %v856_v17, -inf }
 0xdc6   :  { %858 = vmax.xlane.f32.xlu2 %v857_v18 }
 0xdc9   :  { %868 = vrot.lane.b32.xlu0 %v1888_v6, %s2125_s8 }
 0xdd1   :  { %975 = vrot.lane.b32.xlu0 %v1888_v6, %s2126_s24 }
 0xdd9   :  { %903 = vrot.lane.b32.xlu0 %v1888_v6, %s2127_s27 }
 0xe28   :  { %v789_v20 = vpop.xlane.xlu0 %788 }
 0xe29   :  { %v790_v21 = vsub.f32 %v786_v13, %v789_v20 }
 0xe2b   :  { %v791_v22 = vmul.f32 1.442695, %v790_v21 }
 0xe2d   :  { %1431 = vpow2.f32 %v791_v22 }
 0xe33   :  { %v1432_v23 = vpop.eup %1431 }
 0xe34   :  { %v793_v24 = vsel %vm222_vm7, %v1432_v23, 0.0 }
 0xe35   :  { %794 = vadd.xlane.f32.xlu2 %v793_v24 }
 0xe39   :  { %v859_v25 = vpop.xlane.xlu2 %858 }
 0xe3a   :  { %v860_v26 = vsub.f32 %v856_v17, %v859_v25 }
 0xe3b   :  { %v869_v32 = vpop.permute.xlu0 %868 }
 0xe3c   :  { %v861_v27 = vmul.f32 1.442695, %v860_v26  ;;  %889 = vmatpush.msra.mxu2 %v869_v32  ;;  %v1347_v32 = vld [vmem:[%s2091_s13 + $0x38] sm:$0xff] }
 0xe3e   :  { %1433 = vpow2.f32 %v861_v27  ;;  %v1345_v27 = vld [vmem:[%s2091_s13 + $0x28] sm:$0xff] }
 0xe43   :  { %v976_v28 = vpop.permute.xlu0 %975 }
 0xe44   :  { %v1434_v29 = vpop.eup %1433 }
 0xe45   :  { %v863_v30 = vsel %vm222_vm7, %v1434_v29, 0.0 }
 0xe46   :  { %864 = vadd.xlane.f32.xlu1 %v863_v30 }
 0xe4b   :  { %v904_v31 = vpop.permute.xlu0 %903 }
 0xe4c   :  { %1330 = vmatpush.xpose.msk.msra.mxu3 %vm222_vm7, %v904_v31 }
 0xe4d   :  { %977 = vrot.lane.b32.xlu2 %v1888_v6, %s2128_s22 }
 0xe5f   :  { %901 = vrot.lane.b32.xlu1 %v1888_v6, %s2129_s28 }
 0xea8   :  { %v795_v33 = vpop.xlane.xlu2 %794 }
 0xea9   :  { %1435 = vrcp.f32 %v795_v33 }
 0xeaf   :  { %v1436_v34 = vpop.eup %1435 }
 0xeb0   :  { %v797_v35 = vmul.f32 %v1436_v34, %v1432_v23  ;;  %v978_v36 = vpop.permute.xlu2 %977 }
 0xeb1   :  { %1333 = vmatpush.xpose.msk.msrb.mxu2 %vm222_vm7, %v978_v36 }
 0xeb2   :  { %1326 = vmatmul.msk.f32.vlgmr.msrb.gmra.mxu3 %vm222_vm7, %v797_v35 }
 0xeb9   :  { %v865_v37 = vpop.xlane.xlu1 %864 }
 0xeba   :  { %1437 = vrcp.f32 %v865_v37 }
 0xec0   :  { %v1438_v38 = vpop.eup %1437 }
 0xec1   :  { %v867_v39 = vmul.f32 %v1438_v38, %v1434_v29 }
 0xec3   :  { %1329 = vmatmul.msk.f32.vlgmr.msra.gmra.mxu2 %vm222_vm7, %v867_v39  ;;  %v1396_v39 = vld [vmem:[%s2088_s11 + $0x1] ss:$0 sm:$0xff] }
 0xec4   :  { %1141 = vmatpush.msra.mxu2 %v1347_v32 }
 0xecb   :  { %1334 = vmatmul.msk.f32.vlgmr.msrb.gmra.mxu2 %vm222_vm7, %v976_v28  ;;  %v1344_v28 = vld [vmem:[%s2091_s13 + $0x20] sm:$0xff] }
 0xed1   :  { %v902_v42 = vpop.permute.xlu1 %901 }
 0xed2   :  { %1331 = vmatmul.msk.f32.vlgmr.msra.gmra.mxu3 %vm222_vm7, %v902_v42 }
 0xf35   :  { %v821_v43 = vpop.f32.mrf.mxu3 }
 0xf36   :  { %824 = vst.msk [vmem:[#allocation3] sm:$0xff] %vm222_vm7, %v821_v43 }
 0xf46   :  { %v891_v44 = vpop.f32.mrf.mxu2 }
 0xf4e   :  { %v1000_v45 = vpop.f32.mrf.mxu2 }
 0xf4f   :  { %v1003_v46 = vmul.f32 0.35355338, %v1000_v45 }
 0xf51   :  { %v1004_v47 = vadd.f32 %v1003_v46, %v1712_v9 }
 0xf53   :  { %v1005_v48 = vsel %vm222_vm7, %v1004_v47, -inf }
 0xf54   :  { %1006 = vmax.xlane.f32.xlu2 %v1005_v48  ;;  %v1364_v48 = vld [vmem:[%s2093_s15 + $0xf0] sm:$0xff] }
 0xf55   :  { %v926_v19 = vpop.f32.mrf.mxu3 }
 0xf56   :  { %v929_v49 = vmul.f32 0.35355338, %v926_v19  ;;  %v1398_v19 = vld [vmem:[%s2090_s14 + $0x1] ss:$0 sm:$0xff] }
 0xf58   :  { %v930_v50 = vadd.f32 %v929_v49, %v1712_v9  ;;  %v1363_v49 = vld [vmem:[%s2093_s15 + $0xe8] sm:$0xff] }
 0xf5a   :  { %v931_v51 = vsel %vm222_vm7, %v930_v50, -inf }
 0xf5b   :  { %932 = vmax.xlane.f32.xlu0 %v931_v51  ;;  %v1362_v51 = vld [vmem:[%s2093_s15 + $0xe0] sm:$0xff] }
 0xf6f   :  { %942 = vrot.lane.b32.xlu0 %v1888_v6, %s2130_s29 }
 0xfc7   :  { %v1007_v52 = vpop.xlane.xlu2 %1006 }
 0xfc8   :  { %v1008_v53 = vsub.f32 %v1004_v47, %v1007_v52  ;;  %v1365_v47 = vld [vmem:[%s2093_s15 + $0xf8] sm:$0xff] }
 0xfca   :  { %v1009_v54 = vmul.f32 1.442695, %v1008_v53  ;;  %v1361_v53 = vld [vmem:[%s2093_s15 + $0xd8] sm:$0xff] }
 0xfcc   :  { %1439 = vpow2.f32 %v1009_v54 }
 0xfce   :  { %v933_v55 = vpop.xlane.xlu0 %932 }
 0xfcf   :  { %v934_v56 = vsub.f32 %v930_v50, %v933_v55  ;;  %v1360_v55 = vld [vmem:[%s2093_s15 + $0xd0] sm:$0xff] }
 0xfd1   :  { %v935_v57 = vmul.f32 1.442695, %v934_v56 }
 0xfd2   :  { %v1440_v58 = vpop.eup %1439 }
 0xfd3   :  { %1441 = vpow2.f32 %v935_v57  ;;  %v1011_v59 = vsel %vm222_vm7, %v1440_v58, 0.0  ;;  %v1359_v57 = vld [vmem:[%s2093_s15 + $0xc8] sm:$0xff] }
 0xfd4   :  { %1012 = vadd.xlane.f32.xlu1 %v1011_v59  ;;  %v1358_v59 = vld [vmem:[%s2093_s15 + $0xc0] sm:$0xff] }
 0xfd9   :  { %v1442_v60 = vpop.eup %1441 }
 0xfda   :  { %v937_v9 = vsel %vm222_vm7, %v1442_v60, 0.0 }
 0xfdb   :  { %938 = vadd.xlane.f32.xlu2 %v937_v9  ;;  %v1357_v9 = vld [vmem:[%s2093_s15 + $0xb8] sm:$0xff] }
 0xfe1   :  { %v943_v61 = vpop.permute.xlu0 %942 }
 0xfe2   :  { %963 = vmatpush.msra.mxu1 %v943_v61  ;;  %v1356_v61 = vld [vmem:[%s2093_s15 + $0xb0] sm:$0xff] }
 0xfe4   :  { %1073 = vmatpush.msrb.mxu1 %v1339_v8  ;;  %v1351_v8 = vld [vmem:[%s2093_s15 + $0x88] sm:$0xff] }
 0xfe6   :  { %1074 = vmatpush.msrb.mxu1 %v1338_v10  ;;  %v1350_v10 = vld [vmem:[%s2093_s15 + $0x80] sm:$0xff] }
 0xfe8   :  { %1075 = vmatpush.msrb.mxu1 %v1337_v11 }
 0xfea   :  { %1076 = vmatpush.msrb.mxu1 %v1336_v12 }
 0xfed   :  { %895 = vrot.lane.b32.xlu1 %v891_v44, %s2131_s2  ;;  %v1397_v44 = vld [vmem:[%s2089_s12 + $0x1] ss:$0 sm:$0xff] }
 0xff3   :  { %1016 = vrot.lane.b32.xlu2 %v1888_v6, %s2132_s1 }
0x1047   :  { %v1013_v62 = vpop.xlane.xlu1 %1012 }
0x1048   :  { %1443 = vrcp.f32 %v1013_v62  ;;  %v1355_v62 = vld [vmem:[%s2093_s15 + $0xa8] sm:$0xff] }
0x104e   :  { %v939_v63 = vpop.xlane.xlu2 %938  ;;  %v1444_v0 = vpop.eup %1443 }
0x104f   :  { %1445 = vrcp.f32 %v939_v63  ;;  %v1015_v2 = vmul.f32 %v1444_v0, %v1440_v58  ;;  %v1354_v63 = vld [vmem:[%s2093_s15 + $0xa0] sm:$0xff] }
0x1055   :  { %v1446_v1 = vpop.eup %1445 }
0x1056   :  { %v941_v3 = vmul.f32 %v1446_v1, %v1442_v60  ;;  %v1017_v5 = vpop.permute.xlu2 %1016 }
0x1057   :  { %1037 = vmatpush.msrb.mxu3 %v1017_v5  ;;  %v1352_v5 = vld [vmem:[%s2093_s15 + $0x90] sm:$0xff] }
0x1058   :  { %1332 = vmatmul.msk.f32.vlgmr.msra.gmra.mxu1 %vm222_vm7, %v941_v3  ;;  %1335 = vmatmul.msk.f32.vlgmr.msrb.gmra.mxu3 %vm222_vm7, %v1015_v2  ;;  %v1353_v2 = vld [vmem:[%s2093_s15 + $0x98] sm:$0xff] }
0x1059   :  { %1211 = vmatpush.msra.mxu3 %v1365_v47 }
0x105b   :  { %1212 = vmatpush.msra.mxu3 %v1364_v48  ;;  %v1267_v48 = vld [vmem:[%s2097_s19 + $0x18] sm:$0xff] }
0x105c   :  { %1287 = vmatpush.msra.mxu0 %v1267_v48 }
0x105d   :  { %1213 = vmatpush.msra.mxu3 %v1363_v49  ;;  %v1264_v49 = vld [vmem:[%s2097_s19] sm:$0xff] }
0x105f   :  { %v896_v7 = vpop.permute.xlu1 %895  ;;  %1214 = vmatpush.msra.mxu3 %v1362_v51 }
0x1060   :  { %898 = vst.msk [vmem:[#allocation3] sm:$0xff] %vm360_vm8, %v896_v7 }
0x1061   :  { %1215 = vmatpush.msra.mxu3 %v1361_v53 }
0x1063   :  { %1216 = vmatpush.msra.mxu3 %v1360_v55 }
0x1065   :  { %1217 = vmatpush.msra.mxu3 %v1359_v57 }
0x1067   :  { %1218 = vmatpush.msra.mxu3 %v1358_v59  ;;  %v1400_v59 = vld [vmem:[%s2094_s17] ss:$0 sm:$0xff] }
0x1069   :  { %1219 = vmatpush.msra.mxu3 %v1357_v9 }
0x106b   :  { %1220 = vmatpush.msra.mxu3 %v1356_v61 }
0x106d   :  { %1221 = vmatpush.msra.mxu3 %v1355_v62 }
0x106f   :  { %1222 = vmatpush.msra.mxu3 %v1354_v63  ;;  %v1402_v63 = vld [vmem:[%s2096_s20] ss:$0 sm:$0xff] }
0x1071   :  { %1223 = vmatpush.msra.mxu3 %v1353_v2 }
0x1073   :  { %1224 = vmatpush.msra.mxu3 %v1352_v5 }
0x1075   :  { %1225 = vmatpush.msra.mxu3 %v1351_v8 }
0x1077   :  { %1226 = vmatpush.msra.mxu3 %v1350_v10 }
0x10d5   :  { %v965_v4 = vpop.f32.mrf.mxu1 }
0x10d6   :  { %969 = vrot.lane.b32.xlu0 %v965_v4, %s2133_s26 }
0x10db   :  { %v1039_v6 = vpop.f32.mrf.mxu3 }
0x10dc   :  { %1043 = vrot.lane.b32.xlu2 %v1039_v6, %s2134_s3 }
0x1136   :  { %v1044_v14 = vpop.permute.xlu2 %1043 }
0x1148   :  { %v970_v13 = vpop.permute.xlu0 %969 }
0x1149   :  { %972 = vst.msk [vmem:[#allocation3] sm:$0xff] %vm435_vm9, %v970_v13 }
0x114a   :  { %1046 = vst.msk [vmem:[#allocation3] sm:$0xff] %vm510_vm10, %v1044_v14 }
0x1151   :  { %v1047_v15 = vld [vmem:[#allocation3] sm:$0xff] }
0x1152   :  { %1341 = vmatmul.msk.f32.vlgmr.msrb.gmra.mxu1 %vm147_vm1, %v1047_v15 }
0x11cf   :  { %v1078_v17 = vpop.f32.mrf.mxu1 }
0x11d0   :  { %v1079_v18 = vadd.f32 %v1395_v16, %v1078_v17 }
0x11d2   :  { %v1961_v20 = vadd.f32 %v1079_v18, %v1857_v41  ;;  %v1346_v41 = vld [vmem:[%s2091_s13 + $0x30] sm:$0xff] }
0x11d3   :  { %1142 = vmatpush.msra.mxu2 %v1346_v41 }
0x11d4   :  { %v1086_v21 = vsel %vm147_vm1, %v1961_v20, 0.0 }
0x11d5   :  { %1087 = vadd.xlane.f32.xlu1 %v1086_v21  ;;  %1143 = vmatpush.msra.mxu2 %v1345_v27 }
0x11d7   :  { %1144 = vmatpush.msra.mxu2 %v1344_v28 }
0x1248   :  { %v1088_v22 = vpop.xlane.xlu1 %1087 }
0x1249   :  { %v1089_v23 = vmul.f32 %v1088_v22, %v1668_v40 }
0x124b   :  { %v1090_v24 = vsub.f32 %v1961_v20, %v1089_v23 }
0x124d   :  { %v1091_v25 = vmul.f32 %v1090_v24, %v1090_v24 }
0x124f   :  { %v1092_v26 = vsel %vm147_vm1, %v1091_v25, 0.0 }
0x1250   :  { %1093 = vadd.xlane.f32.xlu0 %v1092_v26 }
0x12c3   :  { %v1094_v29 = vpop.xlane.xlu0 %1093 }
0x12c4   :  { %v1095_v30 = vmul.f32 %v1094_v29, %v1668_v40 }
0x12c6   :  { %v1096_v31 = vadd.f32 1e-05, %v1095_v30 }
0x12c8   :  { %1447 = vrsqrt.f32 %v1096_v31  ;;  %vm1103_vm7 = vweird.f32 %v1096_v31 }
0x12ce   :  { %v1448_v33 = vpop.eup %1447 }
0x12cf   :  { %v1098_v34 = vmul.f32 %v1448_v33, %v1096_v31  ;;  %vm1104_vm6 = vweird.f32 %v1448_v33 }
0x12d0   :  { %vm1105_vm8 = vmor %vm1103_vm7, %vm1104_vm6 }
0x12d1   :  { %v1099_v35 = vmul.f32 %v1448_v33, %v1098_v34 }
0x12d3   :  { %v1100_v36 = vmul.f32 0.5, %v1099_v35 }
0x12d5   :  { %v1101_v37 = vsub.f32 1.5, %v1100_v36  ;;  %v1399_v36 = vld [vmem:[%s2092_s16 + $0x1] ss:$0 sm:$0xff] }
0x12d7   :  { %v1102_v38 = vmul.f32 %v1448_v33, %v1101_v37 }
0x12d9   :  { %v1106_v42 = vsel %vm1105_vm8, %v1448_v33, %v1102_v38 }
0x12da   :  { %v1107_v43 = vmul.f32 %v1106_v42, %v1090_v24 }
0x12dc   :  { %v1111_v45 = vmul.f32 %v1396_v39, %v1107_v43 }
0x12de   :  { %v1115_v46 = vadd.f32 %v1397_v44, %v1111_v45 }
0x12e0   :  { %1349 = vmatmul.msk.f32.vlgmr.msra.gmra.mxu2 %vm147_vm1, %v1115_v46 }
0x1363   :  { %v1146_v50 = vpop.f32.mrf.mxu2 }
0x1364   :  { %v2003_v52 = vadd.f32 %v1398_v19, %v1146_v50  ;;  %v1265_v19 = vld [vmem:[%s2097_s19 + $0x8] sm:$0xff] }
0x1366   :  { %v1150_v54 = vmul.f32 0.70710677, %v2003_v52  ;;  %v1149_v33 = vmul.f32 0.5, %v2003_v52 }
0x1368   :  { %v1151_v56 = vand.u32 2147483647, %v1150_v54  ;;  %vm1184_vm14 = vcmp.ge.f32.partialorder %v1150_v54, 0.0 }
0x136a   :  { %v1152_v58 = vmul.f32 0.3275911, %v1151_v56  ;;  %v1178_v15 = vsub.f32 0.0, %v1151_v56 }
0x136c   :  { %v1153_v60 = vadd.f32 1.0, %v1152_v58  ;;  %v1179_v18 = vmul.f32 %v1178_v15, %v1151_v56 }
0x136e   :  { %1449 = vrcp.f32 %v1153_v60  ;;  %v1165_v7 = vand.u32 2147483648, %v1153_v60  ;;  %v1163_v6 = vand.u32 2147483647, %v1153_v60  ;;  %vm1159_vm10 = vweird.f32 %v1153_v60 }
0x136f   :  { %v1180_v23 = vmul.f32 1.442695, %v1179_v18 }
0x1370   :  { %v1166_v12 = vor.u32 1.1754944e-38, %v1165_v7  ;;  %vm1164_vm13 = vcmp.eq.f32.partialorder %v1163_v6, 8.507059e+37 }
0x1371   :  { %1451 = vpow2.f32 %v1180_v23 }
0x1374   :  { %v1450_v0 = vpop.eup %1449 }
0x1375   :  { %v1155_v1 = vmul.f32 %v1450_v0, %v1153_v60  ;;  %vm1160_vm9 = vweird.f32 %v1450_v0 }
0x1376   :  { %vm1161_vm12 = vmor %vm1159_vm10, %vm1160_vm9 }
0x1377   :  { %v1156_v3 = vsub.f32 1.0, %v1155_v1  ;;  %v1452_v27 = vpop.eup %1451 }
0x1379   :  { %v1157_v4 = vmul.f32 %v1450_v0, %v1156_v3 }
0x137b   :  { %v1158_v11 = vadd.f32 %v1450_v0, %v1157_v4 }
0x137d   :  { %v1162_v13 = vsel %vm1161_vm12, %v1450_v0, %v1158_v11 }
0x137e   :  { %v1167_v14 = vsel %vm1164_vm13, %v1166_v12, %v1162_v13 }
0x137f   :  { %v1169_v16 = vmul.f32 1.0614054, %v1167_v14 }
0x1381   :  { %v1170_v17 = vadd.f32 -1.4531521, %v1169_v16 }
0x1383   :  { %v1171_v21 = vmul.f32 %v1170_v17, %v1167_v14 }
0x1385   :  { %v1172_v22 = vadd.f32 1.4214138, %v1171_v21 }
0x1387   :  { %v1173_v24 = vmul.f32 %v1172_v22, %v1167_v14 }
0x1389   :  { %v1174_v25 = vadd.f32 -0.28449672, %v1173_v24 }
0x138b   :  { %v1175_v26 = vmul.f32 %v1174_v25, %v1167_v14 }
0x138d   :  { %v1176_v32 = vadd.f32 0.2548296, %v1175_v26 }
0x138f   :  { %v1177_v41 = vmul.f32 %v1176_v32, %v1167_v14 }
0x1391   :  { %v1182_v28 = vmul.f32 %v1452_v27, %v1177_v41 }
0x1393   :  { %v1183_v29 = vsub.f32 1.0, %v1182_v28 }
0x1395   :  { %v1185_v30 = vsub.f32 0.0, %v1183_v29 }
0x1397   :  { %v1186_v31 = vsel %vm1184_vm14, %v1183_v29, %v1185_v30 }
0x1398   :  { %v1187_v34 = vadd.f32 1.0, %v1186_v31 }
0x139a   :  { %v1188_v35 = vmul.f32 %v1187_v34, %v1149_v33 }
0x139c   :  { %1227 = vmatmul.f32.vlgmr.msra.gmra.mxu3 %v1188_v35 }
0x141f   :  { %v1228_v37 = vpop.f32.mrf.mxu3 }
0x1420   :  { %v1229_v38 = vadd.f32 %v1399_v36, %v1228_v37 }
0x1422   :  { %v1231_v39 = vadd.f32 %v1229_v38, %v1961_v20  ;;  %v1266_v20 = vld [vmem:[%s2097_s19 + $0x10] sm:$0xff] }
0x1423   :  { %1288 = vmatpush.msra.mxu0 %v1266_v20 }
0x1424   :  { %v1234_v42 = vsel %vm147_vm1, %v1231_v39, 0.0 }
0x1425   :  { %1235 = vadd.xlane.f32.xlu2 %v1234_v42  ;;  %1289 = vmatpush.msra.mxu0 %v1265_v19 }
0x1427   :  { %1290 = vmatpush.msra.mxu0 %v1264_v49 }
0x1498   :  { %v1236_v43 = vpop.xlane.xlu2 %1235 }
0x1499   :  { %v1237_v44 = vmul.f32 %v1236_v43, %v1668_v40 }
0x149b   :  { %v1238_v45 = vsub.f32 %v1231_v39, %v1237_v44 }
0x149d   :  { %v1239_v46 = vmul.f32 %v1238_v45, %v1238_v45 }
0x149f   :  { %v1240_v47 = vsel %vm147_vm1, %v1239_v46, 0.0 }
0x14a0   :  { %1241 = vadd.xlane.f32.xlu1 %v1240_v47 }
0x1513   :  { %v1242_v50 = vpop.xlane.xlu1 %1241 }
0x1514   :  { %v1243_v51 = vmul.f32 %v1242_v50, %v1668_v40  ;;  %v1401_v40 = vld [vmem:[%s2095_s18] ss:$0 sm:$0xff] }
0x1516   :  { %v1244_v52 = vadd.f32 1e-05, %v1243_v51 }
0x1518   :  { %1453 = vrsqrt.f32 %v1244_v52  ;;  %vm1251_vm0 = vweird.f32 %v1244_v52 }
0x151e   :  { %v1454_v53 = vpop.eup %1453 }
0x151f   :  { %v1246_v54 = vmul.f32 %v1454_v53, %v1244_v52  ;;  %vm1252_vm15 = vweird.f32 %v1454_v53 }
0x1520   :  { %vm1253_vm2 = vmor %vm1251_vm0, %vm1252_vm15 }
0x1521   :  { %v1247_v55 = vmul.f32 %v1454_v53, %v1246_v54 }
0x1523   :  { %v1248_v56 = vmul.f32 0.5, %v1247_v55 }
0x1525   :  { %v1249_v57 = vsub.f32 1.5, %v1248_v56 }
0x1527   :  { %v1250_v58 = vmul.f32 %v1454_v53, %v1249_v57 }
0x1529   :  { %v1254_v60 = vsel %vm1253_vm2, %v1454_v53, %v1250_v58 }
0x152a   :  { %v1255_v9 = vmul.f32 %v1254_v60, %v1238_v45 }
0x152c   :  { %v1259_v61 = vmul.f32 %v1400_v59, %v1255_v9 }
0x152e   :  { %v1263_v62 = vadd.f32 %v1401_v40, %v1259_v61 }
0x1530   :  { %1367 = vmatmul.msk.f32.vlgmr.msra.gmra.mxu0 %vm147_vm1, %v1263_v62 }
0x15ad   :  { %v1292_v0 = vpop.f32.mrf.mxu0 }
0x15ae   :  { %v1293_v1 = vadd.f32 %v1402_v63, %v1292_v0 }
0x15b0   :  { %1295 = vst.msk [vmem:[%s2098_s21] sm:$0xff] %vm147_vm1, %v1293_v1 }

// kernel: mae_forward.4
= control target key start
LH: loop header
LB: loop body
LE: loop exit
PB: predicated region body
PF: predicated region fallthrough
CT: control target
= control target key end

     0   :  { %vm69_vm0 = vcmask 261120   ;;  %v3452_v8 = vmov 32.0   ;;  %vm228_vm14 = vcmask 785408   ;;  %s3453_s23 = smov 96   ;;  %s3454_s24 = smov 88   ;;  %vm249_vm15 = vcmask 64512   ;;  %s4864_s0 = inlined_call_operand.vmem [shape: f32[32,32], index: 0, kind: input, shape index: {}]   ;;  %s4865_s2 = inlined_call_operand.vmem [shape: f32[2,1,32], index: 2, kind: input, shape index: {}]   ;;  %s4866_s3 = inlined_call_operand.vmem [shape: f32[2,1,32], index: 3, kind: input, shape index: {}]   ;;  %s4867_s5 = inlined_call_operand.vmem [shape: f32[2,1,96], index: 5, kind: input, shape index: {}]   ;;  %s4868_s4 = inlined_call_operand.vmem [shape: f32[2,32,96], index: 4, kind: input, shape index: {}]   ;;  %s4869_s1 = inlined_call_operand.vmem [shape: f32[32,32], index: 1, kind: input, shape index: {}]   ;;  %s4870_s7 = inlined_call_operand.vmem [shape: f32[2,1,32], index: 7, kind: input, shape index: {}]   ;;  %s4871_s6 = inlined_call_operand.vmem [shape: f32[2,32,32], index: 6, kind: input, shape index: {}]   ;;  %s4872_s8 = inlined_call_operand.vmem [shape: f32[2,1,32], index: 8, kind: input, shape index: {}]   ;;  %s4873_s9 = inlined_call_operand.vmem [shape: f32[2,1,32], index: 9, kind: input, shape index: {}]   ;;  %s4874_s11 = inlined_call_operand.vmem [shape: f32[2,1,128], index: 11, kind: input, shape index: {}]   ;;  %s4875_s10 = inlined_call_operand.vmem [shape: f32[2,32,128], index: 10, kind: input, shape index: {}]   ;;  %s4876_s13 = inlined_call_operand.vmem [shape: f32[2,1,32], index: 13, kind: input, shape index: {}]   ;;  %s4877_s12 = inlined_call_operand.vmem [shape: f32[2,128,32], index: 12, kind: input, shape index: {}]   ;;  %s4878_s14 = inlined_call_operand.vmem [shape: f32[1,32], index: 14, kind: input, shape index: {}]   ;;  %s4879_s15 = inlined_call_operand.vmem [shape: f32[1,32], index: 15, kind: input, shape index: {}]   ;;  %s4880_s16 = inlined_call_operand.vmem [shape: f32[32,192], index: 16, kind: input, shape index: {}]   ;;  %s4881_s17 = inlined_call_operand.vmem [shape: f32[1,192], index: 17, kind: input, shape index: {}]   ;;  %s4882_s18 = inlined_call_operand.vmem [shape: f32[32,192], index: 18, kind: output, shape index: {}]  }
   0x1   :  { %4906 = sst [smem:[#allocation4_spill]] %s4864_s0  ;;  %3242 = vrcp.f32 %v3452_v8  ;;  %v182_v35 = vld [vmem:[%s4868_s4 + $0x18] sm:$0xff]  ;;  %v181_v36 = vld [vmem:[%s4868_s4 + $0x10] sm:$0xff]  ;;  %v180_v37 = vld [vmem:[%s4868_s4 + $0x8] sm:$0xff]  ;;  %s4892_s25 = smov 64  }
   0x2   :  { %4907 = sst [smem:[#allocation5_spill]] %s4865_s2  ;;  %211 = vmatpush.msra.mxu1 %v182_v35  ;;  %3121 = vmatpush.msra.mxu3 %v182_v35  ;;  %v179_v38 = vld [vmem:[%s4868_s4] sm:$0xff]  ;;  %s3456_s26 = smov 120  }
   0x3   :  { %4908 = sst [smem:[#allocation6_spill]] %s4866_s3  ;;  %s3457_s27 = smov 80  }
   0x4   :  { %s4909_s29 = sld [smem:[#allocation4_spill]]  ;;  %212 = vmatpush.msra.mxu1 %v181_v36  ;;  %3122 = vmatpush.msra.mxu3 %v181_v36  ;;  %s4904_s20 = smov 72  }
   0x5   :  { %s4910_s19 = sld [smem:[#allocation5_spill]]  ;;  %s4898_s22 = smov 112  }
   0x6   :  { %213 = vmatpush.msra.mxu1 %v180_v37  ;;  %3123 = vmatpush.msra.mxu3 %v180_v37  ;;  %s4911_s21 = sld [smem:[#allocation6_spill]]  ;;  %s4894_s3 = smov 104  }
   0x7   :  { %v3243_v9 = vpop.eup %3242  ;;  %s4888_s28 = smov 56   ;;  %s4890_s30 = smov 48  }
   0x8   :  { %v83_v10 = vmul.f32 32.0, %v3243_v9  ;;  %vm87_vm1 = vweird.f32 %v3243_v9  ;;  %214 = vmatpush.msra.mxu1 %v179_v38  ;;  %3124 = vmatpush.msra.mxu3 %v179_v38  ;;  %s4886_s0 = smov 40   ;;  %s4896_s2 = smov 8  }
   0xa   :  { %v60_v0 = vld [vmem:[%s4909_s29 + $0x8] sm:$0xff]  ;;  %v59_v1 = vld [vmem:[%s4909_s29] sm:$0xff]  ;;  %v61_v4 = vld [vmem:[%s4909_s29 + $0x10] sm:$0xff]  ;;  %v84_v11 = vsub.f32 1.0, %v83_v10 }
   0xb   :  { %v73_v2 = vsel %vm69_vm0, %v60_v0, 0.0  ;;  %v70_v3 = vsel %vm69_vm0, %v59_v1, 0.0  ;;  %v62_v5 = vld [vmem:[%s4909_s29 + $0x18] sm:$0xff]  ;;  %v76_v6 = vsel %vm69_vm0, %v61_v4, 0.0 }
   0xc   :  { %74 = vadd.xlane.f32.xlu1 %v73_v2  ;;  %71 = vadd.xlane.f32.xlu0 %v70_v3  ;;  %v79_v7 = vsel %vm69_vm0, %v62_v5, 0.0  ;;  %v85_v12 = vmul.f32 %v3243_v9, %v84_v11  ;;  %v3224_v3 = vld [vmem:[%s4910_s19] ss:$0 sm:$0xff] }
   0xd   :  { %v3225_v8 = vld [vmem:[%s4911_s21] ss:$0 sm:$0xff] }
   0xe   :  { %v86_v13 = vadd.f32 %v3243_v9, %v85_v12 }
  0x10   :  { %v3578_v14 = vsel %vm87_vm1, %v3243_v9, %v86_v13  ;;  %vm594_vm1 = vcmask 130112  }
  0x14   :  { %77 = vadd.xlane.f32.xlu1 %v76_v6  ;;  %80 = vadd.xlane.f32.xlu0 %v79_v7 }
  0x7f   :  { %v75_v15 = vpop.xlane.xlu1 %74  ;;  %v72_v16 = vpop.xlane.xlu0 %71 }
  0x80   :  { %v90_v17 = vmul.f32 %v3578_v14, %v75_v15  ;;  %v89_v18 = vmul.f32 %v3578_v14, %v72_v16 }
  0x82   :  { %v3582_v19 = vsub.f32 %v60_v0, %v90_v17  ;;  %v3584_v20 = vsub.f32 %v59_v1, %v89_v18 }
  0x84   :  { %v98_v21 = vmul.f32 %v3582_v19, %v3582_v19  ;;  %v97_v22 = vmul.f32 %v3584_v20, %v3584_v20 }
  0x86   :  { %v104_v23 = vsel %vm69_vm0, %v98_v21, 0.0  ;;  %v101_v24 = vsel %vm69_vm0, %v97_v22, 0.0 }
  0x87   :  { %v78_v25 = vpop.xlane.xlu1 %77  ;;  %105 = vadd.xlane.f32.xlu0 %v104_v23  ;;  %102 = vadd.xlane.f32.xlu2 %v101_v24  ;;  %v81_v26 = vpop.xlane.xlu0 %80 }
  0x88   :  { %v91_v27 = vmul.f32 %v3578_v14, %v78_v25  ;;  %v92_v28 = vmul.f32 %v3578_v14, %v81_v26 }
  0x8a   :  { %v3594_v29 = vsub.f32 %v61_v4, %v91_v27  ;;  %v3596_v30 = vsub.f32 %v62_v5, %v92_v28 }
  0x8c   :  { %v99_v31 = vmul.f32 %v3594_v29, %v3594_v29  ;;  %v100_v32 = vmul.f32 %v3596_v30, %v3596_v30 }
  0x8e   :  { %v107_v33 = vsel %vm69_vm0, %v99_v31, 0.0  ;;  %v110_v34 = vsel %vm69_vm0, %v100_v32, 0.0  ;;  %v3228_v32 = vld [vmem:[%s4867_s5] ss:$0 sm:$0xff] }
  0x8f   :  { %108 = vadd.xlane.f32.xlu1 %v107_v33  ;;  %111 = vadd.xlane.f32.xlu2 %v110_v34 }
  0xfa   :  { %v103_v39 = vpop.xlane.xlu2 %102  ;;  %v106_v40 = vpop.xlane.xlu0 %105 }
  0xfb   :  { %v113_v41 = vmul.f32 %v103_v39, %v3578_v14  ;;  %v114_v42 = vmul.f32 %v106_v40, %v3578_v14 }
  0xfd   :  { %v117_v43 = vadd.f32 1e-05, %v113_v41  ;;  %v118_v44 = vadd.f32 1e-05, %v114_v42 }
  0xff   :  { %3244 = vrsqrt.f32 %v117_v43  ;;  %vm127_vm3 = vweird.f32 %v117_v43  ;;  %vm137_vm4 = vweird.f32 %v118_v44 }
 0x100   :  { %3246 = vrsqrt.f32 %v118_v44 }
 0x102   :  { %v109_v45 = vpop.xlane.xlu1 %108  ;;  %v112_v46 = vpop.xlane.xlu2 %111 }
 0x103   :  { %v115_v47 = vmul.f32 %v109_v45, %v3578_v14  ;;  %v116_v48 = vmul.f32 %v112_v46, %v3578_v14 }
 0x105   :  { %v3245_v49 = vpop.eup %3244  ;;  %v119_v50 = vadd.f32 1e-05, %v115_v47  ;;  %v120_v51 = vadd.f32 1e-05, %v116_v48 }
 0x106   :  { %v3247_v52 = vpop.eup %3246  ;;  %v122_v53 = vmul.f32 %v3245_v49, %v117_v43  ;;  %vm128_vm2 = vweird.f32 %v3245_v49 }
 0x107   :  { %v132_v54 = vmul.f32 %v3247_v52, %v118_v44  ;;  %3248 = vrsqrt.f32 %v119_v50  ;;  %vm138_vm5 = vweird.f32 %v3247_v52  ;;  %vm129_vm6 = vmor %vm127_vm3, %vm128_vm2  ;;  %vm157_vm8 = vweird.f32 %v120_v51 }
 0x108   :  { %v123_v55 = vmul.f32 %v3245_v49, %v122_v53  ;;  %3250 = vrsqrt.f32 %v120_v51  ;;  %vm139_vm7 = vmor %vm137_vm4, %vm138_vm5  ;;  %vm147_vm10 = vweird.f32 %v119_v50  ;;  %vm789_vm2 = vcmask 195712  }
 0x109   :  { %v133_v56 = vmul.f32 %v3247_v52, %v132_v54  ;;  %vm984_vm3 = vcmask 261312  }
 0x10a   :  { %v124_v57 = vmul.f32 0.5, %v123_v55 }
 0x10b   :  { %v134_v58 = vmul.f32 0.5, %v133_v56 }
 0x10c   :  { %v125_v59 = vsub.f32 1.5, %v124_v57 }
 0x10d   :  { %v3249_v60 = vpop.eup %3248  ;;  %v135_v61 = vsub.f32 1.5, %v134_v58 }
 0x10e   :  { %v3251_v62 = vpop.eup %3250  ;;  %v126_v63 = vmul.f32 %v3245_v49, %v125_v59  ;;  %v142_v0 = vmul.f32 %v3249_v60, %v119_v50  ;;  %vm148_vm11 = vweird.f32 %v3249_v60 }
 0x10f   :  { %v136_v1 = vmul.f32 %v3247_v52, %v135_v61  ;;  %v152_v2 = vmul.f32 %v3251_v62, %v120_v51  ;;  %vm158_vm9 = vweird.f32 %v3251_v62  ;;  %vm149_vm13 = vmor %vm147_vm10, %vm148_vm11 }
 0x110   :  { %v143_v4 = vmul.f32 %v3249_v60, %v142_v0  ;;  %v130_v5 = vsel %vm129_vm6, %v3245_v49, %v126_v63  ;;  %vm159_vm12 = vmor %vm157_vm8, %vm158_vm9 }
 0x111   :  { %v153_v6 = vmul.f32 %v3251_v62, %v152_v2  ;;  %v161_v7 = vmul.f32 %v130_v5, %v3584_v20  ;;  %v140_v10 = vsel %vm139_vm7, %v3247_v52, %v136_v1  ;;  %v3712_v2 = vld [vmem:[%s4869_s1 + $0x10] sm:$0xff] }
 0x112   :  { %v144_v9 = vmul.f32 0.5, %v143_v4  ;;  %v162_v17 = vmul.f32 %v140_v10, %v3582_v19 }
 0x113   :  { %v154_v11 = vmul.f32 0.5, %v153_v6  ;;  %v168_v12 = vmul.f32 %v3224_v3, %v161_v7  ;;  %v3719_v7 = vld [vmem:[%s4869_s1 + $0x18] sm:$0xff] }
 0x114   :  { %v145_v13 = vsub.f32 1.5, %v144_v9  ;;  %v169_v21 = vmul.f32 %v3224_v3, %v162_v17 }
 0x115   :  { %v155_v15 = vsub.f32 1.5, %v154_v11  ;;  %v175_v16 = vadd.f32 %v3225_v8, %v168_v12 }
 0x116   :  { %v146_v18 = vmul.f32 %v3249_v60, %v145_v13  ;;  %v176_v26 = vadd.f32 %v3225_v8, %v169_v21 }
 0x117   :  { %v156_v20 = vmul.f32 %v3251_v62, %v155_v15  ;;  %2957 = vmatmul.msk.f32.vlgmr.msra.gmra.mxu1 %vm69_vm0, %v175_v16  ;;  %v3750_v15 = vld [vmem:[%s4869_s1 + $0x8] sm:$0xff] }
 0x118   :  { %v150_v24 = vsel %vm149_vm13, %v3249_v60, %v146_v18 }
 0x119   :  { %v160_v22 = vsel %vm159_vm12, %v3251_v62, %v156_v20  ;;  %v163_v27 = vmul.f32 %v150_v24, %v3594_v29 }
 0x11a   :  { %v164_v23 = vmul.f32 %v160_v22, %v3596_v30 }
 0x11b   :  { %v170_v19 = vmul.f32 %v3224_v3, %v163_v27 }
 0x11c   :  { %v171_v25 = vmul.f32 %v3224_v3, %v164_v23 }
 0x11d   :  { %v177_v31 = vadd.f32 %v3225_v8, %v170_v19 }
 0x11e   :  { %v178_v28 = vadd.f32 %v3225_v8, %v171_v25 }
 0x11f   :  { %2958 = vmatmul.msk.f32.gmra.mxu1 %vm69_vm0, %v176_v26 }
 0x120   :  { %2960 = vmatmul.msk.f32.vlgmr.msra.gmra.mxu3 %vm69_vm0, %v178_v28 }
 0x127   :  { %2959 = vmatmul.msk.f32.gmra.mxu1 %vm69_vm0, %v177_v31 }
 0x194   :  { %v216_v33 = vpop.f32.mrf.mxu1 }
 0x195   :  { %v217_v30 = vadd.f32 %v3228_v32, %v216_v33 }
 0x197   :  { %229 = vst.msk [vmem:[#allocation2] sm:$0xff] %vm228_vm14, %v217_v30 }
 0x19c   :  { %v219_v34 = vpop.f32.mrf.mxu1 }
 0x19d   :  { %v220_v29 = vadd.f32 %v3228_v32, %v219_v34 }
 0x19e   :  { %v3655_v42 = vld [vmem:[#allocation2] sm:$0xff] }
 0x19f   :  { %230 = vst.msk [vmem:[#allocation2 + $0x8] sm:$0xff] %vm228_vm14, %v220_v29 }
 0x1a3   :  { %v225_v35 = vpop.f32.mrf.mxu3 }
 0x1a4   :  { %v226_v36 = vadd.f32 %v3228_v32, %v225_v35  ;;  %v222_v37 = vpop.f32.mrf.mxu1 }
 0x1a5   :  { %v223_v38 = vadd.f32 %v3228_v32, %v222_v37 }
 0x1a6   :  { %232 = vst.msk [vmem:[#allocation2 + $0x18] sm:$0xff] %vm228_vm14, %v226_v36  ;;  %v3640_v39 = vld [vmem:[#allocation2 + $0x8] sm:$0xff] }
 0x1a7   :  { %231 = vst.msk [vmem:[#allocation2 + $0x10] sm:$0xff] %vm228_vm14, %v223_v38  ;;  %243 = vrot.lane.b32.xlu1 %v3640_v39, %s3453_s23  ;;  %v3659_v43 = vpack.i.bf16 %v3655_v42, %v3640_v39 }
 0x1ad   :  { %v3645_v40 = vld [vmem:[#allocation2 + $0x18] sm:$0xff] }
 0x1ae   :  { %247 = vrot.lane.b32.xlu2 %v3645_v40, %s3453_s23  ;;  %v3649_v41 = vld [vmem:[#allocation2 + $0x10] sm:$0xff] }
 0x1af   :  { %245 = vrot.lane.b32.xlu0 %v3649_v41, %s3453_s23  ;;  %426 = vrot.lane.b32.xlu1 %v3645_v40, %s3454_s24  ;;  %v3681_v44 = vpack.i.bf16 %v3649_v41, %v3645_v40 }
 0x1b6   :  { %241 = vrot.lane.b32.xlu2 %v3655_v42, %s3453_s23 }
 0x1b7   :  { %3145 = vrot.lane.b32.xlu0 %v3659_v43, %s4892_s25  ;;  %422 = vrot.lane.b32.xlu1 %v3640_v39, %s3454_s24 }
 0x1be   :  { %414 = vrot.lane.b32.xlu2 %v3640_v39, %s3456_s26 }
 0x1bf   :  { %621 = vrot.lane.b32.xlu0 %v3645_v40, %s3457_s27  ;;  %420 = vrot.lane.b32.xlu1 %v3655_v42, %s3454_s24 }
 0x1c6   :  { %416 = vrot.lane.b32.xlu2 %v3649_v41, %s3456_s26 }
 0x1c7   :  { %412 = vrot.lane.b32.xlu1 %v3655_v42, %s3456_s26 }
 0x1cf   :  { %424 = vrot.lane.b32.xlu1 %v3649_v41, %s3454_s24 }
 0x1d7   :  { %3150 = vrot.lane.b32.xlu1 %v3681_v44, %s4892_s25  ;;  %s4915_s25 = smov 64  }
 0x1df   :  { %615 = vrot.lane.b32.xlu1 %v3655_v42, %s3457_s27 }
 0x208   :  { %v248_v45 = vpop.permute.xlu2 %247 }
 0x209   :  { %2961 = vmatpush.xpose.msk.msrb.mxu1 %vm249_vm15, %v248_v45 }
 0x210   :  { %v242_v49 = vpop.permute.xlu2 %241 }
 0x218   :  { %v415_v60 = vpop.permute.xlu2 %414 }
 0x219   :  { %v244_v46 = vpop.permute.xlu1 %243 }
 0x220   :  { %v417_v62 = vpop.permute.xlu2 %416 }
 0x221   :  { %v246_v47 = vpop.permute.xlu0 %245  ;;  %v427_v48 = vpop.permute.xlu1 %426 }
 0x222   :  { %2962 = vmatpush.xpose.msk.msrb.mxu1 %vm249_vm15, %v246_v47  ;;  %2973 = vmatpush.xpose.msk.msrb.mxu3 %vm249_vm15, %v427_v48  ;;  %v3783_v47 = vld [vmem:[%s4869_s1] sm:$0xff] }
 0x226   :  { %2963 = vmatpush.xpose.msk.msrb.mxu1 %vm249_vm15, %v244_v46 }
 0x229   :  { %v423_v50 = vpop.permute.xlu1 %422  ;;  %v3146_v54 = vpop.permute.xlu0 %3145 }
 0x22a   :  { %2964 = vmatpush.xpose.msk.msrb.mxu1 %vm249_vm15, %v242_v49  ;;  %v3147_v58 = vunpack.i.l.bf16 %v3146_v54  ;;  %v3148_v59 = vunpack.i.h.bf16 %v3146_v54 }
 0x22d   :  { %2965 = vmatmul.msk.f32.vlgmr.msrb.gmra.mxu1 %vm249_vm15, %v3655_v42 }
 0x231   :  { %v421_v51 = vpop.permute.xlu1 %420  ;;  %v622_v61 = vpop.permute.xlu0 %621 }
 0x235   :  { %2966 = vmatmul.msk.f32.gmra.mxu1 %vm249_vm15, %v3640_v39 }
 0x239   :  { %v413_v52 = vpop.permute.xlu1 %412 }
 0x23d   :  { %2967 = vmatmul.msk.f32.gmra.mxu1 %vm249_vm15, %v3649_v41 }
 0x241   :  { %v425_v53 = vpop.permute.xlu1 %424 }
 0x242   :  { %2974 = vmatpush.xpose.msk.msrb.mxu3 %vm249_vm15, %v425_v53 }
 0x245   :  { %2968 = vmatmul.msk.f32.gmra.mxu1 %vm249_vm15, %v3645_v40 }
 0x246   :  { %2975 = vmatpush.xpose.msk.msrb.mxu3 %vm249_vm15, %v423_v50 }
 0x249   :  { %v3151_v55 = vpop.permute.xlu1 %3150 }
 0x24a   :  { %2976 = vmatpush.xpose.msk.msrb.mxu3 %vm249_vm15, %v421_v51  ;;  %v3152_v56 = vunpack.i.l.bf16 %v3151_v55  ;;  %v3153_v57 = vunpack.i.h.bf16 %v3151_v55 }
 0x24c   :  { %383 = vmatpush.msra.mxu0 %v3152_v56  ;;  %3125 = vmatpush.msra.mxu2 %v3152_v56 }
 0x24d   :  { %2977 = vmatmul.msk.f32.vlgmr.msrb.gmra.mxu3 %vm249_vm15, %v413_v52 }
 0x24e   :  { %384 = vmatpush.msra.mxu0 %v3153_v57  ;;  %3126 = vmatpush.msra.mxu2 %v3153_v57 }
 0x250   :  { %385 = vmatpush.msra.mxu0 %v3147_v58  ;;  %3127 = vmatpush.msra.mxu2 %v3147_v58 }
 0x251   :  { %v616_v38 = vpop.permute.xlu1 %615 }
 0x252   :  { %386 = vmatpush.msra.mxu0 %v3148_v59  ;;  %3128 = vmatpush.msra.mxu2 %v3148_v59 }
 0x254   :  { %2985 = vmatpush.xpose.msk.msrb.mxu2 %vm249_vm15, %v622_v61 }
 0x255   :  { %2978 = vmatmul.msk.f32.gmra.mxu3 %vm249_vm15, %v415_v60 }
 0x25d   :  { %2979 = vmatmul.msk.f32.gmra.mxu3 %vm249_vm15, %v417_v62 }
 0x2aa   :  { %v3707_v63 = vpop.f32.mrf.mxu1 }
 0x2b2   :  { %v286_v0 = vpop.f32.mrf.mxu1 }
 0x2b3   :  { %v296_v13 = vmul.f32 0.35355338, %v286_v0 }
 0x2b5   :  { %v3753_v18 = vadd.f32 %v296_v13, %v3750_v15 }
 0x2b7   :  { %v306_v23 = vsel %vm69_vm0, %v3753_v18, -inf }
 0x2ba   :  { %v289_v1 = vpop.f32.mrf.mxu1 }
 0x2bb   :  { %v297_v3 = vmul.f32 0.35355338, %v289_v1 }
 0x2bd   :  { %v301_v4 = vadd.f32 %v297_v3, %v3712_v2 }
 0x2bf   :  { %v309_v5 = vsel %vm69_vm0, %v301_v4, -inf }
 0x2c0   :  { %310 = vmax.xlane.f32.xlu0 %v309_v5 }
 0x2c2   :  { %v292_v6 = vpop.f32.mrf.mxu1 }
 0x2c3   :  { %v298_v8 = vmul.f32 0.35355338, %v292_v6 }
 0x2c5   :  { %v302_v9 = vadd.f32 %v298_v8, %v3719_v7 }
 0x2c7   :  { %v312_v10 = vsel %vm69_vm0, %v302_v9, -inf }
 0x2c8   :  { %313 = vmax.xlane.f32.xlu2 %v312_v10 }
 0x2d0   :  { %v461_v11 = vpop.f32.mrf.mxu3 }
 0x2d1   :  { %v473_v46 = vmul.f32 0.35355338, %v461_v11 }
 0x2d3   :  { %v477_v48 = vadd.f32 %v473_v46, %v3783_v47 }
 0x2d4   :  { %619 = vrot.lane.b32.xlu0 %v3649_v41, %s3457_s27 }
 0x2d5   :  { %v481_v49 = vsel %vm69_vm0, %v477_v48, -inf }
 0x2d8   :  { %v464_v12 = vpop.f32.mrf.mxu3 }
 0x2d9   :  { %v474_v50 = vmul.f32 0.35355338, %v464_v12 }
 0x2db   :  { %v3791_v52 = vadd.f32 %v474_v50, %v3750_v15 }
 0x2dc   :  { %418 = vrot.lane.b32.xlu0 %v3645_v40, %s3456_s26 }
 0x2dd   :  { %v484_v53 = vsel %vm69_vm0, %v3791_v52, -inf }
 0x2e0   :  { %816 = vrot.lane.b32.xlu2 %v3645_v40, %s4904_s20  ;;  %v467_v20 = vpop.f32.mrf.mxu3 }
 0x2e1   :  { %v475_v22 = vmul.f32 0.35355338, %v467_v20 }
 0x2e3   :  { %v3758_v26 = vadd.f32 %v475_v22, %v3712_v2 }
 0x2e4   :  { %812 = vrot.lane.b32.xlu0 %v3640_v39, %s4904_s20 }
 0x2e5   :  { %v487_v31 = vsel %vm69_vm0, %v3758_v26, -inf }
 0x2e8   :  { %814 = vrot.lane.b32.xlu2 %v3649_v41, %s4904_s20 }
 0x2ec   :  { %607 = vrot.lane.b32.xlu0 %v3655_v42, %s4898_s22 }
 0x2f0   :  { %617 = vrot.lane.b32.xlu2 %v3640_v39, %s3457_s27 }
 0x2f4   :  { %609 = vrot.lane.b32.xlu0 %v3640_v39, %s4898_s22 }
 0x2f8   :  { %810 = vrot.lane.b32.xlu2 %v3655_v42, %s4904_s20 }
 0x300   :  { %802 = vrot.lane.b32.xlu2 %v3655_v42, %s4894_s3 }
 0x308   :  { %804 = vrot.lane.b32.xlu2 %v3640_v39, %s4894_s3 }
 0x310   :  { %613 = vrot.lane.b32.xlu2 %v3645_v40, %s4898_s22 }
 0x333   :  { %v311_v16 = vpop.xlane.xlu0 %310 }
 0x334   :  { %v317_v17 = vsub.f32 %v301_v4, %v311_v16 }
 0x336   :  { %v323_v21 = vmul.f32 1.442695, %v317_v17 }
 0x338   :  { %3252 = vpow2.f32 %v323_v21 }
 0x339   :  { %307 = vmax.xlane.f32.xlu2 %v306_v23 }
 0x33b   :  { %v314_v24 = vpop.xlane.xlu2 %313 }
 0x33c   :  { %v318_v25 = vsub.f32 %v302_v9, %v314_v24 }
 0x33e   :  { %v3253_v27 = vpop.eup %3252  ;;  %v325_v28 = vmul.f32 1.442695, %v318_v25 }
 0x33f   :  { %v333_v19 = vsel %vm69_vm0, %v3253_v27, 0.0 }
 0x340   :  { %3254 = vpow2.f32 %v325_v28  ;;  %334 = vadd.xlane.f32.xlu0 %v333_v19 }
 0x341   :  { %488 = vmax.xlane.f32.xlu2 %v487_v31 }
 0x343   :  { %v817_v32 = vpop.permute.xlu2 %816 }
 0x344   :  { %2997 = vmatpush.xpose.msk.msra.mxu3 %vm249_vm15, %v817_v32 }
 0x346   :  { %v3255_v33 = vpop.eup %3254  ;;  %v620_v30 = vpop.permute.xlu0 %619 }
 0x347   :  { %2986 = vmatpush.xpose.msk.msrb.mxu2 %vm249_vm15, %v620_v30  ;;  %v336_v34 = vsel %vm69_vm0, %v3255_v33, 0.0 }
 0x348   :  { %337 = vadd.xlane.f32.xlu1 %v336_v34 }
 0x34b   :  { %v815_v29 = vpop.permute.xlu2 %814 }
 0x34c   :  { %2998 = vmatpush.xpose.msk.msra.mxu3 %vm249_vm15, %v815_v29 }
 0x34e   :  { %v419_v35 = vpop.permute.xlu0 %418 }
 0x34f   :  { %2980 = vmatmul.msk.f32.gmra.mxu3 %vm249_vm15, %v419_v35 }
 0x353   :  { %v618_v36 = vpop.permute.xlu2 %617 }
 0x354   :  { %611 = vrot.lane.b32.xlu0 %v3649_v41, %s4898_s22  ;;  %2987 = vmatpush.xpose.msk.msrb.mxu2 %vm249_vm15, %v618_v36 }
 0x356   :  { %v813_v37 = vpop.permute.xlu0 %812 }
 0x357   :  { %2999 = vmatpush.xpose.msk.msra.mxu3 %vm249_vm15, %v813_v37 }
 0x358   :  { %2988 = vmatpush.xpose.msk.msrb.mxu2 %vm249_vm15, %v616_v38 }
 0x35b   :  { %v811_v39 = vpop.permute.xlu2 %810 }
 0x35c   :  { %808 = vrot.lane.b32.xlu0 %v3645_v40, %s4894_s3  ;;  %3000 = vmatpush.xpose.msk.msra.mxu3 %vm249_vm15, %v811_v39  ;;  %v295_v40 = vmul.f32 0.35355338, %v3707_v63 }
 0x35e   :  { %v608_v54 = vpop.permute.xlu0 %607 }
 0x361   :  { %806 = vrot.lane.b32.xlu1 %v3649_v41, %s4894_s3  ;;  %v299_v41 = vadd.f32 %v295_v40, %v3783_v47 }
 0x363   :  { %v803_v42 = vpop.permute.xlu2 %802  ;;  %v303_v51 = vsel %vm69_vm0, %v299_v41, -inf }
 0x364   :  { %3001 = vmatmul.msk.f32.vlgmr.msra.gmra.mxu3 %vm249_vm15, %v803_v42 }
 0x366   :  { %v610_v55 = vpop.permute.xlu0 %609 }
 0x36b   :  { %v805_v45 = vpop.permute.xlu2 %804 }
 0x36c   :  { %3002 = vmatmul.msk.f32.gmra.mxu3 %vm249_vm15, %v805_v45 }
 0x373   :  { %v614_v6 = vpop.permute.xlu2 %613 }
 0x386   :  { %482 = vmax.xlane.f32.xlu0 %v481_v49 }
 0x38b   :  { %304 = vmax.xlane.f32.xlu1 %v303_v51 }
 0x393   :  { %485 = vmax.xlane.f32.xlu1 %v484_v53 }
 0x3ac   :  { %v308_v20 = vpop.xlane.xlu2 %307 }
 0x3ad   :  { %v316_v23 = vsub.f32 %v3753_v18, %v308_v20 }
 0x3af   :  { %v321_v25 = vmul.f32 1.442695, %v316_v23 }
 0x3b3   :  { %v335_v56 = vpop.xlane.xlu0 %334 }
 0x3b4   :  { %3256 = vrcp.f32 %v335_v56 }
 0x3ba   :  { %v3257_v57 = vpop.eup %3256 }
 0x3bb   :  { %v338_v58 = vpop.xlane.xlu1 %337  ;;  %v345_v59 = vmul.f32 %v3257_v57, %v3253_v27 }
 0x3bc   :  { %3258 = vrcp.f32 %v338_v58 }
 0x3bd   :  { %2971 = vmatmul.msk.f32.vlgmr.msra.gmra.mxu2 %vm69_vm0, %v345_v59 }
 0x3c2   :  { %v3259_v60 = vpop.eup %3258 }
 0x3c3   :  { %v346_v61 = vmul.f32 %v3259_v60, %v3255_v33 }
 0x3c5   :  { %2972 = vmatmul.msk.f32.gmra.mxu2 %vm69_vm0, %v346_v61 }
 0x3c6   :  { %v612_v62 = vpop.permute.xlu0 %611 }
 0x3cd   :  { %2989 = vmatmul.msk.f32.vlgmr.msrb.gmra.mxu2 %vm249_vm15, %v608_v54 }
 0x3ce   :  { %v809_v5 = vpop.permute.xlu0 %808 }
 0x3d2   :  { %v470_v63 = vpop.f32.mrf.mxu3 }
 0x3d3   :  { %v476_v0 = vmul.f32 0.35355338, %v470_v63  ;;  %v807_v1 = vpop.permute.xlu1 %806 }
 0x3d4   :  { %3003 = vmatmul.msk.f32.gmra.mxu3 %vm249_vm15, %v807_v1 }
 0x3d5   :  { %2990 = vmatmul.msk.f32.gmra.mxu2 %vm249_vm15, %v610_v55  ;;  %v3801_v3 = vadd.f32 %v476_v0, %v3719_v7  ;;  %v489_v55 = vpop.xlane.xlu2 %488 }
 0x3d7   :  { %v490_v4 = vsel %vm69_vm0, %v3801_v3, -inf }
 0x3d8   :  { %491 = vmax.xlane.f32.xlu0 %v490_v4 }
 0x3dc   :  { %3004 = vmatmul.msk.f32.gmra.mxu3 %vm249_vm15, %v809_v5 }
 0x3dd   :  { %2991 = vmatmul.msk.f32.gmra.mxu2 %vm249_vm15, %v612_v62 }
 0x3e5   :  { %2992 = vmatmul.msk.f32.gmra.mxu2 %vm249_vm15, %v614_v6 }
 0x3e7   :  { %v851_v8 = vpop.f32.mrf.mxu3 }
 0x3e8   :  { %v863_v9 = vmul.f32 0.35355338, %v851_v8 }
 0x3ea   :  { %v3809_v10 = vadd.f32 %v863_v9, %v3783_v47 }
 0x3ec   :  { %v871_v11 = vsel %vm69_vm0, %v3809_v10, -inf }
 0x3ed   :  { %872 = vmax.xlane.f32.xlu2 %v871_v11 }
 0x3ef   :  { %v854_v12 = vpop.f32.mrf.mxu3 }
 0x3f0   :  { %v864_v13 = vmul.f32 0.35355338, %v854_v12 }
 0x3f2   :  { %v3814_v16 = vadd.f32 %v864_v13, %v3750_v15 }
 0x3f4   :  { %v874_v17 = vsel %vm69_vm0, %v3814_v16, -inf }
 0x3f5   :  { %875 = vmax.xlane.f32.xlu2 %v874_v17 }
 0x3f9   :  { %v483_v27 = vpop.xlane.xlu0 %482 }
 0x3fa   :  { %v493_v19 = vsub.f32 %v477_v48, %v483_v27 }
 0x3fc   :  { %v497_v32 = vmul.f32 1.442695, %v493_v19 }
 0x3fe   :  { %v305_v21 = vpop.xlane.xlu1 %304 }
 0x3ff   :  { %v315_v22 = vsub.f32 %v299_v41, %v305_v21 }
 0x401   :  { %v319_v24 = vmul.f32 1.442695, %v315_v22 }
 0x403   :  { %3260 = vpow2.f32 %v319_v24 }
 0x404   :  { %3262 = vpow2.f32 %v321_v25 }
 0x405   :  { %3264 = vpow2.f32 %v497_v32 }
 0x406   :  { %v486_v45 = vpop.xlane.xlu1 %485 }
 0x407   :  { %v494_v41 = vsub.f32 %v3791_v52, %v486_v45 }
 0x409   :  { %v3819_v28 = vpop.eup %3260  ;;  %v499_v53 = vmul.f32 1.442695, %v494_v41 }
 0x40a   :  { %v327_v31 = vsel %vm69_vm0, %v3819_v28, 0.0  ;;  %v3823_v33 = vpop.eup %3262 }
 0x40b   :  { %328 = vadd.xlane.f32.xlu0 %v327_v31  ;;  %v330_v30 = vsel %vm69_vm0, %v3823_v33, 0.0  ;;  %v3827_v18 = vpop.eup %3264  ;;  %3266 = vpow2.f32 %v499_v53 }
 0x40c   :  { %v505_v34 = vsel %vm69_vm0, %v3827_v18, 0.0 }
 0x411   :  { %v3860_v0 = vpop.eup %3266 }
 0x413   :  { %331 = vadd.xlane.f32.xlu0 %v330_v30 }
 0x41b   :  { %506 = vadd.xlane.f32.xlu0 %v505_v34 }
 0x440   :  { %v394_v29 = vpop.f32.mrf.mxu2 }
 0x441   :  { %402 = vst.msk [vmem:[#allocation3 + $0x10] sm:$0xff] %vm249_vm15, %v394_v29 }
 0x448   :  { %v397_v35 = vpop.f32.mrf.mxu2 }
 0x449   :  { %403 = vst.msk [vmem:[#allocation3 + $0x18] sm:$0xff] %vm249_vm15, %v397_v35 }
 0x44b   :  { %v492_v8 = vpop.xlane.xlu0 %491 }
 0x44c   :  { %v496_v20 = vsub.f32 %v3801_v3, %v492_v8 }
 0x44e   :  { %v503_v22 = vmul.f32 1.442695, %v496_v20 }
 0x450   :  { %v656_v36 = vpop.f32.mrf.mxu2 }
 0x451   :  { %v668_v37 = vmul.f32 0.35355338, %v656_v36 }
 0x453   :  { %v3834_v38 = vadd.f32 %v668_v37, %v3783_v47 }
 0x455   :  { %v676_v39 = vsel %vm69_vm0, %v3834_v38, -inf }
 0x456   :  { %677 = vmax.xlane.f32.xlu1 %v676_v39 }
 0x457   :  { %v857_v42 = vpop.f32.mrf.mxu3 }
 0x458   :  { %v865_v46 = vmul.f32 0.35355338, %v857_v42  ;;  %v659_v48 = vpop.f32.mrf.mxu2 }
 0x459   :  { %v669_v40 = vmul.f32 0.35355338, %v659_v48 }
 0x45a   :  { %v3839_v49 = vadd.f32 %v865_v46, %v3712_v2 }
 0x45b   :  { %v3843_v50 = vadd.f32 %v669_v40, %v3750_v15  ;;  %v495_v15 = vsub.f32 %v3758_v26, %v489_v55 }
 0x45c   :  { %v877_v47 = vsel %vm69_vm0, %v3839_v49, -inf }
 0x45d   :  { %878 = vmax.xlane.f32.xlu2 %v877_v47  ;;  %v679_v51 = vsel %vm69_vm0, %v3843_v50, -inf  ;;  %v501_v62 = vmul.f32 1.442695, %v495_v15 }
 0x45e   :  { %680 = vmax.xlane.f32.xlu1 %v679_v51 }
 0x45f   :  { %v860_v54 = vpop.f32.mrf.mxu3  ;;  %3268 = vpow2.f32 %v501_v62 }
 0x460   :  { %v866_v56 = vmul.f32 0.35355338, %v860_v54  ;;  %v662_v57 = vpop.f32.mrf.mxu2  ;;  %v873_v21 = vpop.xlane.xlu2 %872 }
 0x461   :  { %v670_v58 = vmul.f32 0.35355338, %v662_v57  ;;  %v883_v23 = vsub.f32 %v3809_v10, %v873_v21 }
 0x462   :  { %v3850_v59 = vadd.f32 %v866_v56, %v3719_v7 }
 0x463   :  { %v3854_v52 = vadd.f32 %v670_v58, %v3712_v2  ;;  %v508_v2 = vsel %vm69_vm0, %v3860_v0, 0.0  ;;  %v887_v24 = vmul.f32 1.442695, %v883_v23 }
 0x464   :  { %v880_v60 = vsel %vm69_vm0, %v3850_v59, -inf }
 0x465   :  { %881 = vmax.xlane.f32.xlu0 %v880_v60  ;;  %v682_v61 = vsel %vm69_vm0, %v3854_v52, -inf  ;;  %v3869_v5 = vpop.eup %3268 }
 0x466   :  { %683 = vmax.xlane.f32.xlu1 %v682_v61  ;;  %v511_v6 = vsel %vm69_vm0, %v3869_v5, 0.0 }
 0x468   :  { %v665_v63 = vpop.f32.mrf.mxu2  ;;  %v876_v10 = vpop.xlane.xlu2 %875 }
 0x469   :  { %v671_v1 = vmul.f32 0.35355338, %v665_v63  ;;  %v884_v29 = vsub.f32 %v3814_v16, %v876_v10 }
 0x46b   :  { %v3863_v26 = vadd.f32 %v671_v1, %v3719_v7  ;;  %v889_v37 = vmul.f32 1.442695, %v884_v29 }
 0x46d   :  { %509 = vadd.xlane.f32.xlu0 %v508_v2  ;;  %v685_v4 = vsel %vm69_vm0, %v3863_v26, -inf }
 0x46e   :  { %686 = vmax.xlane.f32.xlu2 %v685_v4 }
 0x475   :  { %512 = vadd.xlane.f32.xlu0 %v511_v6 }
 0x47e   :  { %v329_v9 = vpop.xlane.xlu0 %328 }
 0x47f   :  { %3270 = vrcp.f32 %v329_v9  ;;  %3155 = vrot.lane.b32.xlu1 %v3681_v44, %s4888_s28 }
 0x485   :  { %v3271_v7 = vpop.eup %3270 }
 0x486   :  { %v332_v11 = vpop.xlane.xlu0 %331  ;;  %3160 = vrot.lane.b32.xlu2 %v3659_v43, %s4888_s28  ;;  %v343_v12 = vmul.f32 %v3271_v7, %v3819_v28  ;;  %s4902_s28 = smov 24  }
 0x487   :  { %3272 = vrcp.f32 %v332_v11 }
 0x488   :  { %2969 = vmatmul.msk.f32.vlgmr.msra.gmra.mxu0 %vm69_vm0, %v343_v12  ;;  %3274 = vpow2.f32 %v503_v22 }
 0x489   :  { %3165 = vrot.lane.b32.xlu0 %v3681_v44, %s4890_s30  ;;  %3276 = vpow2.f32 %v887_v24 }
 0x48d   :  { %v3273_v13 = vpop.eup %3272 }
 0x48e   :  { %v344_v17 = vmul.f32 %v3273_v13, %v3823_v33  ;;  %v3889_v25 = vpop.eup %3274  ;;  %v507_v32 = vpop.xlane.xlu0 %506 }
 0x48f   :  { %v514_v27 = vsel %vm69_vm0, %v3889_v25, 0.0  ;;  %v3893_v28 = vpop.eup %3276 }
 0x490   :  { %2970 = vmatmul.msk.f32.gmra.mxu0 %vm69_vm0, %v344_v17 }
 0x491   :  { %3170 = vrot.lane.b32.xlu0 %v3681_v44, %s4886_s0  ;;  %v895_v44 = vsel %vm69_vm0, %v3893_v28, 0.0 }
 0x499   :  { %3175 = vrot.lane.b32.xlu0 %v3659_v43, %s4890_s30  ;;  %s4919_s30 = smov 8  }
 0x4a9   :  { %515 = vadd.xlane.f32.xlu1 %v514_v27 }
 0x4af   :  { %896 = vadd.xlane.f32.xlu2 %v895_v44 }
 0x4c9   :  { %v678_v3 = vpop.xlane.xlu1 %677 }
 0x4ca   :  { %v688_v19 = vsub.f32 %v3834_v38, %v678_v3 }
 0x4cc   :  { %v692_v31 = vmul.f32 1.442695, %v688_v19 }
 0x4ce   :  { %3278 = vpow2.f32 %v692_v31 }
 0x4d0   :  { %v879_v39 = vpop.xlane.xlu2 %878 }
 0x4d1   :  { %v681_v33 = vpop.xlane.xlu1 %680  ;;  %v885_v12 = vsub.f32 %v3839_v49, %v879_v39 }
 0x4d2   :  { %v689_v30 = vsub.f32 %v3843_v50, %v681_v33 }
 0x4d3   :  { %v891_v21 = vmul.f32 1.442695, %v885_v12  ;;  %v993_v12 = vld [vmem:[%s4871_s6] sm:$0xff] }
 0x4d4   :  { %v3899_v34 = vpop.eup %3278  ;;  %v694_v35 = vmul.f32 1.442695, %v689_v30 }
 0x4d5   :  { %v700_v36 = vsel %vm69_vm0, %v3899_v34, 0.0 }
 0x4d6   :  { %3280 = vpow2.f32 %v694_v35  ;;  %701 = vadd.xlane.f32.xlu0 %v700_v36 }
 0x4d7   :  { %3282 = vpow2.f32 %v889_v37 }
 0x4d8   :  { %v882_v38 = vpop.xlane.xlu0 %881 }
 0x4d9   :  { %v684_v42 = vpop.xlane.xlu1 %683  ;;  %v886_v48 = vsub.f32 %v3850_v59, %v882_v38 }
 0x4da   :  { %v690_v45 = vsub.f32 %v3854_v52, %v684_v42 }
 0x4db   :  { %v893_v41 = vmul.f32 1.442695, %v886_v48 }
 0x4dc   :  { %v3905_v46 = vpop.eup %3280  ;;  %v696_v40 = vmul.f32 1.442695, %v690_v45 }
 0x4dd   :  { %v703_v16 = vsel %vm69_vm0, %v3905_v46, 0.0  ;;  %v3910_v47 = vpop.eup %3282 }
 0x4de   :  { %3284 = vpow2.f32 %v696_v40  ;;  %704 = vadd.xlane.f32.xlu1 %v703_v16  ;;  %v898_v55 = vsel %vm69_vm0, %v3910_v47, 0.0 }
 0x4df   :  { %3286 = vpow2.f32 %v893_v41 }
 0x4e0   :  { %v510_v57 = vpop.xlane.xlu0 %509 }
 0x4e1   :  { %v687_v50 = vpop.xlane.xlu2 %686 }
 0x4e2   :  { %v691_v51 = vsub.f32 %v3863_v26, %v687_v50 }
 0x4e4   :  { %v3913_v53 = vpop.eup %3284  ;;  %v698_v54 = vmul.f32 1.442695, %v691_v51 }
 0x4e5   :  { %v706_v56 = vsel %vm69_vm0, %v3913_v53, 0.0  ;;  %v3919_v58 = vpop.eup %3286 }
 0x4e6   :  { %3288 = vpow2.f32 %v698_v54  ;;  %899 = vadd.xlane.f32.xlu1 %v898_v55  ;;  %707 = vadd.xlane.f32.xlu2 %v706_v56  ;;  %v904_v15 = vsel %vm69_vm0, %v3919_v58, 0.0 }
 0x4e7   :  { %3290 = vrcp.f32 %v507_v32 }
 0x4e8   :  { %v513_v62 = vpop.xlane.xlu0 %512  ;;  %3292 = vrcp.f32 %v510_v57 }
 0x4e9   :  { %v3161_v63 = vpop.permute.xlu2 %3160  ;;  %3294 = vrcp.f32 %v513_v62 }
 0x4ea   :  { %3180 = vrot.lane.b32.xlu0 %v3659_v43, %s4886_s0  ;;  %v3162_v43 = vunpack.i.l.bf16 %v3161_v63  ;;  %v3163_v2 = vunpack.i.h.bf16 %v3161_v63  ;;  %3296 = vpow2.f32 %v891_v21  ;;  %s4900_s0 = smov 16  }
 0x4ec   :  { %v3923_v59 = vpop.eup %3288 }
 0x4ed   :  { %v709_v52 = vsel %vm69_vm0, %v3923_v59, 0.0  ;;  %v3291_v26 = vpop.eup %3290 }
 0x4ee   :  { %905 = vadd.xlane.f32.xlu2 %v904_v15  ;;  %710 = vadd.xlane.f32.xlu1 %v709_v52  ;;  %v521_v4 = vmul.f32 %v3291_v26, %v3827_v18  ;;  %v3293_v9 = vpop.eup %3292 }
 0x4ef   :  { %v522_v11 = vmul.f32 %v3293_v9, %v3860_v0  ;;  %v3295_v18 = vpop.eup %3294  ;;  %v996_v9 = vld [vmem:[%s4871_s6 + $0x18] sm:$0xff] }
 0x4f0   :  { %v523_v23 = vmul.f32 %v3295_v18, %v3869_v5  ;;  %v3297_v44 = vpop.eup %3296  ;;  %1025 = vmatpush.msra.mxu2 %v996_v9 }
 0x4f1   :  { %v3156_v60 = vpop.permute.xlu1 %3155  ;;  %v901_v3 = vsel %vm69_vm0, %v3297_v44, 0.0 }
 0x4f2   :  { %v3157_v61 = vunpack.i.l.bf16 %v3156_v60  ;;  %v3158_v1 = vunpack.i.h.bf16 %v3156_v60 }
 0x4f4   :  { %561 = vmatpush.msrb.mxu0 %v3157_v61 }
 0x4f6   :  { %562 = vmatpush.msrb.mxu0 %v3158_v1 }
 0x4f8   :  { %563 = vmatpush.msrb.mxu0 %v3162_v43 }
 0x4fa   :  { %564 = vmatpush.msrb.mxu0 %v3163_v2 }
 0x4fb   :  { %v3166_v6 = vpop.permute.xlu0 %3165  ;;  %2981 = vmatmul.msk.f32.vlgmr.msrb.gmra.mxu0 %vm69_vm0, %v521_v4 }
 0x4fc   :  { %v3167_v8 = vunpack.i.l.bf16 %v3166_v6  ;;  %v3168_v7 = vunpack.i.h.bf16 %v3166_v6 }
 0x4fe   :  { %756 = vmatpush.msra.mxu1 %v3167_v8 }
 0x500   :  { %757 = vmatpush.msra.mxu1 %v3168_v7  ;;  %v995_v7 = vld [vmem:[%s4871_s6 + $0x10] sm:$0xff] }
 0x501   :  { %1026 = vmatpush.msra.mxu2 %v995_v7 }
 0x503   :  { %v3171_v13 = vpop.permute.xlu0 %3170  ;;  %2982 = vmatmul.msk.f32.gmra.mxu0 %vm69_vm0, %v522_v11  ;;  %v994_v11 = vld [vmem:[%s4871_s6 + $0x8] sm:$0xff] }
 0x504   :  { %v3172_v17 = vunpack.i.l.bf16 %v3171_v13  ;;  %v3173_v22 = vunpack.i.h.bf16 %v3171_v13  ;;  %1027 = vmatpush.msra.mxu2 %v994_v11 }
 0x505   :  { %v388_v20 = vpop.f32.mrf.mxu0 }
 0x506   :  { %400 = vst.msk [vmem:[#allocation3] sm:$0xff] %vm249_vm15, %v388_v20  ;;  %951 = vmatpush.msra.mxu0 %v3172_v17  ;;  %1028 = vmatpush.msra.mxu2 %v993_v12 }
 0x508   :  { %952 = vmatpush.msra.mxu0 %v3173_v22 }
 0x50b   :  { %v3176_v24 = vpop.permute.xlu0 %3175  ;;  %2983 = vmatmul.msk.f32.gmra.mxu0 %vm69_vm0, %v523_v23 }
 0x50c   :  { %v3177_v0 = vunpack.i.l.bf16 %v3176_v24  ;;  %v3178_v27 = vunpack.i.h.bf16 %v3176_v24 }
 0x50d   :  { %v391_v49 = vpop.f32.mrf.mxu0 }
 0x50e   :  { %401 = vst.msk [vmem:[#allocation3 + $0x8] sm:$0xff] %vm249_vm15, %v391_v49  ;;  %758 = vmatpush.msra.mxu1 %v3177_v0 }
 0x510   :  { %759 = vmatpush.msra.mxu1 %v3178_v27 }
 0x514   :  { %902 = vadd.xlane.f32.xlu0 %v901_v3  ;;  %v3229_v3 = vld [vmem:[%s4870_s7] ss:$0 sm:$0xff] }
 0x51c   :  { %v516_v19 = vpop.xlane.xlu1 %515 }
 0x51d   :  { %3298 = vrcp.f32 %v516_v19 }
 0x522   :  { %v897_v33 = vpop.xlane.xlu2 %896 }
 0x523   :  { %v3299_v31 = vpop.eup %3298 }
 0x524   :  { %v524_v5 = vmul.f32 %v3299_v31, %v3889_v25 }
 0x526   :  { %2984 = vmatmul.msk.f32.gmra.mxu0 %vm69_vm0, %v524_v5  ;;  %v3444_v5 = vld [vmem:[%s4909_s29] sm:$0xff] }
 0x549   :  { %v702_v10 = vpop.xlane.xlu0 %701 }
 0x54a   :  { %3300 = vrcp.f32 %v702_v10 }
 0x550   :  { %v3301_v32 = vpop.eup %3300 }
 0x551   :  { %v716_v30 = vmul.f32 %v3301_v32, %v3899_v34  ;;  %v705_v29 = vpop.xlane.xlu1 %704 }
 0x552   :  { %3302 = vrcp.f32 %v705_v29  ;;  %v3445_v29 = vld [vmem:[%s4909_s29 + $0x8] sm:$0xff] }
 0x553   :  { %2993 = vmatmul.msk.f32.vlgmr.msra.gmra.mxu1 %vm69_vm0, %v716_v30  ;;  %3304 = vrcp.f32 %v897_v33 }
 0x558   :  { %v3303_v35 = vpop.eup %3302 }
 0x559   :  { %v900_v36 = vpop.xlane.xlu1 %899  ;;  %v708_v37 = vpop.xlane.xlu2 %707  ;;  %v717_v39 = vmul.f32 %v3303_v35, %v3905_v46 }
 0x55a   :  { %3306 = vrcp.f32 %v708_v37  ;;  %v3305_v38 = vpop.eup %3304 }
 0x55b   :  { %2994 = vmatmul.msk.f32.gmra.mxu1 %vm69_vm0, %v717_v39  ;;  %3308 = vrcp.f32 %v900_v36  ;;  %v911_v34 = vmul.f32 %v3305_v38, %v3893_v28 }
 0x55c   :  { %v3181_v25 = vpop.permute.xlu0 %3180 }
 0x55d   :  { %v3182_v42 = vunpack.i.l.bf16 %v3181_v25  ;;  %v3183_v45 = vunpack.i.h.bf16 %v3181_v25  ;;  %v3446_v25 = vld [vmem:[%s4909_s29 + $0x10] sm:$0xff] }
 0x55f   :  { %953 = vmatpush.msra.mxu0 %v3182_v42 }
 0x560   :  { %v3307_v48 = vpop.eup %3306 }
 0x561   :  { %v711_v40 = vpop.xlane.xlu1 %710  ;;  %954 = vmatpush.msra.mxu0 %v3183_v45  ;;  %v718_v16 = vmul.f32 %v3307_v48, %v3913_v53  ;;  %v3309_v46 = vpop.eup %3308  ;;  %v3447_v48 = vld [vmem:[%s4909_s29 + $0x18] sm:$0xff] }
 0x562   :  { %3310 = vrcp.f32 %v711_v40  ;;  %3005 = vmatmul.msk.f32.vlgmr.msra.gmra.mxu0 %vm69_vm0, %v911_v34  ;;  %v912_v50 = vmul.f32 %v3309_v46, %v3910_v47  ;;  %v906_v55 = vpop.xlane.xlu2 %905 }
 0x563   :  { %2995 = vmatmul.msk.f32.gmra.mxu1 %vm69_vm0, %v718_v16 }
 0x568   :  { %v3311_v41 = vpop.eup %3310 }
 0x569   :  { %v719_v51 = vmul.f32 %v3311_v41, %v3923_v59 }
 0x56a   :  { %3006 = vmatmul.msk.f32.gmra.mxu0 %vm69_vm0, %v912_v50 }
 0x56b   :  { %2996 = vmatmul.msk.f32.gmra.mxu1 %vm69_vm0, %v719_v51 }
 0x578   :  { %v566_v28 = vpop.f32.mrf.mxu0 }
 0x579   :  { %582 = vrot.lane.b32.xlu1 %v566_v28, %s4896_s2 }
 0x580   :  { %v569_v54 = vpop.f32.mrf.mxu0 }
 0x581   :  { %584 = vrot.lane.b32.xlu2 %v569_v54, %s4896_s2 }
 0x587   :  { %v903_v53 = vpop.xlane.xlu0 %902 }
 0x588   :  { %3312 = vrcp.f32 %v903_v53  ;;  %v572_v15 = vpop.f32.mrf.mxu0 }
 0x589   :  { %3314 = vrcp.f32 %v906_v55 }
 0x58e   :  { %v3313_v56 = vpop.eup %3312 }
 0x58f   :  { %v913_v57 = vmul.f32 %v3313_v56, %v3297_v44  ;;  %v3315_v47 = vpop.eup %3314 }
 0x590   :  { %v914_v59 = vmul.f32 %v3315_v47, %v3919_v58 }
 0x591   :  { %3007 = vmatmul.msk.f32.gmra.mxu0 %vm69_vm0, %v913_v57 }
 0x599   :  { %3008 = vmatmul.msk.f32.gmra.mxu0 %vm69_vm0, %v914_v59 }
 0x5a3   :  { %v575_v60 = vpop.f32.mrf.mxu0 }
 0x5d0   :  { %v761_v52 = vpop.f32.mrf.mxu1 }
 0x5d1   :  { %777 = vrot.lane.b32.xlu2 %v761_v52, %s4900_s0 }
 0x5d8   :  { %v764_v61 = vpop.f32.mrf.mxu1 }
 0x5d9   :  { %779 = vrot.lane.b32.xlu0 %v764_v61, %s4900_s0  ;;  %586 = vrot.lane.b32.xlu2 %v572_v15, %s4896_s2 }
 0x5db   :  { %v585_v62 = vpop.permute.xlu2 %584 }
 0x5dc   :  { %596 = vst.msk [vmem:[#allocation3 + $0x8] sm:$0xff] %vm594_vm1, %v585_v62 }
 0x5df   :  { %v956_v63 = vpop.f32.mrf.mxu0 }
 0x5e0   :  { %972 = vrot.lane.b32.xlu1 %v956_v63, %s4902_s28  ;;  %v767_v26 = vpop.f32.mrf.mxu1 }
 0x5e7   :  { %v959_v58 = vpop.f32.mrf.mxu0 }
 0x5e8   :  { %974 = vrot.lane.b32.xlu1 %v959_v58, %s4902_s28  ;;  %v770_v2 = vpop.f32.mrf.mxu1 }
 0x5eb   :  { %v583_v1 = vpop.permute.xlu1 %582 }
 0x5ec   :  { %595 = vst.msk [vmem:[#allocation3] sm:$0xff] %vm594_vm1, %v583_v1 }
 0x5f0   :  { %781 = vrot.lane.b32.xlu1 %v767_v26, %s4900_s0  ;;  %v1153_v26 = vld [vmem:[%s4875_s10 + $0x18] sm:$0xff] }
 0x5f1   :  { %1182 = vmatpush.msrb.mxu1 %v1153_v26  ;;  %v1374_v26 = vld [vmem:[%s4877_s12 + $0x78] sm:$0xff] }
 0x5f2   :  { %1379 = vmatpush.msrb.mxu3 %v1374_v26 }
 0x5f8   :  { %588 = vrot.lane.b32.xlu1 %v575_v60, %s4896_s2  ;;  %s4914_s2 = smov 104  }
 0x60e   :  { %v962_v43 = vpop.f32.mrf.mxu0 }
 0x60f   :  { %976 = vrot.lane.b32.xlu2 %v962_v43, %s4902_s28  ;;  %v1152_v43 = vld [vmem:[%s4875_s10 + $0x10] sm:$0xff] }
 0x610   :  { %1183 = vmatpush.msrb.mxu1 %v1152_v43  ;;  %v1373_v43 = vld [vmem:[%s4877_s12 + $0x70] sm:$0xff] }
 0x611   :  { %1380 = vmatpush.msrb.mxu3 %v1373_v43 }
 0x616   :  { %v965_v4 = vpop.f32.mrf.mxu0 }
 0x617   :  { %783 = vrot.lane.b32.xlu2 %v770_v2, %s4900_s0  ;;  %978 = vrot.lane.b32.xlu0 %v965_v4, %s4902_s28  ;;  %v1151_v2 = vld [vmem:[%s4875_s10 + $0x8] sm:$0xff]  ;;  %v1150_v4 = vld [vmem:[%s4875_s10] sm:$0xff]  ;;  %s4913_s0 = smov 112  }
 0x618   :  { %1184 = vmatpush.msrb.mxu1 %v1151_v2  ;;  %v4089_v2 = vld [vmem:[%s4874_s11] ss:$0 sm:$0xff] }
 0x61a   :  { %1185 = vmatpush.msrb.mxu1 %v1150_v4 }
 0x62b   :  { %v778_v6 = vpop.permute.xlu2 %777 }
 0x62c   :  { %790 = vst.msk [vmem:[#allocation3] sm:$0xff] %vm789_vm2, %v778_v6 }
 0x633   :  { %v587_v8 = vpop.permute.xlu2 %586 }
 0x634   :  { %597 = vst.msk [vmem:[#allocation3 + $0x10] sm:$0xff] %vm594_vm1, %v587_v8 }
 0x64b   :  { %v780_v13 = vpop.permute.xlu0 %779 }
 0x64c   :  { %791 = vst.msk [vmem:[#allocation3 + $0x8] sm:$0xff] %vm789_vm2, %v780_v13 }
 0x652   :  { %v973_v17 = vpop.permute.xlu1 %972 }
 0x653   :  { %985 = vst.msk [vmem:[#allocation3] sm:$0xff] %vm984_vm3, %v973_v17 }
 0x65a   :  { %v975_v20 = vpop.permute.xlu1 %974  ;;  %v989_v18 = vld [vmem:[#allocation3] sm:$0xff] }
 0x65b   :  { %986 = vst.msk [vmem:[#allocation3 + $0x8] sm:$0xff] %vm984_vm3, %v975_v20  ;;  %3009 = vmatmul.msk.f32.vlgmr.msra.gmra.mxu2 %vm69_vm0, %v989_v18 }
 0x662   :  { %v782_v21 = vpop.permute.xlu1 %781  ;;  %v990_v22 = vld [vmem:[#allocation3 + $0x8] sm:$0xff] }
 0x663   :  { %792 = vst.msk [vmem:[#allocation3 + $0x10] sm:$0xff] %vm789_vm2, %v782_v21  ;;  %3010 = vmatmul.msk.f32.gmra.mxu2 %vm69_vm0, %v990_v22 }
 0x669   :  { %v977_v23 = vpop.permute.xlu2 %976 }
 0x66a   :  { %987 = vst.msk [vmem:[#allocation3 + $0x10] sm:$0xff] %vm984_vm3, %v977_v23  ;;  %v589_v24 = vpop.permute.xlu1 %588 }
 0x66b   :  { %598 = vst.msk [vmem:[#allocation3 + $0x18] sm:$0xff] %vm594_vm1, %v589_v24 }
 0x671   :  { %v784_v0 = vpop.permute.xlu2 %783  ;;  %v991_v49 = vld [vmem:[#allocation3 + $0x10] sm:$0xff] }
 0x672   :  { %793 = vst.msk [vmem:[#allocation3 + $0x18] sm:$0xff] %vm789_vm2, %v784_v0  ;;  %3011 = vmatmul.msk.f32.gmra.mxu2 %vm69_vm0, %v991_v49  ;;  %v3230_v0 = vld [vmem:[%s4872_s8] ss:$0 sm:$0xff] }
 0x689   :  { %v979_v27 = vpop.permute.xlu0 %978 }
 0x68a   :  { %988 = vst.msk [vmem:[#allocation3 + $0x18] sm:$0xff] %vm984_vm3, %v979_v27 }
 0x691   :  { %v992_v44 = vld [vmem:[#allocation3 + $0x18] sm:$0xff] }
 0x692   :  { %3012 = vmatmul.msk.f32.gmra.mxu2 %vm69_vm0, %v992_v44 }
 0x6de   :  { %v1030_v19 = vpop.f32.mrf.mxu2 }
 0x6df   :  { %v1031_v31 = vadd.f32 %v3229_v3, %v1030_v19  ;;  %v3231_v19 = vld [vmem:[%s4873_s9] ss:$0 sm:$0xff] }
 0x6e1   :  { %v4002_v10 = vadd.f32 %v3444_v5, %v1031_v31 }
 0x6e3   :  { %v1048_v32 = vsel %vm69_vm0, %v4002_v10, 0.0 }
 0x6e4   :  { %1049 = vadd.xlane.f32.xlu1 %v1048_v32 }
 0x6e6   :  { %v1033_v33 = vpop.f32.mrf.mxu2 }
 0x6e7   :  { %v1034_v30 = vadd.f32 %v3229_v3, %v1033_v33 }
 0x6e9   :  { %v4009_v35 = vadd.f32 %v3445_v29, %v1034_v30 }
 0x6eb   :  { %v1051_v36 = vsel %vm69_vm0, %v4009_v35, 0.0 }
 0x6ec   :  { %1052 = vadd.xlane.f32.xlu2 %v1051_v36 }
 0x6f5   :  { %v1036_v37 = vpop.f32.mrf.mxu2 }
 0x6f6   :  { %v1037_v39 = vadd.f32 %v3229_v3, %v1036_v37 }
 0x6f8   :  { %v4016_v38 = vadd.f32 %v3446_v25, %v1037_v39 }
 0x6fa   :  { %v1054_v42 = vsel %vm69_vm0, %v4016_v38, 0.0 }
 0x6fb   :  { %1055 = vadd.xlane.f32.xlu0 %v1054_v42 }
 0x715   :  { %v1039_v45 = vpop.f32.mrf.mxu2 }
 0x716   :  { %v1040_v34 = vadd.f32 %v3229_v3, %v1039_v45 }
 0x718   :  { %v4023_v40 = vadd.f32 %v3447_v48, %v1040_v34 }
 0x71a   :  { %v1057_v16 = vsel %vm69_vm0, %v4023_v40, 0.0 }
 0x71b   :  { %1058 = vadd.xlane.f32.xlu1 %v1057_v16 }
 0x757   :  { %v1050_v46 = vpop.xlane.xlu1 %1049 }
 0x758   :  { %v1060_v41 = vmul.f32 %v1050_v46, %v3578_v14 }
 0x75a   :  { %v1064_v50 = vsub.f32 %v4002_v10, %v1060_v41 }
 0x75c   :  { %v1068_v51 = vmul.f32 %v1064_v50, %v1064_v50 }
 0x75e   :  { %v1072_v28 = vsel %vm69_vm0, %v1068_v51, 0.0 }
 0x75f   :  { %1073 = vadd.xlane.f32.xlu2 %v1072_v28  ;;  %v1053_v54 = vpop.xlane.xlu2 %1052 }
 0x760   :  { %v1061_v53 = vmul.f32 %v1053_v54, %v3578_v14 }
 0x762   :  { %v4032_v55 = vsub.f32 %v4009_v35, %v1061_v53 }
 0x764   :  { %v1069_v56 = vmul.f32 %v4032_v55, %v4032_v55 }
 0x766   :  { %v1075_v57 = vsel %vm69_vm0, %v1069_v56, 0.0 }
 0x767   :  { %1076 = vadd.xlane.f32.xlu0 %v1075_v57 }
 0x76e   :  { %v1056_v47 = vpop.xlane.xlu0 %1055 }
 0x76f   :  { %v1062_v59 = vmul.f32 %v1056_v47, %v3578_v14 }
 0x771   :  { %v4039_v15 = vsub.f32 %v4016_v38, %v1062_v59 }
 0x773   :  { %v1070_v52 = vmul.f32 %v4039_v15, %v4039_v15 }
 0x775   :  { %v1078_v60 = vsel %vm69_vm0, %v1070_v52, 0.0 }
 0x776   :  { %1079 = vadd.xlane.f32.xlu1 %v1078_v60 }
 0x78e   :  { %v1059_v61 = vpop.xlane.xlu1 %1058 }
 0x78f   :  { %v1063_v62 = vmul.f32 %v1059_v61, %v3578_v14 }
 0x791   :  { %v4046_v63 = vsub.f32 %v4023_v40, %v1063_v62 }
 0x793   :  { %v1071_v58 = vmul.f32 %v4046_v63, %v4046_v63 }
 0x795   :  { %v1081_v1 = vsel %vm69_vm0, %v1071_v58, 0.0 }
 0x796   :  { %1082 = vadd.xlane.f32.xlu2 %v1081_v1 }
 0x7d2   :  { %v1074_v6 = vpop.xlane.xlu2 %1073 }
 0x7d3   :  { %v1084_v8 = vmul.f32 %v1074_v6, %v3578_v14  ;;  %v1371_v6 = vld [vmem:[%s4877_s12 + $0x60] sm:$0xff] }
 0x7d5   :  { %v1088_v9 = vadd.f32 1e-05, %v1084_v8 }
 0x7d7   :  { %3316 = vrsqrt.f32 %v1088_v9  ;;  %vm1098_vm5 = vweird.f32 %v1088_v9 }
 0x7da   :  { %v1077_v7 = vpop.xlane.xlu0 %1076 }
 0x7db   :  { %v1085_v11 = vmul.f32 %v1077_v7, %v3578_v14 }
 0x7dd   :  { %v3317_v12 = vpop.eup %3316  ;;  %v1089_v13 = vadd.f32 1e-05, %v1085_v11  ;;  %v1369_v11 = vld [vmem:[%s4877_s12 + $0x50] sm:$0xff] }
 0x7de   :  { %v1093_v17 = vmul.f32 %v3317_v12, %v1088_v9  ;;  %vm1099_vm4 = vweird.f32 %v3317_v12  ;;  %v1370_v9 = vld [vmem:[%s4877_s12 + $0x58] sm:$0xff] }
 0x7df   :  { %3318 = vrsqrt.f32 %v1089_v13  ;;  %vm1100_vm6 = vmor %vm1098_vm5, %vm1099_vm4  ;;  %vm1108_vm8 = vweird.f32 %v1089_v13 }
 0x7e0   :  { %v1094_v20 = vmul.f32 %v3317_v12, %v1093_v17 }
 0x7e2   :  { %v1095_v18 = vmul.f32 0.5, %v1094_v20 }
 0x7e4   :  { %v1096_v21 = vsub.f32 1.5, %v1095_v18  ;;  %v1367_v18 = vld [vmem:[%s4877_s12 + $0x40] sm:$0xff] }
 0x7e5   :  { %v3319_v22 = vpop.eup %3318 }
 0x7e6   :  { %v1097_v23 = vmul.f32 %v3317_v12, %v1096_v21  ;;  %v1103_v24 = vmul.f32 %v3319_v22, %v1089_v13  ;;  %vm1109_vm7 = vweird.f32 %v3319_v22  ;;  %v1368_v13 = vld [vmem:[%s4877_s12 + $0x48] sm:$0xff] }
 0x7e7   :  { %vm1110_vm9 = vmor %vm1108_vm8, %vm1109_vm7 }
 0x7e8   :  { %v1101_v49 = vsel %vm1100_vm6, %v3317_v12, %v1097_v23  ;;  %v1104_v27 = vmul.f32 %v3319_v22, %v1103_v24  ;;  %v1366_v23 = vld [vmem:[%s4877_s12 + $0x38] sm:$0xff] }
 0x7e9   :  { %v1132_v44 = vmul.f32 %v1101_v49, %v1064_v50  ;;  %v1080_v3 = vpop.xlane.xlu1 %1079 }
 0x7ea   :  { %v1105_v31 = vmul.f32 0.5, %v1104_v27  ;;  %v1086_v5 = vmul.f32 %v1080_v3, %v3578_v14  ;;  %v1364_v27 = vld [vmem:[%s4877_s12 + $0x28] sm:$0xff]  ;;  %v1363_v3 = vld [vmem:[%s4877_s12 + $0x20] sm:$0xff] }
 0x7eb   :  { %v1139_v32 = vmul.f32 %v3230_v0, %v1132_v44 }
 0x7ec   :  { %v1106_v33 = vsub.f32 1.5, %v1105_v31  ;;  %v1090_v30 = vadd.f32 1e-05, %v1086_v5 }
 0x7ed   :  { %v1146_v29 = vadd.f32 %v3231_v19, %v1139_v32  ;;  %v1362_v32 = vld [vmem:[%s4877_s12 + $0x18] sm:$0xff] }
 0x7ee   :  { %v1107_v36 = vmul.f32 %v3319_v22, %v1106_v33  ;;  %3320 = vrsqrt.f32 %v1090_v30  ;;  %vm1118_vm11 = vweird.f32 %v1090_v30 }
 0x7ef   :  { %3013 = vmatmul.msk.f32.vlgmr.msrb.gmra.mxu1 %vm69_vm0, %v1146_v29 }
 0x7f0   :  { %v1111_v37 = vsel %vm1110_vm9, %v3319_v22, %v1107_v36 }
 0x7f1   :  { %v1133_v39 = vmul.f32 %v1111_v37, %v4032_v55 }
 0x7f3   :  { %v1140_v25 = vmul.f32 %v3230_v0, %v1133_v39  ;;  %v1360_v39 = vld [vmem:[%s4877_s12 + $0x8] sm:$0xff] }
 0x7f4   :  { %v3321_v42 = vpop.eup %3320 }
 0x7f5   :  { %v1113_v45 = vmul.f32 %v3321_v42, %v1090_v30  ;;  %v1147_v34 = vadd.f32 %v3231_v19, %v1140_v25  ;;  %vm1119_vm10 = vweird.f32 %v3321_v42  ;;  %v1361_v30 = vld [vmem:[%s4877_s12 + $0x10] sm:$0xff] }
 0x7f6   :  { %vm1120_vm12 = vmor %vm1118_vm11, %vm1119_vm10 }
 0x7f7   :  { %v1114_v48 = vmul.f32 %v3321_v42, %v1113_v45  ;;  %3014 = vmatmul.msk.f32.gmra.mxu1 %vm69_vm0, %v1147_v34  ;;  %v1359_v34 = vld [vmem:[%s4877_s12] sm:$0xff] }
 0x7f9   :  { %v1115_v16 = vmul.f32 0.5, %v1114_v48 }
 0x7fb   :  { %v1116_v46 = vsub.f32 1.5, %v1115_v16 }
 0x7fd   :  { %v1117_v41 = vmul.f32 %v3321_v42, %v1116_v46 }
 0x7ff   :  { %v1121_v50 = vsel %vm1120_vm12, %v3321_v42, %v1117_v41 }
 0x800   :  { %v1134_v51 = vmul.f32 %v1121_v50, %v4039_v15 }
 0x802   :  { %v1141_v28 = vmul.f32 %v3230_v0, %v1134_v51 }
 0x804   :  { %v1148_v54 = vadd.f32 %v3231_v19, %v1141_v28 }
 0x806   :  { %3015 = vmatmul.msk.f32.gmra.mxu1 %vm69_vm0, %v1148_v54 }
 0x809   :  { %v1083_v53 = vpop.xlane.xlu2 %1082 }
 0x80a   :  { %v1087_v55 = vmul.f32 %v1083_v53, %v3578_v14 }
 0x80c   :  { %v1091_v56 = vadd.f32 1e-05, %v1087_v55 }
 0x80e   :  { %3322 = vrsqrt.f32 %v1091_v56  ;;  %vm1128_vm4 = vweird.f32 %v1091_v56 }
 0x814   :  { %v3323_v57 = vpop.eup %3322 }
 0x815   :  { %v1123_v47 = vmul.f32 %v3323_v57, %v1091_v56  ;;  %vm1129_vm13 = vweird.f32 %v3323_v57 }
 0x816   :  { %vm1130_vm5 = vmor %vm1128_vm4, %vm1129_vm13 }
 0x817   :  { %v1124_v59 = vmul.f32 %v3323_v57, %v1123_v47 }
 0x819   :  { %v1125_v52 = vmul.f32 0.5, %v1124_v59 }
 0x81b   :  { %v1126_v60 = vsub.f32 1.5, %v1125_v52 }
 0x81d   :  { %v1127_v61 = vmul.f32 %v3323_v57, %v1126_v60 }
 0x81f   :  { %v1131_v62 = vsel %vm1130_vm5, %v3323_v57, %v1127_v61 }
 0x820   :  { %v1135_v15 = vmul.f32 %v1131_v62, %v4046_v63  ;;  %v1372_v63 = vld [vmem:[%s4877_s12 + $0x68] sm:$0xff] }
 0x821   :  { %1381 = vmatpush.msrb.mxu3 %v1372_v63 }
 0x822   :  { %v1142_v58 = vmul.f32 %v3230_v0, %v1135_v15  ;;  %v1365_v0 = vld [vmem:[%s4877_s12 + $0x30] sm:$0xff] }
 0x823   :  { %1382 = vmatpush.msrb.mxu3 %v1371_v6 }
 0x824   :  { %v1149_v1 = vadd.f32 %v3231_v19, %v1142_v58 }
 0x825   :  { %1383 = vmatpush.msrb.mxu3 %v1370_v9 }
 0x826   :  { %3016 = vmatmul.msk.f32.gmra.mxu1 %vm69_vm0, %v1149_v1 }
 0x827   :  { %1384 = vmatpush.msrb.mxu3 %v1369_v11 }
 0x829   :  { %1385 = vmatpush.msrb.mxu3 %v1368_v13 }
 0x82b   :  { %1386 = vmatpush.msrb.mxu3 %v1367_v18 }
 0x82d   :  { %1387 = vmatpush.msrb.mxu3 %v1366_v23 }
 0x82f   :  { %1388 = vmatpush.msrb.mxu3 %v1365_v0 }
 0x831   :  { %1389 = vmatpush.msrb.mxu3 %v1364_v27 }
 0x833   :  { %1390 = vmatpush.msrb.mxu3 %v1363_v3 }
 0x835   :  { %1391 = vmatpush.msrb.mxu3 %v1362_v32 }
 0x837   :  { %1392 = vmatpush.msrb.mxu3 %v1361_v30 }
 0x839   :  { %1393 = vmatpush.msrb.mxu3 %v1360_v39 }
 0x83b   :  { %1394 = vmatpush.msrb.mxu3 %v1359_v34 }
 0x86c   :  { %v1187_v4 = vpop.f32.mrf.mxu1 }
 0x86d   :  { %v4098_v8 = vadd.f32 %v4089_v2, %v1187_v4 }
 0x86f   :  { %v4104_v7 = vmul.f32 0.70710677, %v4098_v8 }
 0x871   :  { %v1207_v12 = vand.u32 2147483647, %v4104_v7 }
 0x873   :  { %v1211_v17 = vmul.f32 0.3275911, %v1207_v12  ;;  %v1315_v51 = vsub.f32 0.0, %v1207_v12 }
 0x874   :  { %v1190_v20 = vpop.f32.mrf.mxu1 }
 0x875   :  { %v1215_v21 = vadd.f32 1.0, %v1211_v17  ;;  %v4117_v22 = vadd.f32 %v4089_v2, %v1190_v20  ;;  %v1319_v59 = vmul.f32 %v1315_v51, %v1207_v12  ;;  %v1199_v51 = vmul.f32 0.5, %v4098_v8 }
 0x877   :  { %3324 = vrcp.f32 %v1215_v21  ;;  %v4123_v24 = vmul.f32 0.70710677, %v4117_v22  ;;  %v1230_v29 = vand.u32 2147483648, %v1215_v21  ;;  %v1228_v37 = vand.u32 2147483647, %v1215_v21 }
 0x878   :  { %vm1224_vm7 = vweird.f32 %v1215_v21  ;;  %v1323_v26 = vmul.f32 1.442695, %v1319_v59 }
 0x879   :  { %v4129_v49 = vand.u32 2147483647, %v4123_v24  ;;  %v1231_v48 = vor.u32 1.1754944e-38, %v1230_v29  ;;  %vm1229_vm9 = vcmp.eq.f32.partialorder %v1228_v37, 8.507059e+37 }
 0x87b   :  { %v1212_v44 = vmul.f32 0.3275911, %v4129_v49  ;;  %v1316_v4 = vsub.f32 0.0, %v4129_v49 }
 0x87d   :  { %v3325_v19 = vpop.eup %3324  ;;  %v1216_v5 = vadd.f32 1.0, %v1212_v44  ;;  %v1320_v20 = vmul.f32 %v1316_v4, %v4129_v49 }
 0x87e   :  { %v1220_v31 = vmul.f32 %v3325_v19, %v1215_v21  ;;  %vm1225_vm6 = vweird.f32 %v3325_v19 }
 0x87f   :  { %3326 = vrcp.f32 %v1216_v5  ;;  %vm1226_vm8 = vmor %vm1224_vm7, %vm1225_vm6  ;;  %v1245_v47 = vand.u32 2147483648, %v1216_v5  ;;  %v1243_v60 = vand.u32 2147483647, %v1216_v5  ;;  %vm1239_vm11 = vweird.f32 %v1216_v5 }
 0x880   :  { %v1221_v33 = vsub.f32 1.0, %v1220_v31  ;;  %v1325_v3 = vmul.f32 1.442695, %v1320_v20 }
 0x881   :  { %v1246_v1 = vor.u32 1.1754944e-38, %v1245_v47  ;;  %vm1244_vm13 = vcmp.eq.f32.partialorder %v1243_v60, 8.507059e+37 }
 0x882   :  { %v1222_v36 = vmul.f32 %v3325_v19, %v1221_v33 }
 0x883   :  { %v1193_v25 = vpop.f32.mrf.mxu1 }
 0x884   :  { %v1223_v42 = vadd.f32 %v3325_v19, %v1222_v36  ;;  %v4148_v45 = vadd.f32 %v4089_v2, %v1193_v25 }
 0x885   :  { %v3327_v16 = vpop.eup %3326 }
 0x886   :  { %v1227_v46 = vsel %vm1226_vm8, %v3325_v19, %v1223_v42  ;;  %v4154_v41 = vmul.f32 0.70710677, %v4148_v45  ;;  %v1235_v28 = vmul.f32 %v3327_v16, %v1216_v5  ;;  %vm1240_vm10 = vweird.f32 %v3327_v16 }
 0x887   :  { %v1232_v50 = vsel %vm1229_vm9, %v1231_v48, %v1227_v46  ;;  %vm1241_vm12 = vmor %vm1239_vm11, %vm1240_vm10  ;;  %vm1339_vm8 = vcmp.ge.f32.partialorder %v4104_v7, 0.0  ;;  %vm1340_vm9 = vcmp.ge.f32.partialorder %v4123_v24, 0.0 }
 0x888   :  { %v1279_v54 = vmul.f32 1.0614054, %v1232_v50  ;;  %v4157_v53 = vand.u32 2147483647, %v4154_v41  ;;  %v1236_v55 = vsub.f32 1.0, %v1235_v28  ;;  %vm1341_vm10 = vcmp.ge.f32.partialorder %v4154_v41, 0.0 }
 0x88a   :  { %v1283_v56 = vadd.f32 -1.4531521, %v1279_v54  ;;  %v1213_v57 = vmul.f32 0.3275911, %v4157_v53  ;;  %v1237_v52 = vmul.f32 %v3327_v16, %v1236_v55  ;;  %v1317_v34 = vsub.f32 0.0, %v4157_v53 }
 0x88c   :  { %v1287_v61 = vmul.f32 %v1283_v56, %v1232_v50  ;;  %v1217_v62 = vadd.f32 1.0, %v1213_v57  ;;  %v1238_v15 = vadd.f32 %v3327_v16, %v1237_v52  ;;  %v1321_v57 = vmul.f32 %v1317_v34, %v4157_v53 }
 0x88e   :  { %v1291_v58 = vadd.f32 1.4214138, %v1287_v61  ;;  %3328 = vrcp.f32 %v1217_v62  ;;  %v1242_v43 = vsel %vm1241_vm12, %v3327_v16, %v1238_v15  ;;  %v1260_v19 = vand.u32 2147483648, %v1217_v62 }
 0x88f   :  { %v1247_v6 = vsel %vm1244_vm13, %v1246_v1, %v1242_v43  ;;  %3330 = vpow2.f32 %v1323_v26  ;;  %v1258_v33 = vand.u32 2147483647, %v1217_v62  ;;  %vm1254_vm5 = vweird.f32 %v1217_v62 }
 0x890   :  { %v1295_v63 = vmul.f32 %v1291_v58, %v1232_v50  ;;  %v1280_v9 = vmul.f32 1.0614054, %v1247_v6  ;;  %3332 = vpow2.f32 %v1325_v3  ;;  %v1261_v49 = vor.u32 1.1754944e-38, %v1260_v19 }
 0x891   :  { %vm1259_vm7 = vcmp.eq.f32.partialorder %v1258_v33, 8.507059e+37  ;;  %v1327_v15 = vmul.f32 1.442695, %v1321_v57 }
 0x892   :  { %v1299_v11 = vadd.f32 -0.28449672, %v1295_v63  ;;  %v1284_v12 = vadd.f32 -1.4531521, %v1280_v9  ;;  %v1200_v63 = vmul.f32 0.5, %v4117_v22 }
 0x893   :  { %3334 = vpow2.f32 %v1327_v15 }
 0x894   :  { %v3329_v13 = vpop.eup %3328  ;;  %v1303_v17 = vmul.f32 %v1299_v11, %v1232_v50  ;;  %v1288_v21 = vmul.f32 %v1284_v12, %v1247_v6 }
 0x895   :  { %v1250_v18 = vmul.f32 %v3329_v13, %v1217_v62  ;;  %v3331_v31 = vpop.eup %3330  ;;  %vm1255_vm4 = vweird.f32 %v3329_v13 }
 0x896   :  { %v1307_v23 = vadd.f32 0.2548296, %v1303_v17  ;;  %v1292_v27 = vadd.f32 1.4214138, %v1288_v21  ;;  %vm1256_vm6 = vmor %vm1254_vm5, %vm1255_vm4  ;;  %v3333_v56 = vpop.eup %3332 }
 0x897   :  { %v1251_v0 = vsub.f32 1.0, %v1250_v18 }
 0x898   :  { %v1311_v44 = vmul.f32 %v1307_v23, %v1232_v50  ;;  %v1296_v32 = vmul.f32 %v1292_v27, %v1247_v6  ;;  %v1201_v27 = vmul.f32 0.5, %v4148_v45 }
 0x899   :  { %v1252_v5 = vmul.f32 %v3329_v13, %v1251_v0  ;;  %v3335_v17 = vpop.eup %3334 }
 0x89a   :  { %v1331_v30 = vmul.f32 %v3331_v31, %v1311_v44  ;;  %v1300_v29 = vadd.f32 -0.28449672, %v1296_v32 }
 0x89b   :  { %v1253_v36 = vadd.f32 %v3329_v13, %v1252_v5 }
 0x89c   :  { %v1335_v37 = vsub.f32 1.0, %v1331_v30  ;;  %v1304_v39 = vmul.f32 %v1300_v29, %v1247_v6 }
 0x89d   :  { %v1257_v25 = vsel %vm1256_vm6, %v3329_v13, %v1253_v36 }
 0x89e   :  { %v1343_v42 = vsub.f32 0.0, %v1335_v37  ;;  %v1262_v48 = vsel %vm1259_vm7, %v1261_v49, %v1257_v25  ;;  %v1308_v16 = vadd.f32 0.2548296, %v1304_v39 }
 0x89f   :  { %v1281_v46 = vmul.f32 1.0614054, %v1262_v48 }
 0x8a0   :  { %v1347_v50 = vsel %vm1339_vm8, %v1335_v37, %v1343_v42  ;;  %v1312_v54 = vmul.f32 %v1308_v16, %v1247_v6 }
 0x8a1   :  { %v1351_v28 = vadd.f32 1.0, %v1347_v50  ;;  %v1285_v55 = vadd.f32 -1.4531521, %v1281_v46 }
 0x8a2   :  { %v1332_v52 = vmul.f32 %v3333_v56, %v1312_v54 }
 0x8a3   :  { %v1355_v47 = vmul.f32 %v1351_v28, %v1199_v51  ;;  %v1196_v59 = vpop.f32.mrf.mxu1  ;;  %v1289_v60 = vmul.f32 %v1285_v55, %v1262_v48 }
 0x8a4   :  { %v4167_v61 = vadd.f32 %v4089_v2, %v1196_v59  ;;  %v1336_v7 = vsub.f32 1.0, %v1332_v52  ;;  %v3233_v59 = vld [vmem:[%s4876_s13] ss:$0 sm:$0xff] }
 0x8a5   :  { %1395 = vmatmul.f32.vlgmr.msrb.gmra.mxu3 %v1355_v47  ;;  %v1293_v62 = vadd.f32 1.4214138, %v1289_v60 }
 0x8a6   :  { %v1206_v58 = vmul.f32 0.70710677, %v4167_v61  ;;  %v1344_v8 = vsub.f32 0.0, %v1336_v7  ;;  %v1202_v56 = vmul.f32 0.5, %v4167_v61 }
 0x8a7   :  { %v1297_v1 = vmul.f32 %v1293_v62, %v1262_v48 }
 0x8a8   :  { %v1210_v26 = vand.u32 2147483647, %v1206_v58  ;;  %v1348_v43 = vsel %vm1340_vm9, %v1336_v7, %v1344_v8  ;;  %vm1342_vm5 = vcmp.ge.f32.partialorder %v1206_v58, 0.0 }
 0x8a9   :  { %v1301_v53 = vadd.f32 -0.28449672, %v1297_v1  ;;  %v1352_v6 = vadd.f32 1.0, %v1348_v43 }
 0x8aa   :  { %v1214_v4 = vmul.f32 0.3275911, %v1210_v26  ;;  %v1318_v29 = vsub.f32 0.0, %v1210_v26 }
 0x8ab   :  { %v1305_v2 = vmul.f32 %v1301_v53, %v1262_v48  ;;  %v1356_v11 = vmul.f32 %v1352_v6, %v1200_v63 }
 0x8ac   :  { %v1218_v9 = vadd.f32 1.0, %v1214_v4  ;;  %v1322_v49 = vmul.f32 %v1318_v29, %v1210_v26 }
 0x8ad   :  { %v1309_v12 = vadd.f32 0.2548296, %v1305_v2  ;;  %1398 = vmatmul.f32.gmra.mxu3 %v1356_v11 }
 0x8ae   :  { %3336 = vrcp.f32 %v1218_v9  ;;  %v1275_v3 = vand.u32 2147483648, %v1218_v9  ;;  %v1273_v31 = vand.u32 2147483647, %v1218_v9  ;;  %vm1269_vm12 = vweird.f32 %v1218_v9 }
 0x8af   :  { %v1313_v13 = vmul.f32 %v1309_v12, %v1262_v48  ;;  %v1329_v25 = vmul.f32 1.442695, %v1322_v49 }
 0x8b0   :  { %v1276_v33 = vor.u32 1.1754944e-38, %v1275_v3  ;;  %vm1274_vm4 = vcmp.eq.f32.partialorder %v1273_v31, 8.507059e+37  ;;  %v3022_v31 = vld [vmem:[%s4868_s4 + $0x38] sm:$0xff] }
 0x8b1   :  { %v1333_v20 = vmul.f32 %v3335_v17, %v1313_v13  ;;  %3338 = vpow2.f32 %v1329_v25  ;;  %1552 = vmatpush.msrb.mxu0 %v3022_v31  ;;  %v3234_v31 = vld [vmem:[%s4867_s5 + $0x1] ss:$0 sm:$0xff]  ;;  %s4912_s5 = smov 72  }
 0x8b3   :  { %v1337_v18 = vsub.f32 1.0, %v1333_v20 }
 0x8b4   :  { %v3337_v21 = vpop.eup %3336 }
 0x8b5   :  { %v1265_v24 = vmul.f32 %v3337_v21, %v1218_v9  ;;  %v1345_v23 = vsub.f32 0.0, %v1337_v18  ;;  %vm1270_vm11 = vweird.f32 %v3337_v21 }
 0x8b6   :  { %vm1271_vm13 = vmor %vm1269_vm12, %vm1270_vm11 }
 0x8b7   :  { %v1266_v0 = vsub.f32 1.0, %v1265_v24  ;;  %v1349_v22 = vsel %vm1341_vm10, %v1337_v18, %v1345_v23  ;;  %v3339_v50 = vpop.eup %3338 }
 0x8b8   :  { %v1353_v44 = vadd.f32 1.0, %v1349_v22 }
 0x8b9   :  { %v1267_v19 = vmul.f32 %v3337_v21, %v1266_v0 }
 0x8ba   :  { %v1357_v5 = vmul.f32 %v1353_v44, %v1201_v27 }
 0x8bb   :  { %v1268_v32 = vadd.f32 %v3337_v21, %v1267_v19 }
 0x8bc   :  { %1401 = vmatmul.f32.gmra.mxu3 %v1357_v5  ;;  %v3021_v5 = vld [vmem:[%s4868_s4 + $0x30] sm:$0xff] }
 0x8bd   :  { %v1272_v30 = vsel %vm1271_vm13, %v3337_v21, %v1268_v32  ;;  %1553 = vmatpush.msrb.mxu0 %v3021_v5  ;;  %v3020_v32 = vld [vmem:[%s4868_s4 + $0x28] sm:$0xff] }
 0x8be   :  { %v1277_v36 = vsel %vm1274_vm4, %v1276_v33, %v1272_v30  ;;  %v3019_v33 = vld [vmem:[%s4868_s4 + $0x20] sm:$0xff] }
 0x8bf   :  { %v1282_v41 = vmul.f32 1.0614054, %v1277_v36  ;;  %1554 = vmatpush.msrb.mxu0 %v3020_v32 }
 0x8c1   :  { %v1286_v37 = vadd.f32 -1.4531521, %v1282_v41  ;;  %1555 = vmatpush.msrb.mxu0 %v3019_v33 }
 0x8c3   :  { %v1290_v39 = vmul.f32 %v1286_v37, %v1277_v36 }
 0x8c5   :  { %v1294_v45 = vadd.f32 1.4214138, %v1290_v39 }
 0x8c7   :  { %v1298_v42 = vmul.f32 %v1294_v45, %v1277_v36 }
 0x8c9   :  { %v1302_v34 = vadd.f32 -0.28449672, %v1298_v42 }
 0x8cb   :  { %v1306_v48 = vmul.f32 %v1302_v34, %v1277_v36 }
 0x8cd   :  { %v1310_v16 = vadd.f32 0.2548296, %v1306_v48 }
 0x8cf   :  { %v1314_v46 = vmul.f32 %v1310_v16, %v1277_v36 }
 0x8d1   :  { %v1334_v51 = vmul.f32 %v3339_v50, %v1314_v46  ;;  %v3226_v46 = vld [vmem:[%s4910_s19 + $0x1] ss:$0 sm:$0xff]  ;;  %s4920_s19 = smov 16  }
 0x8d3   :  { %v1338_v28 = vsub.f32 1.0, %v1334_v51 }
 0x8d5   :  { %v1346_v54 = vsub.f32 0.0, %v1338_v28 }
 0x8d7   :  { %v1350_v55 = vsel %vm1342_vm5, %v1338_v28, %v1346_v54  ;;  %v3227_v28 = vld [vmem:[%s4911_s21 + $0x1] ss:$0 sm:$0xff]  ;;  %s4921_s21 = smov 24  }
 0x8d8   :  { %v1354_v57 = vadd.f32 1.0, %v1350_v55 }
 0x8da   :  { %v1358_v47 = vmul.f32 %v1354_v57, %v1202_v56 }
 0x8dc   :  { %1404 = vmatmul.f32.gmra.mxu3 %v1358_v47 }
 0x928   :  { %v1396_v52 = vpop.f32.mrf.mxu3 }
 0x929   :  { %v1397_v60 = vadd.f32 %v3233_v59, %v1396_v52 }
 0x92b   :  { %v4179_v7 = vadd.f32 %v1397_v60, %v4002_v10 }
 0x92d   :  { %v1416_v62 = vsel %vm69_vm0, %v4179_v7, 0.0 }
 0x92e   :  { %1417 = vadd.xlane.f32.xlu0 %v1416_v62 }
 0x930   :  { %v1399_v15 = vpop.f32.mrf.mxu3 }
 0x931   :  { %v1400_v58 = vadd.f32 %v3233_v59, %v1399_v15 }
 0x933   :  { %v4184_v61 = vadd.f32 %v1400_v58, %v4009_v35 }
 0x935   :  { %v1419_v8 = vsel %vm69_vm0, %v4184_v61, 0.0 }
 0x936   :  { %1420 = vadd.xlane.f32.xlu1 %v1419_v8 }
 0x93f   :  { %v1402_v1 = vpop.f32.mrf.mxu3 }
 0x940   :  { %v1403_v26 = vadd.f32 %v3233_v59, %v1402_v1 }
 0x942   :  { %v4189_v43 = vadd.f32 %v1403_v26, %v4016_v38 }
 0x944   :  { %v1422_v10 = vsel %vm69_vm0, %v4189_v43, 0.0 }
 0x945   :  { %1423 = vadd.xlane.f32.xlu2 %v1422_v10 }
 0x95f   :  { %v1405_v53 = vpop.f32.mrf.mxu3 }
 0x960   :  { %v1406_v63 = vadd.f32 %v3233_v59, %v1405_v53 }
 0x962   :  { %v4194_v4 = vadd.f32 %v1406_v63, %v4023_v40 }
 0x964   :  { %v1425_v35 = vsel %vm69_vm0, %v4194_v4, 0.0 }
 0x965   :  { %1426 = vadd.xlane.f32.xlu0 %v1425_v35 }
 0x9a1   :  { %v1418_v6 = vpop.xlane.xlu0 %1417 }
 0x9a2   :  { %v1428_v2 = vmul.f32 %v1418_v6, %v3578_v14 }
 0x9a4   :  { %v1432_v9 = vsub.f32 %v4179_v7, %v1428_v2 }
 0x9a6   :  { %v1436_v38 = vmul.f32 %v1432_v9, %v1432_v9 }
 0x9a8   :  { %v1440_v11 = vsel %vm69_vm0, %v1436_v38, 0.0 }
 0x9a9   :  { %1441 = vadd.xlane.f32.xlu1 %v1440_v11  ;;  %v1421_v12 = vpop.xlane.xlu1 %1420 }
 0x9aa   :  { %v1429_v13 = vmul.f32 %v1421_v12, %v3578_v14 }
 0x9ac   :  { %v4203_v17 = vsub.f32 %v4184_v61, %v1429_v13 }
 0x9ae   :  { %v1437_v40 = vmul.f32 %v4203_v17, %v4203_v17 }
 0x9b0   :  { %v1443_v20 = vsel %vm69_vm0, %v1437_v40, 0.0 }
 0x9b1   :  { %1444 = vadd.xlane.f32.xlu2 %v1443_v20 }
 0x9b8   :  { %v1424_v18 = vpop.xlane.xlu2 %1423 }
 0x9b9   :  { %v1430_v21 = vmul.f32 %v1424_v18, %v3578_v14 }
 0x9bb   :  { %v4210_v24 = vsub.f32 %v4189_v43, %v1430_v21 }
 0x9bd   :  { %v1438_v23 = vmul.f32 %v4210_v24, %v4210_v24 }
 0x9bf   :  { %v1446_v0 = vsel %vm69_vm0, %v1438_v23, 0.0 }
 0x9c0   :  { %1447 = vadd.xlane.f32.xlu0 %v1446_v0 }
 0x9d8   :  { %v1427_v22 = vpop.xlane.xlu0 %1426 }
 0x9d9   :  { %v1431_v27 = vmul.f32 %v1427_v22, %v3578_v14 }
 0x9db   :  { %v4217_v44 = vsub.f32 %v4194_v4, %v1431_v27 }
 0x9dd   :  { %v1439_v3 = vmul.f32 %v4217_v44, %v4217_v44 }
 0x9df   :  { %v1449_v19 = vsel %vm69_vm0, %v1439_v3, 0.0 }
 0x9e0   :  { %1450 = vadd.xlane.f32.xlu1 %v1449_v19 }
 0xa1c   :  { %v1442_v30 = vpop.xlane.xlu1 %1441 }
 0xa1d   :  { %v1452_v29 = vmul.f32 %v1442_v30, %v3578_v14 }
 0xa1f   :  { %v1456_v36 = vadd.f32 1e-05, %v1452_v29 }
 0xa21   :  { %3340 = vrsqrt.f32 %v1456_v36  ;;  %vm1466_vm7 = vweird.f32 %v1456_v36 }
 0xa24   :  { %v1445_v41 = vpop.xlane.xlu2 %1444 }
 0xa25   :  { %v1453_v37 = vmul.f32 %v1445_v41, %v3578_v14 }
 0xa27   :  { %v3341_v49 = vpop.eup %3340  ;;  %v1457_v45 = vadd.f32 1e-05, %v1453_v37 }
 0xa28   :  { %v1461_v39 = vmul.f32 %v3341_v49, %v1456_v36  ;;  %vm1467_vm6 = vweird.f32 %v3341_v49 }
 0xa29   :  { %3342 = vrsqrt.f32 %v1457_v45  ;;  %vm1468_vm8 = vmor %vm1466_vm7, %vm1467_vm6  ;;  %vm1476_vm10 = vweird.f32 %v1457_v45 }
 0xa2a   :  { %v1462_v25 = vmul.f32 %v3341_v49, %v1461_v39 }
 0xa2c   :  { %v1463_v42 = vmul.f32 0.5, %v1462_v25 }
 0xa2e   :  { %v1464_v34 = vsub.f32 1.5, %v1463_v42 }
 0xa2f   :  { %v3343_v48 = vpop.eup %3342 }
 0xa30   :  { %v1465_v16 = vmul.f32 %v3341_v49, %v1464_v34  ;;  %v1471_v50 = vmul.f32 %v3343_v48, %v1457_v45  ;;  %vm1477_vm9 = vweird.f32 %v3343_v48 }
 0xa31   :  { %vm1478_vm11 = vmor %vm1476_vm10, %vm1477_vm9 }
 0xa32   :  { %v1469_v51 = vsel %vm1468_vm8, %v3341_v49, %v1465_v16  ;;  %v1472_v55 = vmul.f32 %v3343_v48, %v1471_v50 }
 0xa33   :  { %v1500_v54 = vmul.f32 %v1469_v51, %v1432_v9  ;;  %v1448_v56 = vpop.xlane.xlu0 %1447 }
 0xa34   :  { %v1454_v57 = vmul.f32 %v1448_v56, %v3578_v14  ;;  %v1473_v59 = vmul.f32 0.5, %v1472_v55 }
 0xa35   :  { %v1507_v47 = vmul.f32 %v3226_v46, %v1500_v54 }
 0xa36   :  { %v1458_v52 = vadd.f32 1e-05, %v1454_v57  ;;  %v1474_v60 = vsub.f32 1.5, %v1473_v59 }
 0xa37   :  { %v1514_v62 = vadd.f32 %v3227_v28, %v1507_v47 }
 0xa38   :  { %3344 = vrsqrt.f32 %v1458_v52  ;;  %v1475_v15 = vmul.f32 %v3343_v48, %v1474_v60  ;;  %vm1486_vm13 = vweird.f32 %v1458_v52 }
 0xa39   :  { %3024 = vmatmul.msk.f32.vlgmr.msrb.gmra.mxu0 %vm69_vm0, %v1514_v62 }
 0xa3a   :  { %v1479_v58 = vsel %vm1478_vm11, %v3343_v48, %v1475_v15 }
 0xa3b   :  { %v1501_v8 = vmul.f32 %v1479_v58, %v4203_v17 }
 0xa3d   :  { %v1508_v26 = vmul.f32 %v3226_v46, %v1501_v8 }
 0xa3e   :  { %v3345_v1 = vpop.eup %3344 }
 0xa3f   :  { %v1481_v10 = vmul.f32 %v3345_v1, %v1458_v52  ;;  %v1515_v53 = vadd.f32 %v3227_v28, %v1508_v26  ;;  %vm1487_vm12 = vweird.f32 %v3345_v1 }
 0xa40   :  { %vm1488_vm4 = vmor %vm1486_vm13, %vm1487_vm12 }
 0xa41   :  { %v1482_v63 = vmul.f32 %v3345_v1, %v1481_v10  ;;  %3025 = vmatmul.msk.f32.gmra.mxu0 %vm69_vm0, %v1515_v53 }
 0xa43   :  { %v1483_v35 = vmul.f32 0.5, %v1482_v63 }
 0xa45   :  { %v1484_v6 = vsub.f32 1.5, %v1483_v35 }
 0xa47   :  { %v1485_v2 = vmul.f32 %v3345_v1, %v1484_v6 }
 0xa49   :  { %v1489_v9 = vsel %vm1488_vm4, %v3345_v1, %v1485_v2 }
 0xa4a   :  { %v1502_v38 = vmul.f32 %v1489_v9, %v4210_v24 }
 0xa4c   :  { %v1509_v11 = vmul.f32 %v3226_v46, %v1502_v38 }
 0xa4e   :  { %v1516_v12 = vadd.f32 %v3227_v28, %v1509_v11 }
 0xa50   :  { %3026 = vmatmul.msk.f32.gmra.mxu0 %vm69_vm0, %v1516_v12 }
 0xa53   :  { %v1451_v13 = vpop.xlane.xlu1 %1450 }
 0xa54   :  { %v1455_v17 = vmul.f32 %v1451_v13, %v3578_v14 }
 0xa56   :  { %v1459_v40 = vadd.f32 1e-05, %v1455_v17 }
 0xa58   :  { %3346 = vrsqrt.f32 %v1459_v40  ;;  %vm1496_vm6 = vweird.f32 %v1459_v40 }
 0xa5e   :  { %v3347_v20 = vpop.eup %3346 }
 0xa5f   :  { %v1491_v18 = vmul.f32 %v3347_v20, %v1459_v40  ;;  %vm1497_vm5 = vweird.f32 %v3347_v20 }
 0xa60   :  { %vm1498_vm7 = vmor %vm1496_vm6, %vm1497_vm5 }
 0xa61   :  { %v1492_v21 = vmul.f32 %v3347_v20, %v1491_v18 }
 0xa63   :  { %v1493_v23 = vmul.f32 0.5, %v1492_v21 }
 0xa65   :  { %v1494_v0 = vsub.f32 1.5, %v1493_v23 }
 0xa67   :  { %v1495_v22 = vmul.f32 %v3347_v20, %v1494_v0 }
 0xa69   :  { %v1499_v27 = vsel %vm1498_vm7, %v3347_v20, %v1495_v22 }
 0xa6a   :  { %v1503_v24 = vmul.f32 %v1499_v27, %v4217_v44 }
 0xa6c   :  { %v1510_v3 = vmul.f32 %v3226_v46, %v1503_v24 }
 0xa6e   :  { %v1517_v19 = vadd.f32 %v3227_v28, %v1510_v3 }
 0xa70   :  { %3027 = vmatmul.msk.f32.gmra.mxu0 %vm69_vm0, %v1517_v19 }
 0xab6   :  { %v1557_v5 = vpop.f32.mrf.mxu0 }
 0xab7   :  { %v1558_v32 = vadd.f32 %v3234_v31, %v1557_v5  ;;  %v3448_v5 = vld [vmem:[%s4869_s1] sm:$0xff] }
 0xab9   :  { %1569 = vst.msk [vmem:[#allocation2] sm:$0xff] %vm228_vm14, %v1558_v32 }
 0xabe   :  { %v1560_v33 = vpop.f32.mrf.mxu0 }
 0xabf   :  { %v1561_v30 = vadd.f32 %v3234_v31, %v1560_v33 }
 0xac0   :  { %v1743_v37 = vld [vmem:[#allocation2] sm:$0xff] }
 0xac1   :  { %1570 = vst.msk [vmem:[#allocation2 + $0x8] sm:$0xff] %vm228_vm14, %v1561_v30 }
 0xac8   :  { %v1574_v29 = vld [vmem:[#allocation2 + $0x8] sm:$0xff] }
 0xac9   :  { %1583 = vrot.lane.b32.xlu2 %v1574_v29, %s3453_s23  ;;  %v4276_v25 = vpack.i.bf16 %v1743_v37, %v1574_v29 }
 0xacd   :  { %v1563_v44 = vpop.f32.mrf.mxu0 }
 0xace   :  { %v1564_v36 = vadd.f32 %v3234_v31, %v1563_v44  ;;  %v3449_v44 = vld [vmem:[%s4869_s1 + $0x8] sm:$0xff] }
 0xad0   :  { %1571 = vst.msk [vmem:[#allocation2 + $0x10] sm:$0xff] %vm228_vm14, %v1564_v36 }
 0xad7   :  { %v1745_v41 = vld [vmem:[#allocation2 + $0x10] sm:$0xff] }
 0xad8   :  { %1763 = vrot.lane.b32.xlu0 %v1745_v41, %s3454_s24  ;;  %1585 = vrot.lane.b32.xlu1 %v1745_v41, %s3453_s23 }
 0xae0   :  { %1759 = vrot.lane.b32.xlu1 %v1743_v37, %s3454_s24 }
 0xae8   :  { %1755 = vrot.lane.b32.xlu1 %v1745_v41, %s3456_s26 }
 0xaed   :  { %v1566_v49 = vpop.f32.mrf.mxu0 }
 0xaee   :  { %v1567_v39 = vadd.f32 %v3234_v31, %v1566_v49 }
 0xaf0   :  { %1572 = vst.msk [vmem:[#allocation2 + $0x18] sm:$0xff] %vm228_vm14, %v1567_v39  ;;  %1957 = vrot.lane.b32.xlu1 %v1745_v41, %s3457_s27  ;;  %v3450_v39 = vld [vmem:[%s4869_s1 + $0x10] sm:$0xff] }
 0xaf7   :  { %v1746_v45 = vld [vmem:[#allocation2 + $0x18] sm:$0xff] }
 0xaf8   :  { %1765 = vrot.lane.b32.xlu0 %v1746_v45, %s3454_s24  ;;  %1955 = vrot.lane.b32.xlu1 %v1574_v29, %s3457_s27  ;;  %v4282_v42 = vpack.i.bf16 %v1745_v41, %v1746_v45 }
 0xaf9   :  { %1587 = vrot.lane.b32.xlu2 %v1746_v45, %s3453_s23 }
 0xb00   :  { %2147 = vrot.lane.b32.xlu1 %v1743_v37, %s4912_s5  ;;  %1761 = vrot.lane.b32.xlu0 %v1574_v29, %s3454_s24  ;;  %s4917_s24 = smov 56  }
 0xb01   :  { %1581 = vrot.lane.b32.xlu2 %v1743_v37, %s3453_s23  ;;  %s4916_s23 = smov 48  }
 0xb08   :  { %1947 = vrot.lane.b32.xlu1 %v1574_v29, %s4913_s0  ;;  %1751 = vrot.lane.b32.xlu0 %v1743_v37, %s3456_s26 }
 0xb09   :  { %1753 = vrot.lane.b32.xlu2 %v1574_v29, %s3456_s26 }
 0xb10   :  { %2143 = vrot.lane.b32.xlu1 %v1745_v41, %s4914_s2  ;;  %2151 = vrot.lane.b32.xlu0 %v1745_v41, %s4912_s5 }
 0xb11   :  { %1953 = vrot.lane.b32.xlu2 %v1743_v37, %s3457_s27 }
 0xb18   :  { %1959 = vrot.lane.b32.xlu0 %v1746_v45, %s3457_s27  ;;  %3185 = vrot.lane.b32.xlu1 %v4276_v25, %s4915_s25 }
 0xb19   :  { %2153 = vrot.lane.b32.xlu2 %v1746_v45, %s4912_s5 }
 0xb20   :  { %2149 = vrot.lane.b32.xlu0 %v1574_v29, %s4912_s5  ;;  %3205 = vrot.lane.b32.xlu1 %v4282_v42, %s4916_s23 }
 0xb21   :  { %1757 = vrot.lane.b32.xlu2 %v1746_v45, %s3456_s26 }
 0xb23   :  { %v1584_v34 = vpop.permute.xlu2 %1583 }
 0xb28   :  { %1945 = vrot.lane.b32.xlu0 %v1743_v37, %s4913_s0 }
 0xb29   :  { %2139 = vrot.lane.b32.xlu2 %v1743_v37, %s4914_s2 }
 0xb30   :  { %2141 = vrot.lane.b32.xlu0 %v1574_v29, %s4914_s2 }
 0xb31   :  { %1949 = vrot.lane.b32.xlu2 %v1745_v41, %s4913_s0 }
 0xb38   :  { %1951 = vrot.lane.b32.xlu0 %v1746_v45, %s4913_s0 }
 0xb39   :  { %2145 = vrot.lane.b32.xlu2 %v1746_v45, %s4914_s2 }
 0xb40   :  { %3200 = vrot.lane.b32.xlu0 %v4282_v42, %s4917_s24 }
 0xb41   :  { %3190 = vrot.lane.b32.xlu2 %v4276_v25, %s4917_s24 }
 0xb49   :  { %3195 = vrot.lane.b32.xlu2 %v4282_v42, %s4915_s25 }
 0xb4a   :  { %v1586_v48 = vpop.permute.xlu1 %1585  ;;  %v1764_v51 = vpop.permute.xlu0 %1763 }
 0xb52   :  { %v1760_v46 = vpop.permute.xlu1 %1759 }
 0xb53   :  { %v1588_v16 = vpop.permute.xlu2 %1587 }
 0xb54   :  { %3028 = vmatpush.xpose.msk.msrb.mxu2 %vm249_vm15, %v1588_v16 }
 0xb58   :  { %3029 = vmatpush.xpose.msk.msrb.mxu2 %vm249_vm15, %v1586_v48 }
 0xb5a   :  { %v1756_v28 = vpop.permute.xlu1 %1755 }
 0xb5b   :  { %v1582_v50 = vpop.permute.xlu2 %1581 }
 0xb5c   :  { %3030 = vmatpush.xpose.msk.msrb.mxu2 %vm249_vm15, %v1584_v34 }
 0xb60   :  { %3031 = vmatpush.xpose.msk.msrb.mxu2 %vm249_vm15, %v1582_v50 }
 0xb62   :  { %v1958_v57 = vpop.permute.xlu1 %1957 }
 0xb63   :  { %3032 = vmatmul.msk.f32.vlgmr.msrb.gmra.mxu2 %vm249_vm15, %v1743_v37  ;;  %v1754_v54 = vpop.permute.xlu2 %1753 }
 0xb6a   :  { %v1766_v55 = vpop.permute.xlu0 %1765  ;;  %v1956_v52 = vpop.permute.xlu1 %1955 }
 0xb6b   :  { %3033 = vmatmul.msk.f32.gmra.mxu2 %vm249_vm15, %v1574_v29  ;;  %v1954_v56 = vpop.permute.xlu2 %1953  ;;  %3040 = vmatpush.xpose.msk.msra.mxu3 %vm249_vm15, %v1766_v55 }
 0xb6f   :  { %3041 = vmatpush.xpose.msk.msra.mxu3 %vm249_vm15, %v1764_v51 }
 0xb72   :  { %v1762_v47 = vpop.permute.xlu0 %1761  ;;  %v2148_v15 = vpop.permute.xlu1 %2147 }
 0xb73   :  { %3034 = vmatmul.msk.f32.gmra.mxu2 %vm249_vm15, %v1745_v41  ;;  %v2154_v59 = vpop.permute.xlu2 %2153  ;;  %3042 = vmatpush.xpose.msk.msra.mxu3 %vm249_vm15, %v1762_v47 }
 0xb77   :  { %3043 = vmatpush.xpose.msk.msra.mxu3 %vm249_vm15, %v1760_v46 }
 0xb7a   :  { %v1752_v60 = vpop.permute.xlu0 %1751  ;;  %v1948_v1 = vpop.permute.xlu1 %1947 }
 0xb7b   :  { %3064 = vmatpush.xpose.msk.msrb.mxu3 %vm249_vm15, %v2154_v59  ;;  %3035 = vmatmul.msk.f32.gmra.mxu2 %vm249_vm15, %v1746_v45  ;;  %v1758_v62 = vpop.permute.xlu2 %1757 }
 0xb7c   :  { %3044 = vmatmul.msk.f32.vlgmr.msra.gmra.mxu3 %vm249_vm15, %v1752_v60 }
 0xb82   :  { %v2152_v58 = vpop.permute.xlu0 %2151  ;;  %v2144_v35 = vpop.permute.xlu1 %2143 }
 0xb83   :  { %v2140_v8 = vpop.permute.xlu2 %2139  ;;  %3065 = vmatpush.xpose.msk.msrb.mxu3 %vm249_vm15, %v2152_v58 }
 0xb84   :  { %3045 = vmatmul.msk.f32.gmra.mxu3 %vm249_vm15, %v1754_v54 }
 0xb8a   :  { %v1960_v26 = vpop.permute.xlu0 %1959  ;;  %v3186_v9 = vpop.permute.xlu1 %3185 }
 0xb8b   :  { %v1950_v10 = vpop.permute.xlu2 %1949  ;;  %3052 = vmatpush.xpose.msk.msra.mxu2 %vm249_vm15, %v1960_v26  ;;  %v3187_v17 = vunpack.i.l.bf16 %v3186_v9  ;;  %v3188_v20 = vunpack.i.h.bf16 %v3186_v9 }
 0xb8c   :  { %3046 = vmatmul.msk.f32.gmra.mxu3 %vm249_vm15, %v1756_v28 }
 0xb8f   :  { %3053 = vmatpush.xpose.msk.msra.mxu2 %vm249_vm15, %v1958_v57 }
 0xb92   :  { %v2150_v53 = vpop.permute.xlu0 %2149  ;;  %v3206_v40 = vpop.permute.xlu1 %3205 }
 0xb93   :  { %v2146_v63 = vpop.permute.xlu2 %2145  ;;  %3054 = vmatpush.xpose.msk.msra.mxu2 %vm249_vm15, %v1956_v52  ;;  %3066 = vmatpush.xpose.msk.msrb.mxu3 %vm249_vm15, %v2150_v53  ;;  %v3207_v21 = vunpack.i.l.bf16 %v3206_v40  ;;  %v3208_v23 = vunpack.i.h.bf16 %v3206_v40  ;;  %v3451_v52 = vld [vmem:[%s4869_s1 + $0x18] sm:$0xff]  ;;  %s4918_s1 = smov 40  }
 0xb94   :  { %3047 = vmatmul.msk.f32.gmra.mxu3 %vm249_vm15, %v1758_v62 }
 0xb97   :  { %3055 = vmatpush.xpose.msk.msra.mxu2 %vm249_vm15, %v1954_v56  ;;  %3067 = vmatpush.xpose.msk.msrb.mxu3 %vm249_vm15, %v2148_v15 }
 0xb9a   :  { %v1946_v6 = vpop.permute.xlu0 %1945 }
 0xb9b   :  { %v3191_v2 = vpop.permute.xlu2 %3190  ;;  %3056 = vmatmul.msk.f32.vlgmr.msra.gmra.mxu2 %vm249_vm15, %v1946_v6 }
 0xb9c   :  { %3068 = vmatmul.msk.f32.vlgmr.msrb.gmra.mxu3 %vm249_vm15, %v2140_v8  ;;  %v3192_v24 = vunpack.i.l.bf16 %v3191_v2  ;;  %v3193_v3 = vunpack.i.h.bf16 %v3191_v2 }
 0xba2   :  { %v2142_v38 = vpop.permute.xlu0 %2141 }
 0xba3   :  { %v3196_v11 = vpop.permute.xlu2 %3195  ;;  %3057 = vmatmul.msk.f32.gmra.mxu2 %vm249_vm15, %v1948_v1 }
 0xba4   :  { %3069 = vmatmul.msk.f32.gmra.mxu3 %vm249_vm15, %v2142_v38  ;;  %v3197_v12 = vunpack.i.l.bf16 %v3196_v11  ;;  %v3198_v13 = vunpack.i.h.bf16 %v3196_v11 }
 0xba6   :  { %1722 = vmatpush.msra.mxu1 %v3197_v12 }
 0xba8   :  { %1723 = vmatpush.msra.mxu1 %v3198_v13 }
 0xbaa   :  { %1724 = vmatpush.msra.mxu1 %v3187_v17  ;;  %v1952_v18 = vpop.permute.xlu0 %1951 }
 0xbab   :  { %3058 = vmatmul.msk.f32.gmra.mxu2 %vm249_vm15, %v1950_v10 }
 0xbac   :  { %3070 = vmatmul.msk.f32.gmra.mxu3 %vm249_vm15, %v2144_v35  ;;  %1725 = vmatpush.msra.mxu1 %v3188_v20 }
 0xbae   :  { %2094 = vmatpush.msrb.mxu1 %v3207_v21 }
 0xbb0   :  { %2095 = vmatpush.msrb.mxu1 %v3208_v23 }
 0xbb2   :  { %v3201_v0 = vpop.permute.xlu0 %3200 }
 0xbb3   :  { %v3202_v22 = vunpack.i.l.bf16 %v3201_v0  ;;  %3059 = vmatmul.msk.f32.gmra.mxu2 %vm249_vm15, %v1952_v18  ;;  %v3203_v27 = vunpack.i.h.bf16 %v3201_v0 }
 0xbb4   :  { %3071 = vmatmul.msk.f32.gmra.mxu3 %vm249_vm15, %v2146_v63 }
 0xbb5   :  { %1900 = vmatpush.msra.mxu0 %v3202_v22 }
 0xbb7   :  { %1901 = vmatpush.msra.mxu0 %v3203_v27 }
 0xbb9   :  { %1902 = vmatpush.msra.mxu0 %v3192_v24 }
 0xbbb   :  { %1903 = vmatpush.msra.mxu0 %v3193_v3 }
 0xbe6   :  { %v1622_v19 = vpop.f32.mrf.mxu2 }
 0xbe7   :  { %v1634_v31 = vmul.f32 0.35355338, %v1622_v19 }
 0xbe9   :  { %v4335_v32 = vadd.f32 %v3448_v5, %v1634_v31 }
 0xbeb   :  { %v1642_v33 = vsel %vm69_vm0, %v4335_v32, -inf }
 0xbec   :  { %1643 = vmax.xlane.f32.xlu1 %v1642_v33 }
 0xbee   :  { %v1625_v30 = vpop.f32.mrf.mxu2 }
 0xbef   :  { %v1635_v29 = vmul.f32 0.35355338, %v1625_v30 }
 0xbf1   :  { %v4342_v36 = vadd.f32 %v3449_v44, %v1635_v29 }
 0xbf3   :  { %v1645_v41 = vsel %vm69_vm0, %v4342_v36, -inf }
 0xbf4   :  { %1646 = vmax.xlane.f32.xlu2 %v1645_v41 }
 0xbf6   :  { %v1628_v37 = vpop.f32.mrf.mxu2 }
 0xbf7   :  { %v1636_v49 = vmul.f32 0.35355338, %v1628_v37 }
 0xbf9   :  { %v4349_v45 = vadd.f32 %v3450_v39, %v1636_v49 }
 0xbfb   :  { %v1648_v34 = vsel %vm69_vm0, %v4349_v45, -inf }
 0xbfc   :  { %1649 = vmax.xlane.f32.xlu2 %v1648_v34 }
 0xbfe   :  { %v1631_v54 = vpop.f32.mrf.mxu2 }
 0xbff   :  { %v1800_v48 = vpop.f32.mrf.mxu3  ;;  %v1637_v56 = vmul.f32 0.35355338, %v1631_v54 }
 0xc00   :  { %v1812_v16 = vmul.f32 0.35355338, %v1800_v48 }
 0xc01   :  { %v4364_v60 = vadd.f32 %v3451_v52, %v1637_v56 }
 0xc02   :  { %v4353_v46 = vadd.f32 %v3448_v5, %v1812_v16 }
 0xc03   :  { %v1651_v15 = vsel %vm69_vm0, %v4364_v60, -inf }
 0xc04   :  { %v1820_v50 = vsel %vm69_vm0, %v4353_v46, -inf }
 0xc05   :  { %1821 = vmax.xlane.f32.xlu0 %v1820_v50 }
 0xc07   :  { %v1803_v51 = vpop.f32.mrf.mxu3 }
 0xc08   :  { %v1813_v28 = vmul.f32 0.35355338, %v1803_v51 }
 0xc0a   :  { %v4357_v55 = vadd.f32 %v3449_v44, %v1813_v28 }
 0xc0c   :  { %v1823_v57 = vsel %vm69_vm0, %v4357_v55, -inf }
 0xc0d   :  { %1824 = vmax.xlane.f32.xlu1 %v1823_v57 }
 0xc0f   :  { %v1806_v47 = vpop.f32.mrf.mxu3 }
 0xc10   :  { %v1814_v59 = vmul.f32 0.35355338, %v1806_v47 }
 0xc12   :  { %v4366_v62 = vadd.f32 %v3450_v39, %v1814_v59 }
 0xc14   :  { %v1826_v58 = vsel %vm69_vm0, %v4366_v62, -inf }
 0xc15   :  { %1652 = vmax.xlane.f32.xlu1 %v1651_v15  ;;  %1827 = vmax.xlane.f32.xlu0 %v1826_v58 }
 0xc17   :  { %v1809_v8 = vpop.f32.mrf.mxu3 }
 0xc18   :  { %v1815_v1 = vmul.f32 0.35355338, %v1809_v8 }
 0xc1a   :  { %v4372_v26 = vadd.f32 %v3451_v52, %v1815_v1 }
 0xc1c   :  { %v1829_v10 = vsel %vm69_vm0, %v4372_v26, -inf }
 0xc1d   :  { %1830 = vmax.xlane.f32.xlu2 %v1829_v10 }
 0xc1e   :  { %v1994_v53 = vpop.f32.mrf.mxu2 }
 0xc1f   :  { %v2188_v63 = vpop.f32.mrf.mxu3  ;;  %v2006_v35 = vmul.f32 0.35355338, %v1994_v53 }
 0xc20   :  { %v2200_v6 = vmul.f32 0.35355338, %v2188_v63 }
 0xc21   :  { %v4376_v2 = vadd.f32 %v3448_v5, %v2006_v35 }
 0xc22   :  { %v4378_v9 = vadd.f32 %v3448_v5, %v2200_v6 }
 0xc23   :  { %v2014_v38 = vsel %vm69_vm0, %v4376_v2, -inf }
 0xc24   :  { %v2208_v11 = vsel %vm69_vm0, %v4378_v9, -inf  ;;  %2015 = vmax.xlane.f32.xlu0 %v2014_v38 }
 0xc25   :  { %2209 = vmax.xlane.f32.xlu1 %v2208_v11 }
 0xc26   :  { %v1997_v12 = vpop.f32.mrf.mxu2 }
 0xc27   :  { %v2191_v13 = vpop.f32.mrf.mxu3  ;;  %v2007_v17 = vmul.f32 0.35355338, %v1997_v12 }
 0xc28   :  { %v2201_v40 = vmul.f32 0.35355338, %v2191_v13 }
 0xc29   :  { %v4384_v20 = vadd.f32 %v3449_v44, %v2007_v17 }
 0xc2a   :  { %v4386_v18 = vadd.f32 %v3449_v44, %v2201_v40 }
 0xc2b   :  { %v2017_v21 = vsel %vm69_vm0, %v4384_v20, -inf }
 0xc2c   :  { %v2211_v23 = vsel %vm69_vm0, %v4386_v18, -inf  ;;  %2018 = vmax.xlane.f32.xlu2 %v2017_v21 }
 0xc2d   :  { %2212 = vmax.xlane.f32.xlu0 %v2211_v23 }
 0xc2e   :  { %v2000_v0 = vpop.f32.mrf.mxu2 }
 0xc2f   :  { %v2194_v22 = vpop.f32.mrf.mxu3  ;;  %v2008_v27 = vmul.f32 0.35355338, %v2000_v0 }
 0xc30   :  { %v2202_v24 = vmul.f32 0.35355338, %v2194_v22 }
 0xc31   :  { %v4394_v19 = vadd.f32 %v3450_v39, %v2008_v27 }
 0xc32   :  { %v4392_v3 = vadd.f32 %v3450_v39, %v2202_v24 }
 0xc33   :  { %v2020_v5 = vsel %vm69_vm0, %v4394_v19, -inf }
 0xc34   :  { %v2214_v31 = vsel %vm69_vm0, %v4392_v3, -inf  ;;  %2021 = vmax.xlane.f32.xlu1 %v2020_v5 }
 0xc35   :  { %2215 = vmax.xlane.f32.xlu2 %v2214_v31 }
 0xc36   :  { %v2003_v33 = vpop.f32.mrf.mxu2 }
 0xc37   :  { %v2009_v30 = vmul.f32 0.35355338, %v2003_v33  ;;  %v2197_v29 = vpop.f32.mrf.mxu3 }
 0xc38   :  { %v2203_v41 = vmul.f32 0.35355338, %v2197_v29 }
 0xc39   :  { %v4400_v44 = vadd.f32 %v3451_v52, %v2009_v30 }
 0xc3a   :  { %v4404_v49 = vadd.f32 %v3451_v52, %v2203_v41 }
 0xc3b   :  { %v2023_v37 = vsel %vm69_vm0, %v4400_v44, -inf }
 0xc3c   :  { %2024 = vmax.xlane.f32.xlu1 %v2023_v37  ;;  %v2217_v39 = vsel %vm69_vm0, %v4404_v49, -inf }
 0xc41   :  { %3210 = vrot.lane.b32.xlu0 %v4282_v42, %s4918_s1 }
 0xc44   :  { %2218 = vmax.xlane.f32.xlu1 %v2217_v39 }
 0xc5f   :  { %v1644_v34 = vpop.xlane.xlu1 %1643 }
 0xc60   :  { %v1654_v48 = vsub.f32 %v4335_v32, %v1644_v34 }
 0xc62   :  { %v1658_v16 = vmul.f32 1.442695, %v1654_v48 }
 0xc64   :  { %3348 = vpow2.f32 %v1658_v16 }
 0xc67   :  { %v1647_v50 = vpop.xlane.xlu2 %1646 }
 0xc68   :  { %v1655_v51 = vsub.f32 %v4342_v36, %v1647_v50 }
 0xc6a   :  { %v4412_v28 = vpop.eup %3348  ;;  %v1660_v54 = vmul.f32 1.442695, %v1655_v51 }
 0xc6b   :  { %v1666_v56 = vsel %vm69_vm0, %v4412_v28, 0.0 }
 0xc6c   :  { %3350 = vpow2.f32 %v1660_v54  ;;  %1667 = vadd.xlane.f32.xlu0 %v1666_v56 }
 0xc6f   :  { %v1650_v32 = vpop.xlane.xlu2 %1649 }
 0xc70   :  { %v1656_v36 = vsub.f32 %v4349_v45, %v1650_v32 }
 0xc72   :  { %v4416_v42 = vpop.eup %3350  ;;  %v1662_v15 = vmul.f32 1.442695, %v1656_v36 }
 0xc73   :  { %v1669_v57 = vsel %vm69_vm0, %v4416_v42, 0.0 }
 0xc74   :  { %1670 = vadd.xlane.f32.xlu0 %v1669_v57 }
 0xc78   :  { %v1822_v47 = vpop.xlane.xlu0 %1821 }
 0xc79   :  { %v1832_v59 = vsub.f32 %v4353_v46, %v1822_v47 }
 0xc7b   :  { %v1836_v52 = vmul.f32 1.442695, %v1832_v59 }
 0xc7d   :  { %3352 = vpow2.f32 %v1836_v52 }
 0xc7e   :  { %3354 = vpow2.f32 %v1662_v15 }
 0xc80   :  { %v1825_v58 = vpop.xlane.xlu1 %1824 }
 0xc81   :  { %v1833_v8 = vsub.f32 %v4357_v55, %v1825_v58 }
 0xc83   :  { %v4423_v1 = vpop.eup %3352  ;;  %v1838_v10 = vmul.f32 1.442695, %v1833_v8 }
 0xc84   :  { %v1844_v53 = vsel %vm69_vm0, %v4423_v1, 0.0  ;;  %v4427_v35 = vpop.eup %3354 }
 0xc85   :  { %3356 = vpow2.f32 %v1838_v10  ;;  %1845 = vadd.xlane.f32.xlu1 %v1844_v53  ;;  %v1672_v12 = vsel %vm69_vm0, %v4427_v35, 0.0 }
 0xc88   :  { %v1828_v63 = vpop.xlane.xlu0 %1827  ;;  %v1653_v46 = vpop.xlane.xlu1 %1652 }
 0xc89   :  { %v1834_v45 = vsub.f32 %v4366_v62, %v1828_v63  ;;  %v1657_v55 = vsub.f32 %v4364_v60, %v1653_v46 }
 0xc8b   :  { %v4430_v6 = vpop.eup %3356  ;;  %v1840_v38 = vmul.f32 1.442695, %v1834_v45  ;;  %v1664_v13 = vmul.f32 1.442695, %v1657_v55 }
 0xc8c   :  { %v1847_v11 = vsel %vm69_vm0, %v4430_v6, 0.0 }
 0xc8d   :  { %1848 = vadd.xlane.f32.xlu2 %v1847_v11  ;;  %1673 = vadd.xlane.f32.xlu1 %v1672_v12  ;;  %3358 = vpow2.f32 %v1840_v38 }
 0xc8e   :  { %3360 = vpow2.f32 %v1664_v13 }
 0xc90   :  { %v1831_v40 = vpop.xlane.xlu2 %1830 }
 0xc91   :  { %v1835_v32 = vsub.f32 %v4372_v26, %v1831_v40 }
 0xc93   :  { %v4437_v17 = vpop.eup %3358  ;;  %v1842_v59 = vmul.f32 1.442695, %v1835_v32 }
 0xc94   :  { %v1850_v62 = vsel %vm69_vm0, %v4437_v17, 0.0  ;;  %v4442_v23 = vpop.eup %3360 }
 0xc95   :  { %1851 = vadd.xlane.f32.xlu0 %v1850_v62  ;;  %v1675_v22 = vsel %vm69_vm0, %v4442_v23, 0.0 }
 0xc97   :  { %v2016_v21 = vpop.xlane.xlu0 %2015 }
 0xc98   :  { %v2026_v60 = vsub.f32 %v4376_v2, %v2016_v21  ;;  %v2210_v27 = vpop.xlane.xlu1 %2209 }
 0xc99   :  { %v2220_v15 = vsub.f32 %v4378_v9, %v2210_v27 }
 0xc9a   :  { %v2030_v0 = vmul.f32 1.442695, %v2026_v60 }
 0xc9b   :  { %v2224_v8 = vmul.f32 1.442695, %v2220_v15 }
 0xc9c   :  { %3362 = vpow2.f32 %v2030_v0 }
 0xc9d   :  { %1676 = vadd.xlane.f32.xlu0 %v1675_v22 }
 0xc9f   :  { %v2019_v24 = vpop.xlane.xlu2 %2018 }
 0xca0   :  { %v2027_v31 = vsub.f32 %v4384_v20, %v2019_v24  ;;  %v2213_v37 = vpop.xlane.xlu0 %2212 }
 0xca1   :  { %v2221_v26 = vsub.f32 %v4386_v18, %v2213_v37 }
 0xca2   :  { %v4447_v5 = vpop.eup %3362  ;;  %v2032_v33 = vmul.f32 1.442695, %v2027_v31 }
 0xca3   :  { %v2038_v30 = vsel %vm69_vm0, %v4447_v5, 0.0  ;;  %v2226_v53 = vmul.f32 1.442695, %v2221_v26 }
 0xca4   :  { %3364 = vpow2.f32 %v2032_v33 }
 0xca5   :  { %3215 = vrot.lane.b32.xlu2 %v4276_v25, %s4916_s23  ;;  %2039 = vadd.xlane.f32.xlu0 %v2038_v30 }
 0xca6   :  { %3220 = vrot.lane.b32.xlu1 %v4276_v25, %s4918_s1 }
 0xca7   :  { %v2022_v2 = vpop.xlane.xlu1 %2021 }
 0xca8   :  { %v2216_v29 = vpop.xlane.xlu2 %2215  ;;  %v2028_v47 = vsub.f32 %v4394_v19, %v2022_v2 }
 0xca9   :  { %v2222_v41 = vsub.f32 %v4392_v3, %v2216_v29 }
 0xcaa   :  { %v4456_v39 = vpop.eup %3364  ;;  %v2034_v36 = vmul.f32 1.442695, %v2028_v47 }
 0xcab   :  { %v2228_v20 = vmul.f32 1.442695, %v2222_v41  ;;  %v2041_v34 = vsel %vm69_vm0, %v4456_v39, 0.0 }
 0xcad   :  { %3366 = vpow2.f32 %v2228_v20  ;;  %2042 = vadd.xlane.f32.xlu0 %v2041_v34 }
 0xcaf   :  { %v2025_v48 = vpop.xlane.xlu1 %2024 }
 0xcb0   :  { %v2029_v46 = vsub.f32 %v4400_v44, %v2025_v48 }
 0xcb2   :  { %v2036_v38 = vmul.f32 1.442695, %v2029_v46 }
 0xcb3   :  { %v3211_v16 = vpop.permute.xlu0 %3210  ;;  %v4460_v50 = vpop.eup %3366 }
 0xcb4   :  { %v3212_v51 = vunpack.i.l.bf16 %v3211_v16  ;;  %v2238_v25 = vsel %vm69_vm0, %v4460_v50, 0.0  ;;  %v3213_v54 = vunpack.i.h.bf16 %v3211_v16 }
 0xcb5   :  { %2239 = vadd.xlane.f32.xlu0 %v2238_v25 }
 0xcb6   :  { %2288 = vmatpush.msrb.mxu0 %v3212_v51 }
 0xcb7   :  { %v2219_v3 = vpop.xlane.xlu1 %2218 }
 0xcb8   :  { %2289 = vmatpush.msrb.mxu0 %v3213_v54  ;;  %v2223_v56 = vsub.f32 %v4404_v49, %v2219_v3 }
 0xcba   :  { %v2230_v57 = vmul.f32 1.442695, %v2223_v56 }
 0xcbc   :  { %3368 = vpow2.f32 %v2230_v57 }
 0xcbd   :  { %3370 = vpow2.f32 %v1842_v59 }
 0xcbe   :  { %3372 = vpow2.f32 %v2034_v36 }
 0xcbf   :  { %3374 = vpow2.f32 %v2224_v8 }
 0xcc0   :  { %3376 = vpow2.f32 %v2226_v53 }
 0xcc1   :  { %3378 = vpow2.f32 %v2036_v38 }
 0xcc2   :  { %v4467_v52 = vpop.eup %3368 }
 0xcc3   :  { %v2241_v58 = vsel %vm69_vm0, %v4467_v52, 0.0  ;;  %v4472_v49 = vpop.eup %3370 }
 0xcc4   :  { %2242 = vadd.xlane.f32.xlu0 %v2241_v58  ;;  %v4474_v10 = vpop.eup %3372  ;;  %v1853_v19 = vsel %vm69_vm0, %v4472_v49, 0.0 }
 0xcc5   :  { %v2044_v9 = vsel %vm69_vm0, %v4474_v10, 0.0  ;;  %v4481_v63 = vpop.eup %3374 }
 0xcc6   :  { %v2232_v45 = vsel %vm69_vm0, %v4481_v63, 0.0  ;;  %v4486_v18 = vpop.eup %3376 }
 0xcc7   :  { %v2235_v55 = vsel %vm69_vm0, %v4486_v18, 0.0  ;;  %v4490_v12 = vpop.eup %3378 }
 0xcc8   :  { %v2047_v13 = vsel %vm69_vm0, %v4490_v12, 0.0 }
 0xcce   :  { %1854 = vadd.xlane.f32.xlu2 %v1853_v19 }
 0xcd0   :  { %2045 = vadd.xlane.f32.xlu1 %v2044_v9 }
 0xcd6   :  { %2233 = vadd.xlane.f32.xlu2 %v2232_v45 }
 0xcde   :  { %2236 = vadd.xlane.f32.xlu2 %v2235_v55 }
 0xcdf   :  { %v1668_v11 = vpop.xlane.xlu0 %1667 }
 0xce0   :  { %3380 = vrcp.f32 %v1668_v11 }
 0xce6   :  { %2048 = vadd.xlane.f32.xlu2 %v2047_v13  ;;  %v3381_v44 = vpop.eup %3380 }
 0xce7   :  { %v1682_v62 = vmul.f32 %v3381_v44, %v4412_v28  ;;  %v1671_v40 = vpop.xlane.xlu0 %1670 }
 0xce8   :  { %3382 = vrcp.f32 %v1671_v40 }
 0xce9   :  { %3036 = vmatmul.msk.f32.vlgmr.msra.gmra.mxu1 %vm69_vm0, %v1682_v62 }
 0xcee   :  { %v3383_v21 = vpop.eup %3382 }
 0xcef   :  { %v1683_v60 = vmul.f32 %v3383_v21, %v4416_v42 }
 0xcf1   :  { %3037 = vmatmul.msk.f32.gmra.mxu1 %vm69_vm0, %v1683_v60 }
 0xcf8   :  { %v1846_v0 = vpop.xlane.xlu1 %1845 }
 0xcf9   :  { %3384 = vrcp.f32 %v1846_v0 }
 0xcff   :  { %v3385_v22 = vpop.eup %3384 }
 0xd00   :  { %v1860_v27 = vmul.f32 %v3385_v22, %v4423_v1  ;;  %v1674_v24 = vpop.xlane.xlu1 %1673  ;;  %v1849_v31 = vpop.xlane.xlu2 %1848 }
 0xd01   :  { %3386 = vrcp.f32 %v1674_v24 }
 0xd02   :  { %3388 = vrcp.f32 %v1849_v31  ;;  %3048 = vmatmul.msk.f32.vlgmr.msra.gmra.mxu0 %vm69_vm0, %v1860_v27 }
 0xd07   :  { %v3387_v28 = vpop.eup %3386 }
 0xd08   :  { %v3389_v33 = vpop.eup %3388  ;;  %v3216_v30 = vpop.permute.xlu2 %3215  ;;  %v1684_v2 = vmul.f32 %v3387_v28, %v4427_v35 }
 0xd09   :  { %v1852_v29 = vpop.xlane.xlu0 %1851  ;;  %v3217_v42 = vunpack.i.l.bf16 %v3216_v30  ;;  %v1861_v41 = vmul.f32 %v3389_v33, %v4430_v6  ;;  %v3218_v37 = vunpack.i.h.bf16 %v3216_v30  ;;  %v3079_v30 = vld [vmem:[%s4871_s6 + $0x38] sm:$0xff] }
 0xd0a   :  { %3390 = vrcp.f32 %v1852_v29  ;;  %3038 = vmatmul.msk.f32.gmra.mxu1 %vm69_vm0, %v1684_v2  ;;  %2363 = vmatpush.msrb.mxu2 %v3079_v30  ;;  %v3078_v2 = vld [vmem:[%s4871_s6 + $0x30] sm:$0xff]  ;;  %v3077_v29 = vld [vmem:[%s4871_s6 + $0x28] sm:$0xff] }
 0xd0b   :  { %3049 = vmatmul.msk.f32.gmra.mxu0 %vm69_vm0, %v1861_v41  ;;  %2096 = vmatpush.msrb.mxu1 %v3217_v42  ;;  %v3076_v42 = vld [vmem:[%s4871_s6 + $0x20] sm:$0xff] }
 0xd0c   :  { %2364 = vmatpush.msrb.mxu2 %v3078_v2 }
 0xd0d   :  { %2097 = vmatpush.msrb.mxu1 %v3218_v37 }
 0xd0e   :  { %2365 = vmatpush.msrb.mxu2 %v3077_v29 }
 0xd10   :  { %v3391_v1 = vpop.eup %3390  ;;  %2366 = vmatpush.msrb.mxu2 %v3076_v42 }
 0xd11   :  { %v1677_v20 = vpop.xlane.xlu0 %1676  ;;  %v1862_v34 = vmul.f32 %v3391_v1, %v4437_v17 }
 0xd12   :  { %3392 = vrcp.f32 %v1677_v20 }
 0xd13   :  { %3050 = vmatmul.msk.f32.gmra.mxu0 %vm69_vm0, %v1862_v34 }
 0xd18   :  { %v3393_v35 = vpop.eup %3392  ;;  %v3221_v48 = vpop.permute.xlu1 %3220 }
 0xd19   :  { %v2040_v16 = vpop.xlane.xlu0 %2039  ;;  %v3222_v51 = vunpack.i.l.bf16 %v3221_v48  ;;  %v1685_v6 = vmul.f32 %v3393_v35, %v4442_v23  ;;  %v3223_v25 = vunpack.i.h.bf16 %v3221_v48 }
 0xd1a   :  { %3394 = vrcp.f32 %v2040_v16 }
 0xd1b   :  { %3039 = vmatmul.msk.f32.gmra.mxu1 %vm69_vm0, %v1685_v6  ;;  %2290 = vmatpush.msrb.mxu0 %v3222_v51 }
 0xd1d   :  { %2291 = vmatpush.msrb.mxu0 %v3223_v25 }
 0xd20   :  { %v3395_v54 = vpop.eup %3394 }
 0xd21   :  { %v2054_v3 = vmul.f32 %v3395_v54, %v4447_v5  ;;  %v2043_v56 = vpop.xlane.xlu0 %2042 }
 0xd22   :  { %3396 = vrcp.f32 %v2043_v56 }
 0xd23   :  { %3060 = vmatmul.msk.f32.vlgmr.msrb.gmra.mxu1 %vm69_vm0, %v2054_v3 }
 0xd28   :  { %v3397_v17 = vpop.eup %3396 }
 0xd29   :  { %v2055_v57 = vmul.f32 %v3397_v17, %v4456_v39  ;;  %v2240_v26 = vpop.xlane.xlu0 %2239  ;;  %v3235_v17 = vld [vmem:[%s4870_s7 + $0x1] ss:$0 sm:$0xff] }
 0xd2b   :  { %3061 = vmatmul.msk.f32.gmra.mxu1 %vm69_vm0, %v2055_v57 }
 0xd37   :  { %v2243_v53 = vpop.xlane.xlu0 %2242 }
 0xd41   :  { %v1855_v32 = vpop.xlane.xlu2 %1854 }
 0xd42   :  { %3398 = vrcp.f32 %v1855_v32 }
 0xd43   :  { %v2046_v23 = vpop.xlane.xlu1 %2045 }
 0xd44   :  { %3400 = vrcp.f32 %v2046_v23 }
 0xd48   :  { %v3399_v47 = vpop.eup %3398 }
 0xd49   :  { %v2234_v59 = vpop.xlane.xlu2 %2233  ;;  %v1863_v36 = vmul.f32 %v3399_v47, %v4472_v49 }
 0xd4a   :  { %v3401_v15 = vpop.eup %3400  ;;  %3402 = vrcp.f32 %v2234_v59 }
 0xd4b   :  { %3051 = vmatmul.msk.f32.gmra.mxu0 %vm69_vm0, %v1863_v36  ;;  %v2056_v5 = vmul.f32 %v3401_v15, %v4474_v10 }
 0xd4d   :  { %3062 = vmatmul.msk.f32.gmra.mxu1 %vm69_vm0, %v2056_v5 }
 0xd50   :  { %v3403_v58 = vpop.eup %3402 }
 0xd51   :  { %v2248_v39 = vmul.f32 %v3403_v58, %v4481_v63  ;;  %v2237_v8 = vpop.xlane.xlu2 %2236 }
 0xd52   :  { %3404 = vrcp.f32 %v2237_v8 }
 0xd53   :  { %3072 = vmatmul.msk.f32.vlgmr.msrb.gmra.mxu0 %vm69_vm0, %v2248_v39  ;;  %3406 = vrcp.f32 %v2240_v26 }
 0xd58   :  { %v3405_v19 = vpop.eup %3404 }
 0xd59   :  { %v2049_v9 = vpop.xlane.xlu2 %2048  ;;  %v2249_v49 = vmul.f32 %v3405_v19, %v4486_v18  ;;  %v3407_v10 = vpop.eup %3406 }
 0xd5a   :  { %3408 = vrcp.f32 %v2049_v9  ;;  %v2250_v63 = vmul.f32 %v3407_v10, %v4460_v50 }
 0xd5b   :  { %3073 = vmatmul.msk.f32.gmra.mxu0 %vm69_vm0, %v2249_v49  ;;  %3410 = vrcp.f32 %v2243_v53 }
 0xd60   :  { %v3409_v46 = vpop.eup %3408 }
 0xd61   :  { %v2057_v45 = vmul.f32 %v3409_v46, %v4490_v12  ;;  %v3411_v38 = vpop.eup %3410 }
 0xd62   :  { %v2251_v18 = vmul.f32 %v3411_v38, %v4467_v52 }
 0xd63   :  { %3063 = vmatmul.msk.f32.gmra.mxu1 %vm69_vm0, %v2057_v45  ;;  %3074 = vmatmul.msk.f32.gmra.mxu0 %vm69_vm0, %v2250_v63 }
 0xd66   :  { %v1727_v55 = vpop.f32.mrf.mxu1 }
 0xd67   :  { %1739 = vst.msk [vmem:[#allocation3] sm:$0xff] %vm249_vm15, %v1727_v55 }
 0xd6b   :  { %3075 = vmatmul.msk.f32.gmra.mxu0 %vm69_vm0, %v2251_v18 }
 0xd6e   :  { %v1730_v11 = vpop.f32.mrf.mxu1 }
 0xd6f   :  { %1740 = vst.msk [vmem:[#allocation3 + $0x8] sm:$0xff] %vm249_vm15, %v1730_v11 }
 0xd7f   :  { %v1905_v13 = vpop.f32.mrf.mxu0 }
 0xd80   :  { %1921 = vrot.lane.b32.xlu1 %v1905_v13, %s4919_s30 }
 0xd87   :  { %v1733_v12 = vpop.f32.mrf.mxu1 }
 0xd88   :  { %1741 = vst.msk [vmem:[#allocation3 + $0x10] sm:$0xff] %vm249_vm15, %v1733_v12  ;;  %v1908_v52 = vpop.f32.mrf.mxu0 }
 0xd90   :  { %v1911_v40 = vpop.f32.mrf.mxu0 }
 0xd98   :  { %v1736_v50 = vpop.f32.mrf.mxu1 }
 0xd99   :  { %1742 = vst.msk [vmem:[#allocation3 + $0x18] sm:$0xff] %vm249_vm15, %v1736_v50 }
 0xda0   :  { %v2099_v44 = vpop.f32.mrf.mxu1 }
 0xda1   :  { %2115 = vrot.lane.b32.xlu2 %v2099_v44, %s4920_s19 }
 0xda8   :  { %v2102_v62 = vpop.f32.mrf.mxu1 }
 0xda9   :  { %2117 = vrot.lane.b32.xlu1 %v2102_v62, %s4920_s19 }
 0xdc8   :  { %v1914_v21 = vpop.f32.mrf.mxu0 }
 0xdca   :  { %v2105_v60 = vpop.f32.mrf.mxu1 }
 0xdcb   :  { %2119 = vrot.lane.b32.xlu1 %v2105_v60, %s4920_s19  ;;  %v3090_v60 = vld [vmem:[%s4875_s10 + $0x38] sm:$0xff] }
 0xdcc   :  { %2524 = vmatpush.msra.mxu1 %v3090_v60 }
 0xdd0   :  { %v2293_v0 = vpop.f32.mrf.mxu0 }
 0xdd1   :  { %2309 = vrot.lane.b32.xlu0 %v2293_v0, %s4921_s21  ;;  %v3089_v0 = vld [vmem:[%s4875_s10 + $0x30] sm:$0xff] }
 0xdd2   :  { %2525 = vmatpush.msra.mxu1 %v3089_v0  ;;  %v4652_v0 = vld [vmem:[%s4874_s11 + $0x1] ss:$0 sm:$0xff] }
 0xdd8   :  { %v2296_v22 = vpop.f32.mrf.mxu0 }
 0xdd9   :  { %1923 = vrot.lane.b32.xlu0 %v1908_v52, %s4919_s30  ;;  %2311 = vrot.lane.b32.xlu2 %v2296_v22, %s4921_s21  ;;  %v3088_v22 = vld [vmem:[%s4875_s10 + $0x28] sm:$0xff] }
 0xdda   :  { %2526 = vmatpush.msra.mxu1 %v3088_v22  ;;  %v3110_v22 = vld [vmem:[%s4877_s12 + $0xf0] sm:$0xff] }
 0xde0   :  { %v2108_v27 = vpop.f32.mrf.mxu1  ;;  %v2299_v24 = vpop.f32.mrf.mxu0 }
 0xde1   :  { %2121 = vrot.lane.b32.xlu1 %v2108_v27, %s4920_s19  ;;  %1925 = vrot.lane.b32.xlu0 %v1911_v40, %s4919_s30  ;;  %v3087_v27 = vld [vmem:[%s4875_s10 + $0x20] sm:$0xff] }
 0xde2   :  { %2313 = vrot.lane.b32.xlu2 %v2299_v24, %s4921_s21  ;;  %2527 = vmatpush.msra.mxu1 %v3087_v27 }
 0xde8   :  { %v2302_v31 = vpop.f32.mrf.mxu0 }
 0xde9   :  { %1927 = vrot.lane.b32.xlu0 %v1914_v21, %s4919_s30 }
 0xdea   :  { %2315 = vrot.lane.b32.xlu2 %v2302_v31, %s4921_s21 }
 0xdf2   :  { %v1922_v28 = vpop.permute.xlu1 %1921 }
 0xdf3   :  { %1933 = vst.msk [vmem:[#allocation3] sm:$0xff] %vm594_vm1, %v1922_v28 }
 0xdfb   :  { %v2116_v33 = vpop.permute.xlu2 %2115 }
 0xdfc   :  { %2127 = vst.msk [vmem:[#allocation3] sm:$0xff] %vm789_vm2, %v2116_v33 }
 0xe1b   :  { %v2118_v34 = vpop.permute.xlu1 %2117 }
 0xe33   :  { %v2312_v37 = vpop.permute.xlu2 %2311 }
 0xe3c   :  { %v2314_v35 = vpop.permute.xlu2 %2313 }
 0xe3d   :  { %v2120_v16 = vpop.permute.xlu1 %2119 }
 0xe43   :  { %v2310_v41 = vpop.permute.xlu0 %2309 }
 0xe44   :  { %2321 = vst.msk [vmem:[#allocation3] sm:$0xff] %vm984_vm3, %v2310_v41  ;;  %v2316_v54 = vpop.permute.xlu2 %2315 }
 0xe4b   :  { %v1924_v1 = vpop.permute.xlu0 %1923  ;;  %v2325_v20 = vld [vmem:[#allocation3] sm:$0xff] }
 0xe4c   :  { %1934 = vst.msk [vmem:[#allocation3 + $0x8] sm:$0xff] %vm594_vm1, %v1924_v1  ;;  %3081 = vmatmul.msk.f32.vlgmr.msrb.gmra.mxu2 %vm69_vm0, %v2325_v20 }
 0xe4d   :  { %2128 = vst.msk [vmem:[#allocation3 + $0x8] sm:$0xff] %vm789_vm2, %v2118_v34 }
 0xe4e   :  { %2322 = vst.msk [vmem:[#allocation3 + $0x8] sm:$0xff] %vm984_vm3, %v2312_v37 }
 0xe53   :  { %v1926_v48 = vpop.permute.xlu0 %1925  ;;  %v2122_v25 = vpop.permute.xlu1 %2121 }
 0xe54   :  { %1935 = vst.msk [vmem:[#allocation3 + $0x10] sm:$0xff] %vm594_vm1, %v1926_v48 }
 0xe55   :  { %2129 = vst.msk [vmem:[#allocation3 + $0x10] sm:$0xff] %vm789_vm2, %v2120_v16  ;;  %v2326_v51 = vld [vmem:[#allocation3 + $0x8] sm:$0xff]  ;;  %v3236_v16 = vld [vmem:[%s4872_s8 + $0x1] ss:$0 sm:$0xff] }
 0xe56   :  { %2323 = vst.msk [vmem:[#allocation3 + $0x10] sm:$0xff] %vm984_vm3, %v2314_v35  ;;  %3082 = vmatmul.msk.f32.gmra.mxu2 %vm69_vm0, %v2326_v51 }
 0xe5b   :  { %v1928_v6 = vpop.permute.xlu0 %1927 }
 0xe5c   :  { %1936 = vst.msk [vmem:[#allocation3 + $0x18] sm:$0xff] %vm594_vm1, %v1928_v6 }
 0xe5d   :  { %2130 = vst.msk [vmem:[#allocation3 + $0x18] sm:$0xff] %vm789_vm2, %v2122_v25  ;;  %v2327_v3 = vld [vmem:[#allocation3 + $0x10] sm:$0xff] }
 0xe5e   :  { %2324 = vst.msk [vmem:[#allocation3 + $0x18] sm:$0xff] %vm984_vm3, %v2316_v54  ;;  %3083 = vmatmul.msk.f32.gmra.mxu2 %vm69_vm0, %v2327_v3  ;;  %v3237_v3 = vld [vmem:[%s4873_s9 + $0x1] ss:$0 sm:$0xff] }
 0xe65   :  { %v2328_v56 = vld [vmem:[#allocation3 + $0x18] sm:$0xff] }
 0xe66   :  { %3084 = vmatmul.msk.f32.gmra.mxu2 %vm69_vm0, %v2328_v56 }
 0xecf   :  { %v2368_v57 = vpop.f32.mrf.mxu2 }
 0xed0   :  { %v2369_v32 = vadd.f32 %v3235_v17, %v2368_v57 }
 0xed2   :  { %v4574_v23 = vadd.f32 %v2369_v32, %v4179_v7 }
 0xed4   :  { %v2388_v47 = vsel %vm69_vm0, %v4574_v23, 0.0 }
 0xed5   :  { %2389 = vadd.xlane.f32.xlu0 %v2388_v47 }
 0xed9   :  { %v2371_v59 = vpop.f32.mrf.mxu2 }
 0xeda   :  { %v2372_v36 = vadd.f32 %v3235_v17, %v2371_v59 }
 0xedc   :  { %v4579_v15 = vadd.f32 %v2372_v36, %v4184_v61 }
 0xede   :  { %v2391_v5 = vsel %vm69_vm0, %v4579_v15, 0.0 }
 0xedf   :  { %2392 = vadd.xlane.f32.xlu1 %v2391_v5 }
 0xee1   :  { %v2374_v58 = vpop.f32.mrf.mxu2 }
 0xee2   :  { %v2375_v39 = vadd.f32 %v3235_v17, %v2374_v58 }
 0xee4   :  { %v4584_v8 = vadd.f32 %v2375_v39, %v4189_v43 }
 0xee6   :  { %v2394_v7 = vsel %vm69_vm0, %v4584_v8, 0.0 }
 0xee7   :  { %2395 = vadd.xlane.f32.xlu2 %v2394_v7 }
 0xee9   :  { %v2377_v26 = vpop.f32.mrf.mxu2 }
 0xeea   :  { %v2378_v19 = vadd.f32 %v3235_v17, %v2377_v26 }
 0xeec   :  { %v4589_v9 = vadd.f32 %v2378_v19, %v4194_v4 }
 0xeee   :  { %v2397_v61 = vsel %vm69_vm0, %v4589_v9, 0.0 }
 0xeef   :  { %2398 = vadd.xlane.f32.xlu0 %v2397_v61 }
 0xf48   :  { %v2390_v49 = vpop.xlane.xlu0 %2389 }
 0xf49   :  { %v2400_v53 = vmul.f32 %v2390_v49, %v3578_v14 }
 0xf4b   :  { %v2404_v10 = vsub.f32 %v4574_v23, %v2400_v53 }
 0xf4d   :  { %v2408_v43 = vmul.f32 %v2404_v10, %v2404_v10 }
 0xf4f   :  { %v2412_v46 = vsel %vm69_vm0, %v2408_v43, 0.0 }
 0xf50   :  { %2413 = vadd.xlane.f32.xlu1 %v2412_v46 }
 0xf52   :  { %v2393_v45 = vpop.xlane.xlu1 %2392 }
 0xf53   :  { %v2401_v63 = vmul.f32 %v2393_v45, %v3578_v14 }
 0xf55   :  { %v4598_v38 = vsub.f32 %v4579_v15, %v2401_v63 }
 0xf57   :  { %v2409_v4 = vmul.f32 %v4598_v38, %v4598_v38 }
 0xf59   :  { %v2415_v55 = vsel %vm69_vm0, %v2409_v4, 0.0 }
 0xf5a   :  { %2416 = vadd.xlane.f32.xlu2 %v2415_v55  ;;  %v2396_v18 = vpop.xlane.xlu2 %2395 }
 0xf5b   :  { %v2402_v11 = vmul.f32 %v2396_v18, %v3578_v14 }
 0xf5d   :  { %v4605_v13 = vsub.f32 %v4584_v8, %v2402_v11 }
 0xf5f   :  { %v2410_v12 = vmul.f32 %v4605_v13, %v4605_v13 }
 0xf61   :  { %v2418_v50 = vsel %vm69_vm0, %v2410_v12, 0.0 }
 0xf62   :  { %v2399_v44 = vpop.xlane.xlu0 %2398  ;;  %2419 = vadd.xlane.f32.xlu0 %v2418_v50 }
 0xf63   :  { %v2403_v62 = vmul.f32 %v2399_v44, %v3578_v14 }
 0xf65   :  { %v4612_v52 = vsub.f32 %v4589_v9, %v2403_v62 }
 0xf67   :  { %v2411_v40 = vmul.f32 %v4612_v52, %v4612_v52 }
 0xf69   :  { %v2421_v21 = vsel %vm69_vm0, %v2411_v40, 0.0 }
 0xf6a   :  { %2422 = vadd.xlane.f32.xlu1 %v2421_v21 }
 0xfc3   :  { %v2414_v24 = vpop.xlane.xlu1 %2413 }
 0xfc4   :  { %v2424_v31 = vmul.f32 %v2414_v24, %v3578_v14 }
 0xfc6   :  { %v2428_v28 = vadd.f32 1e-05, %v2424_v31  ;;  %v3108_v31 = vld [vmem:[%s4877_s12 + $0xe0] sm:$0xff] }
 0xfc8   :  { %3412 = vrsqrt.f32 %v2428_v28  ;;  %vm2438_vm15 = vweird.f32 %v2428_v28 }
 0xfcd   :  { %v2417_v33 = vpop.xlane.xlu2 %2416 }
 0xfce   :  { %v3413_v30 = vpop.eup %3412  ;;  %v2425_v2 = vmul.f32 %v2417_v33, %v3578_v14  ;;  %v3107_v33 = vld [vmem:[%s4877_s12 + $0xd8] sm:$0xff] }
 0xfcf   :  { %v2433_v29 = vmul.f32 %v3413_v30, %v2428_v28  ;;  %vm2439_vm14 = vweird.f32 %v3413_v30 }
 0xfd0   :  { %v2429_v42 = vadd.f32 1e-05, %v2425_v2  ;;  %vm2440_vm1 = vmor %vm2438_vm15, %vm2439_vm14  ;;  %v3106_v2 = vld [vmem:[%s4877_s12 + $0xd0] sm:$0xff] }
 0xfd1   :  { %v2434_v41 = vmul.f32 %v3413_v30, %v2433_v29 }
 0xfd2   :  { %3414 = vrsqrt.f32 %v2429_v42  ;;  %vm2448_vm3 = vweird.f32 %v2429_v42 }
 0xfd3   :  { %v2435_v37 = vmul.f32 0.5, %v2434_v41 }
 0xfd5   :  { %v2436_v1 = vsub.f32 1.5, %v2435_v37  ;;  %v2420_v20 = vpop.xlane.xlu0 %2419  ;;  %v3104_v37 = vld [vmem:[%s4877_s12 + $0xc0] sm:$0xff] }
 0xfd6   :  { %v2426_v34 = vmul.f32 %v2420_v20, %v3578_v14  ;;  %v3103_v20 = vld [vmem:[%s4877_s12 + $0xb8] sm:$0xff] }
 0xfd7   :  { %v2437_v35 = vmul.f32 %v3413_v30, %v2436_v1 }
 0xfd8   :  { %v3415_v48 = vpop.eup %3414  ;;  %v2430_v51 = vadd.f32 1e-05, %v2426_v34 }
 0xfd9   :  { %v2441_v6 = vsel %vm2440_vm1, %v3413_v30, %v2437_v35  ;;  %v2443_v25 = vmul.f32 %v3415_v48, %v2429_v42  ;;  %vm2449_vm2 = vweird.f32 %v3415_v48  ;;  %v3105_v42 = vld [vmem:[%s4877_s12 + $0xc8] sm:$0xff]  ;;  %v3102_v35 = vld [vmem:[%s4877_s12 + $0xb0] sm:$0xff] }
 0xfda   :  { %v2472_v54 = vmul.f32 %v2441_v6, %v2404_v10  ;;  %3416 = vrsqrt.f32 %v2430_v51  ;;  %vm2450_vm8 = vmor %vm2448_vm3, %vm2449_vm2  ;;  %vm2458_vm10 = vweird.f32 %v2430_v51 }
 0xfdb   :  { %v2444_v56 = vmul.f32 %v3415_v48, %v2443_v25  ;;  %v3100_v25 = vld [vmem:[%s4877_s12 + $0xa0] sm:$0xff] }
 0xfdc   :  { %v2479_v17 = vmul.f32 %v3236_v16, %v2472_v54 }
 0xfdd   :  { %v2445_v57 = vmul.f32 0.5, %v2444_v56  ;;  %v2423_v32 = vpop.xlane.xlu1 %2422 }
 0xfde   :  { %v2427_v47 = vmul.f32 %v2423_v32, %v3578_v14  ;;  %v2486_v59 = vadd.f32 %v3237_v3, %v2479_v17 }
 0xfdf   :  { %v2446_v36 = vsub.f32 1.5, %v2445_v57  ;;  %v3099_v57 = vld [vmem:[%s4877_s12 + $0x98] sm:$0xff] }
 0xfe0   :  { %v3417_v5 = vpop.eup %3416  ;;  %v2431_v58 = vadd.f32 1e-05, %v2427_v47  ;;  %3092 = vmatmul.msk.f32.vlgmr.msra.gmra.mxu1 %vm69_vm0, %v2486_v59 }
 0xfe1   :  { %v2447_v39 = vmul.f32 %v3415_v48, %v2446_v36  ;;  %v2453_v7 = vmul.f32 %v3417_v5, %v2430_v51  ;;  %vm2459_vm9 = vweird.f32 %v3417_v5 }
 0xfe2   :  { %3418 = vrsqrt.f32 %v2431_v58  ;;  %vm2460_vm11 = vmor %vm2458_vm10, %vm2459_vm9  ;;  %vm2468_vm13 = vweird.f32 %v2431_v58 }
 0xfe3   :  { %v2451_v26 = vsel %vm2450_vm8, %v3415_v48, %v2447_v39  ;;  %v2454_v19 = vmul.f32 %v3417_v5, %v2453_v7 }
 0xfe4   :  { %v2473_v61 = vmul.f32 %v2451_v26, %v4598_v38  ;;  %v3097_v26 = vld [vmem:[%s4877_s12 + $0x88] sm:$0xff] }
 0xfe5   :  { %v2455_v49 = vmul.f32 0.5, %v2454_v19  ;;  %v3096_v19 = vld [vmem:[%s4877_s12 + $0x80] sm:$0xff] }
 0xfe6   :  { %v2480_v53 = vmul.f32 %v3236_v16, %v2473_v61 }
 0xfe7   :  { %v2456_v10 = vsub.f32 1.5, %v2455_v49 }
 0xfe8   :  { %v3419_v43 = vpop.eup %3418  ;;  %v2487_v46 = vadd.f32 %v3237_v3, %v2480_v53 }
 0xfe9   :  { %v2457_v45 = vmul.f32 %v3417_v5, %v2456_v10  ;;  %v2463_v63 = vmul.f32 %v3419_v43, %v2431_v58  ;;  %vm2469_vm12 = vweird.f32 %v3419_v43 }
 0xfea   :  { %3093 = vmatmul.msk.f32.gmra.mxu1 %vm69_vm0, %v2487_v46  ;;  %vm2470_vm4 = vmor %vm2468_vm13, %vm2469_vm12 }
 0xfeb   :  { %v2461_v4 = vsel %vm2460_vm11, %v3417_v5, %v2457_v45  ;;  %v2464_v55 = vmul.f32 %v3419_v43, %v2463_v63  ;;  %v3098_v5 = vld [vmem:[%s4877_s12 + $0x90] sm:$0xff] }
 0xfec   :  { %v2474_v18 = vmul.f32 %v2461_v4, %v4605_v13  ;;  %v3111_v13 = vld [vmem:[%s4877_s12 + $0xf8] sm:$0xff] }
 0xfed   :  { %v2465_v11 = vmul.f32 0.5, %v2464_v55  ;;  %2723 = vmatpush.msra.mxu3 %v3111_v13 }
 0xfee   :  { %v2481_v12 = vmul.f32 %v3236_v16, %v2474_v18 }
 0xfef   :  { %v2466_v50 = vsub.f32 1.5, %v2465_v11  ;;  %2724 = vmatpush.msra.mxu3 %v3110_v22 }
 0xff0   :  { %v2488_v38 = vadd.f32 %v3237_v3, %v2481_v12 }
 0xff1   :  { %v2467_v44 = vmul.f32 %v3419_v43, %v2466_v50 }
 0xff2   :  { %3094 = vmatmul.msk.f32.gmra.mxu1 %vm69_vm0, %v2488_v38 }
 0xff3   :  { %v2471_v62 = vsel %vm2470_vm4, %v3419_v43, %v2467_v44 }
 0xff4   :  { %v2475_v40 = vmul.f32 %v2471_v62, %v4612_v52  ;;  %v3109_v52 = vld [vmem:[%s4877_s12 + $0xe8] sm:$0xff] }
 0xff5   :  { %2725 = vmatpush.msra.mxu3 %v3109_v52 }
 0xff6   :  { %v2482_v21 = vmul.f32 %v3236_v16, %v2475_v40  ;;  %v3101_v16 = vld [vmem:[%s4877_s12 + $0xa8] sm:$0xff] }
 0xff7   :  { %2726 = vmatpush.msra.mxu3 %v3108_v31 }
 0xff8   :  { %v2489_v60 = vadd.f32 %v3237_v3, %v2482_v21 }
 0xff9   :  { %2727 = vmatpush.msra.mxu3 %v3107_v33 }
 0xffa   :  { %3095 = vmatmul.msk.f32.gmra.mxu1 %vm69_vm0, %v2489_v60 }
 0xffb   :  { %2728 = vmatpush.msra.mxu3 %v3106_v2 }
 0xffd   :  { %2729 = vmatpush.msra.mxu3 %v3105_v42 }
 0xfff   :  { %2730 = vmatpush.msra.mxu3 %v3104_v37 }
0x1001   :  { %2731 = vmatpush.msra.mxu3 %v3103_v20 }
0x1003   :  { %2732 = vmatpush.msra.mxu3 %v3102_v35 }
0x1005   :  { %2733 = vmatpush.msra.mxu3 %v3101_v16 }
0x1007   :  { %2734 = vmatpush.msra.mxu3 %v3100_v25 }
0x1009   :  { %2735 = vmatpush.msra.mxu3 %v3099_v57 }
0x100b   :  { %2736 = vmatpush.msra.mxu3 %v3098_v5 }
0x100d   :  { %2737 = vmatpush.msra.mxu3 %v3097_v26 }
0x100f   :  { %2738 = vmatpush.msra.mxu3 %v3096_v19 }
0x105d   :  { %v2529_v27 = vpop.f32.mrf.mxu1 }
0x105e   :  { %v4661_v24 = vadd.f32 %v4652_v0, %v2529_v27 }
0x1060   :  { %v4667_v28 = vmul.f32 0.70710677, %v4661_v24 }
0x1062   :  { %v2549_v30 = vand.u32 2147483647, %v4667_v28  ;;  %vm2681_vm13 = vcmp.ge.f32.partialorder %v4667_v28, 0.0 }
0x1064   :  { %v2553_v29 = vmul.f32 0.3275911, %v2549_v30  ;;  %v2657_v53 = vsub.f32 0.0, %v2549_v30 }
0x1066   :  { %v2557_v41 = vadd.f32 1.0, %v2553_v29  ;;  %v2661_v11 = vmul.f32 %v2657_v53, %v2549_v30 }
0x1067   :  { %v2532_v1 = vpop.f32.mrf.mxu1 }
0x1068   :  { %3420 = vrcp.f32 %v2557_v41  ;;  %v4686_v34 = vadd.f32 %v4652_v0, %v2532_v1  ;;  %v2572_v59 = vand.u32 2147483648, %v2557_v41  ;;  %v2570_v39 = vand.u32 2147483647, %v2557_v41 }
0x1069   :  { %vm2566_vm6 = vweird.f32 %v2557_v41  ;;  %v2665_v21 = vmul.f32 1.442695, %v2661_v11 }
0x106a   :  { %v4692_v48 = vmul.f32 0.70710677, %v4686_v34  ;;  %v2573_v49 = vor.u32 1.1754944e-38, %v2572_v59  ;;  %vm2571_vm14 = vcmp.eq.f32.partialorder %v2570_v39, 8.507059e+37 }
0x106c   :  { %v4698_v51 = vand.u32 2147483647, %v4692_v48 }
0x106e   :  { %v3421_v6 = vpop.eup %3420  ;;  %v2554_v3 = vmul.f32 0.3275911, %v4698_v51  ;;  %v2658_v1 = vsub.f32 0.0, %v4698_v51 }
0x106f   :  { %v2562_v54 = vmul.f32 %v3421_v6, %v2557_v41  ;;  %v2535_v56 = vpop.f32.mrf.mxu1  ;;  %vm2567_vm5 = vweird.f32 %v3421_v6 }
0x1070   :  { %v4705_v17 = vadd.f32 %v4652_v0, %v2535_v56  ;;  %v2558_v47 = vadd.f32 1.0, %v2554_v3  ;;  %vm2568_vm7 = vmor %vm2566_vm6, %vm2567_vm5 }
0x1071   :  { %v2563_v32 = vsub.f32 1.0, %v2562_v54 }
0x1072   :  { %v4711_v36 = vmul.f32 0.70710677, %v4705_v17  ;;  %3422 = vrcp.f32 %v2558_v47  ;;  %v2587_v13 = vand.u32 2147483648, %v2558_v47  ;;  %v2585_v52 = vand.u32 2147483647, %v2558_v47 }
0x1073   :  { %v2564_v58 = vmul.f32 %v3421_v6, %v2563_v32  ;;  %vm2581_vm1 = vweird.f32 %v2558_v47 }
0x1074   :  { %v4717_v7 = vand.u32 2147483647, %v4711_v36  ;;  %v2588_v42 = vor.u32 1.1754944e-38, %v2587_v13  ;;  %vm2586_vm3 = vcmp.eq.f32.partialorder %v2585_v52, 8.507059e+37 }
0x1075   :  { %v2565_v61 = vadd.f32 %v3421_v6, %v2564_v58 }
0x1076   :  { %v2555_v10 = vmul.f32 0.3275911, %v4717_v7  ;;  %v2659_v19 = vsub.f32 0.0, %v4717_v7 }
0x1077   :  { %v2569_v43 = vsel %vm2568_vm7, %v3421_v6, %v2565_v61  ;;  %v2538_v46 = vpop.f32.mrf.mxu1  ;;  %vm2682_vm7 = vcmp.ge.f32.partialorder %v4692_v48, 0.0 }
0x1078   :  { %v2574_v45 = vsel %vm2571_vm14, %v2573_v49, %v2569_v43  ;;  %v2559_v63 = vadd.f32 1.0, %v2555_v10  ;;  %v4727_v4 = vadd.f32 %v4652_v0, %v2538_v46  ;;  %v3423_v55 = vpop.eup %3422  ;;  %vm2683_vm14 = vcmp.ge.f32.partialorder %v4711_v36, 0.0 }
0x1079   :  { %v2621_v18 = vmul.f32 1.0614054, %v2574_v45  ;;  %v2577_v12 = vmul.f32 %v3423_v55, %v2558_v47  ;;  %vm2582_vm15 = vweird.f32 %v3423_v55  ;;  %v2662_v47 = vmul.f32 %v2658_v1, %v4698_v51 }
0x107a   :  { %3424 = vrcp.f32 %v2559_v63  ;;  %v4730_v38 = vmul.f32 0.70710677, %v4727_v4  ;;  %vm2583_vm2 = vmor %vm2581_vm1, %vm2582_vm15  ;;  %v2600_v35 = vand.u32 2147483647, %v2559_v63  ;;  %v2602_v16 = vand.u32 2147483648, %v2559_v63 }
0x107b   :  { %v2625_v50 = vadd.f32 -1.4531521, %v2621_v18  ;;  %v2578_v44 = vsub.f32 1.0, %v2577_v12  ;;  %3426 = vpow2.f32 %v2665_v21  ;;  %vm2596_vm9 = vweird.f32 %v2559_v63 }
0x107c   :  { %v4733_v40 = vand.u32 2147483647, %v4730_v38  ;;  %v2603_v59 = vor.u32 1.1754944e-38, %v2602_v16  ;;  %vm2601_vm11 = vcmp.eq.f32.partialorder %v2600_v35, 8.507059e+37  ;;  %v2667_v46 = vmul.f32 1.442695, %v2662_v47 }
0x107d   :  { %v2629_v62 = vmul.f32 %v2625_v50, %v2574_v45  ;;  %v2579_v60 = vmul.f32 %v3423_v55, %v2578_v44  ;;  %v2541_v44 = vmul.f32 0.5, %v4661_v24  ;;  %vm2684_vm15 = vcmp.ge.f32.partialorder %v4730_v38, 0.0 }
0x107e   :  { %v2556_v22 = vmul.f32 0.3275911, %v4733_v40  ;;  %v2660_v24 = vsub.f32 0.0, %v4733_v40 }
0x107f   :  { %v2633_v0 = vadd.f32 1.4214138, %v2629_v62  ;;  %v2580_v31 = vadd.f32 %v3423_v55, %v2579_v60 }
0x1080   :  { %v3425_v27 = vpop.eup %3424  ;;  %v4736_v2 = vadd.f32 1.0, %v2556_v22  ;;  %v2664_v16 = vmul.f32 %v2660_v24, %v4733_v40 }
0x1081   :  { %v2637_v33 = vmul.f32 %v2633_v0, %v2574_v45  ;;  %v2592_v30 = vmul.f32 %v3425_v27, %v2559_v63  ;;  %v2584_v29 = vsel %vm2583_vm2, %v3423_v55, %v2580_v31  ;;  %vm2597_vm8 = vweird.f32 %v3425_v27  ;;  %v3427_v32 = vpop.eup %3426 }
0x1082   :  { %3428 = vrcp.f32 %v4736_v2  ;;  %v2589_v20 = vsel %vm2586_vm3, %v2588_v42, %v2584_v29  ;;  %vm2598_vm10 = vmor %vm2596_vm9, %vm2597_vm8  ;;  %v2617_v51 = vand.u32 2147483648, %v4736_v2  ;;  %v2615_v50 = vand.u32 2147483647, %v4736_v2 }
0x1083   :  { %v2641_v41 = vadd.f32 -0.28449672, %v2637_v33  ;;  %v2593_v37 = vsub.f32 1.0, %v2592_v30  ;;  %v2622_v54 = vmul.f32 1.0614054, %v2589_v20  ;;  %3430 = vpow2.f32 %v2667_v46 }
0x1084   :  { %vm2611_vm4 = vweird.f32 %v4736_v2  ;;  %v2618_v22 = vor.u32 1.1754944e-38, %v2617_v51  ;;  %vm2616_vm6 = vcmp.eq.f32.partialorder %v2615_v50, 8.507059e+37  ;;  %v2544_v50 = vmul.f32 0.5, %v4727_v4 }
0x1085   :  { %v2645_v6 = vmul.f32 %v2641_v41, %v2574_v45  ;;  %v2594_v25 = vmul.f32 %v3425_v27, %v2593_v37  ;;  %v2626_v56 = vadd.f32 -1.4531521, %v2622_v54 }
0x1087   :  { %v2649_v3 = vadd.f32 0.2548296, %v2645_v6  ;;  %v2595_v57 = vadd.f32 %v3425_v27, %v2594_v25  ;;  %v2630_v39 = vmul.f32 %v2626_v56, %v2589_v20 }
0x1088   :  { %v3429_v5 = vpop.eup %3428 }
0x1089   :  { %v2653_v58 = vmul.f32 %v2649_v3, %v2574_v45  ;;  %v2599_v26 = vsel %vm2598_vm10, %v3425_v27, %v2595_v57  ;;  %v2607_v61 = vmul.f32 %v3429_v5, %v4736_v2  ;;  %v2634_v10 = vadd.f32 1.4214138, %v2630_v39  ;;  %v3431_v2 = vpop.eup %3430 }
0x108a   :  { %v2604_v49 = vsel %vm2601_vm11, %v2603_v59, %v2599_v26  ;;  %v2663_v45 = vmul.f32 %v2659_v19, %v4717_v7  ;;  %vm2612_vm12 = vweird.f32 %v3429_v5  ;;  %v2542_v26 = vmul.f32 0.5, %v4686_v34 }
0x108b   :  { %v2673_v53 = vmul.f32 %v3427_v32, %v2653_v58  ;;  %v2623_v43 = vmul.f32 1.0614054, %v2604_v49  ;;  %v2608_v63 = vsub.f32 1.0, %v2607_v61  ;;  %v2638_v18 = vmul.f32 %v2634_v10, %v2589_v20  ;;  %vm2613_vm5 = vmor %vm2611_vm4, %vm2612_vm12 }
0x108c   :  { %v2669_v31 = vmul.f32 1.442695, %v2663_v45  ;;  %v2671_v32 = vmul.f32 1.442695, %v2664_v16 }
0x108d   :  { %v2677_v55 = vsub.f32 1.0, %v2673_v53  ;;  %v2627_v11 = vadd.f32 -1.4531521, %v2623_v43  ;;  %v2609_v12 = vmul.f32 %v3429_v5, %v2608_v63  ;;  %v2642_v21 = vadd.f32 -0.28449672, %v2638_v18 }
0x108e   :  { %3432 = vpow2.f32 %v2669_v31  ;;  %v2543_v63 = vmul.f32 0.5, %v4705_v17  ;;  %v3239_v17 = vld [vmem:[%s4876_s13 + $0x1] ss:$0 sm:$0xff] }
0x108f   :  { %v2685_v62 = vsub.f32 0.0, %v2677_v55  ;;  %v2631_v60 = vmul.f32 %v2627_v11, %v2604_v49  ;;  %v2610_v13 = vadd.f32 %v3429_v5, %v2609_v12  ;;  %v2646_v52 = vmul.f32 %v2642_v21, %v2589_v20 }
0x1090   :  { %3434 = vpow2.f32 %v2671_v32 }
0x1091   :  { %v2689_v0 = vsel %vm2681_vm13, %v2677_v55, %v2685_v62  ;;  %v2635_v7 = vadd.f32 1.4214138, %v2631_v60  ;;  %v2614_v33 = vsel %vm2613_vm5, %v3429_v5, %v2610_v13  ;;  %v2650_v30 = vadd.f32 0.2548296, %v2646_v52 }
0x1092   :  { %v2693_v27 = vadd.f32 1.0, %v2689_v0  ;;  %v2619_v42 = vsel %vm2616_vm6, %v2618_v22, %v2614_v33 }
0x1093   :  { %v2639_v29 = vmul.f32 %v2635_v7, %v2604_v49  ;;  %v2624_v28 = vmul.f32 1.0614054, %v2619_v42  ;;  %v2654_v37 = vmul.f32 %v2650_v30, %v2589_v20 }
0x1094   :  { %v2697_v41 = vmul.f32 %v2693_v27, %v2541_v44  ;;  %v3433_v5 = vpop.eup %3432 }
0x1095   :  { %v2643_v1 = vadd.f32 -0.28449672, %v2639_v29  ;;  %v2628_v35 = vadd.f32 -1.4531521, %v2624_v28  ;;  %v2674_v6 = vmul.f32 %v3431_v2, %v2654_v37 }
0x1096   :  { %2739 = vmatmul.f32.vlgmr.msra.gmra.mxu3 %v2697_v41  ;;  %v3435_v51 = vpop.eup %3434 }
0x1097   :  { %v2647_v25 = vmul.f32 %v2643_v1, %v2604_v49  ;;  %v2632_v54 = vmul.f32 %v2628_v35, %v2619_v42  ;;  %v2678_v3 = vsub.f32 1.0, %v2674_v6 }
0x1099   :  { %v2651_v56 = vadd.f32 0.2548296, %v2647_v25  ;;  %v2636_v57 = vadd.f32 1.4214138, %v2632_v54  ;;  %v2686_v47 = vsub.f32 0.0, %v2678_v3 }
0x109b   :  { %v2655_v59 = vmul.f32 %v2651_v56, %v2604_v49  ;;  %v2640_v20 = vmul.f32 %v2636_v57, %v2619_v42  ;;  %v2690_v58 = vsel %vm2682_vm7, %v2678_v3, %v2686_v47  ;;  %vm2945_vm7 = vcmask 523264  }
0x109c   :  { %v2694_v19 = vadd.f32 1.0, %v2690_v58  ;;  %v2864_v58 = vld [vmem:[%s4880_s16 + $0x20] sm:$0xff] }
0x109d   :  { %v2675_v39 = vmul.f32 %v3433_v5, %v2655_v59  ;;  %v2644_v61 = vadd.f32 -0.28449672, %v2640_v20  ;;  %v2867_v59 = vld [vmem:[%s4880_s16 + $0x38] sm:$0xff]  ;;  %v2866_v5 = vld [vmem:[%s4880_s16 + $0x30] sm:$0xff]  ;;  %v2865_v20 = vld [vmem:[%s4880_s16 + $0x28] sm:$0xff] }
0x109e   :  { %v2698_v53 = vmul.f32 %v2694_v19, %v2542_v26  ;;  %2927 = vmatpush.msra.mxu2 %v2867_v59  ;;  %2898 = vmatpush.msra.mxu0 %v2866_v5  ;;  %v2863_v26 = vld [vmem:[%s4880_s16 + $0x18] sm:$0xff]  ;;  %v2860_v19 = vld [vmem:[%s4880_s16] sm:$0xff] }
0x109f   :  { %v2679_v40 = vsub.f32 1.0, %v2675_v39  ;;  %v2648_v10 = vmul.f32 %v2644_v61, %v2619_v42  ;;  %v2862_v39 = vld [vmem:[%s4880_s16 + $0x10] sm:$0xff]  ;;  %v2861_v61 = vld [vmem:[%s4880_s16 + $0x8] sm:$0xff] }
0x10a0   :  { %2742 = vmatmul.f32.gmra.mxu3 %v2698_v53  ;;  %2928 = vmatpush.msra.mxu2 %v2865_v20 }
0x10a1   :  { %v2687_v43 = vsub.f32 0.0, %v2679_v40  ;;  %v2652_v46 = vadd.f32 0.2548296, %v2648_v10  ;;  %2899 = vmatpush.msra.mxu0 %v2864_v58 }
0x10a2   :  { %2929 = vmatpush.msra.mxu2 %v2863_v26 }
0x10a3   :  { %v2691_v49 = vsel %vm2683_vm14, %v2679_v40, %v2687_v43  ;;  %v2656_v55 = vmul.f32 %v2652_v46, %v2619_v42  ;;  %2900 = vmatpush.msra.mxu0 %v2862_v39 }
0x10a4   :  { %v2695_v48 = vadd.f32 1.0, %v2691_v49  ;;  %2930 = vmatpush.msra.mxu2 %v2861_v61 }
0x10a5   :  { %v2676_v11 = vmul.f32 %v3435_v51, %v2656_v55  ;;  %2901 = vmatpush.msra.mxu0 %v2860_v19 }
0x10a6   :  { %v2699_v18 = vmul.f32 %v2695_v48, %v2543_v63 }
0x10a7   :  { %v2680_v34 = vsub.f32 1.0, %v2676_v11 }
0x10a8   :  { %2745 = vmatmul.f32.gmra.mxu3 %v2699_v18 }
0x10a9   :  { %v2688_v45 = vsub.f32 0.0, %v2680_v34 }
0x10ab   :  { %v2692_v12 = vsel %vm2684_vm15, %v2680_v34, %v2688_v45  ;;  %v3240_v45 = vld [vmem:[%s4878_s14] ss:$0 sm:$0xff] }
0x10ac   :  { %v2696_v44 = vadd.f32 1.0, %v2692_v12 }
0x10ae   :  { %v2700_v36 = vmul.f32 %v2696_v44, %v2544_v50 }
0x10b0   :  { %2748 = vmatmul.f32.gmra.mxu3 %v2700_v36 }
0x1119   :  { %v2740_v62 = vpop.f32.mrf.mxu3 }
0x111a   :  { %v2741_v21 = vadd.f32 %v3239_v17, %v2740_v62  ;;  %v3241_v62 = vld [vmem:[%s4879_s15] ss:$0 sm:$0xff] }
0x111c   :  { %v2752_v60 = vadd.f32 %v2741_v21, %v4574_v23 }
0x111e   :  { %v2758_v13 = vsel %vm69_vm0, %v2752_v60, 0.0 }
0x111f   :  { %2759 = vadd.xlane.f32.xlu2 %v2758_v13 }
0x1123   :  { %v2743_v0 = vpop.f32.mrf.mxu3 }
0x1124   :  { %v2744_v22 = vadd.f32 %v3239_v17, %v2743_v0 }
0x1126   :  { %v2753_v38 = vadd.f32 %v2744_v22, %v4579_v15 }
0x1128   :  { %v2761_v4 = vsel %vm69_vm0, %v2753_v38, 0.0 }
0x1129   :  { %2762 = vadd.xlane.f32.xlu0 %v2761_v4 }
0x112b   :  { %v2746_v52 = vpop.f32.mrf.mxu3 }
0x112c   :  { %v2747_v7 = vadd.f32 %v3239_v17, %v2746_v52 }
0x112e   :  { %v2754_v27 = vadd.f32 %v2747_v7, %v4584_v8 }
0x1130   :  { %v2764_v31 = vsel %vm69_vm0, %v2754_v27, 0.0 }
0x1131   :  { %2765 = vadd.xlane.f32.xlu1 %v2764_v31 }
0x1133   :  { %v2749_v33 = vpop.f32.mrf.mxu3 }
0x1134   :  { %v2750_v24 = vadd.f32 %v3239_v17, %v2749_v33 }
0x1136   :  { %v2755_v23 = vadd.f32 %v2750_v24, %v4589_v9 }
0x1138   :  { %v2767_v30 = vsel %vm69_vm0, %v2755_v23, 0.0 }
0x1139   :  { %2768 = vadd.xlane.f32.xlu2 %v2767_v30 }
0x1192   :  { %v2760_v29 = vpop.xlane.xlu2 %2759 }
0x1193   :  { %v2770_v15 = vmul.f32 %v2760_v29, %v3578_v14 }
0x1195   :  { %v2774_v42 = vsub.f32 %v2752_v60, %v2770_v15 }
0x1197   :  { %v2778_v41 = vmul.f32 %v2774_v42, %v2774_v42 }
0x1199   :  { %v2782_v28 = vsel %vm69_vm0, %v2778_v41, 0.0 }
0x119a   :  { %2783 = vadd.xlane.f32.xlu0 %v2782_v28 }
0x119c   :  { %v2763_v37 = vpop.xlane.xlu0 %2762 }
0x119d   :  { %v2771_v8 = vmul.f32 %v2763_v37, %v3578_v14 }
0x119f   :  { %v4771_v1 = vsub.f32 %v2753_v38, %v2771_v8 }
0x11a1   :  { %v2779_v2 = vmul.f32 %v4771_v1, %v4771_v1 }
0x11a3   :  { %v2785_v9 = vsel %vm69_vm0, %v2779_v2, 0.0 }
0x11a4   :  { %v2766_v35 = vpop.xlane.xlu1 %2765  ;;  %2786 = vadd.xlane.f32.xlu1 %v2785_v9 }
0x11a5   :  { %v2772_v16 = vmul.f32 %v2766_v35, %v3578_v14 }
0x11a7   :  { %v4777_v6 = vsub.f32 %v2754_v27, %v2772_v16 }
0x11a9   :  { %v2780_v25 = vmul.f32 %v4777_v6, %v4777_v6 }
0x11ab   :  { %v2788_v54 = vsel %vm69_vm0, %v2780_v25, 0.0 }
0x11ac   :  { %2789 = vadd.xlane.f32.xlu2 %v2788_v54  ;;  %v2769_v3 = vpop.xlane.xlu2 %2768 }
0x11ad   :  { %v2773_v56 = vmul.f32 %v2769_v3, %v3578_v14 }
0x11af   :  { %v4783_v57 = vsub.f32 %v2755_v23, %v2773_v56 }
0x11b1   :  { %v2781_v32 = vmul.f32 %v4783_v57, %v4783_v57 }
0x11b3   :  { %v2791_v47 = vsel %vm69_vm0, %v2781_v32, 0.0 }
0x11b4   :  { %2792 = vadd.xlane.f32.xlu0 %v2791_v47 }
0x120d   :  { %v2784_v40 = vpop.xlane.xlu0 %2783 }
0x120e   :  { %v2794_v53 = vmul.f32 %v2784_v40, %v3578_v14 }
0x1210   :  { %v2798_v10 = vadd.f32 1e-05, %v2794_v53 }
0x1212   :  { %3436 = vrsqrt.f32 %v2798_v10  ;;  %vm2808_vm2 = vweird.f32 %v2798_v10 }
0x1217   :  { %v2787_v49 = vpop.xlane.xlu1 %2786 }
0x1218   :  { %v3437_v43 = vpop.eup %3436  ;;  %v2795_v63 = vmul.f32 %v2787_v49, %v3578_v14 }
0x1219   :  { %v2803_v46 = vmul.f32 %v3437_v43, %v2798_v10  ;;  %vm2809_vm1 = vweird.f32 %v3437_v43 }
0x121a   :  { %v2799_v55 = vadd.f32 1e-05, %v2795_v63  ;;  %vm2810_vm3 = vmor %vm2808_vm2, %vm2809_vm1 }
0x121b   :  { %v2804_v48 = vmul.f32 %v3437_v43, %v2803_v46 }
0x121c   :  { %3438 = vrsqrt.f32 %v2799_v55  ;;  %vm2818_vm9 = vweird.f32 %v2799_v55 }
0x121d   :  { %v2805_v51 = vmul.f32 0.5, %v2804_v48 }
0x121f   :  { %v2806_v18 = vsub.f32 1.5, %v2805_v51  ;;  %v2790_v34 = vpop.xlane.xlu2 %2789 }
0x1220   :  { %v2796_v12 = vmul.f32 %v2790_v34, %v3578_v14 }
0x1221   :  { %v2807_v11 = vmul.f32 %v3437_v43, %v2806_v18 }
0x1222   :  { %v3439_v44 = vpop.eup %3438  ;;  %v2800_v17 = vadd.f32 1e-05, %v2796_v12 }
0x1223   :  { %v2811_v50 = vsel %vm2810_vm3, %v3437_v43, %v2807_v11  ;;  %v2813_v21 = vmul.f32 %v3439_v44, %v2799_v55  ;;  %vm2819_vm8 = vweird.f32 %v3439_v44 }
0x1224   :  { %v2842_v36 = vmul.f32 %v2811_v50, %v2774_v42  ;;  %3440 = vrsqrt.f32 %v2800_v17  ;;  %vm2820_vm10 = vmor %vm2818_vm9, %vm2819_vm8  ;;  %vm2828_vm12 = vweird.f32 %v2800_v17 }
0x1225   :  { %v2814_v13 = vmul.f32 %v3439_v44, %v2813_v21 }
0x1226   :  { %v2849_v60 = vmul.f32 %v3240_v45, %v2842_v36 }
0x1227   :  { %v2815_v22 = vmul.f32 0.5, %v2814_v13  ;;  %v2793_v38 = vpop.xlane.xlu0 %2792 }
0x1228   :  { %v2856_v0 = vadd.f32 %v3241_v62, %v2849_v60  ;;  %v2797_v4 = vmul.f32 %v2793_v38, %v3578_v14 }
0x1229   :  { %v2816_v52 = vsub.f32 1.5, %v2815_v22 }
0x122a   :  { %3113 = vmatmul.msk.f32.vlgmr.msra.gmra.mxu0 %vm69_vm0, %v2856_v0  ;;  %3117 = vmatmul.msk.f32.vlgmr.msra.gmra.mxu2 %vm69_vm0, %v2856_v0  ;;  %v3441_v7 = vpop.eup %3440  ;;  %v2801_v27 = vadd.f32 1e-05, %v2797_v4 }
0x122b   :  { %v2817_v31 = vmul.f32 %v3439_v44, %v2816_v52  ;;  %v2823_v33 = vmul.f32 %v3441_v7, %v2800_v17  ;;  %vm2829_vm11 = vweird.f32 %v3441_v7 }
0x122c   :  { %3442 = vrsqrt.f32 %v2801_v27  ;;  %vm2830_vm13 = vmor %vm2828_vm12, %vm2829_vm11  ;;  %vm2838_vm5 = vweird.f32 %v2801_v27 }
0x122d   :  { %v2821_v24 = vsel %vm2820_vm10, %v3439_v44, %v2817_v31  ;;  %v2824_v23 = vmul.f32 %v3441_v7, %v2823_v33 }
0x122e   :  { %v2843_v30 = vmul.f32 %v2821_v24, %v4771_v1 }
0x122f   :  { %v2825_v29 = vmul.f32 0.5, %v2824_v23 }
0x1230   :  { %v2850_v15 = vmul.f32 %v3240_v45, %v2843_v30 }
0x1231   :  { %v2826_v14 = vsub.f32 1.5, %v2825_v29 }
0x1232   :  { %v3443_v42 = vpop.eup %3442  ;;  %v2857_v41 = vadd.f32 %v3241_v62, %v2850_v15 }
0x1233   :  { %v2827_v28 = vmul.f32 %v3441_v7, %v2826_v14  ;;  %v2833_v37 = vmul.f32 %v3443_v42, %v2801_v27  ;;  %vm2839_vm4 = vweird.f32 %v3443_v42 }
0x1234   :  { %3114 = vmatmul.msk.f32.gmra.mxu0 %vm69_vm0, %v2857_v41  ;;  %3118 = vmatmul.msk.f32.gmra.mxu2 %vm69_vm0, %v2857_v41  ;;  %vm2840_vm6 = vmor %vm2838_vm5, %vm2839_vm4 }
0x1235   :  { %v2831_v8 = vsel %vm2830_vm13, %v3441_v7, %v2827_v28  ;;  %v2834_v2 = vmul.f32 %v3443_v42, %v2833_v37 }
0x1236   :  { %v2844_v9 = vmul.f32 %v2831_v8, %v4777_v6  ;;  %v2868_v6 = vld [vmem:[%s4881_s17] sm:$0x3] }
0x1237   :  { %v2835_v35 = vmul.f32 0.5, %v2834_v2  ;;  %v2870_v59 = vperm.slane %v2868_v6, 0  ;;  %v2871_v58 = vperm.slane %v2868_v6, 1 }
0x1238   :  { %v2851_v1 = vmul.f32 %v3240_v45, %v2844_v9 }
0x1239   :  { %v2836_v16 = vsub.f32 1.5, %v2835_v35 }
0x123a   :  { %v2858_v25 = vadd.f32 %v3241_v62, %v2851_v1 }
0x123b   :  { %v2837_v54 = vmul.f32 %v3443_v42, %v2836_v16 }
0x123c   :  { %3115 = vmatmul.msk.f32.gmra.mxu0 %vm69_vm0, %v2858_v25  ;;  %3119 = vmatmul.msk.f32.gmra.mxu2 %vm69_vm0, %v2858_v25 }
0x123d   :  { %v2841_v3 = vsel %vm2840_vm6, %v3443_v42, %v2837_v54 }
0x123e   :  { %v2845_v56 = vmul.f32 %v2841_v3, %v4783_v57 }
0x1240   :  { %v2852_v32 = vmul.f32 %v3240_v45, %v2845_v56 }
0x1242   :  { %v2859_v47 = vadd.f32 %v3241_v62, %v2852_v32 }
0x1244   :  { %3116 = vmatmul.msk.f32.gmra.mxu0 %vm69_vm0, %v2859_v47  ;;  %3120 = vmatmul.msk.f32.gmra.mxu2 %vm69_vm0, %v2859_v47 }
0x12a7   :  { %v2903_v5 = vpop.f32.mrf.mxu0 }
0x12a8   :  { %v2904_v20 = vadd.f32 %v2903_v5, %v2870_v59 }
0x12aa   :  { %2944 = vst [vmem:[%s4882_s18] sm:$0xff] %v2904_v20 }
0x12ad   :  { %v2932_v39 = vpop.f32.mrf.mxu2 }
0x12ae   :  { %v2933_v57 = vadd.f32 %v2932_v39, %v2871_v58 }
0x12b0   :  { %2946 = vst.msk [vmem:[%s4882_s18 + $0x8] sm:$0xff] %vm2945_vm7, %v2933_v57 }
0x12b1   :  { %v2906_v26 = vpop.f32.mrf.mxu0 }
0x12b2   :  { %v2907_v19 = vadd.f32 %v2906_v26, %v2870_v59 }
0x12b4   :  { %2947 = vst [vmem:[%s4882_s18 + $0x10] sm:$0xff] %v2907_v19 }
0x12b7   :  { %v2935_v61 = vpop.f32.mrf.mxu2 }
0x12b8   :  { %v2936_v40 = vadd.f32 %v2935_v61, %v2871_v58 }
0x12b9   :  { %v2909_v53 = vpop.f32.mrf.mxu0 }
0x12ba   :  { %2948 = vst.msk [vmem:[%s4882_s18 + $0x18] sm:$0xff] %vm2945_vm7, %v2936_v40  ;;  %v2910_v10 = vadd.f32 %v2909_v53, %v2870_v59 }
0x12bc   :  { %2949 = vst [vmem:[%s4882_s18 + $0x20] sm:$0xff] %v2910_v10 }
0x12bf   :  { %v2938_v43 = vpop.f32.mrf.mxu2 }
0x12c0   :  { %v2939_v46 = vadd.f32 %v2938_v43, %v2871_v58 }
0x12c1   :  { %v2912_v49 = vpop.f32.mrf.mxu0 }
0x12c2   :  { %2950 = vst.msk [vmem:[%s4882_s18 + $0x28] sm:$0xff] %vm2945_vm7, %v2939_v46  ;;  %v2913_v63 = vadd.f32 %v2912_v49, %v2870_v59 }
0x12c4   :  { %2951 = vst [vmem:[%s4882_s18 + $0x30] sm:$0xff] %v2913_v63 }
0x12c7   :  { %v2941_v48 = vpop.f32.mrf.mxu2 }
0x12c8   :  { %v2942_v55 = vadd.f32 %v2941_v48, %v2871_v58 }
0x12ca   :  { %2952 = vst.msk [vmem:[%s4882_s18 + $0x38] sm:$0xff] %vm2945_vm7, %v2942_v55 }

// kernel: mae_forward.5
= control target key start
LH: loop header
LB: loop body
LE: loop exit
PB: predicated region body
PF: predicated region fallthrough
CT: control target
= control target key end

     0   :  { %10 = vsyncpa [#allocation3], 0  ;;  %vm50_vm0 = vcmask 523264   ;;  %s295_s0 = inlined_call_operand.vmem [shape: f32[32,192], index: 0, kind: input, shape index: {}]   ;;  %s296_s1 = inlined_call_operand.vmem [shape: f32[32,192], index: 1, kind: input, shape index: {}]   ;;  %s297_s2 = inlined_call_operand.vmem [shape: f32[32,1], index: 2, kind: input, shape index: {}]   ;;  %s298_s3 = inlined_call_operand.hbm [shape: f32[1,1], index: 3, kind: output, shape index: {0}]   ;;  %s299_s4 = inlined_call_operand.hbm [shape: f32[1,1], index: 4, kind: output, shape index: {1}]  }
   0x1   :  { %v18_v0 = vld [vmem:[%s295_s0] sm:$0xff]  ;;  %v19_v1 = vld [vmem:[%s295_s0 + $0x8] sm:$0xff]  ;;  %v20_v10 = vld [vmem:[%s295_s0 + $0x10] sm:$0xff] }
   0x2   :  { %v26_v2 = vld [vmem:[%s296_s1] sm:$0xff]  ;;  %v27_v3 = vld [vmem:[%s296_s1 + $0x8] sm:$0xff]  ;;  %v21_v14 = vld [vmem:[%s295_s0 + $0x18] sm:$0xff] }
   0x3   :  { %v34_v4 = vsub.f32 %v18_v0, %v26_v2  ;;  %v22_v5 = vld [vmem:[%s295_s0 + $0x20] sm:$0xff]  ;;  %v23_v6 = vld [vmem:[%s295_s0 + $0x28] sm:$0xff]  ;;  %v35_v7 = vsub.f32 %v19_v1, %v27_v3  ;;  %v28_v15 = vld [vmem:[%s296_s1 + $0x10] sm:$0xff] }
   0x4   :  { %v30_v8 = vld [vmem:[%s296_s1 + $0x20] sm:$0xff]  ;;  %v31_v9 = vld [vmem:[%s296_s1 + $0x28] sm:$0xff]  ;;  %v29_v16 = vld [vmem:[%s296_s1 + $0x18] sm:$0xff]  ;;  %v36_v24 = vsub.f32 %v20_v10, %v28_v15 }
   0x5   :  { %v42_v11 = vmul.f32 %v34_v4, %v34_v4  ;;  %v38_v12 = vsub.f32 %v22_v5, %v30_v8  ;;  %v39_v13 = vsub.f32 %v23_v6, %v31_v9  ;;  %v43_v17 = vmul.f32 %v35_v7, %v35_v7  ;;  %v24_v19 = vld [vmem:[%s295_s0 + $0x30] sm:$0xff]  ;;  %v25_v20 = vld [vmem:[%s295_s0 + $0x38] sm:$0xff] }
   0x6   :  { %v37_v18 = vsub.f32 %v21_v14, %v29_v16  ;;  %v32_v21 = vld [vmem:[%s296_s1 + $0x30] sm:$0xff]  ;;  %v33_v25 = vld [vmem:[%s296_s1 + $0x38] sm:$0xff] }
   0x7   :  { %v46_v22 = vmul.f32 %v38_v12, %v38_v12  ;;  %v47_v23 = vmul.f32 %v39_v13, %v39_v13 }
   0x8   :  { %11 = vsyncpa [#allocation5], 0  ;;  %v51_v26 = vsel %vm50_vm0, %v43_v17, 0.0  ;;  %v45_v27 = vmul.f32 %v37_v18, %v37_v18  ;;  %v40_v28 = vsub.f32 %v24_v19, %v32_v21  ;;  %v41_v29 = vsub.f32 %v25_v20, %v33_v25  ;;  %v78_v50 = vld [vmem:[%s297_s2] sm:$0xff]  ;;  %v80_v52 = vld [vmem:[%s297_s2 + $0x10] sm:$0xff]  ;;  %s128_s28 = sshll.u32 %s298_s3, 4  ;;  %s129_s28 = int_to_ptr.hbm [resolvable:$true] %s128_s28 }
   0x9   :  { %v52_v30 = vadd.f32 %v51_v26, %v42_v11  ;;  %v59_v31 = vsel %vm50_vm0, %v47_v23, 0.0  ;;  %v44_v34 = vmul.f32 %v36_v24, %v36_v24  ;;  %v189_v40 = vmov 192.0   ;;  %v79_v53 = vld [vmem:[%s297_s2 + $0x8] sm:$0xff]  ;;  %v81_v57 = vld [vmem:[%s297_s2 + $0x18] sm:$0xff]  ;;  %s190_s30 = smov [#allocation2]   ;;  %s137_s7 = sshll.u32 %s299_s4, 4  ;;  %s138_s7 = int_to_ptr.hbm [resolvable:$true] %s137_s7 }
   0xa   :  { %v60_v32 = vadd.f32 %v59_v31, %v46_v22  ;;  %v49_v33 = vmul.f32 %v41_v29, %v41_v29  ;;  %v55_v35 = vsel %vm50_vm0, %v45_v27, 0.0  ;;  %v48_v36 = vmul.f32 %v40_v28, %v40_v28  ;;  %s191_s9 = smov [#allocation4]  }
   0xb   :  { %53 = vadd.xlane.f32.xlu0 %v52_v30  ;;  %v56_v38 = vadd.f32 %v55_v35, %v44_v34  ;;  %159 = vrcp.f32 %v189_v40  ;;  %vm86_vm2 = vcmask 7168  }
   0xc   :  { %61 = vadd.xlane.f32.xlu1 %v60_v32  ;;  %v63_v37 = vsel %vm50_vm0, %v49_v33, 0.0  ;;  %v105_v63 = vsel %vm86_vm2, %v78_v50, 0.0  ;;  %v106_v1 = vsel %vm86_vm2, %v79_v53, 0.0  ;;  %v108_v8 = vsel %vm86_vm2, %v80_v52, 0.0 }
   0xd   :  { %v64_v39 = vadd.f32 %v63_v37, %v48_v36  ;;  %v107_v7 = vadd.f32 %v106_v1, %v105_v63  ;;  %v110_v11 = vsel %vm86_vm2, %v81_v57, 0.0 }
   0xf   :  { %v109_v10 = vadd.f32 %v108_v8, %v107_v7 }
  0x11   :  { %v160_v41 = vpop.eup %159  ;;  %v111_v12 = vadd.f32 %v110_v11, %v109_v10 }
  0x12   :  { %v68_v42 = vmul.f32 192.0, %v160_v41  ;;  %vm72_vm1 = vweird.f32 %v160_v41 }
  0x13   :  { %57 = vadd.xlane.f32.xlu0 %v56_v38 }
  0x14   :  { %65 = vadd.xlane.f32.xlu1 %v64_v39  ;;  %v69_v43 = vsub.f32 1.0, %v68_v42 }
  0x16   :  { %v70_v44 = vmul.f32 %v160_v41, %v69_v43 }
  0x18   :  { %v71_v45 = vadd.f32 %v160_v41, %v70_v44 }
  0x1a   :  { %v73_v48 = vsel %vm72_vm1, %v160_v41, %v71_v45 }
  0x7e   :  { %v54_v46 = vpop.xlane.xlu0 %53 }
  0x7f   :  { %v62_v47 = vpop.xlane.xlu1 %61  ;;  %v74_v49 = vmul.f32 %v73_v48, %v54_v46 }
  0x80   :  { %v76_v51 = vmul.f32 %v73_v48, %v62_v47 }
  0x81   :  { %v82_v55 = vmul.f32 %v78_v50, %v74_v49 }
  0x82   :  { %v84_v60 = vmul.f32 %v80_v52, %v76_v51 }
  0x83   :  { %v87_v0 = vsel %vm86_vm2, %v82_v55, 0.0 }
  0x84   :  { %v90_v4 = vsel %vm86_vm2, %v84_v60, 0.0 }
  0x86   :  { %v58_v54 = vpop.xlane.xlu0 %57 }
  0x87   :  { %v75_v56 = vmul.f32 %v73_v48, %v58_v54  ;;  %v66_v58 = vpop.xlane.xlu1 %65 }
  0x88   :  { %v77_v59 = vmul.f32 %v73_v48, %v66_v58 }
  0x89   :  { %v83_v61 = vmul.f32 %v79_v53, %v75_v56 }
  0x8a   :  { %v85_v62 = vmul.f32 %v81_v57, %v77_v59 }
  0x8b   :  { %v88_v2 = vsel %vm86_vm2, %v83_v61, 0.0 }
  0x8c   :  { %v89_v3 = vadd.f32 %v88_v2, %v87_v0  ;;  %v92_v5 = vsel %vm86_vm2, %v85_v62, 0.0 }
  0x8e   :  { %v91_v6 = vadd.f32 %v90_v4, %v89_v3 }
  0x90   :  { %v93_v9 = vadd.f32 %v92_v5, %v91_v6 }
  0x92   :  { %94 = vadd.xlane.f32.xlu2 %v93_v9 }
  0x9a   :  { %112 = vadd.xlane.f32.xlu2 %v111_v12 }
 0x105   :  { %v95_v13 = vpop.xlane.xlu2 %94 }
 0x106   :  { %v96_v14 = vrot.slane %v95_v13, 4 }
 0x108   :  { %v97_v15 = vadd.f32 %v96_v14, %v95_v13 }
 0x10a   :  { %v98_v16 = vrot.slane %v97_v15, 2 }
 0x10c   :  { %v99_v17 = vadd.f32 %v98_v16, %v97_v15 }
 0x10d   :  { %v113_v18 = vpop.xlane.xlu2 %112 }
 0x10e   :  { %v114_v19 = vrot.slane %v113_v18, 4  ;;  %v100_v20 = vrot.slane %v99_v17, 1 }
 0x110   :  { %v115_v21 = vadd.f32 %v114_v19, %v113_v18  ;;  %v101_v22 = vadd.f32 %v100_v20, %v99_v17 }
 0x112   :  { %v116_v23 = vrot.slane %v115_v21, 2  ;;  %152 = vpush %v101_v22 }
 0x114   :  { %v117_v24 = vadd.f32 %v116_v23, %v115_v21 }
 0x116   :  { %v118_v25 = vrot.slane %v117_v24, 1 }
 0x118   :  { %v119_v26 = vadd.f32 %v118_v25, %v117_v24 }
 0x11a   :  { %154 = vpush %v119_v26 }
 0x143   :  { %s153_s29 = spop %152 }
 0x144   :  { %104 = sst [smem:[#allocation2]] %s153_s29 }
 0x145   :  { %131 = dma.smem_to_hbm %s190_s30, 16, %s129_s28, [#allocation3]  }
 0x14b   :  { %s155_s8 = spop %154 }
 0x14c   :  { %122 = sst [smem:[#allocation4]] %s155_s8 }
 0x14d   :  { %140 = dma.smem_to_hbm %s191_s9, 16, %s138_s7, [#allocation5]  }
 0x14e   :  { %185 = dma.done.wait [#allocation3], 16  }
 0x14f   :  { %186 = vsyncadd [#allocation3], 4294967280 }
 0x150   :  { %187 = dma.done.wait [#allocation5], 16  }
 0x151   :  { %188 = vsyncadd [#allocation5], 4294967280 }
 0x152   :  { %149 = sfence }
 0x153   :  { %150 = vsyncpa [#allocation3], 1 }
 0x154   :  { %151 = vsyncpa [#allocation5], 1 }

</bundles_post_ra>
